<compile_context>
chip_gen: v7x
topology: tpu7x:2x2x1
jax: 0.10.0
libtpu: 0.0.40
codegen_flags: <defaults>
</compile_context>

<pallas_src>
import jax
import jax.numpy as jnp
from jax import lax
from jax.experimental import pallas as pl
from jax.experimental.pallas import tpu as pltpu


# ----------------------------------------------------------------------------
# Shapes (toy sizes consistent with the module), layout constants
# ----------------------------------------------------------------------------
N = 2              # batch
H = W = 16         # spatial
C_IN = 4           # input channels
C_MID = 8          # ResNet width
NUM_CLASSES = 10
CP = 128           # lane-dense channel padding for all activations / weights
CLS_P = 128        # lane-dense padding for the logits
HP, WP = H + 2, W + 2     # spatial padding for the 3x3 "same" convs
M = N * H * W             # flattened activation rows fed to the MXU


# ----------------------------------------------------------------------------
# Fused Pallas kernel: whole forward pass, VMEM resident
# ----------------------------------------------------------------------------
def fused_resnet_kernel(xpad_ref,
                        w1_ref, s1_ref, b1_ref,
                        w2a_ref, s2a_ref, b2a_ref,
                        w2b_ref, s2b_ref, b2b_ref,
                        pool_ref, wfc_ref, bfc_ref,
                        out_ref,
                        a1_ref, a2_ref, acc_ref):
    # a1_ref/a2_ref: (N, HP, WP, CP) spatially padded activation scratch.
    # acc_ref:       (M, CP) f32 matmul accumulator, reused by all three convs.

    def conv3x3_bn(src_ref, w_ref, s_ref, b_ref):
        # 3x3 "same" conv as 9 shifted-slice matmuls over the padded buffer,
        # accumulated on the MXU, with folded-BN scale/bias epilogue in f32.
        acc_ref[...] = jnp.zeros_like(acc_ref)
        for t in range(9):
            dh, dw = divmod(t, 3)
            patch = src_ref[:, dh:dh + H, dw:dw + W, :].reshape(M, CP)
            acc_ref[...] += jnp.dot(patch, w_ref[t],
                                    preferred_element_type=jnp.float32)
        return acc_ref[...] * s_ref[...] + b_ref[...]

    # Zero the padded scratch once; the border stays zero => conv zero-padding.
    a1_ref[...] = jnp.zeros_like(a1_ref)
    a2_ref[...] = jnp.zeros_like(a2_ref)

    # Stem: conv1 + BN + ReLU  (input already padded & channel-padded by wrapper)
    y1 = jnp.maximum(conv3x3_bn(xpad_ref, w1_ref, s1_ref, b1_ref), 0.0)
    a1_ref[:, 1:1 + H, 1:1 + W, :] = y1.reshape(N, H, W, CP)

    # BasicBlock conv a: conv + BN + ReLU
    y2 = jnp.maximum(conv3x3_bn(a1_ref, w2a_ref, s2a_ref, b2a_ref), 0.0)
    a2_ref[:, 1:1 + H, 1:1 + W, :] = y2.reshape(N, H, W, CP)

    # BasicBlock conv b: conv + BN + residual(conv1 output) + ReLU
    res = a1_ref[:, 1:1 + H, 1:1 + W, :].reshape(M, CP)
    y3 = jnp.maximum(conv3x3_bn(a2_ref, w2b_ref, s2b_ref, b2b_ref) + res, 0.0)

    # Head: global average pool as an MXU matmul (1/(H*W) folded into pool_ref),
    # then FC into a 128-wide (lane-dense) padded logits slab.
    pooled = jnp.dot(pool_ref[...], y3, preferred_element_type=jnp.float32)  # (N, CP)
    out_ref[...] = (jnp.dot(pooled, wfc_ref[...],
                            preferred_element_type=jnp.float32) + bfc_ref[...])


# ----------------------------------------------------------------------------
# Plain-JAX glue: layout packing + the single pallas_call
# ----------------------------------------------------------------------------
_VMEM = pl.BlockSpec(memory_space=pltpu.MemorySpace.VMEM)


def _pack_conv(w_hwio):
    """(3,3,cin,cout) HWIO -> (9, CP, CP), zero-padded (tap-major, dh then dw)."""
    kh, kw, cin, cout = w_hwio.shape
    wp = jnp.zeros((kh * kw, CP, CP), jnp.float32)
    return wp.at[:, :cin, :cout].set(w_hwio.reshape(kh * kw, cin, cout))


def _pack_bn(scale, bias):
    s = jnp.ones((1, CP), jnp.float32).at[0, :scale.shape[0]].set(scale)
    b = jnp.zeros((1, CP), jnp.float32).at[0, :bias.shape[0]].set(bias)
    return s, b


def quantized_resnet_forward(x_nchw, params):
    # --- self.quant(x): QuantStub is identity before torch.quantization.convert()
    # TODO(synk): post-convert() int8 requantization (scale/zero-point clamping)
    # is not modeled; when added, use int8 MXU on v5e/v6e and bf16/fp8 on v7x.
    x = x_nchw

    # --- self.model_fp32(x): NCHW -> NHWC, pad spatially (+1 per side for the
    # 3x3 "same" convs) and pad channels to a lane-dense 128.
    x = jnp.transpose(x, (0, 2, 3, 1)).astype(jnp.float32)      # (N,H,W,C_IN)
    xpad = jnp.zeros((N, HP, WP, CP), jnp.float32)
    xpad = xpad.at[:, 1:1 + H, 1:1 + W, :C_IN].set(x)

    w1 = _pack_conv(params["w1"]);   s1, b1 = _pack_bn(*params["bn1"])
    w2a = _pack_conv(params["w2a"]); s2a, b2a = _pack_bn(*params["bn2a"])
    w2b = _pack_conv(params["w2b"]); s2b, b2b = _pack_bn(*params["bn2b"])

    # Global-average-pool as a matmul: block-selection matrix with 1/(H*W) folded in.
    pool_mat = jnp.repeat(jnp.eye(N, dtype=jnp.float32), H * W, axis=1) / float(H * W)

    wfc = jnp.zeros((CP, CLS_P), jnp.float32).at[:C_MID, :NUM_CLASSES].set(params["fc_w"])
    bfc = jnp.zeros((1, CLS_P), jnp.float32).at[0, :NUM_CLASSES].set(params["fc_b"])

    args = (xpad, w1, s1, b1, w2a, s2a, b2a, w2b, s2b, b2b, pool_mat, wfc, bfc)
    bytes_accessed = sum(int(a.size) * 4 for a in args) + N * CLS_P * 4
    flops = 2 * 9 * 3 * M * CP * CP + 2 * N * M * CP + 2 * N * CP * CLS_P

    out_padded = pl.pallas_call(
        fused_resnet_kernel,
        out_shape=jax.ShapeDtypeStruct((N, CLS_P), jnp.float32),
        in_specs=[_VMEM] * len(args),
        out_specs=_VMEM,
        scratch_shapes=[
            pltpu.VMEM((N, HP, WP, CP), jnp.float32),   # conv1 out (padded) / residual
            pltpu.VMEM((N, HP, WP, CP), jnp.float32),   # conv2a out (padded)
            pltpu.VMEM((M, CP), jnp.float32),           # matmul accumulator
        ],
        cost_estimate=pl.CostEstimate(flops=flops, transcendentals=0,
                                      bytes_accessed=bytes_accessed),
        compiler_params=pltpu.CompilerParams(vmem_limit_bytes=32 * 1024 * 1024),
    )(*args)

    # --- self.dequant(x): DeQuantStub is identity before convert()
    return out_padded[:, :NUM_CLASSES]


# ----------------------------------------------------------------------------
# Pure-JAX reference (lax.conv) for a correctness check against the fused kernel
# ----------------------------------------------------------------------------
def reference_forward(x_nchw, params):
    x = jnp.transpose(x_nchw, (0, 2, 3, 1)).astype(jnp.float32)

    def conv_bn(x, w, scale, bias, relu, residual=None):
        y = lax.conv_general_dilated(
            x, w, window_strides=(1, 1), padding="SAME",
            dimension_numbers=("NHWC", "HWIO", "NHWC"),
            precision=lax.Precision.HIGHEST)
        y = y * scale + bias
        if residual is not None:
            y = y + residual
        return jnp.maximum(y, 0.0) if relu else y

    x = conv_bn(x, params["w1"], *params["bn1"], relu=True)
    identity = x
    h = conv_bn(x, params["w2a"], *params["bn2a"], relu=True)
    x = conv_bn(h, params["w2b"], *params["bn2b"], relu=True, residual=identity)
    pooled = jnp.mean(x, axis=(1, 2))
    return jnp.dot(pooled, params["fc_w"],
                   precision=lax.Precision.HIGHEST) + params["fc_b"]


# ----------------------------------------------------------------------------
# Parameter construction (deterministic, synthetic) for model_fp32
# ----------------------------------------------------------------------------
def fold_bn(gamma, beta, mean, var, eps=1e-5):
    scale = gamma / jnp.sqrt(var + eps)
    bias = beta - mean * scale
    return scale, bias


def init_params(key, c_in=C_IN, c_mid=C_MID, num_classes=NUM_CLASSES):
    ks = jax.random.split(key, 8)
    p = {}
    # Stem: conv1 (3x3, c_in -> c_mid), bn1
    p["w1"] = 0.1 * jax.random.normal(ks[0], (3, 3, c_in, c_mid), jnp.float32)
    p["bn1"] = fold_bn(
        1.0 + 0.05 * jax.random.normal(ks[1], (c_mid,), jnp.float32),
        0.05 * jax.random.normal(ks[2], (c_mid,), jnp.float32),
        jnp.zeros((c_mid,), jnp.float32),
        jnp.ones((c_mid,), jnp.float32),
    )
    # BasicBlock: conv2a/bn2a, conv2b/bn2b, identity skip
    p["w2a"] = 0.1 * jax.random.normal(ks[3], (3, 3, c_mid, c_mid), jnp.float32)
    p["bn2a"] = fold_bn(jnp.ones((c_mid,), jnp.float32), jnp.zeros((c_mid,), jnp.float32),
                        jnp.zeros((c_mid,), jnp.float32), jnp.ones((c_mid,), jnp.float32))
    p["w2b"] = 0.1 * jax.random.normal(ks[4], (3, 3, c_mid, c_mid), jnp.float32)
    p["bn2b"] = fold_bn(jnp.ones((c_mid,), jnp.float32), jnp.zeros((c_mid,), jnp.float32),
                        jnp.zeros((c_mid,), jnp.float32), jnp.ones((c_mid,), jnp.float32))
    # Head: global avg pool + FC (c_mid -> num_classes)
    p["fc_w"] = 0.1 * jax.random.normal(ks[5], (c_mid, num_classes), jnp.float32)
    p["fc_b"] = 0.01 * jax.random.normal(ks[6], (num_classes,), jnp.float32)
    return p


if __name__ == "__main__":
    key = jax.random.PRNGKey(0)
    k_x, k_p = jax.random.split(key)

    x = jax.random.normal(k_x, (N, C_IN, H, W), jnp.float32)   # NCHW, like PyTorch
    params = init_params(k_p)

    fwd = jax.jit(quantized_resnet_forward)
    out = fwd(x, params)
    jax.block_until_ready(out)

    assert out.shape == (N, NUM_CLASSES) and out.dtype == jnp.float32

    # Correctness check against lax.conv_general_dilated (loose tol: MXU f32 passes).
    ref = reference_forward(x, params)
    err = float(jnp.max(jnp.abs(out - ref)))
    assert err < 2e-2, f"mismatch vs lax.conv reference: max abs err = {err}"

    print("KERNEL_OK")
</pallas_src>

<mosaic_0001>
module attributes {stable_mosaic.version = 11 : i64} {
  func.func @fused_resnet_kernel(%arg0: memref<2x18x18x128xf32, #tpu.memory_space<vmem>>, %arg1: memref<9x128x128xf32, #tpu.memory_space<vmem>>, %arg2: memref<1x128xf32, #tpu.memory_space<vmem>>, %arg3: memref<1x128xf32, #tpu.memory_space<vmem>>, %arg4: memref<9x128x128xf32, #tpu.memory_space<vmem>>, %arg5: memref<1x128xf32, #tpu.memory_space<vmem>>, %arg6: memref<1x128xf32, #tpu.memory_space<vmem>>, %arg7: memref<9x128x128xf32, #tpu.memory_space<vmem>>, %arg8: memref<1x128xf32, #tpu.memory_space<vmem>>, %arg9: memref<1x128xf32, #tpu.memory_space<vmem>>, %arg10: memref<2x512xf32, #tpu.memory_space<vmem>>, %arg11: memref<128x128xf32, #tpu.memory_space<vmem>>, %arg12: memref<1x128xf32, #tpu.memory_space<vmem>>, %arg13: memref<2x128xf32, #tpu.memory_space<vmem>>, %arg14: memref<2x18x18x128xf32, #tpu.memory_space<vmem>>, %arg15: memref<2x18x18x128xf32, #tpu.memory_space<vmem>>, %arg16: memref<512x128xf32, #tpu.memory_space<vmem>>) attributes {dimension_semantics = [], scalar_prefetch = 0 : i64, scratch_operands = 3 : i64, tpu.core_type = #tpu.core_type<tc>} {
    %cst = arith.constant 0.000000e+00 : f32
    %0 = vector.broadcast %cst : f32 to vector<2x18x18x128xf32>
    %c0 = arith.constant 0 : index
    %c0_0 = arith.constant 0 : index
    %c0_1 = arith.constant 0 : index
    %c0_2 = arith.constant 0 : index
    %1 = vector.load %arg14[%c0, %c0_0, %c0_1, %c0_2] : memref<2x18x18x128xf32, #tpu.memory_space<vmem>>, vector<2x18x18x128xf32>
    tpu.vector_store %arg14[%c0, %c0_0, %c0_1, %c0_2], %0 {strides = array<i32>} : memref<2x18x18x128xf32, #tpu.memory_space<vmem>>, vector<2x18x18x128xf32>,
    %cst_3 = arith.constant 0.000000e+00 : f32
    %2 = vector.broadcast %cst_3 : f32 to vector<2x18x18x128xf32>
    %c0_4 = arith.constant 0 : index
    %c0_5 = arith.constant 0 : index
    %c0_6 = arith.constant 0 : index
    %c0_7 = arith.constant 0 : index
    %3 = vector.load %arg15[%c0_4, %c0_5, %c0_6, %c0_7] : memref<2x18x18x128xf32, #tpu.memory_space<vmem>>, vector<2x18x18x128xf32>
    tpu.vector_store %arg15[%c0_4, %c0_5, %c0_6, %c0_7], %2 {strides = array<i32>} : memref<2x18x18x128xf32, #tpu.memory_space<vmem>>, vector<2x18x18x128xf32>,
    %cst_8 = arith.constant 0.000000e+00 : f32
    %4 = vector.broadcast %cst_8 : f32 to vector<512x128xf32>
    %c0_9 = arith.constant 0 : index
    %c0_10 = arith.constant 0 : index
    %5 = vector.load %arg16[%c0_9, %c0_10] : memref<512x128xf32, #tpu.memory_space<vmem>>, vector<512x128xf32>
    tpu.vector_store %arg16[%c0_9, %c0_10], %4 {strides = array<i32>} : memref<512x128xf32, #tpu.memory_space<vmem>>, vector<512x128xf32>,
    %c0_11 = arith.constant 0 : index
    %c0_12 = arith.constant 0 : index
    %c0_13 = arith.constant 0 : index
    %c0_14 = arith.constant 0 : index
    %6 = vector.load %arg0[%c0_11, %c0_12, %c0_13, %c0_14] : memref<2x18x18x128xf32, #tpu.memory_space<vmem>>, vector<2x16x16x128xf32>
    %7 = vector.shape_cast %6 : vector<2x16x16x128xf32> to vector<512x128xf32>
    %c0_15 = arith.constant 0 : index
    %c0_16 = arith.constant 0 : index
    %8 = vector.load %arg16[%c0_15, %c0_16] : memref<512x128xf32, #tpu.memory_space<vmem>>, vector<512x128xf32>
    %c0_17 = arith.constant 0 : index
    %c0_18 = arith.constant 0 : index
    %c0_19 = arith.constant 0 : index
    %9 = vector.load %arg1[%c0_17, %c0_18, %c0_19] : memref<9x128x128xf32, #tpu.memory_space<vmem>>, vector<1x128x128xf32>
    %10 = vector.shape_cast %9 : vector<1x128x128xf32> to vector<128x128xf32>
    %cst_20 = arith.constant dense<0.000000e+00> : vector<512x128xf32>
    %11 = tpu.matmul %7, %10, %cst_20 {dimension_numbers = #tpu.dot_dimension_numbers<[1], [0], [0], [1], [0, 0, 1, 1], [], []>} : vector<512x128xf32>, vector<128x128xf32>, vector<512x128xf32> -> vector<512x128xf32>
    %12 = arith.addf %8, %11 : vector<512x128xf32>
    %c0_21 = arith.constant 0 : index
    %c0_22 = arith.constant 0 : index
    %13 = vector.load %arg16[%c0_21, %c0_22] : memref<512x128xf32, #tpu.memory_space<vmem>>, vector<512x128xf32>
    tpu.vector_store %arg16[%c0_21, %c0_22], %12 {strides = array<i32>} : memref<512x128xf32, #tpu.memory_space<vmem>>, vector<512x128xf32>,
    %c0_23 = arith.constant 0 : index
    %c0_24 = arith.constant 0 : index
    %c1 = arith.constant 1 : index
    %c0_25 = arith.constant 0 : index
    %14 = vector.load %arg0[%c0_23, %c0_24, %c1, %c0_25] : memref<2x18x18x128xf32, #tpu.memory_space<vmem>>, vector<2x16x16x128xf32>
    %15 = vector.shape_cast %14 : vector<2x16x16x128xf32> to vector<512x128xf32>
    %c0_26 = arith.constant 0 : index
    %c0_27 = arith.constant 0 : index
    %16 = vector.load %arg16[%c0_26, %c0_27] : memref<512x128xf32, #tpu.memory_space<vmem>>, vector<512x128xf32>
    %c1_28 = arith.constant 1 : index
    %c0_29 = arith.constant 0 : index
    %c0_30 = arith.constant 0 : index
    %17 = vector.load %arg1[%c1_28, %c0_29, %c0_30] : memref<9x128x128xf32, #tpu.memory_space<vmem>>, vector<1x128x128xf32>
    %18 = vector.shape_cast %17 : vector<1x128x128xf32> to vector<128x128xf32>
    %cst_31 = arith.constant dense<0.000000e+00> : vector<512x128xf32>
    %19 = tpu.matmul %15, %18, %cst_31 {dimension_numbers = #tpu.dot_dimension_numbers<[1], [0], [0], [1], [0, 0, 1, 1], [], []>} : vector<512x128xf32>, vector<128x128xf32>, vector<512x128xf32> -> vector<512x128xf32>
    %20 = arith.addf %16, %19 : vector<512x128xf32>
    %c0_32 = arith.constant 0 : index
    %c0_33 = arith.constant 0 : index
    %21 = vector.load %arg16[%c0_32, %c0_33] : memref<512x128xf32, #tpu.memory_space<vmem>>, vector<512x128xf32>
    tpu.vector_store %arg16[%c0_32, %c0_33], %20 {strides = array<i32>} : memref<512x128xf32, #tpu.memory_space<vmem>>, vector<512x128xf32>,
    %c0_34 = arith.constant 0 : index
    %c0_35 = arith.constant 0 : index
    %c2 = arith.constant 2 : index
    %c0_36 = arith.constant 0 : index
    %22 = vector.load %arg0[%c0_34, %c0_35, %c2, %c0_36] : memref<2x18x18x128xf32, #tpu.memory_space<vmem>>, vector<2x16x16x128xf32>
    %23 = vector.shape_cast %22 : vector<2x16x16x128xf32> to vector<512x128xf32>
    %c0_37 = arith.constant 0 : index
    %c0_38 = arith.constant 0 : index
    %24 = vector.load %arg16[%c0_37, %c0_38] : memref<512x128xf32, #tpu.memory_space<vmem>>, vector<512x128xf32>
    %c2_39 = arith.constant 2 : index
    %c0_40 = arith.constant 0 : index
    %c0_41 = arith.constant 0 : index
    %25 = vector.load %arg1[%c2_39, %c0_40, %c0_41] : memref<9x128x128xf32, #tpu.memory_space<vmem>>, vector<1x128x128xf32>
    %26 = vector.shape_cast %25 : vector<1x128x128xf32> to vector<128x128xf32>
    %cst_42 = arith.constant dense<0.000000e+00> : vector<512x128xf32>
    %27 = tpu.matmul %23, %26, %cst_42 {dimension_numbers = #tpu.dot_dimension_numbers<[1], [0], [0], [1], [0, 0, 1, 1], [], []>} : vector<512x128xf32>, vector<128x128xf32>, vector<512x128xf32> -> vector<512x128xf32>
    %28 = arith.addf %24, %27 : vector<512x128xf32>
    %c0_43 = arith.constant 0 : index
    %c0_44 = arith.constant 0 : index
    %29 = vector.load %arg16[%c0_43, %c0_44] : memref<512x128xf32, #tpu.memory_space<vmem>>, vector<512x128xf32>
    tpu.vector_store %arg16[%c0_43, %c0_44], %28 {strides = array<i32>} : memref<512x128xf32, #tpu.memory_space<vmem>>, vector<512x128xf32>,
    %c0_45 = arith.constant 0 : index
    %c1_46 = arith.constant 1 : index
    %c0_47 = arith.constant 0 : index
    %c0_48 = arith.constant 0 : index
    %30 = vector.load %arg0[%c0_45, %c1_46, %c0_47, %c0_48] : memref<2x18x18x128xf32, #tpu.memory_space<vmem>>, vector<2x16x16x128xf32>
    %31 = vector.shape_cast %30 : vector<2x16x16x128xf32> to vector<512x128xf32>
    %c0_49 = arith.constant 0 : index
    %c0_50 = arith.constant 0 : index
    %32 = vector.load %arg16[%c0_49, %c0_50] : memref<512x128xf32, #tpu.memory_space<vmem>>, vector<512x128xf32>
    %c3 = arith.constant 3 : index
    %c0_51 = arith.constant 0 : index
    %c0_52 = arith.constant 0 : index
    %33 = vector.load %arg1[%c3, %c0_51, %c0_52] : memref<9x128x128xf32, #tpu.memory_space<vmem>>, vector<1x128x128xf32>
    %34 = vector.shape_cast %33 : vector<1x128x128xf32> to vector<128x128xf32>
    %cst_53 = arith.constant dense<0.000000e+00> : vector<512x128xf32>
    %35 = tpu.matmul %31, %34, %cst_53 {dimension_numbers = #tpu.dot_dimension_numbers<[1], [0], [0], [1], [0, 0, 1, 1], [], []>} : vector<512x128xf32>, vector<128x128xf32>, vector<512x128xf32> -> vector<512x128xf32>
    %36 = arith.addf %32, %35 : vector<512x128xf32>
    %c0_54 = arith.constant 0 : index
    %c0_55 = arith.constant 0 : index
    %37 = vector.load %arg16[%c0_54, %c0_55] : memref<512x128xf32, #tpu.memory_space<vmem>>, vector<512x128xf32>
    tpu.vector_store %arg16[%c0_54, %c0_55], %36 {strides = array<i32>} : memref<512x128xf32, #tpu.memory_space<vmem>>, vector<512x128xf32>,
    %c0_56 = arith.constant 0 : index
    %c1_57 = arith.constant 1 : index
    %c1_58 = arith.constant 1 : index
    %c0_59 = arith.constant 0 : index
    %38 = vector.load %arg0[%c0_56, %c1_57, %c1_58, %c0_59] : memref<2x18x18x128xf32, #tpu.memory_space<vmem>>, vector<2x16x16x128xf32>
    %39 = vector.shape_cast %38 : vector<2x16x16x128xf32> to vector<512x128xf32>
    %c0_60 = arith.constant 0 : index
    %c0_61 = arith.constant 0 : index
    %40 = vector.load %arg16[%c0_60, %c0_61] : memref<512x128xf32, #tpu.memory_space<vmem>>, vector<512x128xf32>
    %c4 = arith.constant 4 : index
    %c0_62 = arith.constant 0 : index
    %c0_63 = arith.constant 0 : index
    %41 = vector.load %arg1[%c4, %c0_62, %c0_63] : memref<9x128x128xf32, #tpu.memory_space<vmem>>, vector<1x128x128xf32>
    %42 = vector.shape_cast %41 : vector<1x128x128xf32> to vector<128x128xf32>
    %cst_64 = arith.constant dense<0.000000e+00> : vector<512x128xf32>
    %43 = tpu.matmul %39, %42, %cst_64 {dimension_numbers = #tpu.dot_dimension_numbers<[1], [0], [0], [1], [0, 0, 1, 1], [], []>} : vector<512x128xf32>, vector<128x128xf32>, vector<512x128xf32> -> vector<512x128xf32>
    %44 = arith.addf %40, %43 : vector<512x128xf32>
    %c0_65 = arith.constant 0 : index
    %c0_66 = arith.constant 0 : index
    %45 = vector.load %arg16[%c0_65, %c0_66] : memref<512x128xf32, #tpu.memory_space<vmem>>, vector<512x128xf32>
    tpu.vector_store %arg16[%c0_65, %c0_66], %44 {strides = array<i32>} : memref<512x128xf32, #tpu.memory_space<vmem>>, vector<512x128xf32>,
    %c0_67 = arith.constant 0 : index
    %c1_68 = arith.constant 1 : index
    %c2_69 = arith.constant 2 : index
    %c0_70 = arith.constant 0 : index
    %46 = vector.load %arg0[%c0_67, %c1_68, %c2_69, %c0_70] : memref<2x18x18x128xf32, #tpu.memory_space<vmem>>, vector<2x16x16x128xf32>
    %47 = vector.shape_cast %46 : vector<2x16x16x128xf32> to vector<512x128xf32>
    %c0_71 = arith.constant 0 : index
    %c0_72 = arith.constant 0 : index
    %48 = vector.load %arg16[%c0_71, %c0_72] : memref<512x128xf32, #tpu.memory_space<vmem>>, vector<512x128xf32>
    %c5 = arith.constant 5 : index
    %c0_73 = arith.constant 0 : index
    %c0_74 = arith.constant 0 : index
    %49 = vector.load %arg1[%c5, %c0_73, %c0_74] : memref<9x128x128xf32, #tpu.memory_space<vmem>>, vector<1x128x128xf32>
    %50 = vector.shape_cast %49 : vector<1x128x128xf32> to vector<128x128xf32>
    %cst_75 = arith.constant dense<0.000000e+00> : vector<512x128xf32>
    %51 = tpu.matmul %47, %50, %cst_75 {dimension_numbers = #tpu.dot_dimension_numbers<[1], [0], [0], [1], [0, 0, 1, 1], [], []>} : vector<512x128xf32>, vector<128x128xf32>, vector<512x128xf32> -> vector<512x128xf32>
    %52 = arith.addf %48, %51 : vector<512x128xf32>
    %c0_76 = arith.constant 0 : index
    %c0_77 = arith.constant 0 : index
    %53 = vector.load %arg16[%c0_76, %c0_77] : memref<512x128xf32, #tpu.memory_space<vmem>>, vector<512x128xf32>
    tpu.vector_store %arg16[%c0_76, %c0_77], %52 {strides = array<i32>} : memref<512x128xf32, #tpu.memory_space<vmem>>, vector<512x128xf32>,
    %c0_78 = arith.constant 0 : index
    %c2_79 = arith.constant 2 : index
    %c0_80 = arith.constant 0 : index
    %c0_81 = arith.constant 0 : index
    %54 = vector.load %arg0[%c0_78, %c2_79, %c0_80, %c0_81] : memref<2x18x18x128xf32, #tpu.memory_space<vmem>>, vector<2x16x16x128xf32>
    %55 = vector.shape_cast %54 : vector<2x16x16x128xf32> to vector<512x128xf32>
    %c0_82 = arith.constant 0 : index
    %c0_83 = arith.constant 0 : index
    %56 = vector.load %arg16[%c0_82, %c0_83] : memref<512x128xf32, #tpu.memory_space<vmem>>, vector<512x128xf32>
    %c6 = arith.constant 6 : index
    %c0_84 = arith.constant 0 : index
    %c0_85 = arith.constant 0 : index
    %57 = vector.load %arg1[%c6, %c0_84, %c0_85] : memref<9x128x128xf32, #tpu.memory_space<vmem>>, vector<1x128x128xf32>
    %58 = vector.shape_cast %57 : vector<1x128x128xf32> to vector<128x128xf32>
    %cst_86 = arith.constant dense<0.000000e+00> : vector<512x128xf32>
    %59 = tpu.matmul %55, %58, %cst_86 {dimension_numbers = #tpu.dot_dimension_numbers<[1], [0], [0], [1], [0, 0, 1, 1], [], []>} : vector<512x128xf32>, vector<128x128xf32>, vector<512x128xf32> -> vector<512x128xf32>
    %60 = arith.addf %56, %59 : vector<512x128xf32>
    %c0_87 = arith.constant 0 : index
    %c0_88 = arith.constant 0 : index
    %61 = vector.load %arg16[%c0_87, %c0_88] : memref<512x128xf32, #tpu.memory_space<vmem>>, vector<512x128xf32>
    tpu.vector_store %arg16[%c0_87, %c0_88], %60 {strides = array<i32>} : memref<512x128xf32, #tpu.memory_space<vmem>>, vector<512x128xf32>,
    %c0_89 = arith.constant 0 : index
    %c2_90 = arith.constant 2 : index
    %c1_91 = arith.constant 1 : index
    %c0_92 = arith.constant 0 : index
    %62 = vector.load %arg0[%c0_89, %c2_90, %c1_91, %c0_92] : memref<2x18x18x128xf32, #tpu.memory_space<vmem>>, vector<2x16x16x128xf32>
    %63 = vector.shape_cast %62 : vector<2x16x16x128xf32> to vector<512x128xf32>
    %c0_93 = arith.constant 0 : index
    %c0_94 = arith.constant 0 : index
    %64 = vector.load %arg16[%c0_93, %c0_94] : memref<512x128xf32, #tpu.memory_space<vmem>>, vector<512x128xf32>
    %c7 = arith.constant 7 : index
    %c0_95 = arith.constant 0 : index
    %c0_96 = arith.constant 0 : index
    %65 = vector.load %arg1[%c7, %c0_95, %c0_96] : memref<9x128x128xf32, #tpu.memory_space<vmem>>, vector<1x128x128xf32>
    %66 = vector.shape_cast %65 : vector<1x128x128xf32> to vector<128x128xf32>
    %cst_97 = arith.constant dense<0.000000e+00> : vector<512x128xf32>
    %67 = tpu.matmul %63, %66, %cst_97 {dimension_numbers = #tpu.dot_dimension_numbers<[1], [0], [0], [1], [0, 0, 1, 1], [], []>} : vector<512x128xf32>, vector<128x128xf32>, vector<512x128xf32> -> vector<512x128xf32>
    %68 = arith.addf %64, %67 : vector<512x128xf32>
    %c0_98 = arith.constant 0 : index
    %c0_99 = arith.constant 0 : index
    %69 = vector.load %arg16[%c0_98, %c0_99] : memref<512x128xf32, #tpu.memory_space<vmem>>, vector<512x128xf32>
    tpu.vector_store %arg16[%c0_98, %c0_99], %68 {strides = array<i32>} : memref<512x128xf32, #tpu.memory_space<vmem>>, vector<512x128xf32>,
    %c0_100 = arith.constant 0 : index
    %c2_101 = arith.constant 2 : index
    %c2_102 = arith.constant 2 : index
    %c0_103 = arith.constant 0 : index
    %70 = vector.load %arg0[%c0_100, %c2_101, %c2_102, %c0_103] : memref<2x18x18x128xf32, #tpu.memory_space<vmem>>, vector<2x16x16x128xf32>
    %71 = vector.shape_cast %70 : vector<2x16x16x128xf32> to vector<512x128xf32>
    %c0_104 = arith.constant 0 : index
    %c0_105 = arith.constant 0 : index
    %72 = vector.load %arg16[%c0_104, %c0_105] : memref<512x128xf32, #tpu.memory_space<vmem>>, vector<512x128xf32>
    %c8 = arith.constant 8 : index
    %c0_106 = arith.constant 0 : index
    %c0_107 = arith.constant 0 : index
    %73 = vector.load %arg1[%c8, %c0_106, %c0_107] : memref<9x128x128xf32, #tpu.memory_space<vmem>>, vector<1x128x128xf32>
    %74 = vector.shape_cast %73 : vector<1x128x128xf32> to vector<128x128xf32>
    %cst_108 = arith.constant dense<0.000000e+00> : vector<512x128xf32>
    %75 = tpu.matmul %71, %74, %cst_108 {dimension_numbers = #tpu.dot_dimension_numbers<[1], [0], [0], [1], [0, 0, 1, 1], [], []>} : vector<512x128xf32>, vector<128x128xf32>, vector<512x128xf32> -> vector<512x128xf32>
    %76 = arith.addf %72, %75 : vector<512x128xf32>
    %c0_109 = arith.constant 0 : index
    %c0_110 = arith.constant 0 : index
    %77 = vector.load %arg16[%c0_109, %c0_110] : memref<512x128xf32, #tpu.memory_space<vmem>>, vector<512x128xf32>
    tpu.vector_store %arg16[%c0_109, %c0_110], %76 {strides = array<i32>} : memref<512x128xf32, #tpu.memory_space<vmem>>, vector<512x128xf32>,
    %c0_111 = arith.constant 0 : index
    %c0_112 = arith.constant 0 : index
    %78 = vector.load %arg16[%c0_111, %c0_112] : memref<512x128xf32, #tpu.memory_space<vmem>>, vector<512x128xf32>
    %c0_113 = arith.constant 0 : index
    %c0_114 = arith.constant 0 : index
    %79 = vector.load %arg2[%c0_113, %c0_114] : memref<1x128xf32, #tpu.memory_space<vmem>>, vector<1x128xf32>
    %80 = vector.broadcast %79 : vector<1x128xf32> to vector<512x128xf32>
    %81 = arith.mulf %78, %80 : vector<512x128xf32>
    %c0_115 = arith.constant 0 : index
    %c0_116 = arith.constant 0 : index
    %82 = vector.load %arg3[%c0_115, %c0_116] : memref<1x128xf32, #tpu.memory_space<vmem>>, vector<1x128xf32>
    %83 = vector.broadcast %82 : vector<1x128xf32> to vector<512x128xf32>
    %84 = arith.addf %81, %83 : vector<512x128xf32>
    %cst_117 = arith.constant 0.000000e+00 : f32
    %85 = vector.broadcast %cst_117 : f32 to vector<512x128xf32>
    %86 = arith.maximumf %84, %85 : vector<512x128xf32>
    %87 = vector.shape_cast %86 : vector<512x128xf32> to vector<2x16x16x128xf32>
    %c0_118 = arith.constant 0 : index
    %c1_119 = arith.constant 1 : index
    %c1_120 = arith.constant 1 : index
    %c0_121 = arith.constant 0 : index
    %88 = vector.load %arg14[%c0_118, %c1_119, %c1_120, %c0_121] : memref<2x18x18x128xf32, #tpu.memory_space<vmem>>, vector<2x16x16x128xf32>
    tpu.vector_store %arg14[%c0_118, %c1_119, %c1_120, %c0_121], %87 {strides = array<i32>} : memref<2x18x18x128xf32, #tpu.memory_space<vmem>>, vector<2x16x16x128xf32>,
    %cst_122 = arith.constant 0.000000e+00 : f32
    %89 = vector.broadcast %cst_122 : f32 to vector<512x128xf32>
    %c0_123 = arith.constant 0 : index
    %c0_124 = arith.constant 0 : index
    %90 = vector.load %arg16[%c0_123, %c0_124] : memref<512x128xf32, #tpu.memory_space<vmem>>, vector<512x128xf32>
    tpu.vector_store %arg16[%c0_123, %c0_124], %89 {strides = array<i32>} : memref<512x128xf32, #tpu.memory_space<vmem>>, vector<512x128xf32>,
    %c0_125 = arith.constant 0 : index
    %c0_126 = arith.constant 0 : index
    %c0_127 = arith.constant 0 : index
    %c0_128 = arith.constant 0 : index
    %91 = vector.load %arg14[%c0_125, %c0_126, %c0_127, %c0_128] : memref<2x18x18x128xf32, #tpu.memory_space<vmem>>, vector<2x16x16x128xf32>
    %92 = vector.shape_cast %91 : vector<2x16x16x128xf32> to vector<512x128xf32>
    %c0_129 = arith.constant 0 : index
    %c0_130 = arith.constant 0 : index
    %93 = vector.load %arg16[%c0_129, %c0_130] : memref<512x128xf32, #tpu.memory_space<vmem>>, vector<512x128xf32>
    %c0_131 = arith.constant 0 : index
    %c0_132 = arith.constant 0 : index
    %c0_133 = arith.constant 0 : index
    %94 = vector.load %arg4[%c0_131, %c0_132, %c0_133] : memref<9x128x128xf32, #tpu.memory_space<vmem>>, vector<1x128x128xf32>
    %95 = vector.shape_cast %94 : vector<1x128x128xf32> to vector<128x128xf32>
    %cst_134 = arith.constant dense<0.000000e+00> : vector<512x128xf32>
    %96 = tpu.matmul %92, %95, %cst_134 {dimension_numbers = #tpu.dot_dimension_numbers<[1], [0], [0], [1], [0, 0, 1, 1], [], []>} : vector<512x128xf32>, vector<128x128xf32>, vector<512x128xf32> -> vector<512x128xf32>
    %97 = arith.addf %93, %96 : vector<512x128xf32>
    %c0_135 = arith.constant 0 : index
    %c0_136 = arith.constant 0 : index
    %98 = vector.load %arg16[%c0_135, %c0_136] : memref<512x128xf32, #tpu.memory_space<vmem>>, vector<512x128xf32>
    tpu.vector_store %arg16[%c0_135, %c0_136], %97 {strides = array<i32>} : memref<512x128xf32, #tpu.memory_space<vmem>>, vector<512x128xf32>,
    %c0_137 = arith.constant 0 : index
    %c0_138 = arith.constant 0 : index
    %c1_139 = arith.constant 1 : index
    %c0_140 = arith.constant 0 : index
    %99 = vector.load %arg14[%c0_137, %c0_138, %c1_139, %c0_140] : memref<2x18x18x128xf32, #tpu.memory_space<vmem>>, vector<2x16x16x128xf32>
    %100 = vector.shape_cast %99 : vector<2x16x16x128xf32> to vector<512x128xf32>
    %c0_141 = arith.constant 0 : index
    %c0_142 = arith.constant 0 : index
    %101 = vector.load %arg16[%c0_141, %c0_142] : memref<512x128xf32, #tpu.memory_space<vmem>>, vector<512x128xf32>
    %c1_143 = arith.constant 1 : index
    %c0_144 = arith.constant 0 : index
    %c0_145 = arith.constant 0 : index
    %102 = vector.load %arg4[%c1_143, %c0_144, %c0_145] : memref<9x128x128xf32, #tpu.memory_space<vmem>>, vector<1x128x128xf32>
    %103 = vector.shape_cast %102 : vector<1x128x128xf32> to vector<128x128xf32>
    %cst_146 = arith.constant dense<0.000000e+00> : vector<512x128xf32>
    %104 = tpu.matmul %100, %103, %cst_146 {dimension_numbers = #tpu.dot_dimension_numbers<[1], [0], [0], [1], [0, 0, 1, 1], [], []>} : vector<512x128xf32>, vector<128x128xf32>, vector<512x128xf32> -> vector<512x128xf32>
    %105 = arith.addf %101, %104 : vector<512x128xf32>
    %c0_147 = arith.constant 0 : index
    %c0_148 = arith.constant 0 : index
    %106 = vector.load %arg16[%c0_147, %c0_148] : memref<512x128xf32, #tpu.memory_space<vmem>>, vector<512x128xf32>
    tpu.vector_store %arg16[%c0_147, %c0_148], %105 {strides = array<i32>} : memref<512x128xf32, #tpu.memory_space<vmem>>, vector<512x128xf32>,
    %c0_149 = arith.constant 0 : index
    %c0_150 = arith.constant 0 : index
    %c2_151 = arith.constant 2 : index
    %c0_152 = arith.constant 0 : index
    %107 = vector.load %arg14[%c0_149, %c0_150, %c2_151, %c0_152] : memref<2x18x18x128xf32, #tpu.memory_space<vmem>>, vector<2x16x16x128xf32>
    %108 = vector.shape_cast %107 : vector<2x16x16x128xf32> to vector<512x128xf32>
    %c0_153 = arith.constant 0 : index
    %c0_154 = arith.constant 0 : index
    %109 = vector.load %arg16[%c0_153, %c0_154] : memref<512x128xf32, #tpu.memory_space<vmem>>, vector<512x128xf32>
    %c2_155 = arith.constant 2 : index
    %c0_156 = arith.constant 0 : index
    %c0_157 = arith.constant 0 : index
    %110 = vector.load %arg4[%c2_155, %c0_156, %c0_157] : memref<9x128x128xf32, #tpu.memory_space<vmem>>, vector<1x128x128xf32>
    %111 = vector.shape_cast %110 : vector<1x128x128xf32> to vector<128x128xf32>
    %cst_158 = arith.constant dense<0.000000e+00> : vector<512x128xf32>
    %112 = tpu.matmul %108, %111, %cst_158 {dimension_numbers = #tpu.dot_dimension_numbers<[1], [0], [0], [1], [0, 0, 1, 1], [], []>} : vector<512x128xf32>, vector<128x128xf32>, vector<512x128xf32> -> vector<512x128xf32>
    %113 = arith.addf %109, %112 : vector<512x128xf32>
    %c0_159 = arith.constant 0 : index
    %c0_160 = arith.constant 0 : index
    %114 = vector.load %arg16[%c0_159, %c0_160] : memref<512x128xf32, #tpu.memory_space<vmem>>, vector<512x128xf32>
    tpu.vector_store %arg16[%c0_159, %c0_160], %113 {strides = array<i32>} : memref<512x128xf32, #tpu.memory_space<vmem>>, vector<512x128xf32>,
    %c0_161 = arith.constant 0 : index
    %c1_162 = arith.constant 1 : index
    %c0_163 = arith.constant 0 : index
    %c0_164 = arith.constant 0 : index
    %115 = vector.load %arg14[%c0_161, %c1_162, %c0_163, %c0_164] : memref<2x18x18x128xf32, #tpu.memory_space<vmem>>, vector<2x16x16x128xf32>
    %116 = vector.shape_cast %115 : vector<2x16x16x128xf32> to vector<512x128xf32>
    %c0_165 = arith.constant 0 : index
    %c0_166 = arith.constant 0 : index
    %117 = vector.load %arg16[%c0_165, %c0_166] : memref<512x128xf32, #tpu.memory_space<vmem>>, vector<512x128xf32>
    %c3_167 = arith.constant 3 : index
    %c0_168 = arith.constant 0 : index
    %c0_169 = arith.constant 0 : index
    %118 = vector.load %arg4[%c3_167, %c0_168, %c0_169] : memref<9x128x128xf32, #tpu.memory_space<vmem>>, vector<1x128x128xf32>
    %119 = vector.shape_cast %118 : vector<1x128x128xf32> to vector<128x128xf32>
    %cst_170 = arith.constant dense<0.000000e+00> : vector<512x128xf32>
    %120 = tpu.matmul %116, %119, %cst_170 {dimension_numbers = #tpu.dot_dimension_numbers<[1], [0], [0], [1], [0, 0, 1, 1], [], []>} : vector<512x128xf32>, vector<128x128xf32>, vector<512x128xf32> -> vector<512x128xf32>
    %121 = arith.addf %117, %120 : vector<512x128xf32>
    %c0_171 = arith.constant 0 : index
    %c0_172 = arith.constant 0 : index
    %122 = vector.load %arg16[%c0_171, %c0_172] : memref<512x128xf32, #tpu.memory_space<vmem>>, vector<512x128xf32>
    tpu.vector_store %arg16[%c0_171, %c0_172], %121 {strides = array<i32>} : memref<512x128xf32, #tpu.memory_space<vmem>>, vector<512x128xf32>,
    %c0_173 = arith.constant 0 : index
    %c1_174 = arith.constant 1 : index
    %c1_175 = arith.constant 1 : index
    %c0_176 = arith.constant 0 : index
    %123 = vector.load %arg14[%c0_173, %c1_174, %c1_175, %c0_176] : memref<2x18x18x128xf32, #tpu.memory_space<vmem>>, vector<2x16x16x128xf32>
    %124 = vector.shape_cast %123 : vector<2x16x16x128xf32> to vector<512x128xf32>
    %c0_177 = arith.constant 0 : index
    %c0_178 = arith.constant 0 : index
    %125 = vector.load %arg16[%c0_177, %c0_178] : memref<512x128xf32, #tpu.memory_space<vmem>>, vector<512x128xf32>
    %c4_179 = arith.constant 4 : index
    %c0_180 = arith.constant 0 : index
    %c0_181 = arith.constant 0 : index
    %126 = vector.load %arg4[%c4_179, %c0_180, %c0_181] : memref<9x128x128xf32, #tpu.memory_space<vmem>>, vector<1x128x128xf32>
    %127 = vector.shape_cast %126 : vector<1x128x128xf32> to vector<128x128xf32>
    %cst_182 = arith.constant dense<0.000000e+00> : vector<512x128xf32>
    %128 = tpu.matmul %124, %127, %cst_182 {dimension_numbers = #tpu.dot_dimension_numbers<[1], [0], [0], [1], [0, 0, 1, 1], [], []>} : vector<512x128xf32>, vector<128x128xf32>, vector<512x128xf32> -> vector<512x128xf32>
    %129 = arith.addf %125, %128 : vector<512x128xf32>
    %c0_183 = arith.constant 0 : index
    %c0_184 = arith.constant 0 : index
    %130 = vector.load %arg16[%c0_183, %c0_184] : memref<512x128xf32, #tpu.memory_space<vmem>>, vector<512x128xf32>
    tpu.vector_store %arg16[%c0_183, %c0_184], %129 {strides = array<i32>} : memref<512x128xf32, #tpu.memory_space<vmem>>, vector<512x128xf32>,
    %c0_185 = arith.constant 0 : index
    %c1_186 = arith.constant 1 : index
    %c2_187 = arith.constant 2 : index
    %c0_188 = arith.constant 0 : index
    %131 = vector.load %arg14[%c0_185, %c1_186, %c2_187, %c0_188] : memref<2x18x18x128xf32, #tpu.memory_space<vmem>>, vector<2x16x16x128xf32>
    %132 = vector.shape_cast %131 : vector<2x16x16x128xf32> to vector<512x128xf32>
    %c0_189 = arith.constant 0 : index
    %c0_190 = arith.constant 0 : index
    %133 = vector.load %arg16[%c0_189, %c0_190] : memref<512x128xf32, #tpu.memory_space<vmem>>, vector<512x128xf32>
    %c5_191 = arith.constant 5 : index
    %c0_192 = arith.constant 0 : index
    %c0_193 = arith.constant 0 : index
    %134 = vector.load %arg4[%c5_191, %c0_192, %c0_193] : memref<9x128x128xf32, #tpu.memory_space<vmem>>, vector<1x128x128xf32>
    %135 = vector.shape_cast %134 : vector<1x128x128xf32> to vector<128x128xf32>
    %cst_194 = arith.constant dense<0.000000e+00> : vector<512x128xf32>
    %136 = tpu.matmul %132, %135, %cst_194 {dimension_numbers = #tpu.dot_dimension_numbers<[1], [0], [0], [1], [0, 0, 1, 1], [], []>} : vector<512x128xf32>, vector<128x128xf32>, vector<512x128xf32> -> vector<512x128xf32>
    %137 = arith.addf %133, %136 : vector<512x128xf32>
    %c0_195 = arith.constant 0 : index
    %c0_196 = arith.constant 0 : index
    %138 = vector.load %arg16[%c0_195, %c0_196] : memref<512x128xf32, #tpu.memory_space<vmem>>, vector<512x128xf32>
    tpu.vector_store %arg16[%c0_195, %c0_196], %137 {strides = array<i32>} : memref<512x128xf32, #tpu.memory_space<vmem>>, vector<512x128xf32>,
    %c0_197 = arith.constant 0 : index
    %c2_198 = arith.constant 2 : index
    %c0_199 = arith.constant 0 : index
    %c0_200 = arith.constant 0 : index
    %139 = vector.load %arg14[%c0_197, %c2_198, %c0_199, %c0_200] : memref<2x18x18x128xf32, #tpu.memory_space<vmem>>, vector<2x16x16x128xf32>
    %140 = vector.shape_cast %139 : vector<2x16x16x128xf32> to vector<512x128xf32>
    %c0_201 = arith.constant 0 : index
    %c0_202 = arith.constant 0 : index
    %141 = vector.load %arg16[%c0_201, %c0_202] : memref<512x128xf32, #tpu.memory_space<vmem>>, vector<512x128xf32>
    %c6_203 = arith.constant 6 : index
    %c0_204 = arith.constant 0 : index
    %c0_205 = arith.constant 0 : index
    %142 = vector.load %arg4[%c6_203, %c0_204, %c0_205] : memref<9x128x128xf32, #tpu.memory_space<vmem>>, vector<1x128x128xf32>
    %143 = vector.shape_cast %142 : vector<1x128x128xf32> to vector<128x128xf32>
    %cst_206 = arith.constant dense<0.000000e+00> : vector<512x128xf32>
    %144 = tpu.matmul %140, %143, %cst_206 {dimension_numbers = #tpu.dot_dimension_numbers<[1], [0], [0], [1], [0, 0, 1, 1], [], []>} : vector<512x128xf32>, vector<128x128xf32>, vector<512x128xf32> -> vector<512x128xf32>
    %145 = arith.addf %141, %144 : vector<512x128xf32>
    %c0_207 = arith.constant 0 : index
    %c0_208 = arith.constant 0 : index
    %146 = vector.load %arg16[%c0_207, %c0_208] : memref<512x128xf32, #tpu.memory_space<vmem>>, vector<512x128xf32>
    tpu.vector_store %arg16[%c0_207, %c0_208], %145 {strides = array<i32>} : memref<512x128xf32, #tpu.memory_space<vmem>>, vector<512x128xf32>,
    %c0_209 = arith.constant 0 : index
    %c2_210 = arith.constant 2 : index
    %c1_211 = arith.constant 1 : index
    %c0_212 = arith.constant 0 : index
    %147 = vector.load %arg14[%c0_209, %c2_210, %c1_211, %c0_212] : memref<2x18x18x128xf32, #tpu.memory_space<vmem>>, vector<2x16x16x128xf32>
    %148 = vector.shape_cast %147 : vector<2x16x16x128xf32> to vector<512x128xf32>
    %c0_213 = arith.constant 0 : index
    %c0_214 = arith.constant 0 : index
    %149 = vector.load %arg16[%c0_213, %c0_214] : memref<512x128xf32, #tpu.memory_space<vmem>>, vector<512x128xf32>
    %c7_215 = arith.constant 7 : index
    %c0_216 = arith.constant 0 : index
    %c0_217 = arith.constant 0 : index
    %150 = vector.load %arg4[%c7_215, %c0_216, %c0_217] : memref<9x128x128xf32, #tpu.memory_space<vmem>>, vector<1x128x128xf32>
    %151 = vector.shape_cast %150 : vector<1x128x128xf32> to vector<128x128xf32>
    %cst_218 = arith.constant dense<0.000000e+00> : vector<512x128xf32>
    %152 = tpu.matmul %148, %151, %cst_218 {dimension_numbers = #tpu.dot_dimension_numbers<[1], [0], [0], [1], [0, 0, 1, 1], [], []>} : vector<512x128xf32>, vector<128x128xf32>, vector<512x128xf32> -> vector<512x128xf32>
    %153 = arith.addf %149, %152 : vector<512x128xf32>
    %c0_219 = arith.constant 0 : index
    %c0_220 = arith.constant 0 : index
    %154 = vector.load %arg16[%c0_219, %c0_220] : memref<512x128xf32, #tpu.memory_space<vmem>>, vector<512x128xf32>
    tpu.vector_store %arg16[%c0_219, %c0_220], %153 {strides = array<i32>} : memref<512x128xf32, #tpu.memory_space<vmem>>, vector<512x128xf32>,
    %c0_221 = arith.constant 0 : index
    %c2_222 = arith.constant 2 : index
    %c2_223 = arith.constant 2 : index
    %c0_224 = arith.constant 0 : index
    %155 = vector.load %arg14[%c0_221, %c2_222, %c2_223, %c0_224] : memref<2x18x18x128xf32, #tpu.memory_space<vmem>>, vector<2x16x16x128xf32>
    %156 = vector.shape_cast %155 : vector<2x16x16x128xf32> to vector<512x128xf32>
    %c0_225 = arith.constant 0 : index
    %c0_226 = arith.constant 0 : index
    %157 = vector.load %arg16[%c0_225, %c0_226] : memref<512x128xf32, #tpu.memory_space<vmem>>, vector<512x128xf32>
    %c8_227 = arith.constant 8 : index
    %c0_228 = arith.constant 0 : index
    %c0_229 = arith.constant 0 : index
    %158 = vector.load %arg4[%c8_227, %c0_228, %c0_229] : memref<9x128x128xf32, #tpu.memory_space<vmem>>, vector<1x128x128xf32>
    %159 = vector.shape_cast %158 : vector<1x128x128xf32> to vector<128x128xf32>
    %cst_230 = arith.constant dense<0.000000e+00> : vector<512x128xf32>
    %160 = tpu.matmul %156, %159, %cst_230 {dimension_numbers = #tpu.dot_dimension_numbers<[1], [0], [0], [1], [0, 0, 1, 1], [], []>} : vector<512x128xf32>, vector<128x128xf32>, vector<512x128xf32> -> vector<512x128xf32>
    %161 = arith.addf %157, %160 : vector<512x128xf32>
    %c0_231 = arith.constant 0 : index
    %c0_232 = arith.constant 0 : index
    %162 = vector.load %arg16[%c0_231, %c0_232] : memref<512x128xf32, #tpu.memory_space<vmem>>, vector<512x128xf32>
    tpu.vector_store %arg16[%c0_231, %c0_232], %161 {strides = array<i32>} : memref<512x128xf32, #tpu.memory_space<vmem>>, vector<512x128xf32>,
    %c0_233 = arith.constant 0 : index
    %c0_234 = arith.constant 0 : index
    %163 = vector.load %arg16[%c0_233, %c0_234] : memref<512x128xf32, #tpu.memory_space<vmem>>, vector<512x128xf32>
    %c0_235 = arith.constant 0 : index
    %c0_236 = arith.constant 0 : index
    %164 = vector.load %arg5[%c0_235, %c0_236] : memref<1x128xf32, #tpu.memory_space<vmem>>, vector<1x128xf32>
    %165 = vector.broadcast %164 : vector<1x128xf32> to vector<512x128xf32>
    %166 = arith.mulf %163, %165 : vector<512x128xf32>
    %c0_237 = arith.constant 0 : index
    %c0_238 = arith.constant 0 : index
    %167 = vector.load %arg6[%c0_237, %c0_238] : memref<1x128xf32, #tpu.memory_space<vmem>>, vector<1x128xf32>
    %168 = vector.broadcast %167 : vector<1x128xf32> to vector<512x128xf32>
    %169 = arith.addf %166, %168 : vector<512x128xf32>
    %cst_239 = arith.constant 0.000000e+00 : f32
    %170 = vector.broadcast %cst_239 : f32 to vector<512x128xf32>
    %171 = arith.maximumf %169, %170 : vector<512x128xf32>
    %172 = vector.shape_cast %171 : vector<512x128xf32> to vector<2x16x16x128xf32>
    %c0_240 = arith.constant 0 : index
    %c1_241 = arith.constant 1 : index
    %c1_242 = arith.constant 1 : index
    %c0_243 = arith.constant 0 : index
    %173 = vector.load %arg15[%c0_240, %c1_241, %c1_242, %c0_243] : memref<2x18x18x128xf32, #tpu.memory_space<vmem>>, vector<2x16x16x128xf32>
    tpu.vector_store %arg15[%c0_240, %c1_241, %c1_242, %c0_243], %172 {strides = array<i32>} : memref<2x18x18x128xf32, #tpu.memory_space<vmem>>, vector<2x16x16x128xf32>,
    %c0_244 = arith.constant 0 : index
    %c1_245 = arith.constant 1 : index
    %c1_246 = arith.constant 1 : index
    %c0_247 = arith.constant 0 : index
    %174 = vector.load %arg14[%c0_244, %c1_245, %c1_246, %c0_247] : memref<2x18x18x128xf32, #tpu.memory_space<vmem>>, vector<2x16x16x128xf32>
    %175 = vector.shape_cast %174 : vector<2x16x16x128xf32> to vector<512x128xf32>
    %cst_248 = arith.constant 0.000000e+00 : f32
    %176 = vector.broadcast %cst_248 : f32 to vector<512x128xf32>
    %c0_249 = arith.constant 0 : index
    %c0_250 = arith.constant 0 : index
    %177 = vector.load %arg16[%c0_249, %c0_250] : memref<512x128xf32, #tpu.memory_space<vmem>>, vector<512x128xf32>
    tpu.vector_store %arg16[%c0_249, %c0_250], %176 {strides = array<i32>} : memref<512x128xf32, #tpu.memory_space<vmem>>, vector<512x128xf32>,
    %c0_251 = arith.constant 0 : index
    %c0_252 = arith.constant 0 : index
    %c0_253 = arith.constant 0 : index
    %c0_254 = arith.constant 0 : index
    %178 = vector.load %arg15[%c0_251, %c0_252, %c0_253, %c0_254] : memref<2x18x18x128xf32, #tpu.memory_space<vmem>>, vector<2x16x16x128xf32>
    %179 = vector.shape_cast %178 : vector<2x16x16x128xf32> to vector<512x128xf32>
    %c0_255 = arith.constant 0 : index
    %c0_256 = arith.constant 0 : index
    %180 = vector.load %arg16[%c0_255, %c0_256] : memref<512x128xf32, #tpu.memory_space<vmem>>, vector<512x128xf32>
    %c0_257 = arith.constant 0 : index
    %c0_258 = arith.constant 0 : index
    %c0_259 = arith.constant 0 : index
    %181 = vector.load %arg7[%c0_257, %c0_258, %c0_259] : memref<9x128x128xf32, #tpu.memory_space<vmem>>, vector<1x128x128xf32>
    %182 = vector.shape_cast %181 : vector<1x128x128xf32> to vector<128x128xf32>
    %cst_260 = arith.constant dense<0.000000e+00> : vector<512x128xf32>
    %183 = tpu.matmul %179, %182, %cst_260 {dimension_numbers = #tpu.dot_dimension_numbers<[1], [0], [0], [1], [0, 0, 1, 1], [], []>} : vector<512x128xf32>, vector<128x128xf32>, vector<512x128xf32> -> vector<512x128xf32>
    %184 = arith.addf %180, %183 : vector<512x128xf32>
    %c0_261 = arith.constant 0 : index
    %c0_262 = arith.constant 0 : index
    %185 = vector.load %arg16[%c0_261, %c0_262] : memref<512x128xf32, #tpu.memory_space<vmem>>, vector<512x128xf32>
    tpu.vector_store %arg16[%c0_261, %c0_262], %184 {strides = array<i32>} : memref<512x128xf32, #tpu.memory_space<vmem>>, vector<512x128xf32>,
    %c0_263 = arith.constant 0 : index
    %c0_264 = arith.constant 0 : index
    %c1_265 = arith.constant 1 : index
    %c0_266 = arith.constant 0 : index
    %186 = vector.load %arg15[%c0_263, %c0_264, %c1_265, %c0_266] : memref<2x18x18x128xf32, #tpu.memory_space<vmem>>, vector<2x16x16x128xf32>
    %187 = vector.shape_cast %186 : vector<2x16x16x128xf32> to vector<512x128xf32>
    %c0_267 = arith.constant 0 : index
    %c0_268 = arith.constant 0 : index
    %188 = vector.load %arg16[%c0_267, %c0_268] : memref<512x128xf32, #tpu.memory_space<vmem>>, vector<512x128xf32>
    %c1_269 = arith.constant 1 : index
    %c0_270 = arith.constant 0 : index
    %c0_271 = arith.constant 0 : index
    %189 = vector.load %arg7[%c1_269, %c0_270, %c0_271] : memref<9x128x128xf32, #tpu.memory_space<vmem>>, vector<1x128x128xf32>
    %190 = vector.shape_cast %189 : vector<1x128x128xf32> to vector<128x128xf32>
    %cst_272 = arith.constant dense<0.000000e+00> : vector<512x128xf32>
    %191 = tpu.matmul %187, %190, %cst_272 {dimension_numbers = #tpu.dot_dimension_numbers<[1], [0], [0], [1], [0, 0, 1, 1], [], []>} : vector<512x128xf32>, vector<128x128xf32>, vector<512x128xf32> -> vector<512x128xf32>
    %192 = arith.addf %188, %191 : vector<512x128xf32>
    %c0_273 = arith.constant 0 : index
    %c0_274 = arith.constant 0 : index
    %193 = vector.load %arg16[%c0_273, %c0_274] : memref<512x128xf32, #tpu.memory_space<vmem>>, vector<512x128xf32>
    tpu.vector_store %arg16[%c0_273, %c0_274], %192 {strides = array<i32>} : memref<512x128xf32, #tpu.memory_space<vmem>>, vector<512x128xf32>,
    %c0_275 = arith.constant 0 : index
    %c0_276 = arith.constant 0 : index
    %c2_277 = arith.constant 2 : index
    %c0_278 = arith.constant 0 : index
    %194 = vector.load %arg15[%c0_275, %c0_276, %c2_277, %c0_278] : memref<2x18x18x128xf32, #tpu.memory_space<vmem>>, vector<2x16x16x128xf32>
    %195 = vector.shape_cast %194 : vector<2x16x16x128xf32> to vector<512x128xf32>
    %c0_279 = arith.constant 0 : index
    %c0_280 = arith.constant 0 : index
    %196 = vector.load %arg16[%c0_279, %c0_280] : memref<512x128xf32, #tpu.memory_space<vmem>>, vector<512x128xf32>
    %c2_281 = arith.constant 2 : index
    %c0_282 = arith.constant 0 : index
    %c0_283 = arith.constant 0 : index
    %197 = vector.load %arg7[%c2_281, %c0_282, %c0_283] : memref<9x128x128xf32, #tpu.memory_space<vmem>>, vector<1x128x128xf32>
    %198 = vector.shape_cast %197 : vector<1x128x128xf32> to vector<128x128xf32>
    %cst_284 = arith.constant dense<0.000000e+00> : vector<512x128xf32>
    %199 = tpu.matmul %195, %198, %cst_284 {dimension_numbers = #tpu.dot_dimension_numbers<[1], [0], [0], [1], [0, 0, 1, 1], [], []>} : vector<512x128xf32>, vector<128x128xf32>, vector<512x128xf32> -> vector<512x128xf32>
    %200 = arith.addf %196, %199 : vector<512x128xf32>
    %c0_285 = arith.constant 0 : index
    %c0_286 = arith.constant 0 : index
    %201 = vector.load %arg16[%c0_285, %c0_286] : memref<512x128xf32, #tpu.memory_space<vmem>>, vector<512x128xf32>
    tpu.vector_store %arg16[%c0_285, %c0_286], %200 {strides = array<i32>} : memref<512x128xf32, #tpu.memory_space<vmem>>, vector<512x128xf32>,
    %c0_287 = arith.constant 0 : index
    %c1_288 = arith.constant 1 : index
    %c0_289 = arith.constant 0 : index
    %c0_290 = arith.constant 0 : index
    %202 = vector.load %arg15[%c0_287, %c1_288, %c0_289, %c0_290] : memref<2x18x18x128xf32, #tpu.memory_space<vmem>>, vector<2x16x16x128xf32>
    %203 = vector.shape_cast %202 : vector<2x16x16x128xf32> to vector<512x128xf32>
    %c0_291 = arith.constant 0 : index
    %c0_292 = arith.constant 0 : index
    %204 = vector.load %arg16[%c0_291, %c0_292] : memref<512x128xf32, #tpu.memory_space<vmem>>, vector<512x128xf32>
    %c3_293 = arith.constant 3 : index
    %c0_294 = arith.constant 0 : index
    %c0_295 = arith.constant 0 : index
    %205 = vector.load %arg7[%c3_293, %c0_294, %c0_295] : memref<9x128x128xf32, #tpu.memory_space<vmem>>, vector<1x128x128xf32>
    %206 = vector.shape_cast %205 : vector<1x128x128xf32> to vector<128x128xf32>
    %cst_296 = arith.constant dense<0.000000e+00> : vector<512x128xf32>
    %207 = tpu.matmul %203, %206, %cst_296 {dimension_numbers = #tpu.dot_dimension_numbers<[1], [0], [0], [1], [0, 0, 1, 1], [], []>} : vector<512x128xf32>, vector<128x128xf32>, vector<512x128xf32> -> vector<512x128xf32>
    %208 = arith.addf %204, %207 : vector<512x128xf32>
    %c0_297 = arith.constant 0 : index
    %c0_298 = arith.constant 0 : index
    %209 = vector.load %arg16[%c0_297, %c0_298] : memref<512x128xf32, #tpu.memory_space<vmem>>, vector<512x128xf32>
    tpu.vector_store %arg16[%c0_297, %c0_298], %208 {strides = array<i32>} : memref<512x128xf32, #tpu.memory_space<vmem>>, vector<512x128xf32>,
    %c0_299 = arith.constant 0 : index
    %c1_300 = arith.constant 1 : index
    %c1_301 = arith.constant 1 : index
    %c0_302 = arith.constant 0 : index
    %210 = vector.load %arg15[%c0_299, %c1_300, %c1_301, %c0_302] : memref<2x18x18x128xf32, #tpu.memory_space<vmem>>, vector<2x16x16x128xf32>
    %211 = vector.shape_cast %210 : vector<2x16x16x128xf32> to vector<512x128xf32>
    %c0_303 = arith.constant 0 : index
    %c0_304 = arith.constant 0 : index
    %212 = vector.load %arg16[%c0_303, %c0_304] : memref<512x128xf32, #tpu.memory_space<vmem>>, vector<512x128xf32>
    %c4_305 = arith.constant 4 : index
    %c0_306 = arith.constant 0 : index
    %c0_307 = arith.constant 0 : index
    %213 = vector.load %arg7[%c4_305, %c0_306, %c0_307] : memref<9x128x128xf32, #tpu.memory_space<vmem>>, vector<1x128x128xf32>
    %214 = vector.shape_cast %213 : vector<1x128x128xf32> to vector<128x128xf32>
    %cst_308 = arith.constant dense<0.000000e+00> : vector<512x128xf32>
    %215 = tpu.matmul %211, %214, %cst_308 {dimension_numbers = #tpu.dot_dimension_numbers<[1], [0], [0], [1], [0, 0, 1, 1], [], []>} : vector<512x128xf32>, vector<128x128xf32>, vector<512x128xf32> -> vector<512x128xf32>
    %216 = arith.addf %212, %215 : vector<512x128xf32>
    %c0_309 = arith.constant 0 : index
    %c0_310 = arith.constant 0 : index
    %217 = vector.load %arg16[%c0_309, %c0_310] : memref<512x128xf32, #tpu.memory_space<vmem>>, vector<512x128xf32>
    tpu.vector_store %arg16[%c0_309, %c0_310], %216 {strides = array<i32>} : memref<512x128xf32, #tpu.memory_space<vmem>>, vector<512x128xf32>,
    %c0_311 = arith.constant 0 : index
    %c1_312 = arith.constant 1 : index
    %c2_313 = arith.constant 2 : index
    %c0_314 = arith.constant 0 : index
    %218 = vector.load %arg15[%c0_311, %c1_312, %c2_313, %c0_314] : memref<2x18x18x128xf32, #tpu.memory_space<vmem>>, vector<2x16x16x128xf32>
    %219 = vector.shape_cast %218 : vector<2x16x16x128xf32> to vector<512x128xf32>
    %c0_315 = arith.constant 0 : index
    %c0_316 = arith.constant 0 : index
    %220 = vector.load %arg16[%c0_315, %c0_316] : memref<512x128xf32, #tpu.memory_space<vmem>>, vector<512x128xf32>
    %c5_317 = arith.constant 5 : index
    %c0_318 = arith.constant 0 : index
    %c0_319 = arith.constant 0 : index
    %221 = vector.load %arg7[%c5_317, %c0_318, %c0_319] : memref<9x128x128xf32, #tpu.memory_space<vmem>>, vector<1x128x128xf32>
    %222 = vector.shape_cast %221 : vector<1x128x128xf32> to vector<128x128xf32>
    %cst_320 = arith.constant dense<0.000000e+00> : vector<512x128xf32>
    %223 = tpu.matmul %219, %222, %cst_320 {dimension_numbers = #tpu.dot_dimension_numbers<[1], [0], [0], [1], [0, 0, 1, 1], [], []>} : vector<512x128xf32>, vector<128x128xf32>, vector<512x128xf32> -> vector<512x128xf32>
    %224 = arith.addf %220, %223 : vector<512x128xf32>
    %c0_321 = arith.constant 0 : index
    %c0_322 = arith.constant 0 : index
    %225 = vector.load %arg16[%c0_321, %c0_322] : memref<512x128xf32, #tpu.memory_space<vmem>>, vector<512x128xf32>
    tpu.vector_store %arg16[%c0_321, %c0_322], %224 {strides = array<i32>} : memref<512x128xf32, #tpu.memory_space<vmem>>, vector<512x128xf32>,
    %c0_323 = arith.constant 0 : index
    %c2_324 = arith.constant 2 : index
    %c0_325 = arith.constant 0 : index
    %c0_326 = arith.constant 0 : index
    %226 = vector.load %arg15[%c0_323, %c2_324, %c0_325, %c0_326] : memref<2x18x18x128xf32, #tpu.memory_space<vmem>>, vector<2x16x16x128xf32>
    %227 = vector.shape_cast %226 : vector<2x16x16x128xf32> to vector<512x128xf32>
    %c0_327 = arith.constant 0 : index
    %c0_328 = arith.constant 0 : index
    %228 = vector.load %arg16[%c0_327, %c0_328] : memref<512x128xf32, #tpu.memory_space<vmem>>, vector<512x128xf32>
    %c6_329 = arith.constant 6 : index
    %c0_330 = arith.constant 0 : index
    %c0_331 = arith.constant 0 : index
    %229 = vector.load %arg7[%c6_329, %c0_330, %c0_331] : memref<9x128x128xf32, #tpu.memory_space<vmem>>, vector<1x128x128xf32>
    %230 = vector.shape_cast %229 : vector<1x128x128xf32> to vector<128x128xf32>
    %cst_332 = arith.constant dense<0.000000e+00> : vector<512x128xf32>
    %231 = tpu.matmul %227, %230, %cst_332 {dimension_numbers = #tpu.dot_dimension_numbers<[1], [0], [0], [1], [0, 0, 1, 1], [], []>} : vector<512x128xf32>, vector<128x128xf32>, vector<512x128xf32> -> vector<512x128xf32>
    %232 = arith.addf %228, %231 : vector<512x128xf32>
    %c0_333 = arith.constant 0 : index
    %c0_334 = arith.constant 0 : index
    %233 = vector.load %arg16[%c0_333, %c0_334] : memref<512x128xf32, #tpu.memory_space<vmem>>, vector<512x128xf32>
    tpu.vector_store %arg16[%c0_333, %c0_334], %232 {strides = array<i32>} : memref<512x128xf32, #tpu.memory_space<vmem>>, vector<512x128xf32>,
    %c0_335 = arith.constant 0 : index
    %c2_336 = arith.constant 2 : index
    %c1_337 = arith.constant 1 : index
    %c0_338 = arith.constant 0 : index
    %234 = vector.load %arg15[%c0_335, %c2_336, %c1_337, %c0_338] : memref<2x18x18x128xf32, #tpu.memory_space<vmem>>, vector<2x16x16x128xf32>
    %235 = vector.shape_cast %234 : vector<2x16x16x128xf32> to vector<512x128xf32>
    %c0_339 = arith.constant 0 : index
    %c0_340 = arith.constant 0 : index
    %236 = vector.load %arg16[%c0_339, %c0_340] : memref<512x128xf32, #tpu.memory_space<vmem>>, vector<512x128xf32>
    %c7_341 = arith.constant 7 : index
    %c0_342 = arith.constant 0 : index
    %c0_343 = arith.constant 0 : index
    %237 = vector.load %arg7[%c7_341, %c0_342, %c0_343] : memref<9x128x128xf32, #tpu.memory_space<vmem>>, vector<1x128x128xf32>
    %238 = vector.shape_cast %237 : vector<1x128x128xf32> to vector<128x128xf32>
    %cst_344 = arith.constant dense<0.000000e+00> : vector<512x128xf32>
    %239 = tpu.matmul %235, %238, %cst_344 {dimension_numbers = #tpu.dot_dimension_numbers<[1], [0], [0], [1], [0, 0, 1, 1], [], []>} : vector<512x128xf32>, vector<128x128xf32>, vector<512x128xf32> -> vector<512x128xf32>
    %240 = arith.addf %236, %239 : vector<512x128xf32>
    %c0_345 = arith.constant 0 : index
    %c0_346 = arith.constant 0 : index
    %241 = vector.load %arg16[%c0_345, %c0_346] : memref<512x128xf32, #tpu.memory_space<vmem>>, vector<512x128xf32>
    tpu.vector_store %arg16[%c0_345, %c0_346], %240 {strides = array<i32>} : memref<512x128xf32, #tpu.memory_space<vmem>>, vector<512x128xf32>,
    %c0_347 = arith.constant 0 : index
    %c2_348 = arith.constant 2 : index
    %c2_349 = arith.constant 2 : index
    %c0_350 = arith.constant 0 : index
    %242 = vector.load %arg15[%c0_347, %c2_348, %c2_349, %c0_350] : memref<2x18x18x128xf32, #tpu.memory_space<vmem>>, vector<2x16x16x128xf32>
    %243 = vector.shape_cast %242 : vector<2x16x16x128xf32> to vector<512x128xf32>
    %c0_351 = arith.constant 0 : index
    %c0_352 = arith.constant 0 : index
    %244 = vector.load %arg16[%c0_351, %c0_352] : memref<512x128xf32, #tpu.memory_space<vmem>>, vector<512x128xf32>
    %c8_353 = arith.constant 8 : index
    %c0_354 = arith.constant 0 : index
    %c0_355 = arith.constant 0 : index
    %245 = vector.load %arg7[%c8_353, %c0_354, %c0_355] : memref<9x128x128xf32, #tpu.memory_space<vmem>>, vector<1x128x128xf32>
    %246 = vector.shape_cast %245 : vector<1x128x128xf32> to vector<128x128xf32>
    %cst_356 = arith.constant dense<0.000000e+00> : vector<512x128xf32>
    %247 = tpu.matmul %243, %246, %cst_356 {dimension_numbers = #tpu.dot_dimension_numbers<[1], [0], [0], [1], [0, 0, 1, 1], [], []>} : vector<512x128xf32>, vector<128x128xf32>, vector<512x128xf32> -> vector<512x128xf32>
    %248 = arith.addf %244, %247 : vector<512x128xf32>
    %c0_357 = arith.constant 0 : index
    %c0_358 = arith.constant 0 : index
    %249 = vector.load %arg16[%c0_357, %c0_358] : memref<512x128xf32, #tpu.memory_space<vmem>>, vector<512x128xf32>
    tpu.vector_store %arg16[%c0_357, %c0_358], %248 {strides = array<i32>} : memref<512x128xf32, #tpu.memory_space<vmem>>, vector<512x128xf32>,
    %c0_359 = arith.constant 0 : index
    %c0_360 = arith.constant 0 : index
    %250 = vector.load %arg16[%c0_359, %c0_360] : memref<512x128xf32, #tpu.memory_space<vmem>>, vector<512x128xf32>
    %c0_361 = arith.constant 0 : index
    %c0_362 = arith.constant 0 : index
    %251 = vector.load %arg8[%c0_361, %c0_362] : memref<1x128xf32, #tpu.memory_space<vmem>>, vector<1x128xf32>
    %252 = vector.broadcast %251 : vector<1x128xf32> to vector<512x128xf32>
    %253 = arith.mulf %250, %252 : vector<512x128xf32>
    %c0_363 = arith.constant 0 : index
    %c0_364 = arith.constant 0 : index
    %254 = vector.load %arg9[%c0_363, %c0_364] : memref<1x128xf32, #tpu.memory_space<vmem>>, vector<1x128xf32>
    %255 = vector.broadcast %254 : vector<1x128xf32> to vector<512x128xf32>
    %256 = arith.addf %253, %255 : vector<512x128xf32>
    %257 = arith.addf %256, %175 : vector<512x128xf32>
    %cst_365 = arith.constant 0.000000e+00 : f32
    %258 = vector.broadcast %cst_365 : f32 to vector<512x128xf32>
    %259 = arith.maximumf %257, %258 : vector<512x128xf32>
    %c0_366 = arith.constant 0 : index
    %c0_367 = arith.constant 0 : index
    %260 = vector.load %arg10[%c0_366, %c0_367] : memref<2x512xf32, #tpu.memory_space<vmem>>, vector<2x512xf32>
    %cst_368 = arith.constant dense<0.000000e+00> : vector<2x128xf32>
    %261 = tpu.matmul %260, %259, %cst_368 {dimension_numbers = #tpu.dot_dimension_numbers<[1], [0], [0], [1], [0, 0, 1, 1], [], []>} : vector<2x512xf32>, vector<512x128xf32>, vector<2x128xf32> -> vector<2x128xf32>
    %c0_369 = arith.constant 0 : index
    %c0_370 = arith.constant 0 : index
    %262 = vector.load %arg11[%c0_369, %c0_370] : memref<128x128xf32, #tpu.memory_space<vmem>>, vector<128x128xf32>
    %cst_371 = arith.constant dense<0.000000e+00> : vector<2x128xf32>
    %263 = tpu.matmul %261, %262, %cst_371 {dimension_numbers = #tpu.dot_dimension_numbers<[1], [0], [0], [1], [0, 0, 1, 1], [], []>} : vector<2x128xf32>, vector<128x128xf32>, vector<2x128xf32> -> vector<2x128xf32>
    %c0_372 = arith.constant 0 : index
    %c0_373 = arith.constant 0 : index
    %264 = vector.load %arg12[%c0_372, %c0_373] : memref<1x128xf32, #tpu.memory_space<vmem>>, vector<1x128xf32>
    %265 = vector.broadcast %264 : vector<1x128xf32> to vector<2x128xf32>
    %266 = arith.addf %263, %265 : vector<2x128xf32>
    %c0_374 = arith.constant 0 : index
    %c0_375 = arith.constant 0 : index
    %267 = vector.load %arg13[%c0_374, %c0_375] : memref<2x128xf32, #tpu.memory_space<vmem>>, vector<2x128xf32>
    tpu.vector_store %arg13[%c0_374, %c0_375], %266 {strides = array<i32>} : memref<2x128xf32, #tpu.memory_space<vmem>>, vector<2x128xf32>,
    return
  }
}

</mosaic_0001>

<bundles_post_ra>
// kernel: quantized_resnet_forward.1
= control target key start
LH: loop header
LB: loop body
LE: loop exit
PB: predicated region body
PF: predicated region fallthrough
CT: control target
= control target key end

     0   :  { %s35142_s0 = inlined_call_operand.vmem [shape: f32[2,18,18,128], index: 0, kind: input, shape index: {}]   ;;  %s35143_s1 = inlined_call_operand.vmem [shape: f32[9,128,128], index: 1, kind: input, shape index: {}]   ;;  %s35144_s2 = inlined_call_operand.vmem [shape: f32[1,128], index: 2, kind: input, shape index: {}]   ;;  %s35145_s3 = inlined_call_operand.vmem [shape: f32[1,128], index: 3, kind: input, shape index: {}]   ;;  %s35146_s4 = inlined_call_operand.vmem [shape: f32[9,128,128], index: 4, kind: input, shape index: {}]   ;;  %s35147_s5 = inlined_call_operand.vmem [shape: f32[1,128], index: 5, kind: input, shape index: {}]   ;;  %s35148_s6 = inlined_call_operand.vmem [shape: f32[1,128], index: 6, kind: input, shape index: {}]   ;;  %s35149_s7 = inlined_call_operand.vmem [shape: f32[9,128,128], index: 7, kind: input, shape index: {}]   ;;  %s35150_s8 = inlined_call_operand.vmem [shape: f32[1,128], index: 8, kind: input, shape index: {}]   ;;  %s35151_s9 = inlined_call_operand.vmem [shape: f32[1,128], index: 9, kind: input, shape index: {}]   ;;  %s35152_s10 = inlined_call_operand.vmem [shape: f32[2,512], index: 10, kind: input, shape index: {}]   ;;  %s35153_s11 = inlined_call_operand.vmem [shape: f32[128,128], index: 11, kind: input, shape index: {}]   ;;  %s35154_s12 = inlined_call_operand.vmem [shape: f32[1,128], index: 12, kind: input, shape index: {}]   ;;  %s35155_s13 = inlined_call_operand.hbm [shape: f32[2,128], index: 13, kind: output, shape index: {}]  }
   0x1   :  { %v453_v0 = vld [vmem:[%s35143_s1] sm:$0xff]  ;;  %v454_v1 = vld [vmem:[%s35143_s1 + $0x8] sm:$0xff]  ;;  %v455_v5 = vld [vmem:[%s35143_s1 + $0x10] sm:$0xff] }
   0x2   :  { %v19735_v2 = vld [vmem:[%s35143_s1 + $0x200] sm:$0xff]  ;;  %v26072_v3 = vpack.c.bf16 %v454_v1, %v453_v0  ;;  %v19736_v4 = vld [vmem:[%s35143_s1 + $0x208] sm:$0xff]  ;;  %v456_v6 = vld [vmem:[%s35143_s1 + $0x18] sm:$0xff] }
   0x3   :  { %v26200_v7 = vpack.c.bf16 %v19736_v4, %v19735_v2  ;;  %v26076_v8 = vpack.c.bf16 %v456_v6, %v455_v5  ;;  %v19737_v9 = vld [vmem:[%s35143_s1 + $0x210] sm:$0xff]  ;;  %v19738_v10 = vld [vmem:[%s35143_s1 + $0x218] sm:$0xff]  ;;  %v457_v11 = vld [vmem:[%s35143_s1 + $0x20] sm:$0xff] }
   0x4   :  { %26073 = vmatprep.subr.bf16.mxu1 %v26072_v3  ;;  %v26204_v12 = vpack.c.bf16 %v19738_v10, %v19737_v9  ;;  %v458_v13 = vld [vmem:[%s35143_s1 + $0x28] sm:$0xff]  ;;  %v19739_v14 = vld [vmem:[%s35143_s1 + $0x220] sm:$0xff]  ;;  %v459_v18 = vld [vmem:[%s35143_s1 + $0x30] sm:$0xff] }
   0x5   :  { %v19740_v15 = vld [vmem:[%s35143_s1 + $0x228] sm:$0xff]  ;;  %26201 = vmatprep.subr.bf16.mxu0 %v26200_v7  ;;  %26075 = vmatpush3.bf16.msra.mxu1 %v26072_v3  ;;  %v26080_v16 = vpack.c.bf16 %v458_v13, %v457_v11  ;;  %v460_v19 = vld [vmem:[%s35143_s1 + $0x38] sm:$0xff]  ;;  %v19741_v20 = vld [vmem:[%s35143_s1 + $0x230] sm:$0xff] }
   0x6   :  { %26203 = vmatpush3.bf16.msra.mxu0 %v26200_v7  ;;  %26077 = vmatprep.subr.bf16.mxu1 %v26076_v8  ;;  %v26208_v17 = vpack.c.bf16 %v19740_v15, %v19739_v14  ;;  %v19742_v21 = vld [vmem:[%s35143_s1 + $0x238] sm:$0xff]  ;;  %v26084_v22 = vpack.c.bf16 %v460_v19, %v459_v18  ;;  %v461_v24 = vld [vmem:[%s35143_s1 + $0x40] sm:$0xff]  ;;  %v462_v25 = vld [vmem:[%s35143_s1 + $0x48] sm:$0xff] }
   0x7   :  { %26205 = vmatprep.subr.bf16.mxu0 %v26204_v12  ;;  %v26212_v23 = vpack.c.bf16 %v19742_v21, %v19741_v20  ;;  %v325_v26 = vld [vmem:[%s35142_s0] sm:$0xff]  ;;  %v19744_v28 = vld [vmem:[%s35143_s1 + $0x248] sm:$0xff]  ;;  %v26088_v30 = vpack.c.bf16 %v462_v25, %v461_v24  ;;  %v463_v32 = vld [vmem:[%s35143_s1 + $0x50] sm:$0xff] }
   0x8   :  { %v19743_v27 = vld [vmem:[%s35143_s1 + $0x240] sm:$0xff]  ;;  %22613 = vmatprep.mubr.f32.mxu1 %v325_v26  ;;  %v464_v33 = vld [vmem:[%s35143_s1 + $0x58] sm:$0xff]  ;;  %v19745_v34 = vld [vmem:[%s35143_s1 + $0x250] sm:$0xff] }
   0x9   :  { %26079 = vmatpush3.bf16.msra.mxu1 %v26076_v8  ;;  %v28736_v29 = vld [vmem:[%s35142_s0 + $0x19] sm:$0xff]  ;;  %v26216_v31 = vpack.c.bf16 %v19744_v28, %v19743_v27  ;;  %v26092_v36 = vpack.c.bf16 %v464_v33, %v463_v32  ;;  %v466_v39 = vld [vmem:[%s35143_s1 + $0x68] sm:$0xff]  ;;  %v467_v44 = vld [vmem:[%s35143_s1 + $0x70] sm:$0xff] }
   0xa   :  { %26207 = vmatpush3.bf16.msra.mxu0 %v26204_v12  ;;  %26081 = vmatprep.subr.bf16.mxu1 %v26080_v16  ;;  %v19746_v35 = vld [vmem:[%s35143_s1 + $0x258] sm:$0xff]  ;;  %v465_v38 = vld [vmem:[%s35143_s1 + $0x60] sm:$0xff]  ;;  %v19748_v41 = vld [vmem:[%s35143_s1 + $0x268] sm:$0xff] }
   0xb   :  { %26209 = vmatprep.subr.bf16.mxu0 %v26208_v17  ;;  %23125 = vmatprep.mubr.f32.mxu0 %v28736_v29  ;;  %v26220_v37 = vpack.c.bf16 %v19746_v35, %v19745_v34  ;;  %v19747_v40 = vld [vmem:[%s35143_s1 + $0x260] sm:$0xff]  ;;  %v26096_v42 = vpack.c.bf16 %v466_v39, %v465_v38  ;;  %v468_v45 = vld [vmem:[%s35143_s1 + $0x78] sm:$0xff]  ;;  %v19749_v46 = vld [vmem:[%s35143_s1 + $0x270] sm:$0xff] }
   0xc   :  { %v26224_v43 = vpack.c.bf16 %v19748_v41, %v19747_v40  ;;  %v19750_v47 = vld [vmem:[%s35143_s1 + $0x278] sm:$0xff]  ;;  %v26100_v48 = vpack.c.bf16 %v468_v45, %v467_v44  ;;  %v326_v50 = vld [vmem:[%s35142_s0 + $0x8] sm:$0xff]  ;;  %v19815_v51 = vld [vmem:[%s35143_s1 + $0x280] sm:$0xff] }
   0xd   :  { %26083 = vmatpush3.bf16.msra.mxu1 %v26080_v16  ;;  %v26228_v49 = vpack.c.bf16 %v19750_v47, %v19749_v46  ;;  %v28784_v52 = vld [vmem:[%s35142_s0 + $0x21] sm:$0xff]  ;;  %v327_v53 = vld [vmem:[%s35142_s0 + $0x18] sm:$0xff]  ;;  %v329_v59 = vld [vmem:[%s35142_s0 + $0x30] sm:$0xff] }
   0xe   :  { %26211 = vmatpush3.bf16.msra.mxu0 %v26208_v17  ;;  %26085 = vmatprep.subr.bf16.mxu1 %v26084_v22  ;;  %v19816_v54 = vld [vmem:[%s35143_s1 + $0x288] sm:$0xff]  ;;  %v28795_v55 = vld [vmem:[%s35142_s0 + $0x31] sm:$0xff]  ;;  %v328_v57 = vld [vmem:[%s35142_s0 + $0x20] sm:$0xff] }
   0xf   :  { %26213 = vmatprep.subr.bf16.mxu0 %v26212_v23  ;;  %v26232_v56 = vpack.c.bf16 %v19816_v54, %v19815_v51  ;;  %v28805_v58 = vld [vmem:[%s35142_s0 + $0x39] sm:$0xff]  ;;  %v28813_v60 = vld [vmem:[%s35142_s0 + $0x49] sm:$0xff]  ;;  %v28829_v1 = vld [vmem:[%s35142_s0 + $0x51] sm:$0xff] }
  0x10   :  { %v19817_v61 = vld [vmem:[%s35143_s1 + $0x290] sm:$0xff]  ;;  %v19818_v62 = vld [vmem:[%s35143_s1 + $0x298] sm:$0xff]  ;;  %v331_v2 = vld [vmem:[%s35142_s0 + $0x48] sm:$0xff] }
  0x11   :  { %26087 = vmatpush3.bf16.msra.mxu1 %v26084_v22  ;;  %v330_v63 = vld [vmem:[%s35142_s0 + $0x38] sm:$0xff]  ;;  %v26236_v0 = vpack.c.bf16 %v19818_v62, %v19817_v61  ;;  %v28837_v3 = vld [vmem:[%s35142_s0 + $0x61] sm:$0xff]  ;;  %v332_v4 = vld [vmem:[%s35142_s0 + $0x50] sm:$0xff] }
  0x12   :  { %26215 = vmatpush3.bf16.msra.mxu0 %v26212_v23  ;;  %26089 = vmatprep.subr.bf16.mxu1 %v26088_v30  ;;  %v28846_v5 = vld [vmem:[%s35142_s0 + $0x69] sm:$0xff]  ;;  %v19819_v6 = vld [vmem:[%s35143_s1 + $0x2a0] sm:$0xff]  ;;  %v19562_v16 = vld [vmem:[%s35143_s1 + $0x98] sm:$0xff] }
  0x13   :  { %26217 = vmatprep.subr.bf16.mxu0 %v26216_v31  ;;  %v333_v7 = vld [vmem:[%s35142_s0 + $0x60] sm:$0xff]  ;;  %v19820_v8 = vld [vmem:[%s35143_s1 + $0x2a8] sm:$0xff]  ;;  %v19561_v14 = vld [vmem:[%s35143_s1 + $0x90] sm:$0xff] }
  0x14   :  { %v19559_v9 = vld [vmem:[%s35143_s1 + $0x80] sm:$0xff]  ;;  %v26240_v11 = vpack.c.bf16 %v19820_v8, %v19819_v6  ;;  %v19560_v12 = vld [vmem:[%s35143_s1 + $0x88] sm:$0xff]  ;;  %v335_v18 = vld [vmem:[%s35142_s0 + $0x78] sm:$0xff]  ;;  %v26108_v20 = vpack.c.bf16 %v19562_v16, %v19561_v14 }
  0x15   :  { %26091 = vmatpush3.bf16.msra.mxu1 %v26088_v30  ;;  %v28864_v10 = vld [vmem:[%s35142_s0 + $0x79] sm:$0xff]  ;;  %v26104_v13 = vpack.c.bf16 %v19560_v12, %v19559_v9  ;;  %v334_v15 = vld [vmem:[%s35142_s0 + $0x68] sm:$0xff]  ;;  %v28891_v19 = vld [vmem:[%s35142_s0 + $0x91] sm:$0xff] }
  0x16   :  { %26219 = vmatpush3.bf16.msra.mxu0 %v26216_v31  ;;  %26093 = vmatprep.subr.bf16.mxu1 %v26092_v36  ;;  %v28883_v17 = vld [vmem:[%s35142_s0 + $0x81] sm:$0xff]  ;;  %v19821_v24 = vld [vmem:[%s35143_s1 + $0x2b0] sm:$0xff]  ;;  %v28910_v25 = vld [vmem:[%s35142_s0 + $0x99] sm:$0xff] }
  0x17   :  { %26221 = vmatprep.subr.bf16.mxu0 %v26220_v37  ;;  %v19563_v21 = vld [vmem:[%s35143_s1 + $0xa0] sm:$0xff]  ;;  %v19564_v22 = vld [vmem:[%s35143_s1 + $0xa8] sm:$0xff]  ;;  %v337_v26 = vld [vmem:[%s35142_s0 + $0x90] sm:$0xff] }
  0x18   :  { %v336_v23 = vld [vmem:[%s35142_s0 + $0x80] sm:$0xff]  ;;  %v19822_v27 = vld [vmem:[%s35143_s1 + $0x2b8] sm:$0xff]  ;;  %v28921_v28 = vld [vmem:[%s35142_s0 + $0xa9] sm:$0xff]  ;;  %v26112_v30 = vpack.c.bf16 %v19564_v22, %v19563_v21 }
  0x19   :  { %26095 = vmatpush3.bf16.msra.mxu1 %v26092_v36  ;;  %v19565_v31 = vld [vmem:[%s35143_s1 + $0xb0] sm:$0xff]  ;;  %v26244_v32 = vpack.c.bf16 %v19822_v27, %v19821_v24  ;;  %v19566_v33 = vld [vmem:[%s35143_s1 + $0xb8] sm:$0xff]  ;;  %v19823_v34 = vld [vmem:[%s35143_s1 + $0x2c0] sm:$0xff] }
  0x1a   :  { %26223 = vmatpush3.bf16.msra.mxu0 %v26220_v37  ;;  %26097 = vmatprep.subr.bf16.mxu1 %v26096_v42  ;;  %v19824_v35 = vld [vmem:[%s35143_s1 + $0x2c8] sm:$0xff]  ;;  %v338_v36 = vld [vmem:[%s35142_s0 + $0x98] sm:$0xff]  ;;  %v26116_v40 = vpack.c.bf16 %v19566_v33, %v19565_v31  ;;  %v19567_v41 = vld [vmem:[%s35143_s1 + $0xc0] sm:$0xff] }
  0x1b   :  { %26225 = vmatprep.subr.bf16.mxu0 %v26224_v43  ;;  %v28943_v37 = vld [vmem:[%s35142_s0 + $0xb1] sm:$0xff]  ;;  %v339_v38 = vld [vmem:[%s35142_s0 + $0xa8] sm:$0xff]  ;;  %v344_v9 = vld [vmem:[%s35142_s0 + $0xe0] sm:$0xff] }
  0x1c   :  { %v28951_v39 = vld [vmem:[%s35142_s0 + $0xc1] sm:$0xff]  ;;  %v19825_v44 = vld [vmem:[%s35143_s1 + $0x2d0] sm:$0xff]  ;;  %v19826_v45 = vld [vmem:[%s35143_s1 + $0x2d8] sm:$0xff] }
  0x1d   :  { %26099 = vmatpush3.bf16.msra.mxu1 %v26096_v42  ;;  %v26248_v42 = vpack.c.bf16 %v19824_v35, %v19823_v34  ;;  %v340_v46 = vld [vmem:[%s35142_s0 + $0xb0] sm:$0xff]  ;;  %v19570_v54 = vld [vmem:[%s35143_s1 + $0xd8] sm:$0xff]  ;;  %v29003_v61 = vld [vmem:[%s35142_s0 + $0xe1] sm:$0xff] }
  0x1e   :  { %26227 = vmatpush3.bf16.msra.mxu0 %v26224_v43  ;;  %26101 = vmatprep.subr.bf16.mxu1 %v26100_v48  ;;  %v19568_v43 = vld [vmem:[%s35143_s1 + $0xc8] sm:$0xff]  ;;  %v19569_v51 = vld [vmem:[%s35143_s1 + $0xd0] sm:$0xff]  ;;  %v343_v62 = vld [vmem:[%s35142_s0 + $0xd8] sm:$0xff] }
  0x1f   :  { %26229 = vmatprep.subr.bf16.mxu0 %v26228_v49  ;;  %v28973_v47 = vld [vmem:[%s35142_s0 + $0xc9] sm:$0xff]  ;;  %v19830_v8 = vld [vmem:[%s35143_s1 + $0x2f8] sm:$0xff] }
  0x20   :  { %v19572_v6 = vld [vmem:[%s35143_s1 + $0xe8] sm:$0xff]  ;;  %v345_v12 = vld [vmem:[%s35142_s0 + $0xf0] sm:$0xff] }
  0x21   :  { %26103 = vmatpush3.bf16.msra.mxu1 %v26100_v48  ;;  %v341_v48 = vld [vmem:[%s35142_s0 + $0xc0] sm:$0xff]  ;;  %v19573_v16 = vld [vmem:[%s35143_s1 + $0xf0] sm:$0xff] }
  0x22   :  { %26231 = vmatpush3.bf16.msra.mxu0 %v26228_v49  ;;  %26105 = vmatprep.subr.bf16.mxu1 %v26104_v13  ;;  %v28981_v49 = vld [vmem:[%s35142_s0 + $0xd9] sm:$0xff] }
  0x23   :  { %26233 = vmatprep.subr.bf16.mxu0 %v26232_v56 }
  0x24   :  { %22614 = vmatmul.mubr.f32.vlgmr.msra.gmra.mrb[0].mxu1 %v326_v50  ;;  %v26120_v50 = vpack.c.bf16 %v19568_v43, %v19567_v41 }
  0x25   :  { %23126 = vmatmul.mubr.f32.vlgmr.msra.gmra.mrb[0].mxu0 %v28784_v52  ;;  %22616 = vmatprep.mubr.f32.mxu1 %v327_v53  ;;  %v26252_v53 = vpack.c.bf16 %v19826_v45, %v19825_v44 }
  0x26   :  { %23128 = vmatprep.mubr.f32.mxu0 %v28795_v55  ;;  %26235 = vmatpush3.bf16.msra.mxu0 %v26232_v56  ;;  %v19827_v56 = vld [vmem:[%s35143_s1 + $0x2e0] sm:$0xff] }
  0x27   :  { %26237 = vmatprep.subr.bf16.mxu0 %v26236_v0  ;;  %26107 = vmatpush3.bf16.msra.mxu1 %v26104_v13  ;;  %v29041_v13 = vld [vmem:[%s35142_s0 + $0x109] sm:$0xff] }
  0x28   :  { %22617 = vmatmul.mubr.f32.gmra.mrb[2].mxu1 %v328_v57  ;;  %26109 = vmatprep.subr.bf16.mxu1 %v26108_v20  ;;  %v19828_v57 = vld [vmem:[%s35143_s1 + $0x2e8] sm:$0xff] }
  0x29   :  { %23129 = vmatmul.mubr.f32.gmra.mrb[2].mxu0 %v28805_v58  ;;  %22619 = vmatprep.mubr.f32.mxu1 %v329_v59  ;;  %v342_v59 = vld [vmem:[%s35142_s0 + $0xc8] sm:$0xff] }
  0x2a   :  { %23131 = vmatprep.mubr.f32.mxu0 %v28813_v60  ;;  %26239 = vmatpush3.bf16.msra.mxu0 %v26236_v0  ;;  %v26124_v0 = vpack.c.bf16 %v19570_v54, %v19569_v51 }
  0x2b   :  { %26241 = vmatprep.subr.bf16.mxu0 %v26240_v11  ;;  %26111 = vmatpush3.bf16.msra.mxu1 %v26108_v20 }
  0x2c   :  { %22620 = vmatmul.mubr.f32.gmra.mrb[4].mxu1 %v330_v63  ;;  %26113 = vmatprep.subr.bf16.mxu1 %v26112_v30  ;;  %v29011_v63 = vld [vmem:[%s35142_s0 + $0xf1] sm:$0xff] }
  0x2d   :  { %23132 = vmatmul.mubr.f32.gmra.mrb[4].mxu0 %v28829_v1  ;;  %22622 = vmatprep.mubr.f32.mxu1 %v331_v2  ;;  %v19571_v2 = vld [vmem:[%s35143_s1 + $0xe0] sm:$0xff] }
  0x2e   :  { %23134 = vmatprep.mubr.f32.mxu0 %v28837_v3  ;;  %26243 = vmatpush3.bf16.msra.mxu0 %v26240_v11  ;;  %v29033_v11 = vld [vmem:[%s35142_s0 + $0xf9] sm:$0xff]  ;;  %v26128_v14 = vpack.c.bf16 %v19572_v6, %v19571_v2 }
  0x2f   :  { %26245 = vmatprep.subr.bf16.mxu0 %v26244_v32  ;;  %26115 = vmatpush3.bf16.msra.mxu1 %v26112_v30 }
  0x30   :  { %22623 = vmatmul.mubr.f32.gmra.mrb[6].mxu1 %v332_v4  ;;  %26117 = vmatprep.subr.bf16.mxu1 %v26116_v40  ;;  %v26256_v4 = vpack.c.bf16 %v19828_v57, %v19827_v56 }
  0x31   :  { %23135 = vmatmul.mubr.f32.gmra.mrb[6].mxu0 %v28846_v5  ;;  %22625 = vmatprep.mubr.f32.mxu1 %v333_v7  ;;  %v19829_v7 = vld [vmem:[%s35143_s1 + $0x2f0] sm:$0xff] }
  0x32   :  { %23137 = vmatprep.mubr.f32.mxu0 %v28864_v10  ;;  %26247 = vmatpush3.bf16.msra.mxu0 %v26244_v32 }
  0x33   :  { %26249 = vmatprep.subr.bf16.mxu0 %v26248_v42  ;;  %26119 = vmatpush3.bf16.msra.mxu1 %v26116_v40 }
  0x34   :  { %22626 = vmatmul.mubr.f32.gmra.mrb[8].mxu1 %v334_v15  ;;  %26121 = vmatprep.subr.bf16.mxu1 %v26120_v50  ;;  %v26260_v15 = vpack.c.bf16 %v19830_v8, %v19829_v7 }
  0x35   :  { %23138 = vmatmul.mubr.f32.gmra.mrb[8].mxu0 %v28883_v17  ;;  %22628 = vmatprep.mubr.f32.mxu1 %v335_v18  ;;  %v19574_v18 = vld [vmem:[%s35143_s1 + $0xf8] sm:$0xff] }
  0x36   :  { %23140 = vmatprep.mubr.f32.mxu0 %v28891_v19  ;;  %26251 = vmatpush3.bf16.msra.mxu0 %v26248_v42 }
  0x37   :  { %26253 = vmatprep.subr.bf16.mxu0 %v26252_v53  ;;  %26123 = vmatpush3.bf16.msra.mxu1 %v26120_v50 }
  0x38   :  { %22629 = vmatmul.mubr.f32.gmra.mrb[10].mxu1 %v336_v23  ;;  %26125 = vmatprep.subr.bf16.mxu1 %v26124_v0 }
  0x39   :  { %23141 = vmatmul.mubr.f32.gmra.mrb[10].mxu0 %v28910_v25  ;;  %22631 = vmatprep.mubr.f32.mxu1 %v337_v26 }
  0x3a   :  { %23143 = vmatprep.mubr.f32.mxu0 %v28921_v28  ;;  %26255 = vmatpush3.bf16.msra.mxu0 %v26252_v53 }
  0x3b   :  { %26257 = vmatprep.subr.bf16.mxu0 %v26256_v4 }
  0x3c   :  { %22632 = vmatmul.mubr.f32.gmra.mrb[12].mxu1 %v338_v36 }
  0x3d   :  { %23144 = vmatmul.mubr.f32.gmra.mrb[12].mxu0 %v28943_v37  ;;  %22634 = vmatprep.mubr.f32.mxu1 %v339_v38 }
  0x3e   :  { %23146 = vmatprep.mubr.f32.mxu0 %v28951_v39  ;;  %26259 = vmatpush3.bf16.msra.mxu0 %v26256_v4 }
  0x40   :  { %22635 = vmatmul.mubr.f32.gmra.mrb[14].mxu1 %v340_v46 }
  0x41   :  { %23147 = vmatmul.mubr.f32.gmra.mrb[14].mxu0 %v28973_v47  ;;  %22637 = vmatprep.mubr.f32.mxu1 %v341_v48 }
  0x42   :  { %23149 = vmatprep.mubr.f32.mxu0 %v28981_v49 }
  0x44   :  { %22638 = vmatmul.mubr.f32.gmra.mrb[16].mxu1 %v342_v59 }
  0x45   :  { %23150 = vmatmul.mubr.f32.gmra.mrb[16].mxu0 %v29003_v61  ;;  %22640 = vmatprep.mubr.f32.mxu1 %v343_v62 }
  0x46   :  { %23152 = vmatprep.mubr.f32.mxu0 %v29011_v63 }
  0x48   :  { %22641 = vmatmul.mubr.f32.gmra.mrb[18].mxu1 %v344_v9 }
  0x49   :  { %18 = vsyncpa [#allocation6], 0  ;;  %23153 = vmatmul.mubr.f32.gmra.mrb[18].mxu0 %v29033_v11  ;;  %22643 = vmatprep.mubr.f32.mxu1 %v345_v12  ;;  %v346_v20 = vld [vmem:[%s35142_s0 + $0xf8] sm:$0xff]  ;;  %v347_v22 = vld [vmem:[%s35142_s0 + $0x108] sm:$0xff]  ;;  %v26132_v24 = vpack.c.bf16 %v19574_v18, %v19573_v16  ;;  %vm28598_vm0 = vmmov 0   ;;  %s28599_s18 = smov [#allocation5]  }
  0x4a   :  { %23155 = vmatprep.mubr.f32.mxu0 %v29041_v13  ;;  %v29057_v21 = vld [vmem:[%s35142_s0 + $0x111] sm:$0xff]  ;;  %26127 = vmatpush3.bf16.msra.mxu1 %v26124_v0  ;;  %v29065_v23 = vld [vmem:[%s35142_s0 + $0x121] sm:$0xff]  ;;  %v29075_v27 = vld [vmem:[%s35142_s0 + $0x129] sm:$0xff]  ;;  %s19551_s19 = sshll.u32 %s28599_s18, 4  ;;  %s19552_s19 = int_to_ptr.vmem [resolvable:$true] %s19551_s19 }
  0x4b   :  { %26129 = vmatprep.subr.bf16.mxu1 %v26128_v14  ;;  %26261 = vmatprep.subr.bf16.mxu0 %v26260_v15  ;;  %v348_v26 = vld [vmem:[%s35142_s0 + $0x110] sm:$0xff]  ;;  %v349_v30 = vld [vmem:[%s35142_s0 + $0x120] sm:$0xff]  ;;  %v350_v32 = vld [vmem:[%s35142_s0 + $0x128] sm:$0xff]  ;;  %p28576_p1 = scmp.lt.s32.totalorder %s19552_s19, %s19552_s19 }
  0x4c   :  { %22644 = vmatmul.mubr.f32.gmra.mrb[20].mxu1 %v346_v20  ;;  %26263 = vmatpush3.bf16.msra.mxu0 %v26260_v15  ;;  %v29083_v31 = vld [vmem:[%s35142_s0 + $0x139] sm:$0xff]  ;;  %v29093_v33 = vld [vmem:[%s35142_s0 + $0x141] sm:$0xff]  ;;  %v29101_v35 = vld [vmem:[%s35142_s0 + $0x151] sm:$0xff] }
  0x4d   :  { %23156 = vmatmul.mubr.f32.gmra.mrb[20].mxu0 %v29057_v21  ;;  %22646 = vmatprep.mubr.f32.mxu1 %v347_v22  ;;  %v351_v34 = vld [vmem:[%s35142_s0 + $0x138] sm:$0xff]  ;;  %v352_v36 = vld [vmem:[%s35142_s0 + $0x140] sm:$0xff]  ;;  %v353_v40 = vld [vmem:[%s35142_s0 + $0x150] sm:$0xff] }
  0x4e   :  { %23158 = vmatprep.mubr.f32.mxu0 %v29065_v23  ;;  %26131 = vmatpush3.bf16.msra.mxu1 %v26128_v14  ;;  %v29111_v38 = vld [vmem:[%s35142_s0 + $0x159] sm:$0xff]  ;;  %v29119_v41 = vld [vmem:[%s35142_s0 + $0x169] sm:$0xff]  ;;  %v29129_v43 = vld [vmem:[%s35142_s0 + $0x171] sm:$0xff] }
  0x4f   :  { %26133 = vmatprep.subr.bf16.mxu1 %v26132_v24  ;;  %v354_v42 = vld [vmem:[%s35142_s0 + $0x158] sm:$0xff]  ;;  %v355_v44 = vld [vmem:[%s35142_s0 + $0x168] sm:$0xff]  ;;  %v356_v46 = vld [vmem:[%s35142_s0 + $0x170] sm:$0xff] }
  0x50   :  { %22647 = vmatmul.mubr.f32.gmra.mrb[22].mxu1 %v348_v26  ;;  %v19701_v45 = vld [vmem:[%s35142_s0 + $0x181] sm:$0xff]  ;;  %v19702_v48 = vld [vmem:[%s35142_s0 + $0x189] sm:$0xff]  ;;  %v358_v53 = vld [vmem:[%s35142_s0 + $0x1b8] sm:$0xff] }
  0x51   :  { %23159 = vmatmul.mubr.f32.gmra.mrb[22].mxu0 %v29075_v27  ;;  %22649 = vmatprep.mubr.f32.mxu1 %v349_v30  ;;  %v357_v50 = vld [vmem:[%s35142_s0 + $0x1b0] sm:$0xff]  ;;  %v359_v56 = vld [vmem:[%s35142_s0 + $0x1c8] sm:$0xff]  ;;  %v19895_v57 = vld [vmem:[%s35143_s1 + $0x300] sm:$0xff] }
  0x52   :  { %23161 = vmatprep.mubr.f32.mxu0 %v29083_v31  ;;  %26135 = vmatpush3.bf16.msra.mxu1 %v26132_v24  ;;  %v29150_v51 = vld [vmem:[%s35142_s0 + $0x1c9] sm:$0xff]  ;;  %v29158_v54 = vld [vmem:[%s35142_s0 + $0x1d1] sm:$0xff]  ;;  %v29173_v62 = vld [vmem:[%s35142_s0 + $0x1e1] sm:$0xff] }
  0x53   :  { %v19896_v59 = vld [vmem:[%s35143_s1 + $0x308] sm:$0xff]  ;;  %v360_v2 = vld [vmem:[%s35142_s0 + $0x1d0] sm:$0xff]  ;;  %v361_v6 = vld [vmem:[%s35142_s0 + $0x1e0] sm:$0xff] }
  0x54   :  { %22650 = vmatmul.mubr.f32.gmra.mrb[24].mxu1 %v350_v32  ;;  %v29175_v0 = vpack.c.bf16 %v19896_v59, %v19895_v57  ;;  %v29185_v4 = vld [vmem:[%s35142_s0 + $0x1e9] sm:$0xff]  ;;  %v29194_v7 = vld [vmem:[%s35142_s0 + $0x1f9] sm:$0xff]  ;;  %v29204_v9 = vld [vmem:[%s35142_s0 + $0x201] sm:$0xff] }
  0x55   :  { %23162 = vmatmul.mubr.f32.gmra.mrb[24].mxu0 %v29093_v33  ;;  %22652 = vmatprep.mubr.f32.mxu1 %v351_v34  ;;  %v362_v8 = vld [vmem:[%s35142_s0 + $0x1e8] sm:$0xff]  ;;  %v363_v12 = vld [vmem:[%s35142_s0 + $0x1f8] sm:$0xff]  ;;  %v364_v15 = vld [vmem:[%s35142_s0 + $0x200] sm:$0xff] }
  0x56   :  { %23164 = vmatprep.mubr.f32.mxu0 %v29101_v35  ;;  %26265 = vmatprep.subr.bf16.mxu0 %v29175_v0  ;;  %v29212_v14 = vld [vmem:[%s35142_s0 + $0x211] sm:$0xff]  ;;  %v29222_v16 = vld [vmem:[%s35142_s0 + $0x219] sm:$0xff]  ;;  %v29230_v20 = vld [vmem:[%s35142_s0 + $0x229] sm:$0xff] }
  0x57   :  { %v365_v18 = vld [vmem:[%s35142_s0 + $0x210] sm:$0xff]  ;;  %v366_v22 = vld [vmem:[%s35142_s0 + $0x218] sm:$0xff]  ;;  %v367_v26 = vld [vmem:[%s35142_s0 + $0x228] sm:$0xff] }
  0x58   :  { %22653 = vmatmul.mubr.f32.gmra.mrb[26].mxu1 %v352_v36  ;;  %v29240_v24 = vld [vmem:[%s35142_s0 + $0x231] sm:$0xff]  ;;  %v29248_v30 = vld [vmem:[%s35142_s0 + $0x241] sm:$0xff]  ;;  %v29258_v34 = vld [vmem:[%s35142_s0 + $0x249] sm:$0xff] }
  0x59   :  { %23165 = vmatmul.mubr.f32.gmra.mrb[26].mxu0 %v29111_v38  ;;  %22655 = vmatprep.mubr.f32.mxu1 %v353_v40  ;;  %v368_v32 = vld [vmem:[%s35142_s0 + $0x230] sm:$0xff]  ;;  %v369_v36 = vld [vmem:[%s35142_s0 + $0x240] sm:$0xff]  ;;  %v374_v57 = vld [vmem:[%s35142_s0 + $0x278] sm:$0xff] }
  0x5a   :  { %23167 = vmatprep.mubr.f32.mxu0 %v29119_v41  ;;  %v29266_v40 = vld [vmem:[%s35142_s0 + $0x259] sm:$0xff]  ;;  %v29312_v59 = vld [vmem:[%s35142_s0 + $0x291] sm:$0xff] }
  0x5c   :  { %22656 = vmatmul.mubr.f32.gmra.mrb[28].mxu1 %v354_v42  ;;  %v370_v42 = vld [vmem:[%s35142_s0 + $0x248] sm:$0xff] }
  0x5d   :  { %23168 = vmatmul.mubr.f32.gmra.mrb[28].mxu0 %v29129_v43  ;;  %22658 = vmatprep.mubr.f32.mxu1 %v355_v44  ;;  %v29276_v44 = vld [vmem:[%s35142_s0 + $0x261] sm:$0xff] }
  0x5e   :  { %23170 = vmatprep.mubr.f32.mxu0 %v19701_v45  ;;  %v371_v45 = vld [vmem:[%s35142_s0 + $0x258] sm:$0xff] }
  0x60   :  { %22659 = vmatmul.mubr.f32.gmra.mrb[30].mxu1 %v356_v46  ;;  %v29284_v46 = vld [vmem:[%s35142_s0 + $0x271] sm:$0xff] }
  0x61   :  { %23171 = vmatmul.mubr.f32.gmra.mrb[30].mxu0 %v19702_v48  ;;  %22661 = vmatprep.mubr.f32.mxu1 %v357_v50  ;;  %v372_v48 = vld [vmem:[%s35142_s0 + $0x260] sm:$0xff] }
  0x62   :  { %23173 = vmatprep.mubr.f32.mxu0 %v29150_v51  ;;  %v29294_v50 = vld [vmem:[%s35142_s0 + $0x279] sm:$0xff] }
  0x64   :  { %22662 = vmatmul.mubr.f32.gmra.mrb[32].mxu1 %v358_v53  ;;  %v373_v53 = vld [vmem:[%s35142_s0 + $0x270] sm:$0xff] }
  0x65   :  { %23174 = vmatmul.mubr.f32.gmra.mrb[32].mxu0 %v29158_v54  ;;  %22664 = vmatprep.mubr.f32.mxu1 %v359_v56  ;;  %v29302_v56 = vld [vmem:[%s35142_s0 + $0x289] sm:$0xff] }
  0x66   :  { %23176 = vmatprep.mubr.f32.mxu0 %v29173_v62 }
  0x68   :  { %22665 = vmatmul.mubr.f32.gmra.mrb[34].mxu1 %v360_v2  ;;  %v375_v2 = vld [vmem:[%s35142_s0 + $0x288] sm:$0xff] }
  0x69   :  { %23177 = vmatmul.mubr.f32.gmra.mrb[34].mxu0 %v29185_v4  ;;  %22667 = vmatprep.mubr.f32.mxu1 %v361_v6  ;;  %v19575_v6 = vld [vmem:[%s35143_s1 + $0x100] sm:$0xff] }
  0x6a   :  { %23179 = vmatprep.mubr.f32.mxu0 %v29194_v7 }
  0x6c   :  { %22668 = vmatmul.mubr.f32.gmra.mrb[36].mxu1 %v362_v8  ;;  %v29323_v8 = vld [vmem:[%s35142_s0 + $0x2a1] sm:$0xff] }
  0x6d   :  { %23180 = vmatmul.mubr.f32.gmra.mrb[36].mxu0 %v29204_v9  ;;  %22670 = vmatprep.mubr.f32.mxu1 %v363_v12  ;;  %v19576_v12 = vld [vmem:[%s35143_s1 + $0x108] sm:$0xff] }
  0x6e   :  { %23182 = vmatprep.mubr.f32.mxu0 %v29212_v14 }
  0x70   :  { %22671 = vmatmul.mubr.f32.gmra.mrb[38].mxu1 %v364_v15  ;;  %v29328_v15 = vpack.c.bf16 %v19576_v12, %v19575_v6  ;;  %v29383_v6 = vld [vmem:[%s35142_s0 + $0x2e9] sm:$0xff]  ;;  %v382_v12 = vld [vmem:[%s35142_s0 + $0x2d8] sm:$0xff] }
  0x71   :  { %23183 = vmatmul.mubr.f32.gmra.mrb[38].mxu0 %v29222_v16  ;;  %22673 = vmatprep.mubr.f32.mxu1 %v365_v18  ;;  %v376_v18 = vld [vmem:[%s35142_s0 + $0x290] sm:$0xff]  ;;  %35549 = vst [vmem:[#allocation12_spill] sm:$0xff] %v29383_v6 }
  0x72   :  { %23185 = vmatprep.mubr.f32.mxu0 %v29230_v20  ;;  %26137 = vmatprep.subr.bf16.mxu1 %v29328_v15 }
  0x74   :  { %22674 = vmatmul.mubr.f32.gmra.mrb[40].mxu1 %v366_v22  ;;  %v29338_v22 = vld [vmem:[%s35142_s0 + $0x2a9] sm:$0xff] }
  0x75   :  { %23186 = vmatmul.mubr.f32.gmra.mrb[40].mxu0 %v29240_v24  ;;  %22676 = vmatprep.mubr.f32.mxu1 %v367_v26  ;;  %v377_v26 = vld [vmem:[%s35142_s0 + $0x2a0] sm:$0xff] }
  0x76   :  { %23188 = vmatprep.mubr.f32.mxu0 %v29248_v30 }
  0x78   :  { %22677 = vmatmul.mubr.f32.gmra.mrb[42].mxu1 %v368_v32  ;;  %v29347_v32 = vld [vmem:[%s35142_s0 + $0x2b9] sm:$0xff] }
  0x79   :  { %23189 = vmatmul.mubr.f32.gmra.mrb[42].mxu0 %v29258_v34  ;;  %22679 = vmatprep.mubr.f32.mxu1 %v369_v36  ;;  %35545 = vst [vmem:[#allocation8_spill] sm:$0xff] %v29347_v32  ;;  %v378_v36 = vld [vmem:[%s35142_s0 + $0x2a8] sm:$0xff] }
  0x7a   :  { %23191 = vmatprep.mubr.f32.mxu0 %v29266_v40 }
  0x7c   :  { %22680 = vmatmul.mubr.f32.gmra.mrb[44].mxu1 %v370_v42  ;;  %v29357_v42 = vld [vmem:[%s35142_s0 + $0x2c1] sm:$0xff] }
  0x7d   :  { %23192 = vmatmul.mubr.f32.gmra.mrb[44].mxu0 %v29276_v44  ;;  %22682 = vmatprep.mubr.f32.mxu1 %v371_v45  ;;  %35546 = vst [vmem:[#allocation9_spill] sm:$0xff] %v29357_v42  ;;  %v379_v45 = vld [vmem:[%s35142_s0 + $0x2b8] sm:$0xff] }
  0x7e   :  { %23194 = vmatprep.mubr.f32.mxu0 %v29284_v46 }
  0x80   :  { %22683 = vmatmul.mubr.f32.gmra.mrb[46].mxu1 %v372_v48  ;;  %v29365_v48 = vld [vmem:[%s35142_s0 + $0x2d1] sm:$0xff] }
  0x81   :  { %23195 = vmatmul.mubr.f32.gmra.mrb[46].mxu0 %v29294_v50  ;;  %22685 = vmatprep.mubr.f32.mxu1 %v373_v53  ;;  %35547 = vst [vmem:[#allocation10_spill] sm:$0xff] %v29365_v48  ;;  %v380_v53 = vld [vmem:[%s35142_s0 + $0x2c0] sm:$0xff] }
  0x82   :  { %23197 = vmatprep.mubr.f32.mxu0 %v29302_v56 }
  0x84   :  { %22686 = vmatmul.mubr.f32.gmra.mrb[48].mxu1 %v374_v57  ;;  %v29375_v57 = vld [vmem:[%s35142_s0 + $0x2d9] sm:$0xff] }
  0x85   :  { %23198 = vmatmul.mubr.f32.gmra.mrb[48].mxu0 %v29312_v59  ;;  %22688 = vmatprep.mubr.f32.mxu1 %v375_v2  ;;  %35548 = vst [vmem:[#allocation11_spill] sm:$0xff] %v29375_v57  ;;  %v381_v2 = vld [vmem:[%s35142_s0 + $0x2d0] sm:$0xff] }
  0x86   :  { %23200 = vmatprep.mubr.f32.mxu0 %v29323_v8 }
  0x88   :  { %22689 = vmatmul.mubr.f32.gmra.mrb[50].mxu1 %v376_v18  ;;  %v29393_v18 = vld [vmem:[%s35142_s0 + $0x2f1] sm:$0xff] }
  0x89   :  { %23201 = vmatmul.mubr.f32.gmra.mrb[50].mxu0 %v29338_v22  ;;  %22691 = vmatprep.mubr.f32.mxu1 %v377_v26  ;;  %35550 = vst [vmem:[#allocation13_spill] sm:$0xff] %v29393_v18  ;;  %v383_v26 = vld [vmem:[%s35142_s0 + $0x2e8] sm:$0xff] }
  0x8a   :  { %23203 = vmatprep.mubr.f32.mxu0 %v29347_v32  ;;  %v19579_v32 = vld [vmem:[%s35143_s1 + $0x120] sm:$0xff] }
  0x8c   :  { %22692 = vmatmul.mubr.f32.gmra.mrb[52].mxu1 %v378_v36  ;;  %v29401_v36 = vld [vmem:[%s35142_s0 + $0x301] sm:$0xff] }
  0x8d   :  { %23204 = vmatmul.mubr.f32.gmra.mrb[52].mxu0 %v29357_v42  ;;  %22694 = vmatprep.mubr.f32.mxu1 %v379_v45  ;;  %35551 = vst [vmem:[#allocation14_spill] sm:$0xff] %v29401_v36  ;;  %v384_v45 = vld [vmem:[%s35142_s0 + $0x2f0] sm:$0xff] }
  0x8e   :  { %23206 = vmatprep.mubr.f32.mxu0 %v29365_v48  ;;  %v19899_v48 = vld [vmem:[%s35143_s1 + $0x320] sm:$0xff] }
  0x90   :  { %22695 = vmatmul.mubr.f32.gmra.mrb[54].mxu1 %v380_v53  ;;  %v29411_v53 = vld [vmem:[%s35142_s0 + $0x309] sm:$0xff] }
  0x91   :  { %23207 = vmatmul.mubr.f32.gmra.mrb[54].mxu0 %v29375_v57  ;;  %22697 = vmatprep.mubr.f32.mxu1 %v381_v2  ;;  %35552 = vst [vmem:[#allocation15_spill] sm:$0xff] %v29411_v53  ;;  %v385_v2 = vld [vmem:[%s35142_s0 + $0x300] sm:$0xff] }
  0x92   :  { %23209 = vmatprep.mubr.f32.mxu0 %v29383_v6  ;;  %v19577_v6 = vld [vmem:[%s35143_s1 + $0x110] sm:$0xff]  ;;  %v29471_v57 = vld [vmem:[%s35142_s0 + $0x22] sm:$0xff] }
  0x94   :  { %22698 = vmatmul.mubr.f32.gmra.mrb[56].mxu1 %v382_v12  ;;  %v29419_v12 = vld [vmem:[%s35142_s0 + $0x319] sm:$0xff] }
  0x95   :  { %23210 = vmatmul.mubr.f32.gmra.mrb[56].mxu0 %v29393_v18  ;;  %22700 = vmatprep.mubr.f32.mxu1 %v383_v26  ;;  %35553 = vst [vmem:[#allocation16_spill] sm:$0xff] %v29419_v12  ;;  %v386_v26 = vld [vmem:[%s35142_s0 + $0x308] sm:$0xff]  ;;  %v387_v18 = vld [vmem:[%s35142_s0 + $0x318] sm:$0xff] }
  0x96   :  { %23212 = vmatprep.mubr.f32.mxu0 %v29401_v36  ;;  %v29429_v36 = vld [vmem:[%s35142_s0 + $0x321] sm:$0xff] }
  0x97   :  { %35554 = vst [vmem:[#allocation17_spill] sm:$0xff] %v29429_v36 }
  0x98   :  { %22701 = vmatmul.mubr.f32.gmra.mrb[58].mxu1 %v384_v45  ;;  %v19733_v45 = vld [vmem:[%s35142_s0 + $0x331] sm:$0xff] }
  0x99   :  { %23213 = vmatmul.mubr.f32.gmra.mrb[58].mxu0 %v29411_v53  ;;  %22703 = vmatprep.mubr.f32.mxu1 %v385_v2  ;;  %v388_v2 = vld [vmem:[%s35142_s0 + $0x320] sm:$0xff] }
  0x9a   :  { %23215 = vmatprep.mubr.f32.mxu0 %v29419_v12  ;;  %v19734_v12 = vld [vmem:[%s35142_s0 + $0x339] sm:$0xff]  ;;  %v982_v53 = vld [vmem:[%s35142_s0 + $0x1] sm:$0xff] }
  0x9c   :  { %22704 = vmatmul.mubr.f32.gmra.mrb[60].mxu1 %v386_v26  ;;  %v29450_v26 = vld [vmem:[%s35142_s0 + $0x1a] sm:$0xff] }
  0x9d   :  { %23216 = vmatmul.mubr.f32.gmra.mrb[60].mxu0 %v29429_v36  ;;  %22706 = vmatprep.mubr.f32.mxu1 %v387_v18  ;;  %35555 = vst [vmem:[#allocation18_spill] sm:$0xff] %v29450_v26  ;;  %v19897_v18 = vld [vmem:[%s35143_s1 + $0x310] sm:$0xff] }
  0x9e   :  { %23218 = vmatprep.mubr.f32.mxu0 %v19733_v45  ;;  %v19898_v45 = vld [vmem:[%s35143_s1 + $0x318] sm:$0xff]  ;;  %v983_v36 = vld [vmem:[%s35142_s0 + $0x9] sm:$0xff] }
  0xa0   :  { %22707 = vmatmul.mubr.f32.gmra.mrb[62].mxu1 %v388_v2  ;;  %v19578_v2 = vld [vmem:[%s35143_s1 + $0x118] sm:$0xff] }
  0xa1   :  { %23219 = vmatmul.mubr.f32.gmra.mrb[62].mxu0 %v19734_v12  ;;  %22741 = vmatprep.mubr.f32.mxu1 %v982_v53  ;;  %v29476_v53 = vld [vmem:[%s35142_s0 + $0x32] sm:$0xff]  ;;  %v26268_v12 = vpack.c.bf16 %v19898_v45, %v19897_v18  ;;  %v26140_v42 = vpack.c.bf16 %v19578_v2, %v19577_v6  ;;  %v29496_v18 = vld [vmem:[%s35142_s0 + $0x3a] sm:$0xff] }
  0xa2   :  { %23253 = vmatprep.mubr.f32.mxu0 %v29450_v26  ;;  %v19900_v26 = vld [vmem:[%s35143_s1 + $0x328] sm:$0xff]  ;;  %v19901_v2 = vld [vmem:[%s35143_s1 + $0x330] sm:$0xff] }
  0xa3   :  { %v26272_v6 = vpack.c.bf16 %v19900_v26, %v19899_v48 }
  0xa4   :  { %22742 = vmatmul.mubr.f32.vlgmr.msra.gmra.mrb[0].mxu1 %v983_v36  ;;  %v19580_v36 = vld [vmem:[%s35143_s1 + $0x128] sm:$0xff] }
  0xa5   :  { %23254 = vmatmul.mubr.f32.vlgmr.msra.gmra.mrb[0].mxu0 %v29471_v57  ;;  %22744 = vmatprep.mubr.f32.mxu1 %v28736_v29  ;;  %v29502_v29 = vld [vmem:[%s35142_s0 + $0x4a] sm:$0xff]  ;;  %v26144_v45 = vpack.c.bf16 %v19580_v36, %v19579_v32  ;;  %v29524_v32 = vld [vmem:[%s35142_s0 + $0x52] sm:$0xff]  ;;  %v19903_v36 = vld [vmem:[%s35143_s1 + $0x340] sm:$0xff] }
  0xa6   :  { %23256 = vmatprep.mubr.f32.mxu0 %v29476_v53  ;;  %26267 = vmatpush3.bf16.msra.mxu0 %v29175_v0  ;;  %v19902_v0 = vld [vmem:[%s35143_s1 + $0x338] sm:$0xff] }
  0xa7   :  { %26269 = vmatprep.subr.bf16.mxu0 %v26268_v12  ;;  %26139 = vmatpush3.bf16.msra.mxu1 %v29328_v15  ;;  %v19581_v15 = vld [vmem:[%s35143_s1 + $0x130] sm:$0xff]  ;;  %v26276_v48 = vpack.c.bf16 %v19902_v0, %v19901_v2 }
  0xa8   :  { %22745 = vmatmul.mubr.f32.gmra.mrb[2].mxu1 %v28784_v52  ;;  %26141 = vmatprep.subr.bf16.mxu1 %v26140_v42  ;;  %v19582_v52 = vld [vmem:[%s35143_s1 + $0x138] sm:$0xff]  ;;  %v29550_v2 = vld [vmem:[%s35142_s0 + $0x6a] sm:$0xff] }
  0xa9   :  { %23257 = vmatmul.mubr.f32.gmra.mrb[2].mxu0 %v29496_v18  ;;  %22747 = vmatprep.mubr.f32.mxu1 %v28795_v55  ;;  %v29529_v55 = vld [vmem:[%s35142_s0 + $0x62] sm:$0xff]  ;;  %v26148_v26 = vpack.c.bf16 %v19582_v52, %v19581_v15  ;;  %v19905_v52 = vld [vmem:[%s35143_s1 + $0x350] sm:$0xff] }
  0xaa   :  { %23259 = vmatprep.mubr.f32.mxu0 %v29502_v29  ;;  %26271 = vmatpush3.bf16.msra.mxu0 %v26268_v12  ;;  %v19904_v12 = vld [vmem:[%s35143_s1 + $0x348] sm:$0xff] }
  0xab   :  { %26273 = vmatprep.subr.bf16.mxu0 %v26272_v6  ;;  %26143 = vmatpush3.bf16.msra.mxu1 %v26140_v42  ;;  %v19583_v42 = vld [vmem:[%s35143_s1 + $0x140] sm:$0xff]  ;;  %v26280_v0 = vpack.c.bf16 %v19904_v12, %v19903_v36 }
  0xac   :  { %22748 = vmatmul.mubr.f32.gmra.mrb[4].mxu1 %v28805_v58  ;;  %26145 = vmatprep.subr.bf16.mxu1 %v26144_v45  ;;  %v19584_v58 = vld [vmem:[%s35143_s1 + $0x148] sm:$0xff] }
  0xad   :  { %23260 = vmatmul.mubr.f32.gmra.mrb[4].mxu0 %v29524_v32  ;;  %22750 = vmatprep.mubr.f32.mxu1 %v28813_v60  ;;  %v29555_v60 = vld [vmem:[%s35142_s0 + $0x7a] sm:$0xff]  ;;  %v26152_v15 = vpack.c.bf16 %v19584_v58, %v19583_v42  ;;  %v29576_v36 = vld [vmem:[%s35142_s0 + $0x82] sm:$0xff] }
  0xae   :  { %23262 = vmatprep.mubr.f32.mxu0 %v29529_v55  ;;  %26275 = vmatpush3.bf16.msra.mxu0 %v26272_v6  ;;  %v19906_v6 = vld [vmem:[%s35143_s1 + $0x358] sm:$0xff]  ;;  %v19907_v58 = vld [vmem:[%s35143_s1 + $0x360] sm:$0xff] }
  0xaf   :  { %26147 = vmatpush3.bf16.msra.mxu1 %v26144_v45  ;;  %26277 = vmatprep.subr.bf16.mxu0 %v26276_v48  ;;  %v19585_v45 = vld [vmem:[%s35143_s1 + $0x150] sm:$0xff]  ;;  %v26284_v12 = vpack.c.bf16 %v19906_v6, %v19905_v52  ;;  %v29602_v52 = vld [vmem:[%s35142_s0 + $0x9a] sm:$0xff] }
  0xb0   :  { %22751 = vmatmul.mubr.f32.gmra.mrb[6].mxu1 %v28829_v1  ;;  %26149 = vmatprep.subr.bf16.mxu1 %v26148_v26  ;;  %v19586_v1 = vld [vmem:[%s35143_s1 + $0x158] sm:$0xff] }
  0xb1   :  { %23263 = vmatmul.mubr.f32.gmra.mrb[6].mxu0 %v29550_v2  ;;  %22753 = vmatprep.mubr.f32.mxu1 %v28837_v3  ;;  %v29581_v3 = vld [vmem:[%s35142_s0 + $0x92] sm:$0xff]  ;;  %v26156_v42 = vpack.c.bf16 %v19586_v1, %v19585_v45 }
  0xb2   :  { %23265 = vmatprep.mubr.f32.mxu0 %v29555_v60  ;;  %26279 = vmatpush3.bf16.msra.mxu0 %v26276_v48  ;;  %v19908_v48 = vld [vmem:[%s35143_s1 + $0x368] sm:$0xff]  ;;  %v19909_v1 = vld [vmem:[%s35143_s1 + $0x370] sm:$0xff] }
  0xb3   :  { %26151 = vmatpush3.bf16.msra.mxu1 %v26148_v26  ;;  %26281 = vmatprep.subr.bf16.mxu0 %v26280_v0  ;;  %v19587_v26 = vld [vmem:[%s35143_s1 + $0x160] sm:$0xff]  ;;  %v26288_v6 = vpack.c.bf16 %v19908_v48, %v19907_v58  ;;  %v29628_v58 = vld [vmem:[%s35142_s0 + $0xb2] sm:$0xff] }
  0xb4   :  { %22754 = vmatmul.mubr.f32.gmra.mrb[8].mxu1 %v28846_v5  ;;  %26153 = vmatprep.subr.bf16.mxu1 %v26152_v15  ;;  %v19588_v5 = vld [vmem:[%s35143_s1 + $0x168] sm:$0xff] }
  0xb5   :  { %23266 = vmatmul.mubr.f32.gmra.mrb[8].mxu0 %v29576_v36  ;;  %22756 = vmatprep.mubr.f32.mxu1 %v28864_v10  ;;  %v29607_v10 = vld [vmem:[%s35142_s0 + $0xaa] sm:$0xff]  ;;  %v26160_v45 = vpack.c.bf16 %v19588_v5, %v19587_v26 }
  0xb6   :  { %23268 = vmatprep.mubr.f32.mxu0 %v29581_v3  ;;  %26283 = vmatpush3.bf16.msra.mxu0 %v26280_v0  ;;  %v19910_v0 = vld [vmem:[%s35143_s1 + $0x378] sm:$0xff]  ;;  %v29757_v5 = vld [vmem:[%s35142_s0 + $0x1ca] sm:$0xff] }
  0xb7   :  { %26155 = vmatpush3.bf16.msra.mxu1 %v26152_v15  ;;  %26285 = vmatprep.subr.bf16.mxu0 %v26284_v12  ;;  %v19589_v15 = vld [vmem:[%s35143_s1 + $0x170] sm:$0xff]  ;;  %v26292_v48 = vpack.c.bf16 %v19910_v0, %v19909_v1 }
  0xb8   :  { %22757 = vmatmul.mubr.f32.gmra.mrb[10].mxu1 %v28883_v17  ;;  %26157 = vmatprep.subr.bf16.mxu1 %v26156_v42  ;;  %v19590_v17 = vld [vmem:[%s35143_s1 + $0x178] sm:$0xff]  ;;  %v29788_v0 = vld [vmem:[%s35142_s0 + $0x1ea] sm:$0xff] }
  0xb9   :  { %23269 = vmatmul.mubr.f32.gmra.mrb[10].mxu0 %v29602_v52  ;;  %22759 = vmatprep.mubr.f32.mxu1 %v28891_v19  ;;  %v29633_v19 = vld [vmem:[%s35142_s0 + $0xc2] sm:$0xff]  ;;  %v26164_v26 = vpack.c.bf16 %v19590_v17, %v19589_v15  ;;  %v29794_v15 = vld [vmem:[%s35142_s0 + $0x1fa] sm:$0xff]  ;;  %v29808_v17 = vld [vmem:[%s35142_s0 + $0x212] sm:$0xff] }
  0xba   :  { %23271 = vmatprep.mubr.f32.mxu0 %v29607_v10  ;;  %26287 = vmatpush3.bf16.msra.mxu0 %v26284_v12  ;;  %v29642_v12 = vld [vmem:[%s35142_s0 + $0xca] sm:$0xff] }
  0xbb   :  { %26159 = vmatpush3.bf16.msra.mxu1 %v26156_v42  ;;  %26289 = vmatprep.subr.bf16.mxu0 %v26288_v6  ;;  %v29647_v42 = vld [vmem:[%s35142_s0 + $0xda] sm:$0xff] }
  0xbc   :  { %22760 = vmatmul.mubr.f32.gmra.mrb[12].mxu1 %v28910_v25  ;;  %26161 = vmatprep.subr.bf16.mxu1 %v26160_v45  ;;  %v29656_v25 = vld [vmem:[%s35142_s0 + $0xe2] sm:$0xff] }
  0xbd   :  { %23272 = vmatmul.mubr.f32.gmra.mrb[12].mxu0 %v29628_v58  ;;  %22762 = vmatprep.mubr.f32.mxu1 %v28921_v28  ;;  %v29661_v28 = vld [vmem:[%s35142_s0 + $0xf2] sm:$0xff] }
  0xbe   :  { %23274 = vmatprep.mubr.f32.mxu0 %v29633_v19  ;;  %26291 = vmatpush3.bf16.msra.mxu0 %v26288_v6  ;;  %v19975_v6 = vld [vmem:[%s35143_s1 + $0x380] sm:$0xff] }
  0xbf   :  { %26163 = vmatpush3.bf16.msra.mxu1 %v26160_v45  ;;  %26293 = vmatprep.subr.bf16.mxu0 %v26292_v48  ;;  %v29778_v45 = vld [vmem:[%s35142_s0 + $0x1e2] sm:$0xff] }
  0xc0   :  { %22763 = vmatmul.mubr.f32.gmra.mrb[14].mxu1 %v28943_v37  ;;  %26165 = vmatprep.subr.bf16.mxu1 %v26164_v26  ;;  %v29670_v37 = vld [vmem:[%s35142_s0 + $0xfa] sm:$0xff] }
  0xc1   :  { %23275 = vmatmul.mubr.f32.gmra.mrb[14].mxu0 %v29642_v12  ;;  %22765 = vmatprep.mubr.f32.mxu1 %v28951_v39  ;;  %v29675_v39 = vld [vmem:[%s35142_s0 + $0x10a] sm:$0xff] }
  0xc2   :  { %23277 = vmatprep.mubr.f32.mxu0 %v29647_v42  ;;  %26295 = vmatpush3.bf16.msra.mxu0 %v26292_v48  ;;  %v29895_v48 = vld [vmem:[%s35142_s0 + $0x2a2] sm:$0xff] }
  0xc3   :  { %26167 = vmatpush3.bf16.msra.mxu1 %v26164_v26  ;;  %v29909_v26 = vld [vmem:[%s35142_s0 + $0x2aa] sm:$0xff] }
  0xc4   :  { %22766 = vmatmul.mubr.f32.gmra.mrb[16].mxu1 %v28973_v47  ;;  %v29684_v47 = vld [vmem:[%s35142_s0 + $0x112] sm:$0xff] }
  0xc5   :  { %23278 = vmatmul.mubr.f32.gmra.mrb[16].mxu0 %v29656_v25  ;;  %22768 = vmatprep.mubr.f32.mxu1 %v28981_v49  ;;  %v29689_v49 = vld [vmem:[%s35142_s0 + $0x122] sm:$0xff] }
  0xc6   :  { %23280 = vmatprep.mubr.f32.mxu0 %v29661_v28 }
  0xc8   :  { %22769 = vmatmul.mubr.f32.gmra.mrb[18].mxu1 %v29003_v61  ;;  %v29698_v61 = vld [vmem:[%s35142_s0 + $0x12a] sm:$0xff] }
  0xc9   :  { %23281 = vmatmul.mubr.f32.gmra.mrb[18].mxu0 %v29670_v37  ;;  %22771 = vmatprep.mubr.f32.mxu1 %v29011_v63  ;;  %v29703_v63 = vld [vmem:[%s35142_s0 + $0x13a] sm:$0xff] }
  0xca   :  { %23283 = vmatprep.mubr.f32.mxu0 %v29675_v39 }
  0xcc   :  { %22772 = vmatmul.mubr.f32.gmra.mrb[20].mxu1 %v29033_v11  ;;  %v29712_v11 = vld [vmem:[%s35142_s0 + $0x142] sm:$0xff] }
  0xcd   :  { %23284 = vmatmul.mubr.f32.gmra.mrb[20].mxu0 %v29684_v47  ;;  %22774 = vmatprep.mubr.f32.mxu1 %v29041_v13  ;;  %v29717_v13 = vld [vmem:[%s35142_s0 + $0x152] sm:$0xff] }
  0xce   :  { %23286 = vmatprep.mubr.f32.mxu0 %v29689_v49 }
  0xd0   :  { %22775 = vmatmul.mubr.f32.gmra.mrb[22].mxu1 %v29057_v21  ;;  %v29726_v21 = vld [vmem:[%s35142_s0 + $0x15a] sm:$0xff] }
  0xd1   :  { %23287 = vmatmul.mubr.f32.gmra.mrb[22].mxu0 %v29698_v61  ;;  %22777 = vmatprep.mubr.f32.mxu1 %v29065_v23  ;;  %v29731_v23 = vld [vmem:[%s35142_s0 + $0x16a] sm:$0xff] }
  0xd2   :  { %23289 = vmatprep.mubr.f32.mxu0 %v29703_v63 }
  0xd4   :  { %22778 = vmatmul.mubr.f32.gmra.mrb[24].mxu1 %v29075_v27  ;;  %v29740_v27 = vld [vmem:[%s35142_s0 + $0x172] sm:$0xff] }
  0xd5   :  { %23290 = vmatmul.mubr.f32.gmra.mrb[24].mxu0 %v29712_v11  ;;  %22780 = vmatprep.mubr.f32.mxu1 %v29083_v31  ;;  %v19781_v31 = vld [vmem:[%s35142_s0 + $0x182] sm:$0xff] }
  0xd6   :  { %23292 = vmatprep.mubr.f32.mxu0 %v29717_v13 }
  0xd8   :  { %22781 = vmatmul.mubr.f32.gmra.mrb[26].mxu1 %v29093_v33  ;;  %v19782_v33 = vld [vmem:[%s35142_s0 + $0x18a] sm:$0xff] }
  0xd9   :  { %23293 = vmatmul.mubr.f32.gmra.mrb[26].mxu0 %v29726_v21  ;;  %22783 = vmatprep.mubr.f32.mxu1 %v29101_v35  ;;  %v1014_v35 = vld [vmem:[%s35142_s0 + $0x1b1] sm:$0xff] }
  0xda   :  { %23295 = vmatprep.mubr.f32.mxu0 %v29731_v23 }
  0xdc   :  { %22784 = vmatmul.mubr.f32.gmra.mrb[28].mxu1 %v29111_v38  ;;  %v1015_v38 = vld [vmem:[%s35142_s0 + $0x1b9] sm:$0xff] }
  0xdd   :  { %23296 = vmatmul.mubr.f32.gmra.mrb[28].mxu0 %v29740_v27  ;;  %22786 = vmatprep.mubr.f32.mxu1 %v29119_v41  ;;  %v29767_v41 = vld [vmem:[%s35142_s0 + $0x1d2] sm:$0xff] }
  0xde   :  { %23298 = vmatprep.mubr.f32.mxu0 %v19781_v31  ;;  %v29915_v31 = vld [vmem:[%s35142_s0 + $0x2ba] sm:$0xff] }
  0xdf   :  { %35556 = vst [vmem:[#allocation19_spill] sm:$0xff] %v29915_v31 }
  0xe0   :  { %22787 = vmatmul.mubr.f32.gmra.mrb[30].mxu1 %v29129_v43  ;;  %v19976_v43 = vld [vmem:[%s35143_s1 + $0x388] sm:$0xff] }
  0xe1   :  { %23299 = vmatmul.mubr.f32.gmra.mrb[30].mxu0 %v19782_v33  ;;  %22789 = vmatprep.mubr.f32.mxu1 %v1014_v35  ;;  %v29780_v1 = vpack.c.bf16 %v19976_v43, %v19975_v6  ;;  %v29943_v33 = vld [vmem:[%s35142_s0 + $0x2ea] sm:$0xff]  ;;  %v29957_v6 = vld [vmem:[%s35142_s0 + $0x302] sm:$0xff]  ;;  %v35566_v43 = vld [vmem:[#allocation11_spill] sm:$0xff] }
  0xe2   :  { %23301 = vmatprep.mubr.f32.mxu0 %v29757_v5  ;;  %35561 = vst [vmem:[#allocation22_spill] sm:$0xff] %v29943_v33  ;;  %v35562_v35 = vld [vmem:[#allocation9_spill] sm:$0xff] }
  0xe3   :  { %26297 = vmatprep.subr.bf16.mxu0 %v29780_v1 }
  0xe4   :  { %22790 = vmatmul.mubr.f32.gmra.mrb[32].mxu1 %v1015_v38  ;;  %v29952_v38 = vld [vmem:[%s35142_s0 + $0x2f2] sm:$0xff] }
  0xe5   :  { %23302 = vmatmul.mubr.f32.gmra.mrb[32].mxu0 %v29767_v41  ;;  %22792 = vmatprep.mubr.f32.mxu1 %v29150_v51  ;;  %v29803_v51 = vld [vmem:[%s35142_s0 + $0x202] sm:$0xff]  ;;  %35564 = vst [vmem:[#allocation9_spill] sm:$0xff] %v29952_v38 }
  0xe6   :  { %23304 = vmatprep.mubr.f32.mxu0 %v29778_v45 }
  0xe8   :  { %22793 = vmatmul.mubr.f32.gmra.mrb[34].mxu1 %v29158_v54  ;;  %v29817_v54 = vld [vmem:[%s35142_s0 + $0x21a] sm:$0xff] }
  0xe9   :  { %23305 = vmatmul.mubr.f32.gmra.mrb[34].mxu0 %v29788_v0  ;;  %22795 = vmatprep.mubr.f32.mxu1 %v29173_v62  ;;  %v29822_v62 = vld [vmem:[%s35142_s0 + $0x22a] sm:$0xff] }
  0xea   :  { %23307 = vmatprep.mubr.f32.mxu0 %v29794_v15 }
  0xec   :  { %22796 = vmatmul.mubr.f32.gmra.mrb[36].mxu1 %v29185_v4  ;;  %v29831_v4 = vld [vmem:[%s35142_s0 + $0x232] sm:$0xff] }
  0xed   :  { %23308 = vmatmul.mubr.f32.gmra.mrb[36].mxu0 %v29803_v51  ;;  %22798 = vmatprep.mubr.f32.mxu1 %v29194_v7  ;;  %v29836_v7 = vld [vmem:[%s35142_s0 + $0x242] sm:$0xff] }
  0xee   :  { %23310 = vmatprep.mubr.f32.mxu0 %v29808_v17 }
  0xf0   :  { %22799 = vmatmul.mubr.f32.gmra.mrb[38].mxu1 %v29204_v9  ;;  %v29845_v9 = vld [vmem:[%s35142_s0 + $0x24a] sm:$0xff] }
  0xf1   :  { %23311 = vmatmul.mubr.f32.gmra.mrb[38].mxu0 %v29817_v54  ;;  %22801 = vmatprep.mubr.f32.mxu1 %v29212_v14  ;;  %v29850_v14 = vld [vmem:[%s35142_s0 + $0x25a] sm:$0xff] }
  0xf2   :  { %23313 = vmatprep.mubr.f32.mxu0 %v29822_v62 }
  0xf4   :  { %22802 = vmatmul.mubr.f32.gmra.mrb[40].mxu1 %v29222_v16  ;;  %v29859_v16 = vld [vmem:[%s35142_s0 + $0x262] sm:$0xff] }
  0xf5   :  { %23314 = vmatmul.mubr.f32.gmra.mrb[40].mxu0 %v29831_v4  ;;  %22804 = vmatprep.mubr.f32.mxu1 %v29230_v20  ;;  %v29864_v20 = vld [vmem:[%s35142_s0 + $0x272] sm:$0xff] }
  0xf6   :  { %23316 = vmatprep.mubr.f32.mxu0 %v29836_v7 }
  0xf8   :  { %22805 = vmatmul.mubr.f32.gmra.mrb[42].mxu1 %v29240_v24  ;;  %v29873_v24 = vld [vmem:[%s35142_s0 + $0x27a] sm:$0xff] }
  0xf9   :  { %23317 = vmatmul.mubr.f32.gmra.mrb[42].mxu0 %v29845_v9  ;;  %22807 = vmatprep.mubr.f32.mxu1 %v29248_v30  ;;  %v29878_v30 = vld [vmem:[%s35142_s0 + $0x28a] sm:$0xff] }
  0xfa   :  { %23319 = vmatprep.mubr.f32.mxu0 %v29850_v14 }
  0xfc   :  { %22808 = vmatmul.mubr.f32.gmra.mrb[44].mxu1 %v29258_v34  ;;  %v29887_v34 = vld [vmem:[%s35142_s0 + $0x292] sm:$0xff] }
  0xfd   :  { %23320 = vmatmul.mubr.f32.gmra.mrb[44].mxu0 %v29859_v16  ;;  %22810 = vmatprep.mubr.f32.mxu1 %v29266_v40  ;;  %v19655_v40 = vld [vmem:[%s35143_s1 + $0x180] sm:$0xff] }
  0xfe   :  { %23322 = vmatprep.mubr.f32.mxu0 %v29864_v20 }
 0x100   :  { %22811 = vmatmul.mubr.f32.gmra.mrb[46].mxu1 %v29276_v44  ;;  %v19656_v44 = vld [vmem:[%s35143_s1 + $0x188] sm:$0xff] }
 0x101   :  { %23323 = vmatmul.mubr.f32.gmra.mrb[46].mxu0 %v29873_v24  ;;  %22813 = vmatprep.mubr.f32.mxu1 %v29284_v46  ;;  %v29901_v46 = vpack.c.bf16 %v19656_v44, %v19655_v40  ;;  %v35567_v40 = vld [vmem:[#allocation12_spill] sm:$0xff]  ;;  %v29966_v44 = vld [vmem:[%s35142_s0 + $0x30a] sm:$0xff] }
 0x102   :  { %23325 = vmatprep.mubr.f32.mxu0 %v29878_v30  ;;  %35568 = vst [vmem:[#allocation11_spill] sm:$0xff] %v29966_v44 }
 0x103   :  { %26169 = vmatprep.subr.bf16.mxu1 %v29901_v46 }
 0x104   :  { %22814 = vmatmul.mubr.f32.gmra.mrb[48].mxu1 %v29294_v50  ;;  %v29924_v50 = vld [vmem:[%s35142_s0 + $0x2c2] sm:$0xff] }
 0x105   :  { %23326 = vmatmul.mubr.f32.gmra.mrb[48].mxu0 %v29887_v34  ;;  %22816 = vmatprep.mubr.f32.mxu1 %v29302_v56  ;;  %35557 = vst [vmem:[#allocation20_spill] sm:$0xff] %v29924_v50  ;;  %v29929_v56 = vld [vmem:[%s35142_s0 + $0x2d2] sm:$0xff] }
 0x106   :  { %23328 = vmatprep.mubr.f32.mxu0 %v29895_v48  ;;  %35558 = vst [vmem:[#allocation21_spill] sm:$0xff] %v29929_v56 }
 0x108   :  { %22817 = vmatmul.mubr.f32.gmra.mrb[50].mxu1 %v29312_v59  ;;  %v35559_v59 = vld [vmem:[#allocation8_spill] sm:$0xff] }
 0x109   :  { %23329 = vmatmul.mubr.f32.gmra.mrb[50].mxu0 %v29909_v26  ;;  %22819 = vmatprep.mubr.f32.mxu1 %v29323_v8  ;;  %v29938_v8 = vld [vmem:[%s35142_s0 + $0x2da] sm:$0xff] }
 0x10a   :  { %23331 = vmatprep.mubr.f32.mxu0 %v29915_v31  ;;  %35560 = vst [vmem:[#allocation8_spill] sm:$0xff] %v29938_v8  ;;  %v19659_v31 = vld [vmem:[%s35143_s1 + $0x1a0] sm:$0xff] }
 0x10c   :  { %22820 = vmatmul.mubr.f32.gmra.mrb[52].mxu1 %v29338_v22  ;;  %v35563_v22 = vld [vmem:[#allocation10_spill] sm:$0xff] }
 0x10d   :  { %23332 = vmatmul.mubr.f32.gmra.mrb[52].mxu0 %v29924_v50  ;;  %22822 = vmatprep.mubr.f32.mxu1 %v35559_v59  ;;  %35565 = vst [vmem:[#allocation10_spill] sm:$0xff] %v29957_v6  ;;  %v29971_v59 = vld [vmem:[%s35142_s0 + $0x31a] sm:$0xff]  ;;  %v35577_v50 = vld [vmem:[#allocation18_spill] sm:$0xff] }
 0x10e   :  { %23334 = vmatprep.mubr.f32.mxu0 %v29929_v56  ;;  %35569 = vst [vmem:[#allocation12_spill] sm:$0xff] %v29971_v59 }
 0x110   :  { %22823 = vmatmul.mubr.f32.gmra.mrb[54].mxu1 %v35562_v35  ;;  %v35570_v35 = vld [vmem:[#allocation13_spill] sm:$0xff] }
 0x111   :  { %23335 = vmatmul.mubr.f32.gmra.mrb[54].mxu0 %v29938_v8  ;;  %22825 = vmatprep.mubr.f32.mxu1 %v35563_v22  ;;  %v35571_v22 = vld [vmem:[#allocation14_spill] sm:$0xff]  ;;  %v19979_v8 = vld [vmem:[%s35143_s1 + $0x3a0] sm:$0xff] }
 0x112   :  { %23337 = vmatprep.mubr.f32.mxu0 %v29943_v33  ;;  %v30019_v33 = vld [vmem:[%s35142_s0 + $0x38] sm:$0xff] }
 0x114   :  { %22826 = vmatmul.mubr.f32.gmra.mrb[56].mxu1 %v35566_v43  ;;  %v29980_v43 = vld [vmem:[%s35142_s0 + $0x322] sm:$0xff] }
 0x115   :  { %23338 = vmatmul.mubr.f32.gmra.mrb[56].mxu0 %v29952_v38  ;;  %22828 = vmatprep.mubr.f32.mxu1 %v35567_v40  ;;  %35572 = vst [vmem:[#allocation13_spill] sm:$0xff] %v29980_v43  ;;  %v19813_v40 = vld [vmem:[%s35142_s0 + $0x332] sm:$0xff]  ;;  %v35576_v38 = vld [vmem:[#allocation17_spill] sm:$0xff] }
 0x116   :  { %23340 = vmatprep.mubr.f32.mxu0 %v29957_v6  ;;  %v35573_v6 = vld [vmem:[#allocation15_spill] sm:$0xff] }
 0x118   :  { %22829 = vmatmul.mubr.f32.gmra.mrb[58].mxu1 %v35570_v35  ;;  %v35574_v35 = vld [vmem:[#allocation16_spill] sm:$0xff] }
 0x119   :  { %23341 = vmatmul.mubr.f32.gmra.mrb[58].mxu0 %v29966_v44  ;;  %22831 = vmatprep.mubr.f32.mxu1 %v35571_v22  ;;  %v19814_v22 = vld [vmem:[%s35142_s0 + $0x33a] sm:$0xff]  ;;  %v29997_v44 = vld [vmem:[%s35142_s0 + $0x30] sm:$0xff] }
 0x11a   :  { %23343 = vmatprep.mubr.f32.mxu0 %v29971_v59  ;;  %v1640_v59 = vld [vmem:[%s35142_s0 + $0x2] sm:$0xff]  ;;  %35575 = vst [vmem:[#allocation14_spill] sm:$0xff] %v29997_v44 }
 0x11c   :  { %22832 = vmatmul.mubr.f32.gmra.mrb[60].mxu1 %v35573_v6  ;;  %v19977_v6 = vld [vmem:[%s35143_s1 + $0x390] sm:$0xff] }
 0x11d   :  { %23344 = vmatmul.mubr.f32.gmra.mrb[60].mxu0 %v29980_v43  ;;  %22834 = vmatprep.mubr.f32.mxu1 %v35574_v35  ;;  %v1641_v35 = vld [vmem:[%s35142_s0 + $0xa] sm:$0xff] }
 0x11e   :  { %23346 = vmatprep.mubr.f32.mxu0 %v19813_v40  ;;  %v19978_v40 = vld [vmem:[%s35143_s1 + $0x398] sm:$0xff]  ;;  %v19657_v43 = vld [vmem:[%s35143_s1 + $0x190] sm:$0xff] }
 0x120   :  { %22835 = vmatmul.mubr.f32.gmra.mrb[62].mxu1 %v35576_v38  ;;  %v19658_v38 = vld [vmem:[%s35143_s1 + $0x198] sm:$0xff] }
 0x121   :  { %23347 = vmatmul.mubr.f32.gmra.mrb[62].mxu0 %v19814_v22  ;;  %22869 = vmatprep.mubr.f32.mxu1 %v1640_v59  ;;  %v30024_v59 = vld [vmem:[%s35142_s0 + $0x48] sm:$0xff]  ;;  %v26300_v22 = vpack.c.bf16 %v19978_v40, %v19977_v6  ;;  %v26172_v56 = vpack.c.bf16 %v19658_v38, %v19657_v43  ;;  %v30044_v40 = vld [vmem:[%s35142_s0 + $0x50] sm:$0xff] }
 0x122   :  { %23381 = vmatprep.mubr.f32.mxu0 %v29997_v44  ;;  %v19980_v44 = vld [vmem:[%s35143_s1 + $0x3a8] sm:$0xff]  ;;  %v19981_v38 = vld [vmem:[%s35143_s1 + $0x3b0] sm:$0xff] }
 0x123   :  { %v19660_v6 = vld [vmem:[%s35143_s1 + $0x1a8] sm:$0xff]  ;;  %v26304_v43 = vpack.c.bf16 %v19980_v44, %v19979_v8 }
 0x124   :  { %22870 = vmatmul.mubr.f32.vlgmr.msra.gmra.mrb[0].mxu1 %v1641_v35  ;;  %v26176_v35 = vpack.c.bf16 %v19660_v6, %v19659_v31  ;;  %v30072_v31 = vld [vmem:[%s35142_s0 + $0x68] sm:$0xff]  ;;  %v19983_v6 = vld [vmem:[%s35143_s1 + $0x3c0] sm:$0xff] }
 0x125   :  { %23382 = vmatmul.mubr.f32.vlgmr.msra.gmra.mrb[0].mxu0 %v30019_v33  ;;  %22872 = vmatprep.mubr.f32.mxu1 %v35577_v50  ;;  %v30050_v50 = vld [vmem:[%s35142_s0 + $0x60] sm:$0xff] }
 0x126   :  { %23384 = vmatprep.mubr.f32.mxu0 %v30024_v59  ;;  %26299 = vmatpush3.bf16.msra.mxu0 %v29780_v1  ;;  %v19982_v1 = vld [vmem:[%s35143_s1 + $0x3b8] sm:$0xff] }
 0x127   :  { %26301 = vmatprep.subr.bf16.mxu0 %v26300_v22  ;;  %26171 = vmatpush3.bf16.msra.mxu1 %v29901_v46  ;;  %v19661_v46 = vld [vmem:[%s35143_s1 + $0x1b0] sm:$0xff]  ;;  %v26308_v8 = vpack.c.bf16 %v19982_v1, %v19981_v38  ;;  %v30098_v38 = vld [vmem:[%s35142_s0 + $0x80] sm:$0xff] }
 0x128   :  { %22873 = vmatmul.mubr.f32.gmra.mrb[2].mxu1 %v29471_v57  ;;  %26173 = vmatprep.subr.bf16.mxu1 %v26172_v56  ;;  %v19662_v57 = vld [vmem:[%s35143_s1 + $0x1b8] sm:$0xff] }
 0x129   :  { %23385 = vmatmul.mubr.f32.gmra.mrb[2].mxu0 %v30044_v40  ;;  %22875 = vmatprep.mubr.f32.mxu1 %v29476_v53  ;;  %v30077_v53 = vld [vmem:[%s35142_s0 + $0x78] sm:$0xff]  ;;  %v26180_v44 = vpack.c.bf16 %v19662_v57, %v19661_v46  ;;  %v19985_v57 = vld [vmem:[%s35143_s1 + $0x3d0] sm:$0xff] }
 0x12a   :  { %23387 = vmatprep.mubr.f32.mxu0 %v30050_v50  ;;  %26303 = vmatpush3.bf16.msra.mxu0 %v26300_v22  ;;  %v19984_v22 = vld [vmem:[%s35143_s1 + $0x3c8] sm:$0xff] }
 0x12b   :  { %26305 = vmatprep.subr.bf16.mxu0 %v26304_v43  ;;  %26175 = vmatpush3.bf16.msra.mxu1 %v26172_v56  ;;  %v19663_v56 = vld [vmem:[%s35143_s1 + $0x1c0] sm:$0xff]  ;;  %v26312_v1 = vpack.c.bf16 %v19984_v22, %v19983_v6  ;;  %v30124_v6 = vld [vmem:[%s35142_s0 + $0x98] sm:$0xff] }
 0x12c   :  { %22876 = vmatmul.mubr.f32.gmra.mrb[4].mxu1 %v29496_v18  ;;  %26177 = vmatprep.subr.bf16.mxu1 %v26176_v35  ;;  %v19664_v18 = vld [vmem:[%s35143_s1 + $0x1c8] sm:$0xff] }
 0x12d   :  { %23388 = vmatmul.mubr.f32.gmra.mrb[4].mxu0 %v30072_v31  ;;  %22878 = vmatprep.mubr.f32.mxu1 %v29502_v29  ;;  %v30103_v29 = vld [vmem:[%s35142_s0 + $0x90] sm:$0xff]  ;;  %v26184_v46 = vpack.c.bf16 %v19664_v18, %v19663_v56  ;;  %v19987_v18 = vld [vmem:[%s35143_s1 + $0x3e0] sm:$0xff] }
 0x12e   :  { %23390 = vmatprep.mubr.f32.mxu0 %v30077_v53  ;;  %26307 = vmatpush3.bf16.msra.mxu0 %v26304_v43  ;;  %v19986_v43 = vld [vmem:[%s35143_s1 + $0x3d8] sm:$0xff] }
 0x12f   :  { %26179 = vmatpush3.bf16.msra.mxu1 %v26176_v35  ;;  %26309 = vmatprep.subr.bf16.mxu0 %v26308_v8  ;;  %v19665_v35 = vld [vmem:[%s35143_s1 + $0x1d0] sm:$0xff]  ;;  %v26316_v22 = vpack.c.bf16 %v19986_v43, %v19985_v57 }
 0x130   :  { %22879 = vmatmul.mubr.f32.gmra.mrb[6].mxu1 %v29524_v32  ;;  %26181 = vmatprep.subr.bf16.mxu1 %v26180_v44  ;;  %v19666_v32 = vld [vmem:[%s35143_s1 + $0x1d8] sm:$0xff]  ;;  %v30150_v57 = vld [vmem:[%s35142_s0 + $0xb0] sm:$0xff] }
 0x131   :  { %23391 = vmatmul.mubr.f32.gmra.mrb[6].mxu0 %v30098_v38  ;;  %22881 = vmatprep.mubr.f32.mxu1 %v29529_v55  ;;  %v30129_v55 = vld [vmem:[%s35142_s0 + $0xa8] sm:$0xff]  ;;  %v26188_v56 = vpack.c.bf16 %v19666_v32, %v19665_v35  ;;  %v19989_v32 = vld [vmem:[%s35143_s1 + $0x3f0] sm:$0xff] }
 0x132   :  { %23393 = vmatprep.mubr.f32.mxu0 %v30103_v29  ;;  %26311 = vmatpush3.bf16.msra.mxu0 %v26308_v8  ;;  %v19988_v8 = vld [vmem:[%s35143_s1 + $0x3e8] sm:$0xff] }
 0x133   :  { %26183 = vmatpush3.bf16.msra.mxu1 %v26180_v44  ;;  %26313 = vmatprep.subr.bf16.mxu0 %v26312_v1  ;;  %v19667_v44 = vld [vmem:[%s35143_s1 + $0x1e0] sm:$0xff]  ;;  %v26320_v43 = vpack.c.bf16 %v19988_v8, %v19987_v18  ;;  %v30176_v18 = vld [vmem:[%s35142_s0 + $0xc8] sm:$0xff] }
 0x134   :  { %22882 = vmatmul.mubr.f32.gmra.mrb[8].mxu1 %v29550_v2  ;;  %26185 = vmatprep.subr.bf16.mxu1 %v26184_v46  ;;  %v19668_v2 = vld [vmem:[%s35143_s1 + $0x1e8] sm:$0xff] }
 0x135   :  { %23394 = vmatmul.mubr.f32.gmra.mrb[8].mxu0 %v30124_v6  ;;  %22884 = vmatprep.mubr.f32.mxu1 %v29555_v60  ;;  %v30155_v60 = vld [vmem:[%s35142_s0 + $0xc0] sm:$0xff]  ;;  %v26192_v35 = vpack.c.bf16 %v19668_v2, %v19667_v44 }
 0x136   :  { %23396 = vmatprep.mubr.f32.mxu0 %v30129_v55  ;;  %26315 = vmatpush3.bf16.msra.mxu0 %v26312_v1  ;;  %v19990_v1 = vld [vmem:[%s35143_s1 + $0x3f8] sm:$0xff]  ;;  %v30305_v2 = vld [vmem:[%s35142_s0 + $0x1e0] sm:$0xff] }
 0x137   :  { %26187 = vmatpush3.bf16.msra.mxu1 %v26184_v46  ;;  %26317 = vmatprep.subr.bf16.mxu0 %v26316_v22  ;;  %v19669_v46 = vld [vmem:[%s35143_s1 + $0x1f0] sm:$0xff]  ;;  %v26324_v8 = vpack.c.bf16 %v19990_v1, %v19989_v32  ;;  %v30336_v1 = vld [vmem:[%s35142_s0 + $0x200] sm:$0xff] }
 0x138   :  { %22885 = vmatmul.mubr.f32.gmra.mrb[10].mxu1 %v29576_v36  ;;  %26189 = vmatprep.subr.bf16.mxu1 %v26188_v56  ;;  %v19670_v36 = vld [vmem:[%s35143_s1 + $0x1f8] sm:$0xff] }
 0x139   :  { %23397 = vmatmul.mubr.f32.gmra.mrb[10].mxu0 %v30150_v57  ;;  %22887 = vmatprep.mubr.f32.mxu1 %v29581_v3  ;;  %v30181_v3 = vld [vmem:[%s35142_s0 + $0xd8] sm:$0xff]  ;;  %v26196_v44 = vpack.c.bf16 %v19670_v36, %v19669_v46  ;;  %v30342_v46 = vld [vmem:[%s35142_s0 + $0x210] sm:$0xff]  ;;  %v30356_v36 = vld [vmem:[%s35142_s0 + $0x228] sm:$0xff] }
 0x13a   :  { %23399 = vmatprep.mubr.f32.mxu0 %v30155_v60  ;;  %26319 = vmatpush3.bf16.msra.mxu0 %v26316_v22  ;;  %v30190_v22 = vld [vmem:[%s35142_s0 + $0xe0] sm:$0xff] }
 0x13b   :  { %26191 = vmatpush3.bf16.msra.mxu1 %v26188_v56  ;;  %26321 = vmatprep.subr.bf16.mxu0 %v26320_v43  ;;  %v30195_v56 = vld [vmem:[%s35142_s0 + $0xf0] sm:$0xff] }
 0x13c   :  { %22888 = vmatmul.mubr.f32.gmra.mrb[12].mxu1 %v29602_v52  ;;  %26193 = vmatprep.subr.bf16.mxu1 %v26192_v35  ;;  %v30204_v52 = vld [vmem:[%s35142_s0 + $0xf8] sm:$0xff] }
 0x13d   :  { %23400 = vmatmul.mubr.f32.gmra.mrb[12].mxu0 %v30176_v18  ;;  %22890 = vmatprep.mubr.f32.mxu1 %v29607_v10  ;;  %v30209_v10 = vld [vmem:[%s35142_s0 + $0x108] sm:$0xff] }
 0x13e   :  { %23402 = vmatprep.mubr.f32.mxu0 %v30181_v3  ;;  %26323 = vmatpush3.bf16.msra.mxu0 %v26320_v43  ;;  %v20055_v43 = vld [vmem:[%s35143_s1 + $0x400] sm:$0xff] }
 0x13f   :  { %26195 = vmatpush3.bf16.msra.mxu1 %v26192_v35  ;;  %26325 = vmatprep.subr.bf16.mxu0 %v26324_v8  ;;  %v30326_v35 = vld [vmem:[%s35142_s0 + $0x1f8] sm:$0xff] }
 0x140   :  { %22891 = vmatmul.mubr.f32.gmra.mrb[14].mxu1 %v29628_v58  ;;  %26197 = vmatprep.subr.bf16.mxu1 %v26196_v44  ;;  %v30218_v58 = vld [vmem:[%s35142_s0 + $0x110] sm:$0xff] }
 0x141   :  { %23403 = vmatmul.mubr.f32.gmra.mrb[14].mxu0 %v30190_v22  ;;  %22893 = vmatprep.mubr.f32.mxu1 %v29633_v19  ;;  %v30223_v19 = vld [vmem:[%s35142_s0 + $0x120] sm:$0xff] }
 0x142   :  { %23405 = vmatprep.mubr.f32.mxu0 %v30195_v56  ;;  %26327 = vmatpush3.bf16.msra.mxu0 %v26324_v8  ;;  %v30482_v8 = vld [vmem:[%s35142_s0 + $0x300] sm:$0xff] }
 0x143   :  { %26199 = vmatpush3.bf16.msra.mxu1 %v26196_v44  ;;  %35579 = vst [vmem:[#allocation15_spill] sm:$0xff] %v30482_v8  ;;  %v35580_v44 = vld [vmem:[#allocation20_spill] sm:$0xff] }
 0x144   :  { %22894 = vmatmul.mubr.f32.gmra.mrb[16].mxu1 %v29642_v12  ;;  %v30232_v12 = vld [vmem:[%s35142_s0 + $0x128] sm:$0xff] }
 0x145   :  { %23406 = vmatmul.mubr.f32.gmra.mrb[16].mxu0 %v30204_v52  ;;  %22896 = vmatprep.mubr.f32.mxu1 %v29647_v42  ;;  %v30237_v42 = vld [vmem:[%s35142_s0 + $0x138] sm:$0xff] }
 0x146   :  { %23408 = vmatprep.mubr.f32.mxu0 %v30209_v10 }
 0x148   :  { %22897 = vmatmul.mubr.f32.gmra.mrb[18].mxu1 %v29656_v25  ;;  %v30246_v25 = vld [vmem:[%s35142_s0 + $0x140] sm:$0xff] }
 0x149   :  { %23409 = vmatmul.mubr.f32.gmra.mrb[18].mxu0 %v30218_v58  ;;  %22899 = vmatprep.mubr.f32.mxu1 %v29661_v28  ;;  %v30251_v28 = vld [vmem:[%s35142_s0 + $0x150] sm:$0xff] }
 0x14a   :  { %23411 = vmatprep.mubr.f32.mxu0 %v30223_v19 }
 0x14c   :  { %22900 = vmatmul.mubr.f32.gmra.mrb[20].mxu1 %v29670_v37  ;;  %v30260_v37 = vld [vmem:[%s35142_s0 + $0x158] sm:$0xff] }
 0x14d   :  { %23412 = vmatmul.mubr.f32.gmra.mrb[20].mxu0 %v30232_v12  ;;  %22902 = vmatprep.mubr.f32.mxu1 %v29675_v39  ;;  %v30265_v39 = vld [vmem:[%s35142_s0 + $0x168] sm:$0xff] }
 0x14e   :  { %23414 = vmatprep.mubr.f32.mxu0 %v30237_v42 }
 0x150   :  { %22903 = vmatmul.mubr.f32.gmra.mrb[22].mxu1 %v29684_v47  ;;  %v30274_v47 = vld [vmem:[%s35142_s0 + $0x170] sm:$0xff] }
 0x151   :  { %23415 = vmatmul.mubr.f32.gmra.mrb[22].mxu0 %v30246_v25  ;;  %22905 = vmatprep.mubr.f32.mxu1 %v29689_v49  ;;  %v30279_v49 = vld [vmem:[%s35142_s0 + $0x180] sm:$0xff] }
 0x152   :  { %23417 = vmatprep.mubr.f32.mxu0 %v30251_v28 }
 0x154   :  { %22906 = vmatmul.mubr.f32.gmra.mrb[24].mxu1 %v29698_v61  ;;  %v30288_v61 = vld [vmem:[%s35142_s0 + $0x188] sm:$0xff] }
 0x155   :  { %23418 = vmatmul.mubr.f32.gmra.mrb[24].mxu0 %v30260_v37  ;;  %22908 = vmatprep.mubr.f32.mxu1 %v29703_v63  ;;  %v19861_v63 = vld [vmem:[%s35142_s0 + $0x198] sm:$0xff] }
 0x156   :  { %23420 = vmatprep.mubr.f32.mxu0 %v30265_v39 }
 0x158   :  { %22909 = vmatmul.mubr.f32.gmra.mrb[26].mxu1 %v29712_v11  ;;  %v19862_v11 = vld [vmem:[%s35142_s0 + $0x1a0] sm:$0xff] }
 0x159   :  { %23421 = vmatmul.mubr.f32.gmra.mrb[26].mxu0 %v30274_v47  ;;  %22911 = vmatprep.mubr.f32.mxu1 %v29717_v13  ;;  %v1672_v13 = vld [vmem:[%s35142_s0 + $0x1b2] sm:$0xff] }
 0x15a   :  { %23423 = vmatprep.mubr.f32.mxu0 %v30279_v49 }
 0x15c   :  { %22912 = vmatmul.mubr.f32.gmra.mrb[28].mxu1 %v29726_v21  ;;  %v1673_v21 = vld [vmem:[%s35142_s0 + $0x1ba] sm:$0xff] }
 0x15d   :  { %23424 = vmatmul.mubr.f32.gmra.mrb[28].mxu0 %v30288_v61  ;;  %22914 = vmatprep.mubr.f32.mxu1 %v29731_v23  ;;  %v30315_v23 = vld [vmem:[%s35142_s0 + $0x1e8] sm:$0xff] }
 0x15e   :  { %23426 = vmatprep.mubr.f32.mxu0 %v19861_v63  ;;  %v30491_v63 = vld [vmem:[%s35142_s0 + $0x308] sm:$0xff] }
 0x15f   :  { %35582 = vst [vmem:[#allocation16_spill] sm:$0xff] %v30491_v63 }
 0x160   :  { %22915 = vmatmul.mubr.f32.gmra.mrb[30].mxu1 %v29740_v27  ;;  %v20056_v27 = vld [vmem:[%s35143_s1 + $0x408] sm:$0xff] }
 0x161   :  { %23427 = vmatmul.mubr.f32.gmra.mrb[30].mxu0 %v19862_v11  ;;  %22917 = vmatprep.mubr.f32.mxu1 %v1672_v13  ;;  %v30328_v32 = vpack.c.bf16 %v20056_v27, %v20055_v43  ;;  %v30496_v11 = vld [vmem:[%s35142_s0 + $0x318] sm:$0xff]  ;;  %v35584_v13 = vld [vmem:[#allocation8_spill] sm:$0xff]  ;;  %v30510_v27 = vld [vmem:[%s35142_s0 + $0x330] sm:$0xff] }
 0x162   :  { %23429 = vmatprep.mubr.f32.mxu0 %v30305_v2  ;;  %35583 = vst [vmem:[#allocation17_spill] sm:$0xff] %v30496_v11  ;;  %v30505_v43 = vld [vmem:[%s35142_s0 + $0x320] sm:$0xff] }
 0x163   :  { %26329 = vmatprep.subr.bf16.mxu0 %v30328_v32  ;;  %35586 = vst [vmem:[#allocation18_spill] sm:$0xff] %v30505_v43 }
 0x164   :  { %22918 = vmatmul.mubr.f32.gmra.mrb[32].mxu1 %v1673_v21  ;;  %v35585_v21 = vld [vmem:[#allocation22_spill] sm:$0xff] }
 0x165   :  { %23430 = vmatmul.mubr.f32.gmra.mrb[32].mxu0 %v30315_v23  ;;  %22920 = vmatprep.mubr.f32.mxu1 %v29757_v5  ;;  %v30351_v5 = vld [vmem:[%s35142_s0 + $0x218] sm:$0xff] }
 0x166   :  { %23432 = vmatprep.mubr.f32.mxu0 %v30326_v35 }
 0x168   :  { %22921 = vmatmul.mubr.f32.gmra.mrb[34].mxu1 %v29767_v41  ;;  %v30365_v41 = vld [vmem:[%s35142_s0 + $0x230] sm:$0xff] }
 0x169   :  { %23433 = vmatmul.mubr.f32.gmra.mrb[34].mxu0 %v30336_v1  ;;  %22923 = vmatprep.mubr.f32.mxu1 %v29778_v45  ;;  %v30370_v45 = vld [vmem:[%s35142_s0 + $0x240] sm:$0xff] }
 0x16a   :  { %23435 = vmatprep.mubr.f32.mxu0 %v30342_v46 }
 0x16c   :  { %22924 = vmatmul.mubr.f32.gmra.mrb[36].mxu1 %v29788_v0  ;;  %v30379_v0 = vld [vmem:[%s35142_s0 + $0x248] sm:$0xff] }
 0x16d   :  { %23436 = vmatmul.mubr.f32.gmra.mrb[36].mxu0 %v30351_v5  ;;  %22926 = vmatprep.mubr.f32.mxu1 %v29794_v15  ;;  %v30384_v15 = vld [vmem:[%s35142_s0 + $0x258] sm:$0xff] }
 0x16e   :  { %23438 = vmatprep.mubr.f32.mxu0 %v30356_v36 }
 0x170   :  { %22927 = vmatmul.mubr.f32.gmra.mrb[38].mxu1 %v29803_v51  ;;  %v30393_v51 = vld [vmem:[%s35142_s0 + $0x260] sm:$0xff] }
 0x171   :  { %23439 = vmatmul.mubr.f32.gmra.mrb[38].mxu0 %v30365_v41  ;;  %22929 = vmatprep.mubr.f32.mxu1 %v29808_v17  ;;  %v30398_v17 = vld [vmem:[%s35142_s0 + $0x270] sm:$0xff] }
 0x172   :  { %23441 = vmatprep.mubr.f32.mxu0 %v30370_v45 }
 0x174   :  { %22930 = vmatmul.mubr.f32.gmra.mrb[40].mxu1 %v29817_v54  ;;  %v30407_v54 = vld [vmem:[%s35142_s0 + $0x278] sm:$0xff] }
 0x175   :  { %23442 = vmatmul.mubr.f32.gmra.mrb[40].mxu0 %v30379_v0  ;;  %22932 = vmatprep.mubr.f32.mxu1 %v29822_v62  ;;  %v30412_v62 = vld [vmem:[%s35142_s0 + $0x288] sm:$0xff] }
 0x176   :  { %23444 = vmatprep.mubr.f32.mxu0 %v30384_v15 }
 0x178   :  { %22933 = vmatmul.mubr.f32.gmra.mrb[42].mxu1 %v29831_v4  ;;  %v30421_v4 = vld [vmem:[%s35142_s0 + $0x290] sm:$0xff] }
 0x179   :  { %23445 = vmatmul.mubr.f32.gmra.mrb[42].mxu0 %v30393_v51  ;;  %22935 = vmatprep.mubr.f32.mxu1 %v29836_v7  ;;  %v30426_v7 = vld [vmem:[%s35142_s0 + $0x2a0] sm:$0xff] }
 0x17a   :  { %23447 = vmatprep.mubr.f32.mxu0 %v30398_v17 }
 0x17c   :  { %22936 = vmatmul.mubr.f32.gmra.mrb[44].mxu1 %v29845_v9  ;;  %v30435_v9 = vld [vmem:[%s35142_s0 + $0x2a8] sm:$0xff] }
 0x17d   :  { %23448 = vmatmul.mubr.f32.gmra.mrb[44].mxu0 %v30407_v54  ;;  %22938 = vmatprep.mubr.f32.mxu1 %v29850_v14  ;;  %v30440_v14 = vld [vmem:[%s35142_s0 + $0x2b8] sm:$0xff] }
 0x17e   :  { %23450 = vmatprep.mubr.f32.mxu0 %v30412_v62 }
 0x180   :  { %22939 = vmatmul.mubr.f32.gmra.mrb[46].mxu1 %v29859_v16  ;;  %v30449_v16 = vld [vmem:[%s35142_s0 + $0x2c0] sm:$0xff] }
 0x181   :  { %23451 = vmatmul.mubr.f32.gmra.mrb[46].mxu0 %v30421_v4  ;;  %22941 = vmatprep.mubr.f32.mxu1 %v29864_v20  ;;  %v30454_v20 = vld [vmem:[%s35142_s0 + $0x2d0] sm:$0xff] }
 0x182   :  { %23453 = vmatprep.mubr.f32.mxu0 %v30426_v7 }
 0x184   :  { %22942 = vmatmul.mubr.f32.gmra.mrb[48].mxu1 %v29873_v24  ;;  %v30463_v24 = vld [vmem:[%s35142_s0 + $0x2d8] sm:$0xff] }
 0x185   :  { %23454 = vmatmul.mubr.f32.gmra.mrb[48].mxu0 %v30435_v9  ;;  %22944 = vmatprep.mubr.f32.mxu1 %v29878_v30  ;;  %v30468_v30 = vld [vmem:[%s35142_s0 + $0x2e8] sm:$0xff] }
 0x186   :  { %23456 = vmatprep.mubr.f32.mxu0 %v30440_v14 }
 0x188   :  { %22945 = vmatmul.mubr.f32.gmra.mrb[50].mxu1 %v29887_v34  ;;  %v35578_v34 = vld [vmem:[#allocation19_spill] sm:$0xff] }
 0x189   :  { %23457 = vmatmul.mubr.f32.gmra.mrb[50].mxu0 %v30449_v16  ;;  %22947 = vmatprep.mubr.f32.mxu1 %v29895_v48  ;;  %v30477_v48 = vld [vmem:[%s35142_s0 + $0x2f0] sm:$0xff]  ;;  %35587 = vst [vmem:[#allocation19_spill] sm:$0xff] %v30510_v27 }
 0x18a   :  { %23459 = vmatprep.mubr.f32.mxu0 %v30454_v20 }
 0x18c   :  { %22948 = vmatmul.mubr.f32.gmra.mrb[52].mxu1 %v29909_v26  ;;  %v35581_v26 = vld [vmem:[#allocation21_spill] sm:$0xff] }
 0x18d   :  { %23460 = vmatmul.mubr.f32.gmra.mrb[52].mxu0 %v30463_v24  ;;  %22950 = vmatprep.mubr.f32.mxu1 %v35578_v34  ;;  %v35588_v34 = vld [vmem:[#allocation9_spill] sm:$0xff] }
 0x18e   :  { %23462 = vmatprep.mubr.f32.mxu0 %v30468_v30 }
 0x190   :  { %22951 = vmatmul.mubr.f32.gmra.mrb[54].mxu1 %v35580_v44  ;;  %v35589_v44 = vld [vmem:[#allocation10_spill] sm:$0xff] }
 0x191   :  { %23463 = vmatmul.mubr.f32.gmra.mrb[54].mxu0 %v30477_v48  ;;  %22953 = vmatprep.mubr.f32.mxu1 %v35581_v26  ;;  %v30519_v26 = vld [vmem:[%s35142_s0 + $0x338] sm:$0xff] }
 0x192   :  { %23465 = vmatprep.mubr.f32.mxu0 %v30482_v8  ;;  %35590 = vst [vmem:[#allocation20_spill] sm:$0xff] %v30519_v26  ;;  %v19914_v8 = vld [vmem:[%s35142_s0 + $0x51] sm:$0xff] }
 0x194   :  { %22954 = vmatmul.mubr.f32.gmra.mrb[56].mxu1 %v35584_v13  ;;  %v19893_v13 = vld [vmem:[%s35142_s0 + $0x348] sm:$0xff] }
 0x195   :  { %23466 = vmatmul.mubr.f32.gmra.mrb[56].mxu0 %v30491_v63  ;;  %22956 = vmatprep.mubr.f32.mxu1 %v35585_v21  ;;  %v35591_v21 = vld [vmem:[#allocation11_spill] sm:$0xff] }
 0x196   :  { %23468 = vmatprep.mubr.f32.mxu0 %v30496_v11  ;;  %v35593_v11 = vld [vmem:[#allocation13_spill] sm:$0xff] }
 0x198   :  { %22957 = vmatmul.mubr.f32.gmra.mrb[58].mxu1 %v35588_v34  ;;  %v35592_v34 = vld [vmem:[#allocation12_spill] sm:$0xff] }
 0x199   :  { %23469 = vmatmul.mubr.f32.gmra.mrb[58].mxu0 %v30505_v43  ;;  %22959 = vmatprep.mubr.f32.mxu1 %v35589_v44  ;;  %v19894_v44 = vld [vmem:[%s35142_s0 + $0x350] sm:$0xff] }
 0x19a   :  { %23471 = vmatprep.mubr.f32.mxu0 %v30510_v27  ;;  %v19591_v27 = vld [vmem:[%s35142_s0 + $0x18] sm:$0xff] }
 0x19b   :  { %v19911_v43 = vld [vmem:[%s35142_s0 + $0x31] sm:$0xff] }
 0x19c   :  { %22960 = vmatmul.mubr.f32.gmra.mrb[60].mxu1 %v35591_v21  ;;  %v20057_v21 = vld [vmem:[%s35143_s1 + $0x410] sm:$0xff] }
 0x19d   :  { %23472 = vmatmul.mubr.f32.gmra.mrb[60].mxu0 %v30519_v26  ;;  %22962 = vmatprep.mubr.f32.mxu1 %v35592_v34  ;;  %v19592_v34 = vld [vmem:[%s35142_s0 + $0x20] sm:$0xff] }
 0x19e   :  { %23474 = vmatprep.mubr.f32.mxu0 %v19893_v13  ;;  %v20058_v13 = vld [vmem:[%s35143_s1 + $0x418] sm:$0xff] }
 0x19f   :  { %v19912_v26 = vld [vmem:[%s35142_s0 + $0x39] sm:$0xff]  ;;  %v26332_v63 = vpack.c.bf16 %v20058_v13, %v20057_v21  ;;  %v19915_v21 = vld [vmem:[%s35142_s0 + $0x61] sm:$0xff] }
 0x1a0   :  { %22963 = vmatmul.mubr.f32.gmra.mrb[62].mxu1 %v35593_v11  ;;  %v19913_v11 = vld [vmem:[%s35142_s0 + $0x49] sm:$0xff] }
 0x1a1   :  { %23475 = vmatmul.mubr.f32.gmra.mrb[62].mxu0 %v19894_v44  ;;  %22997 = vmatprep.mubr.f32.mxu1 %v19591_v27  ;;  %v20059_v44 = vld [vmem:[%s35143_s1 + $0x420] sm:$0xff]  ;;  %v20060_v27 = vld [vmem:[%s35143_s1 + $0x428] sm:$0xff] }
 0x1a2   :  { %23509 = vmatprep.mubr.f32.mxu0 %v19911_v43  ;;  %v35594_v43 = vld [vmem:[#allocation14_spill] sm:$0xff]  ;;  %v26336_v13 = vpack.c.bf16 %v20060_v27, %v20059_v44 }
 0x1a3   :  { %v20065_v27 = vld [vmem:[%s35143_s1 + $0x450] sm:$0xff] }
 0x1a4   :  { %22998 = vmatmul.mubr.f32.vlgmr.msra.gmra.mrb[0].mxu1 %v19592_v34  ;;  %v20062_v34 = vld [vmem:[%s35143_s1 + $0x438] sm:$0xff] }
 0x1a5   :  { %23510 = vmatmul.mubr.f32.vlgmr.msra.gmra.mrb[0].mxu0 %v19912_v26  ;;  %23000 = vmatprep.mubr.f32.mxu1 %v35594_v43  ;;  %v20061_v26 = vld [vmem:[%s35143_s1 + $0x430] sm:$0xff]  ;;  %v19920_v43 = vld [vmem:[%s35142_s0 + $0x99] sm:$0xff] }
 0x1a6   :  { %23512 = vmatprep.mubr.f32.mxu0 %v19913_v11  ;;  %26331 = vmatpush3.bf16.msra.mxu0 %v30328_v32  ;;  %v19916_v32 = vld [vmem:[%s35142_s0 + $0x69] sm:$0xff]  ;;  %v26340_v11 = vpack.c.bf16 %v20062_v34, %v20061_v26  ;;  %v19922_v26 = vld [vmem:[%s35142_s0 + $0xb1] sm:$0xff] }
 0x1a7   :  { %26333 = vmatprep.subr.bf16.mxu0 %v26332_v63 }
 0x1a8   :  { %23001 = vmatmul.mubr.f32.gmra.mrb[2].mxu1 %v30019_v33  ;;  %v19917_v33 = vld [vmem:[%s35142_s0 + $0x79] sm:$0xff] }
 0x1a9   :  { %23513 = vmatmul.mubr.f32.gmra.mrb[2].mxu0 %v19914_v8  ;;  %23003 = vmatprep.mubr.f32.mxu1 %v30024_v59  ;;  %v20063_v8 = vld [vmem:[%s35143_s1 + $0x440] sm:$0xff]  ;;  %v20064_v59 = vld [vmem:[%s35143_s1 + $0x448] sm:$0xff] }
 0x1aa   :  { %23515 = vmatprep.mubr.f32.mxu0 %v19915_v21  ;;  %26335 = vmatpush3.bf16.msra.mxu0 %v26332_v63  ;;  %v19918_v63 = vld [vmem:[%s35142_s0 + $0x81] sm:$0xff]  ;;  %v26344_v44 = vpack.c.bf16 %v20064_v59, %v20063_v8  ;;  %v19927_v8 = vld [vmem:[%s35142_s0 + $0xf1] sm:$0xff] }
 0x1ab   :  { %26337 = vmatprep.subr.bf16.mxu0 %v26336_v13  ;;  %v19943_v59 = vld [vmem:[%s35142_s0 + $0x1e1] sm:$0xff] }
 0x1ac   :  { %23004 = vmatmul.mubr.f32.gmra.mrb[4].mxu1 %v30044_v40  ;;  %v19919_v40 = vld [vmem:[%s35142_s0 + $0x91] sm:$0xff] }
 0x1ad   :  { %23516 = vmatmul.mubr.f32.gmra.mrb[4].mxu0 %v19916_v32  ;;  %23006 = vmatprep.mubr.f32.mxu1 %v30050_v50  ;;  %v20066_v50 = vld [vmem:[%s35143_s1 + $0x458] sm:$0xff]  ;;  %v20069_v32 = vld [vmem:[%s35143_s1 + $0x470] sm:$0xff] }
 0x1ae   :  { %23518 = vmatprep.mubr.f32.mxu0 %v19917_v33  ;;  %26339 = vmatpush3.bf16.msra.mxu0 %v26336_v13  ;;  %v26348_v21 = vpack.c.bf16 %v20066_v50, %v20065_v27  ;;  %v20067_v13 = vld [vmem:[%s35143_s1 + $0x460] sm:$0xff]  ;;  %v19924_v33 = vld [vmem:[%s35142_s0 + $0xc9] sm:$0xff] }
 0x1af   :  { %26341 = vmatprep.subr.bf16.mxu0 %v26340_v11  ;;  %v35595_v27 = vld [vmem:[#allocation15_spill] sm:$0xff]  ;;  %v35596_v50 = vld [vmem:[#allocation16_spill] sm:$0xff] }
 0x1b0   :  { %23007 = vmatmul.mubr.f32.gmra.mrb[6].mxu1 %v30072_v31  ;;  %v19921_v31 = vld [vmem:[%s35142_s0 + $0xa9] sm:$0xff] }
 0x1b1   :  { %23519 = vmatmul.mubr.f32.gmra.mrb[6].mxu0 %v19918_v63  ;;  %23009 = vmatprep.mubr.f32.mxu1 %v30077_v53  ;;  %v20068_v53 = vld [vmem:[%s35143_s1 + $0x468] sm:$0xff]  ;;  %v19945_v63 = vld [vmem:[%s35142_s0 + $0x1f9] sm:$0xff] }
 0x1b2   :  { %23521 = vmatprep.mubr.f32.mxu0 %v19919_v40  ;;  %26343 = vmatpush3.bf16.msra.mxu0 %v26340_v11  ;;  %v26352_v34 = vpack.c.bf16 %v20068_v53, %v20067_v13  ;;  %v19947_v40 = vld [vmem:[%s35142_s0 + $0x211] sm:$0xff]  ;;  %v35599_v13 = vld [vmem:[#allocation19_spill] sm:$0xff] }
 0x1b3   :  { %26345 = vmatprep.subr.bf16.mxu0 %v26344_v44  ;;  %v19974_v53 = vld [vmem:[%s35142_s0 + $0x351] sm:$0xff] }
 0x1b4   :  { %23010 = vmatmul.mubr.f32.gmra.mrb[8].mxu1 %v30098_v38  ;;  %v19923_v38 = vld [vmem:[%s35142_s0 + $0xc1] sm:$0xff] }
 0x1b5   :  { %23522 = vmatmul.mubr.f32.gmra.mrb[8].mxu0 %v19920_v43  ;;  %23012 = vmatprep.mubr.f32.mxu1 %v30103_v29  ;;  %v20070_v29 = vld [vmem:[%s35143_s1 + $0x478] sm:$0xff]  ;;  %v35597_v43 = vld [vmem:[#allocation17_spill] sm:$0xff] }
 0x1b6   :  { %23524 = vmatprep.mubr.f32.mxu0 %v19921_v31  ;;  %26347 = vmatpush3.bf16.msra.mxu0 %v26344_v44  ;;  %v26356_v11 = vpack.c.bf16 %v20070_v29, %v20069_v32  ;;  %v19948_v44 = vld [vmem:[%s35142_s0 + $0x219] sm:$0xff]  ;;  %v19973_v31 = vld [vmem:[%s35142_s0 + $0x349] sm:$0xff] }
 0x1b7   :  { %26349 = vmatprep.subr.bf16.mxu0 %v26348_v21  ;;  %v19993_v32 = vld [vmem:[%s35142_s0 + $0x4a] sm:$0xff]  ;;  %v19994_v29 = vld [vmem:[%s35142_s0 + $0x52] sm:$0xff] }
 0x1b8   :  { %23013 = vmatmul.mubr.f32.gmra.mrb[10].mxu1 %v30124_v6  ;;  %v19925_v6 = vld [vmem:[%s35142_s0 + $0xd9] sm:$0xff] }
 0x1b9   :  { %23525 = vmatmul.mubr.f32.gmra.mrb[10].mxu0 %v19922_v26  ;;  %23015 = vmatprep.mubr.f32.mxu1 %v30129_v55  ;;  %v19926_v55 = vld [vmem:[%s35142_s0 + $0xe1] sm:$0xff]  ;;  %v19991_v26 = vld [vmem:[%s35142_s0 + $0x32] sm:$0xff] }
 0x1ba   :  { %23527 = vmatprep.mubr.f32.mxu0 %v19923_v38  ;;  %26351 = vmatpush3.bf16.msra.mxu0 %v26348_v21  ;;  %v35598_v21 = vld [vmem:[#allocation18_spill] sm:$0xff]  ;;  %v35600_v38 = vld [vmem:[#allocation20_spill] sm:$0xff] }
 0x1bb   :  { %26353 = vmatprep.subr.bf16.mxu0 %v26352_v34 }
 0x1bc   :  { %23016 = vmatmul.mubr.f32.gmra.mrb[12].mxu1 %v30150_v57  ;;  %v19928_v57 = vld [vmem:[%s35142_s0 + $0xf9] sm:$0xff] }
 0x1bd   :  { %23528 = vmatmul.mubr.f32.gmra.mrb[12].mxu0 %v19924_v33  ;;  %23018 = vmatprep.mubr.f32.mxu1 %v30155_v60  ;;  %v19929_v60 = vld [vmem:[%s35142_s0 + $0x109] sm:$0xff] }
 0x1be   :  { %23530 = vmatprep.mubr.f32.mxu0 %v19925_v6  ;;  %26355 = vmatpush3.bf16.msra.mxu0 %v26352_v34  ;;  %v19992_v34 = vld [vmem:[%s35142_s0 + $0x3a] sm:$0xff]  ;;  %v19995_v33 = vld [vmem:[%s35142_s0 + $0x62] sm:$0xff]  ;;  %v19996_v6 = vld [vmem:[%s35142_s0 + $0x6a] sm:$0xff] }
 0x1bf   :  { %26357 = vmatprep.subr.bf16.mxu0 %v26356_v11 }
 0x1c0   :  { %23019 = vmatmul.mubr.f32.gmra.mrb[14].mxu1 %v30176_v18  ;;  %v19930_v18 = vld [vmem:[%s35142_s0 + $0x111] sm:$0xff] }
 0x1c1   :  { %23531 = vmatmul.mubr.f32.gmra.mrb[14].mxu0 %v19926_v55  ;;  %23021 = vmatprep.mubr.f32.mxu1 %v30181_v3  ;;  %v19931_v3 = vld [vmem:[%s35142_s0 + $0x121] sm:$0xff] }
 0x1c2   :  { %23533 = vmatprep.mubr.f32.mxu0 %v19927_v8  ;;  %26359 = vmatpush3.bf16.msra.mxu0 %v26356_v11  ;;  %v19997_v11 = vld [vmem:[%s35142_s0 + $0x7a] sm:$0xff]  ;;  %v19998_v55 = vld [vmem:[%s35142_s0 + $0x82] sm:$0xff]  ;;  %v19999_v8 = vld [vmem:[%s35142_s0 + $0x92] sm:$0xff] }
 0x1c4   :  { %23022 = vmatmul.mubr.f32.gmra.mrb[16].mxu1 %v30190_v22  ;;  %v19932_v22 = vld [vmem:[%s35142_s0 + $0x129] sm:$0xff] }
 0x1c5   :  { %23534 = vmatmul.mubr.f32.gmra.mrb[16].mxu0 %v19928_v57  ;;  %23024 = vmatprep.mubr.f32.mxu1 %v30195_v56  ;;  %v19933_v56 = vld [vmem:[%s35142_s0 + $0x139] sm:$0xff] }
 0x1c6   :  { %23536 = vmatprep.mubr.f32.mxu0 %v19929_v60  ;;  %v20000_v57 = vld [vmem:[%s35142_s0 + $0x9a] sm:$0xff]  ;;  %v20001_v60 = vld [vmem:[%s35142_s0 + $0xaa] sm:$0xff] }
 0x1c8   :  { %23025 = vmatmul.mubr.f32.gmra.mrb[18].mxu1 %v30204_v52  ;;  %v19934_v52 = vld [vmem:[%s35142_s0 + $0x141] sm:$0xff] }
 0x1c9   :  { %23537 = vmatmul.mubr.f32.gmra.mrb[18].mxu0 %v19930_v18  ;;  %23027 = vmatprep.mubr.f32.mxu1 %v30209_v10  ;;  %v19935_v10 = vld [vmem:[%s35142_s0 + $0x151] sm:$0xff] }
 0x1ca   :  { %23539 = vmatprep.mubr.f32.mxu0 %v19931_v3  ;;  %v20002_v18 = vld [vmem:[%s35142_s0 + $0xb2] sm:$0xff]  ;;  %v20003_v3 = vld [vmem:[%s35142_s0 + $0xc2] sm:$0xff] }
 0x1cc   :  { %23028 = vmatmul.mubr.f32.gmra.mrb[20].mxu1 %v30218_v58  ;;  %v19936_v58 = vld [vmem:[%s35142_s0 + $0x159] sm:$0xff] }
 0x1cd   :  { %23540 = vmatmul.mubr.f32.gmra.mrb[20].mxu0 %v19932_v22  ;;  %23030 = vmatprep.mubr.f32.mxu1 %v30223_v19  ;;  %v19937_v19 = vld [vmem:[%s35142_s0 + $0x169] sm:$0xff] }
 0x1ce   :  { %23542 = vmatprep.mubr.f32.mxu0 %v19933_v56  ;;  %v20004_v22 = vld [vmem:[%s35142_s0 + $0xca] sm:$0xff]  ;;  %v20005_v56 = vld [vmem:[%s35142_s0 + $0xda] sm:$0xff] }
 0x1d0   :  { %23031 = vmatmul.mubr.f32.gmra.mrb[22].mxu1 %v30232_v12  ;;  %v19938_v12 = vld [vmem:[%s35142_s0 + $0x171] sm:$0xff] }
 0x1d1   :  { %23543 = vmatmul.mubr.f32.gmra.mrb[22].mxu0 %v19934_v52  ;;  %23033 = vmatprep.mubr.f32.mxu1 %v30237_v42  ;;  %v19939_v42 = vld [vmem:[%s35142_s0 + $0x181] sm:$0xff] }
 0x1d2   :  { %23545 = vmatprep.mubr.f32.mxu0 %v19935_v10  ;;  %v20006_v52 = vld [vmem:[%s35142_s0 + $0xe2] sm:$0xff]  ;;  %v20007_v10 = vld [vmem:[%s35142_s0 + $0xf2] sm:$0xff] }
 0x1d4   :  { %23034 = vmatmul.mubr.f32.gmra.mrb[24].mxu1 %v30246_v25  ;;  %v19940_v25 = vld [vmem:[%s35142_s0 + $0x189] sm:$0xff] }
 0x1d5   :  { %23546 = vmatmul.mubr.f32.gmra.mrb[24].mxu0 %v19936_v58  ;;  %23036 = vmatprep.mubr.f32.mxu1 %v30251_v28  ;;  %v19941_v28 = vld [vmem:[%s35142_s0 + $0x199] sm:$0xff] }
 0x1d6   :  { %23548 = vmatprep.mubr.f32.mxu0 %v19937_v19  ;;  %v20008_v58 = vld [vmem:[%s35142_s0 + $0xfa] sm:$0xff]  ;;  %v20009_v19 = vld [vmem:[%s35142_s0 + $0x10a] sm:$0xff] }
 0x1d8   :  { %23037 = vmatmul.mubr.f32.gmra.mrb[26].mxu1 %v30260_v37  ;;  %v19942_v37 = vld [vmem:[%s35142_s0 + $0x1a1] sm:$0xff] }
 0x1d9   :  { %23549 = vmatmul.mubr.f32.gmra.mrb[26].mxu0 %v19938_v12  ;;  %23039 = vmatprep.mubr.f32.mxu1 %v30265_v39  ;;  %v19623_v39 = vld [vmem:[%s35142_s0 + $0x1c8] sm:$0xff]  ;;  %v6775_v12 = vld [vmem:[%s35146_s4] sm:$0xff] }
 0x1da   :  { %23551 = vmatprep.mubr.f32.mxu0 %v19939_v42  ;;  %v6776_v42 = vld [vmem:[%s35146_s4 + $0x8] sm:$0xff] }
 0x1dc   :  { %23040 = vmatmul.mubr.f32.gmra.mrb[28].mxu1 %v30274_v47  ;;  %v19624_v47 = vld [vmem:[%s35142_s0 + $0x1d0] sm:$0xff] }
 0x1dd   :  { %23552 = vmatmul.mubr.f32.gmra.mrb[28].mxu0 %v19940_v25  ;;  %23042 = vmatprep.mubr.f32.mxu1 %v30279_v49  ;;  %v19944_v49 = vld [vmem:[%s35142_s0 + $0x1e9] sm:$0xff]  ;;  %v26360_v25 = vpack.c.bf16 %v6776_v42, %v6775_v12 }
 0x1de   :  { %23554 = vmatprep.mubr.f32.mxu0 %v19941_v28  ;;  %v20010_v28 = vld [vmem:[%s35142_s0 + $0x112] sm:$0xff]  ;;  %v20042_v42 = vld [vmem:[%s35142_s0 + $0x2c2] sm:$0xff] }
 0x1df   :  { %26361 = vmatprep.subr.bf16.mxu1 %v26360_v25 }
 0x1e0   :  { %23043 = vmatmul.mubr.f32.gmra.mrb[30].mxu1 %v30288_v61  ;;  %v19946_v61 = vld [vmem:[%s35142_s0 + $0x201] sm:$0xff] }
 0x1e1   :  { %23555 = vmatmul.mubr.f32.gmra.mrb[30].mxu0 %v19942_v37  ;;  %23045 = vmatprep.mubr.f32.mxu1 %v19623_v39  ;;  %v20011_v37 = vld [vmem:[%s35142_s0 + $0x122] sm:$0xff]  ;;  %v20012_v39 = vld [vmem:[%s35142_s0 + $0x12a] sm:$0xff] }
 0x1e2   :  { %23557 = vmatprep.mubr.f32.mxu0 %v19943_v59  ;;  %26363 = vmatpush3.bf16.msra.mxu1 %v26360_v25  ;;  %v20013_v59 = vld [vmem:[%s35142_s0 + $0x13a] sm:$0xff] }
 0x1e4   :  { %23046 = vmatmul.mubr.f32.gmra.mrb[32].mxu1 %v19624_v47  ;;  %v20014_v47 = vld [vmem:[%s35142_s0 + $0x142] sm:$0xff] }
 0x1e5   :  { %23558 = vmatmul.mubr.f32.gmra.mrb[32].mxu0 %v19944_v49  ;;  %23048 = vmatprep.mubr.f32.mxu1 %v30305_v2  ;;  %v19949_v2 = vld [vmem:[%s35142_s0 + $0x229] sm:$0xff]  ;;  %v20015_v49 = vld [vmem:[%s35142_s0 + $0x152] sm:$0xff] }
 0x1e6   :  { %23560 = vmatprep.mubr.f32.mxu0 %v19945_v63  ;;  %v20016_v63 = vld [vmem:[%s35142_s0 + $0x15a] sm:$0xff] }
 0x1e8   :  { %23049 = vmatmul.mubr.f32.gmra.mrb[34].mxu1 %v30315_v23  ;;  %v19950_v23 = vld [vmem:[%s35142_s0 + $0x231] sm:$0xff] }
 0x1e9   :  { %23561 = vmatmul.mubr.f32.gmra.mrb[34].mxu0 %v19946_v61  ;;  %23051 = vmatprep.mubr.f32.mxu1 %v30326_v35  ;;  %v19951_v35 = vld [vmem:[%s35142_s0 + $0x241] sm:$0xff]  ;;  %v20017_v61 = vld [vmem:[%s35142_s0 + $0x16a] sm:$0xff] }
 0x1ea   :  { %23563 = vmatprep.mubr.f32.mxu0 %v19947_v40  ;;  %v6777_v40 = vld [vmem:[%s35146_s4 + $0x10] sm:$0xff] }
 0x1ec   :  { %23052 = vmatmul.mubr.f32.gmra.mrb[36].mxu1 %v30336_v1  ;;  %v19952_v1 = vld [vmem:[%s35142_s0 + $0x249] sm:$0xff] }
 0x1ed   :  { %23564 = vmatmul.mubr.f32.gmra.mrb[36].mxu0 %v19948_v44  ;;  %23054 = vmatprep.mubr.f32.mxu1 %v30342_v46  ;;  %v19953_v46 = vld [vmem:[%s35142_s0 + $0x259] sm:$0xff] }
 0x1ee   :  { %23566 = vmatprep.mubr.f32.mxu0 %v19949_v2  ;;  %v6778_v44 = vld [vmem:[%s35146_s4 + $0x18] sm:$0xff] }
 0x1ef   :  { %v26364_v2 = vpack.c.bf16 %v6778_v44, %v6777_v40  ;;  %v20047_v40 = vld [vmem:[%s35142_s0 + $0x302] sm:$0xff] }
 0x1f0   :  { %23055 = vmatmul.mubr.f32.gmra.mrb[38].mxu1 %v30351_v5  ;;  %v19954_v5 = vld [vmem:[%s35142_s0 + $0x261] sm:$0xff] }
 0x1f1   :  { %23567 = vmatmul.mubr.f32.gmra.mrb[38].mxu0 %v19950_v23  ;;  %23057 = vmatprep.mubr.f32.mxu1 %v30356_v36  ;;  %v19955_v36 = vld [vmem:[%s35142_s0 + $0x271] sm:$0xff] }
 0x1f2   :  { %23569 = vmatprep.mubr.f32.mxu0 %v19951_v35  ;;  %v20018_v23 = vld [vmem:[%s35142_s0 + $0x172] sm:$0xff]  ;;  %v20019_v35 = vld [vmem:[%s35142_s0 + $0x182] sm:$0xff]  ;;  %26365 = vmatprep.subr.bf16.mxu1 %v26364_v2 }
 0x1f3   :  { %26367 = vmatpush3.bf16.msra.mxu1 %v26364_v2  ;;  %v20048_v2 = vld [vmem:[%s35142_s0 + $0x30a] sm:$0xff] }
 0x1f4   :  { %23058 = vmatmul.mubr.f32.gmra.mrb[40].mxu1 %v30365_v41  ;;  %v19956_v41 = vld [vmem:[%s35142_s0 + $0x279] sm:$0xff] }
 0x1f5   :  { %23570 = vmatmul.mubr.f32.gmra.mrb[40].mxu0 %v19952_v1  ;;  %23060 = vmatprep.mubr.f32.mxu1 %v30370_v45  ;;  %v19957_v45 = vld [vmem:[%s35142_s0 + $0x289] sm:$0xff] }
 0x1f6   :  { %23572 = vmatprep.mubr.f32.mxu0 %v19953_v46  ;;  %v20020_v1 = vld [vmem:[%s35142_s0 + $0x18a] sm:$0xff]  ;;  %v20021_v46 = vld [vmem:[%s35142_s0 + $0x19a] sm:$0xff] }
 0x1f8   :  { %23061 = vmatmul.mubr.f32.gmra.mrb[42].mxu1 %v30379_v0  ;;  %v19958_v0 = vld [vmem:[%s35142_s0 + $0x291] sm:$0xff] }
 0x1f9   :  { %23573 = vmatmul.mubr.f32.gmra.mrb[42].mxu0 %v19954_v5  ;;  %23063 = vmatprep.mubr.f32.mxu1 %v30384_v15  ;;  %v19959_v15 = vld [vmem:[%s35142_s0 + $0x2a1] sm:$0xff] }
 0x1fa   :  { %23575 = vmatprep.mubr.f32.mxu0 %v19955_v36  ;;  %v20022_v5 = vld [vmem:[%s35142_s0 + $0x1a2] sm:$0xff] }
 0x1fb   :  { %v20023_v36 = vld [vmem:[%s35142_s0 + $0x1e2] sm:$0xff] }
 0x1fc   :  { %23064 = vmatmul.mubr.f32.gmra.mrb[44].mxu1 %v30393_v51  ;;  %v19960_v51 = vld [vmem:[%s35142_s0 + $0x2a9] sm:$0xff] }
 0x1fd   :  { %23576 = vmatmul.mubr.f32.gmra.mrb[44].mxu0 %v19956_v41  ;;  %23066 = vmatprep.mubr.f32.mxu1 %v30398_v17  ;;  %v19961_v17 = vld [vmem:[%s35142_s0 + $0x2b9] sm:$0xff]  ;;  %v20024_v41 = vld [vmem:[%s35142_s0 + $0x1ea] sm:$0xff] }
 0x1fe   :  { %23578 = vmatprep.mubr.f32.mxu0 %v19957_v45  ;;  %v20025_v45 = vld [vmem:[%s35142_s0 + $0x1fa] sm:$0xff] }
 0x200   :  { %23067 = vmatmul.mubr.f32.gmra.mrb[46].mxu1 %v30407_v54  ;;  %v19962_v54 = vld [vmem:[%s35142_s0 + $0x2c1] sm:$0xff] }
 0x201   :  { %23579 = vmatmul.mubr.f32.gmra.mrb[46].mxu0 %v19958_v0  ;;  %23069 = vmatprep.mubr.f32.mxu1 %v30412_v62  ;;  %v19963_v62 = vld [vmem:[%s35142_s0 + $0x2d1] sm:$0xff]  ;;  %v6779_v0 = vld [vmem:[%s35146_s4 + $0x20] sm:$0xff] }
 0x202   :  { %23581 = vmatprep.mubr.f32.mxu0 %v19959_v15  ;;  %v6780_v15 = vld [vmem:[%s35146_s4 + $0x28] sm:$0xff] }
 0x204   :  { %23070 = vmatmul.mubr.f32.gmra.mrb[48].mxu1 %v30421_v4  ;;  %v19964_v4 = vld [vmem:[%s35142_s0 + $0x2d9] sm:$0xff] }
 0x205   :  { %23582 = vmatmul.mubr.f32.gmra.mrb[48].mxu0 %v19960_v51  ;;  %23072 = vmatprep.mubr.f32.mxu1 %v30426_v7  ;;  %v19965_v7 = vld [vmem:[%s35142_s0 + $0x2e9] sm:$0xff]  ;;  %v26368_v51 = vpack.c.bf16 %v6780_v15, %v6779_v0 }
 0x206   :  { %23584 = vmatprep.mubr.f32.mxu0 %v19961_v17  ;;  %v20026_v17 = vld [vmem:[%s35142_s0 + $0x202] sm:$0xff]  ;;  %v20053_v15 = vld [vmem:[%s35142_s0 + $0x34a] sm:$0xff] }
 0x207   :  { %26369 = vmatprep.subr.bf16.mxu1 %v26368_v51 }
 0x208   :  { %23073 = vmatmul.mubr.f32.gmra.mrb[50].mxu1 %v30435_v9  ;;  %v19966_v9 = vld [vmem:[%s35142_s0 + $0x2f1] sm:$0xff] }
 0x209   :  { %23585 = vmatmul.mubr.f32.gmra.mrb[50].mxu0 %v19962_v54  ;;  %23075 = vmatprep.mubr.f32.mxu1 %v30440_v14  ;;  %v19967_v14 = vld [vmem:[%s35142_s0 + $0x301] sm:$0xff]  ;;  %v20027_v54 = vld [vmem:[%s35142_s0 + $0x212] sm:$0xff] }
 0x20a   :  { %23587 = vmatprep.mubr.f32.mxu0 %v19963_v62  ;;  %26371 = vmatpush3.bf16.msra.mxu1 %v26368_v51  ;;  %v20028_v62 = vld [vmem:[%s35142_s0 + $0x21a] sm:$0xff] }
 0x20c   :  { %23076 = vmatmul.mubr.f32.gmra.mrb[52].mxu1 %v30449_v16  ;;  %v19968_v16 = vld [vmem:[%s35142_s0 + $0x309] sm:$0xff] }
 0x20d   :  { %23588 = vmatmul.mubr.f32.gmra.mrb[52].mxu0 %v19964_v4  ;;  %23078 = vmatprep.mubr.f32.mxu1 %v30454_v20  ;;  %v19969_v20 = vld [vmem:[%s35142_s0 + $0x319] sm:$0xff]  ;;  %v20029_v4 = vld [vmem:[%s35142_s0 + $0x22a] sm:$0xff] }
 0x20e   :  { %23590 = vmatprep.mubr.f32.mxu0 %v19965_v7  ;;  %v20030_v7 = vld [vmem:[%s35142_s0 + $0x232] sm:$0xff] }
 0x210   :  { %23079 = vmatmul.mubr.f32.gmra.mrb[54].mxu1 %v30463_v24  ;;  %v19970_v24 = vld [vmem:[%s35142_s0 + $0x321] sm:$0xff] }
 0x211   :  { %23591 = vmatmul.mubr.f32.gmra.mrb[54].mxu0 %v19966_v9  ;;  %23081 = vmatprep.mubr.f32.mxu1 %v30468_v30  ;;  %v19971_v30 = vld [vmem:[%s35142_s0 + $0x331] sm:$0xff]  ;;  %v20031_v9 = vld [vmem:[%s35142_s0 + $0x242] sm:$0xff] }
 0x212   :  { %23593 = vmatprep.mubr.f32.mxu0 %v19967_v14  ;;  %v6781_v14 = vld [vmem:[%s35146_s4 + $0x30] sm:$0xff] }
 0x214   :  { %23082 = vmatmul.mubr.f32.gmra.mrb[56].mxu1 %v30477_v48  ;;  %v19972_v48 = vld [vmem:[%s35142_s0 + $0x339] sm:$0xff] }
 0x215   :  { %23594 = vmatmul.mubr.f32.gmra.mrb[56].mxu0 %v19968_v16  ;;  %23084 = vmatprep.mubr.f32.mxu1 %v35595_v27  ;;  %v6782_v16 = vld [vmem:[%s35146_s4 + $0x38] sm:$0xff]  ;;  %v20032_v27 = vld [vmem:[%s35142_s0 + $0x24a] sm:$0xff] }
 0x216   :  { %23596 = vmatprep.mubr.f32.mxu0 %v19969_v20  ;;  %v26372_v20 = vpack.c.bf16 %v6782_v16, %v6781_v14 }
 0x218   :  { %23085 = vmatmul.mubr.f32.gmra.mrb[58].mxu1 %v35596_v50  ;;  %26373 = vmatprep.subr.bf16.mxu1 %v26372_v20  ;;  %v6784_v50 = vld [vmem:[%s35146_s4 + $0x48] sm:$0xff] }
 0x219   :  { %23597 = vmatmul.mubr.f32.gmra.mrb[58].mxu0 %v19970_v24  ;;  %23087 = vmatprep.mubr.f32.mxu1 %v35597_v43  ;;  %v30991_v24 = vld [vmem:[%s35142_s0 + $0x25a] sm:$0xff] }
 0x21a   :  { %23599 = vmatprep.mubr.f32.mxu0 %v19971_v30  ;;  %26375 = vmatpush3.bf16.msra.mxu1 %v26372_v20  ;;  %v6783_v30 = vld [vmem:[%s35146_s4 + $0x40] sm:$0xff] }
 0x21b   :  { %v30999_v43 = vpack.c.bf16 %v6784_v50, %v6783_v30 }
 0x21c   :  { %23088 = vmatmul.mubr.f32.gmra.mrb[60].mxu1 %v35598_v21 }
 0x21d   :  { %23600 = vmatmul.mubr.f32.gmra.mrb[60].mxu0 %v19972_v48  ;;  %23090 = vmatprep.mubr.f32.mxu1 %v35599_v13  ;;  %v28595_v48 = vmov 0.0   ;;  %v20035_v13 = vld [vmem:[%s35142_s0 + $0x272] sm:$0xff] }
 0x21e   :  { %23602 = vmatprep.mubr.f32.mxu0 %v19973_v31  ;;  %49 = vst [vmem:[#allocation2 + $0x20] sm:$0xff] %v28595_v48  ;;  %50 = vst [vmem:[#allocation2 + $0x28] sm:$0x3] %v28595_v48  ;;  %v20034_v31 = vld [vmem:[%s35142_s0 + $0x262] sm:$0xff]  ;;  %26377 = vmatprep.subr.bf16.mxu1 %v30999_v43 }
 0x21f   :  { %45 = vst [vmem:[#allocation2] sm:$0xff] %v28595_v48  ;;  %46 = vst [vmem:[#allocation2 + $0x8] sm:$0xff] %v28595_v48  ;;  %26379 = vmatpush3.bf16.msra.mxu1 %v30999_v43 }
 0x220   :  { %23091 = vmatmul.mubr.f32.gmra.mrb[62].mxu1 %v35600_v38  ;;  %47 = vst [vmem:[#allocation2 + $0x10] sm:$0x3] %v28595_v48  ;;  %48 = vst [vmem:[#allocation2 + $0x18] sm:$0xff] %v28595_v48  ;;  %v6786_v38 = vld [vmem:[%s35146_s4 + $0x58] sm:$0xff] }
 0x221   :  { %23603 = vmatmul.mubr.f32.gmra.mrb[62].mxu0 %v19974_v53  ;;  %51 = vst [vmem:[#allocation2 + $0x30] sm:$0xff] %v28595_v48  ;;  %52 = vst [vmem:[#allocation2 + $0x38] sm:$0xff] %v28595_v48  ;;  %23765 = vmatprep.mubr.f32.mxu1 %v28595_v48 }
 0x222   :  { %23637 = vmatprep.mubr.f32.mxu0 %v19991_v26  ;;  %53 = vst [vmem:[#allocation2 + $0x40] sm:$0x3] %v28595_v48  ;;  %54 = vst [vmem:[#allocation2 + $0x48] sm:$0xff] %v28595_v48  ;;  %v6785_v26 = vld [vmem:[%s35146_s4 + $0x50] sm:$0xff] }
 0x223   :  { %55 = vst [vmem:[#allocation2 + $0x50] sm:$0xff] %v28595_v48  ;;  %56 = vst [vmem:[#allocation2 + $0x58] sm:$0x3] %v28595_v48 }
 0x224   :  { %57 = vst [vmem:[#allocation2 + $0x60] sm:$0xff] %v28595_v48  ;;  %58 = vst [vmem:[#allocation2 + $0x68] sm:$0xff] %v28595_v48 }
 0x225   :  { %23638 = vmatmul.mubr.f32.vlgmr.msra.gmra.mrb[0].mxu0 %v19992_v34  ;;  %59 = vst [vmem:[#allocation2 + $0x70] sm:$0x3] %v28595_v48  ;;  %60 = vst [vmem:[#allocation2 + $0x78] sm:$0xff] %v28595_v48  ;;  %v26380_v34 = vpack.c.bf16 %v6786_v38, %v6785_v26 }
 0x226   :  { %23640 = vmatprep.mubr.f32.mxu0 %v19993_v32  ;;  %61 = vst [vmem:[#allocation2 + $0x80] sm:$0xff] %v28595_v48  ;;  %62 = vst [vmem:[#allocation2 + $0x88] sm:$0x3] %v28595_v48  ;;  %v20036_v32 = vld [vmem:[%s35142_s0 + $0x27a] sm:$0xff] }
 0x227   :  { %63 = vst [vmem:[#allocation2 + $0x90] sm:$0xff] %v28595_v48  ;;  %64 = vst [vmem:[#allocation2 + $0x98] sm:$0xff] %v28595_v48  ;;  %26381 = vmatprep.subr.bf16.mxu1 %v26380_v34 }
 0x228   :  { %65 = vst [vmem:[#allocation2 + $0xa0] sm:$0x3] %v28595_v48  ;;  %66 = vst [vmem:[#allocation2 + $0xa8] sm:$0xff] %v28595_v48  ;;  %26383 = vmatpush3.bf16.msra.mxu1 %v26380_v34 }
 0x229   :  { %23641 = vmatmul.mubr.f32.gmra.mrb[2].mxu0 %v19994_v29  ;;  %67 = vst [vmem:[#allocation2 + $0xb0] sm:$0xff] %v28595_v48  ;;  %68 = vst [vmem:[#allocation2 + $0xb8] sm:$0x3] %v28595_v48 }
 0x22a   :  { %23643 = vmatprep.mubr.f32.mxu0 %v19995_v33  ;;  %69 = vst [vmem:[#allocation2 + $0xc0] sm:$0xff] %v28595_v48  ;;  %70 = vst [vmem:[#allocation2 + $0xc8] sm:$0xff] %v28595_v48  ;;  %v20037_v33 = vld [vmem:[%s35142_s0 + $0x28a] sm:$0xff] }
 0x22b   :  { %71 = vst [vmem:[#allocation2 + $0xd0] sm:$0x3] %v28595_v48  ;;  %72 = vst [vmem:[#allocation2 + $0xd8] sm:$0xff] %v28595_v48 }
 0x22c   :  { %73 = vst [vmem:[#allocation2 + $0xe0] sm:$0xff] %v28595_v48  ;;  %74 = vst [vmem:[#allocation2 + $0xe8] sm:$0x3] %v28595_v48 }
 0x22d   :  { %23644 = vmatmul.mubr.f32.gmra.mrb[4].mxu0 %v19996_v6  ;;  %75 = vst [vmem:[#allocation2 + $0xf0] sm:$0xff] %v28595_v48  ;;  %76 = vst [vmem:[#allocation2 + $0xf8] sm:$0xff] %v28595_v48 }
 0x22e   :  { %23646 = vmatprep.mubr.f32.mxu0 %v19997_v11  ;;  %77 = vst [vmem:[#allocation2 + $0x100] sm:$0x3] %v28595_v48  ;;  %78 = vst [vmem:[#allocation2 + $0x108] sm:$0xff] %v28595_v48  ;;  %v6787_v11 = vld [vmem:[%s35146_s4 + $0x60] sm:$0xff] }
 0x22f   :  { %79 = vst [vmem:[#allocation2 + $0x110] sm:$0xff] %v28595_v48  ;;  %80 = vst [vmem:[#allocation2 + $0x118] sm:$0x3] %v28595_v48 }
 0x230   :  { %81 = vst [vmem:[#allocation2 + $0x120] sm:$0xff] %v28595_v48  ;;  %82 = vst [vmem:[#allocation2 + $0x128] sm:$0xff] %v28595_v48 }
 0x231   :  { %23647 = vmatmul.mubr.f32.gmra.mrb[6].mxu0 %v19998_v55  ;;  %83 = vst [vmem:[#allocation2 + $0x130] sm:$0x3] %v28595_v48  ;;  %84 = vst [vmem:[#allocation2 + $0x138] sm:$0xff] %v28595_v48  ;;  %v6788_v55 = vld [vmem:[%s35146_s4 + $0x68] sm:$0xff] }
 0x232   :  { %23649 = vmatprep.mubr.f32.mxu0 %v19999_v8  ;;  %85 = vst [vmem:[#allocation2 + $0x140] sm:$0xff] %v28595_v48  ;;  %86 = vst [vmem:[#allocation2 + $0x148] sm:$0x3] %v28595_v48  ;;  %v26384_v8 = vpack.c.bf16 %v6788_v55, %v6787_v11 }
 0x233   :  { %87 = vst [vmem:[#allocation2 + $0x150] sm:$0xff] %v28595_v48  ;;  %88 = vst [vmem:[#allocation2 + $0x158] sm:$0xff] %v28595_v48 }
 0x234   :  { %89 = vst [vmem:[#allocation2 + $0x160] sm:$0x3] %v28595_v48  ;;  %90 = vst [vmem:[#allocation2 + $0x168] sm:$0xff] %v28595_v48  ;;  %26385 = vmatprep.subr.bf16.mxu1 %v26384_v8 }
 0x235   :  { %23650 = vmatmul.mubr.f32.gmra.mrb[8].mxu0 %v20000_v57  ;;  %91 = vst [vmem:[#allocation2 + $0x170] sm:$0xff] %v28595_v48  ;;  %92 = vst [vmem:[#allocation2 + $0x178] sm:$0x3] %v28595_v48  ;;  %v20038_v57 = vld [vmem:[%s35142_s0 + $0x292] sm:$0xff]  ;;  %26387 = vmatpush3.bf16.msra.mxu1 %v26384_v8 }
 0x236   :  { %23652 = vmatprep.mubr.f32.mxu0 %v20001_v60  ;;  %93 = vst [vmem:[#allocation2 + $0x180] sm:$0xff] %v28595_v48  ;;  %94 = vst [vmem:[#allocation2 + $0x188] sm:$0xff] %v28595_v48 }
 0x237   :  { %95 = vst [vmem:[#allocation2 + $0x190] sm:$0x3] %v28595_v48  ;;  %96 = vst [vmem:[#allocation2 + $0x198] sm:$0xff] %v28595_v48 }
 0x238   :  { %97 = vst [vmem:[#allocation2 + $0x1a0] sm:$0xff] %v28595_v48  ;;  %98 = vst [vmem:[#allocation2 + $0x1a8] sm:$0x3] %v28595_v48 }
 0x239   :  { %23653 = vmatmul.mubr.f32.gmra.mrb[10].mxu0 %v20002_v18  ;;  %99 = vst [vmem:[#allocation2 + $0x1b0] sm:$0xff] %v28595_v48  ;;  %100 = vst [vmem:[#allocation2 + $0x1b8] sm:$0xff] %v28595_v48  ;;  %v20039_v18 = vld [vmem:[%s35142_s0 + $0x2a2] sm:$0xff] }
 0x23a   :  { %23655 = vmatprep.mubr.f32.mxu0 %v20003_v3  ;;  %101 = vst [vmem:[#allocation2 + $0x1c0] sm:$0x3] %v28595_v48  ;;  %102 = vst [vmem:[#allocation2 + $0x1c8] sm:$0xff] %v28595_v48 }
 0x23b   :  { %103 = vst [vmem:[#allocation2 + $0x1d0] sm:$0xff] %v28595_v48  ;;  %104 = vst [vmem:[#allocation2 + $0x1d8] sm:$0x3] %v28595_v48 }
 0x23c   :  { %105 = vst [vmem:[#allocation2 + $0x1e0] sm:$0xff] %v28595_v48  ;;  %106 = vst [vmem:[#allocation2 + $0x1e8] sm:$0xff] %v28595_v48 }
 0x23d   :  { %23656 = vmatmul.mubr.f32.gmra.mrb[12].mxu0 %v20004_v22  ;;  %107 = vst [vmem:[#allocation2 + $0x1f0] sm:$0x3] %v28595_v48  ;;  %108 = vst [vmem:[#allocation2 + $0x1f8] sm:$0xff] %v28595_v48  ;;  %v6789_v22 = vld [vmem:[%s35146_s4 + $0x70] sm:$0xff] }
 0x23e   :  { %23658 = vmatprep.mubr.f32.mxu0 %v20005_v56  ;;  %109 = vst [vmem:[#allocation2 + $0x200] sm:$0xff] %v28595_v48  ;;  %110 = vst [vmem:[#allocation2 + $0x208] sm:$0x3] %v28595_v48  ;;  %v6790_v56 = vld [vmem:[%s35146_s4 + $0x78] sm:$0xff] }
 0x23f   :  { %111 = vst [vmem:[#allocation2 + $0x210] sm:$0xff] %v28595_v48  ;;  %112 = vst [vmem:[#allocation2 + $0x218] sm:$0xff] %v28595_v48 }
 0x240   :  { %113 = vst [vmem:[#allocation2 + $0x220] sm:$0x3] %v28595_v48  ;;  %114 = vst [vmem:[#allocation2 + $0x228] sm:$0xff] %v28595_v48 }
 0x241   :  { %23659 = vmatmul.mubr.f32.gmra.mrb[14].mxu0 %v20006_v52  ;;  %115 = vst [vmem:[#allocation2 + $0x230] sm:$0xff] %v28595_v48  ;;  %116 = vst [vmem:[#allocation2 + $0x238] sm:$0x3] %v28595_v48  ;;  %v26388_v52 = vpack.c.bf16 %v6790_v56, %v6789_v22 }
 0x242   :  { %23661 = vmatprep.mubr.f32.mxu0 %v20007_v10  ;;  %117 = vst [vmem:[#allocation2 + $0x240] sm:$0xff] %v28595_v48  ;;  %118 = vst [vmem:[#allocation2 + $0x248] sm:$0xff] %v28595_v48  ;;  %v20040_v10 = vld [vmem:[%s35142_s0 + $0x2aa] sm:$0xff] }
 0x243   :  { %119 = vst [vmem:[#allocation2 + $0x250] sm:$0x3] %v28595_v48  ;;  %120 = vst [vmem:[#allocation2 + $0x258] sm:$0xff] %v28595_v48  ;;  %26389 = vmatprep.subr.bf16.mxu1 %v26388_v52 }
 0x244   :  { %121 = vst [vmem:[#allocation2 + $0x260] sm:$0xff] %v28595_v48  ;;  %122 = vst [vmem:[#allocation2 + $0x268] sm:$0x3] %v28595_v48  ;;  %26391 = vmatpush3.bf16.msra.mxu1 %v26388_v52 }
 0x245   :  { %23662 = vmatmul.mubr.f32.gmra.mrb[16].mxu0 %v20008_v58  ;;  %123 = vst [vmem:[#allocation2 + $0x270] sm:$0xff] %v28595_v48  ;;  %124 = vst [vmem:[#allocation2 + $0x278] sm:$0xff] %v28595_v48 }
 0x246   :  { %23664 = vmatprep.mubr.f32.mxu0 %v20009_v19  ;;  %125 = vst [vmem:[#allocation2 + $0x280] sm:$0x3] %v28595_v48  ;;  %126 = vst [vmem:[#allocation2 + $0x288] sm:$0xff] %v28595_v48  ;;  %v20041_v19 = vld [vmem:[%s35142_s0 + $0x2ba] sm:$0xff] }
 0x247   :  { %127 = vst [vmem:[#allocation2 + $0x290] sm:$0xff] %v28595_v48  ;;  %128 = vst [vmem:[#allocation2 + $0x298] sm:$0x3] %v28595_v48  ;;  %23766 = vmatmul.mubr.f32.vlgmr.msra.gmra.mrb[64].mxu1 %v28595_v48 }
 0x248   :  { %129 = vst [vmem:[#allocation2 + $0x2a0] sm:$0xff] %v28595_v48  ;;  %130 = vst [vmem:[#allocation2 + $0x2a8] sm:$0xff] %v28595_v48 }
 0x249   :  { %23665 = vmatmul.mubr.f32.gmra.mrb[18].mxu0 %v20010_v28  ;;  %131 = vst [vmem:[#allocation2 + $0x2b0] sm:$0x3] %v28595_v48  ;;  %132 = vst [vmem:[#allocation2 + $0x2b8] sm:$0xff] %v28595_v48  ;;  %v20043_v28 = vld [vmem:[%s35142_s0 + $0x2d2] sm:$0xff] }
 0x24a   :  { %23667 = vmatprep.mubr.f32.mxu0 %v20011_v37  ;;  %133 = vst [vmem:[#allocation2 + $0x2c0] sm:$0xff] %v28595_v48  ;;  %134 = vst [vmem:[#allocation2 + $0x2c8] sm:$0x3] %v28595_v48 }
 0x24b   :  { %135 = vst [vmem:[#allocation2 + $0x2d0] sm:$0xff] %v28595_v48  ;;  %136 = vst [vmem:[#allocation2 + $0x2d8] sm:$0xff] %v28595_v48 }
 0x24c   :  { %137 = vst [vmem:[#allocation2 + $0x2e0] sm:$0x3] %v28595_v48  ;;  %138 = vst [vmem:[#allocation2 + $0x2e8] sm:$0xff] %v28595_v48 }
 0x24d   :  { %23668 = vmatmul.mubr.f32.gmra.mrb[20].mxu0 %v20012_v39  ;;  %139 = vst [vmem:[#allocation2 + $0x2f0] sm:$0xff] %v28595_v48  ;;  %140 = vst [vmem:[#allocation2 + $0x2f8] sm:$0x3] %v28595_v48  ;;  %v20044_v39 = vld [vmem:[%s35142_s0 + $0x2da] sm:$0xff] }
 0x24e   :  { %23670 = vmatprep.mubr.f32.mxu0 %v20013_v59  ;;  %141 = vst [vmem:[#allocation2 + $0x300] sm:$0xff] %v28595_v48  ;;  %142 = vst [vmem:[#allocation2 + $0x308] sm:$0xff] %v28595_v48 }
 0x24f   :  { %143 = vst [vmem:[#allocation2 + $0x310] sm:$0x3] %v28595_v48  ;;  %144 = vst [vmem:[#allocation2 + $0x318] sm:$0xff] %v28595_v48 }
 0x250   :  { %145 = vst [vmem:[#allocation2 + $0x320] sm:$0xff] %v28595_v48  ;;  %146 = vst [vmem:[#allocation2 + $0x328] sm:$0x3] %v28595_v48 }
 0x251   :  { %23671 = vmatmul.mubr.f32.gmra.mrb[22].mxu0 %v20014_v47  ;;  %147 = vst [vmem:[#allocation2 + $0x330] sm:$0xff] %v28595_v48  ;;  %148 = vst [vmem:[#allocation2 + $0x338] sm:$0xff] %v28595_v48  ;;  %v20045_v47 = vld [vmem:[%s35142_s0 + $0x2ea] sm:$0xff] }
 0x252   :  { %23673 = vmatprep.mubr.f32.mxu0 %v20015_v49  ;;  %149 = vst [vmem:[#allocation2 + $0x340] sm:$0x3] %v28595_v48  ;;  %150 = vst [vmem:[#allocation2 + $0x348] sm:$0xff] %v28595_v48 }
 0x253   :  { %151 = vst [vmem:[#allocation2 + $0x350] sm:$0xff] %v28595_v48  ;;  %152 = vst [vmem:[#allocation2 + $0x358] sm:$0x3] %v28595_v48 }
 0x254   :  { %153 = vst [vmem:[#allocation3] sm:$0xff] %v28595_v48  ;;  %154 = vst [vmem:[#allocation3 + $0x8] sm:$0xff] %v28595_v48 }
 0x255   :  { %23674 = vmatmul.mubr.f32.gmra.mrb[24].mxu0 %v20016_v63  ;;  %155 = vst [vmem:[#allocation3 + $0x10] sm:$0x3] %v28595_v48  ;;  %156 = vst [vmem:[#allocation3 + $0x18] sm:$0xff] %v28595_v48  ;;  %v20046_v63 = vld [vmem:[%s35142_s0 + $0x2f2] sm:$0xff] }
 0x256   :  { %23676 = vmatprep.mubr.f32.mxu0 %v20017_v61  ;;  %157 = vst [vmem:[#allocation3 + $0x20] sm:$0xff] %v28595_v48  ;;  %158 = vst [vmem:[#allocation3 + $0x28] sm:$0x3] %v28595_v48 }
 0x257   :  { %159 = vst [vmem:[#allocation3 + $0x30] sm:$0xff] %v28595_v48  ;;  %160 = vst [vmem:[#allocation3 + $0x38] sm:$0xff] %v28595_v48 }
 0x258   :  { %161 = vst [vmem:[#allocation3 + $0x40] sm:$0x3] %v28595_v48  ;;  %162 = vst [vmem:[#allocation3 + $0x48] sm:$0xff] %v28595_v48 }
 0x259   :  { %23677 = vmatmul.mubr.f32.gmra.mrb[26].mxu0 %v20018_v23  ;;  %163 = vst [vmem:[#allocation3 + $0x50] sm:$0xff] %v28595_v48  ;;  %164 = vst [vmem:[#allocation3 + $0x58] sm:$0x3] %v28595_v48 }
 0x25a   :  { %23679 = vmatprep.mubr.f32.mxu0 %v20019_v35  ;;  %165 = vst [vmem:[#allocation3 + $0x60] sm:$0xff] %v28595_v48  ;;  %166 = vst [vmem:[#allocation3 + $0x68] sm:$0xff] %v28595_v48  ;;  %v20049_v35 = vld [vmem:[%s35142_s0 + $0x31a] sm:$0xff] }
 0x25b   :  { %167 = vst [vmem:[#allocation3 + $0x70] sm:$0x3] %v28595_v48  ;;  %168 = vst [vmem:[#allocation3 + $0x78] sm:$0xff] %v28595_v48 }
 0x25c   :  { %169 = vst [vmem:[#allocation3 + $0x80] sm:$0xff] %v28595_v48  ;;  %170 = vst [vmem:[#allocation3 + $0x88] sm:$0x3] %v28595_v48 }
 0x25d   :  { %23680 = vmatmul.mubr.f32.gmra.mrb[28].mxu0 %v20020_v1  ;;  %171 = vst [vmem:[#allocation3 + $0x90] sm:$0xff] %v28595_v48  ;;  %172 = vst [vmem:[#allocation3 + $0x98] sm:$0xff] %v28595_v48 }
 0x25e   :  { %23682 = vmatprep.mubr.f32.mxu0 %v20021_v46  ;;  %173 = vst [vmem:[#allocation3 + $0xa0] sm:$0x3] %v28595_v48  ;;  %174 = vst [vmem:[#allocation3 + $0xa8] sm:$0xff] %v28595_v48  ;;  %v20050_v46 = vld [vmem:[%s35142_s0 + $0x322] sm:$0xff] }
 0x25f   :  { %175 = vst [vmem:[#allocation3 + $0xb0] sm:$0xff] %v28595_v48  ;;  %176 = vst [vmem:[#allocation3 + $0xb8] sm:$0x3] %v28595_v48 }
 0x260   :  { %177 = vst [vmem:[#allocation3 + $0xc0] sm:$0xff] %v28595_v48  ;;  %178 = vst [vmem:[#allocation3 + $0xc8] sm:$0xff] %v28595_v48 }
 0x261   :  { %23683 = vmatmul.mubr.f32.gmra.mrb[30].mxu0 %v20022_v5  ;;  %179 = vst [vmem:[#allocation3 + $0xd0] sm:$0x3] %v28595_v48  ;;  %180 = vst [vmem:[#allocation3 + $0xd8] sm:$0xff] %v28595_v48 }
 0x262   :  { %23685 = vmatprep.mubr.f32.mxu0 %v20023_v36  ;;  %181 = vst [vmem:[#allocation3 + $0xe0] sm:$0xff] %v28595_v48  ;;  %182 = vst [vmem:[#allocation3 + $0xe8] sm:$0x3] %v28595_v48  ;;  %v20051_v36 = vld [vmem:[%s35142_s0 + $0x332] sm:$0xff] }
 0x263   :  { %183 = vst [vmem:[#allocation3 + $0xf0] sm:$0xff] %v28595_v48  ;;  %184 = vst [vmem:[#allocation3 + $0xf8] sm:$0xff] %v28595_v48 }
 0x264   :  { %185 = vst [vmem:[#allocation3 + $0x100] sm:$0x3] %v28595_v48  ;;  %186 = vst [vmem:[#allocation3 + $0x108] sm:$0xff] %v28595_v48 }
 0x265   :  { %23686 = vmatmul.mubr.f32.gmra.mrb[32].mxu0 %v20024_v41  ;;  %187 = vst [vmem:[#allocation3 + $0x110] sm:$0xff] %v28595_v48  ;;  %188 = vst [vmem:[#allocation3 + $0x118] sm:$0x3] %v28595_v48 }
 0x266   :  { %23688 = vmatprep.mubr.f32.mxu0 %v20025_v45  ;;  %189 = vst [vmem:[#allocation3 + $0x120] sm:$0xff] %v28595_v48  ;;  %190 = vst [vmem:[#allocation3 + $0x128] sm:$0xff] %v28595_v48  ;;  %v20052_v45 = vld [vmem:[%s35142_s0 + $0x33a] sm:$0xff] }
 0x267   :  { %191 = vst [vmem:[#allocation3 + $0x130] sm:$0x3] %v28595_v48  ;;  %192 = vst [vmem:[#allocation3 + $0x138] sm:$0xff] %v28595_v48 }
 0x268   :  { %193 = vst [vmem:[#allocation3 + $0x140] sm:$0xff] %v28595_v48  ;;  %194 = vst [vmem:[#allocation3 + $0x148] sm:$0x3] %v28595_v48 }
 0x269   :  { %23689 = vmatmul.mubr.f32.gmra.mrb[34].mxu0 %v20026_v17  ;;  %195 = vst [vmem:[#allocation3 + $0x150] sm:$0xff] %v28595_v48  ;;  %196 = vst [vmem:[#allocation3 + $0x158] sm:$0xff] %v28595_v48  ;;  %v20054_v17 = vld [vmem:[%s35142_s0 + $0x352] sm:$0xff] }
 0x26a   :  { %23691 = vmatprep.mubr.f32.mxu0 %v20027_v54  ;;  %197 = vst [vmem:[#allocation3 + $0x160] sm:$0x3] %v28595_v48  ;;  %198 = vst [vmem:[#allocation3 + $0x168] sm:$0xff] %v28595_v48 }
 0x26b   :  { %199 = vst [vmem:[#allocation3 + $0x170] sm:$0xff] %v28595_v48  ;;  %200 = vst [vmem:[#allocation3 + $0x178] sm:$0x3] %v28595_v48 }
 0x26c   :  { %201 = vst [vmem:[#allocation3 + $0x180] sm:$0xff] %v28595_v48  ;;  %202 = vst [vmem:[#allocation3 + $0x188] sm:$0xff] %v28595_v48 }
 0x26d   :  { %23692 = vmatmul.mubr.f32.gmra.mrb[36].mxu0 %v20028_v62  ;;  %203 = vst [vmem:[#allocation3 + $0x190] sm:$0x3] %v28595_v48  ;;  %204 = vst [vmem:[#allocation3 + $0x198] sm:$0xff] %v28595_v48 }
 0x26e   :  { %23694 = vmatprep.mubr.f32.mxu0 %v20029_v4  ;;  %205 = vst [vmem:[#allocation3 + $0x1a0] sm:$0xff] %v28595_v48  ;;  %206 = vst [vmem:[#allocation3 + $0x1a8] sm:$0x3] %v28595_v48 }
 0x26f   :  { %207 = vst [vmem:[#allocation3 + $0x1b0] sm:$0xff] %v28595_v48  ;;  %208 = vst [vmem:[#allocation3 + $0x1b8] sm:$0xff] %v28595_v48 }
 0x270   :  { %209 = vst [vmem:[#allocation3 + $0x1c0] sm:$0x3] %v28595_v48  ;;  %210 = vst [vmem:[#allocation3 + $0x1c8] sm:$0xff] %v28595_v48 }
 0x271   :  { %23695 = vmatmul.mubr.f32.gmra.mrb[38].mxu0 %v20030_v7  ;;  %211 = vst [vmem:[#allocation3 + $0x1d0] sm:$0xff] %v28595_v48  ;;  %212 = vst [vmem:[#allocation3 + $0x1d8] sm:$0x3] %v28595_v48 }
 0x272   :  { %23697 = vmatprep.mubr.f32.mxu0 %v20031_v9  ;;  %213 = vst [vmem:[#allocation3 + $0x1e0] sm:$0xff] %v28595_v48  ;;  %214 = vst [vmem:[#allocation3 + $0x1e8] sm:$0xff] %v28595_v48 }
 0x273   :  { %215 = vst [vmem:[#allocation3 + $0x1f0] sm:$0x3] %v28595_v48  ;;  %216 = vst [vmem:[#allocation3 + $0x1f8] sm:$0xff] %v28595_v48 }
 0x274   :  { %217 = vst [vmem:[#allocation3 + $0x200] sm:$0xff] %v28595_v48  ;;  %218 = vst [vmem:[#allocation3 + $0x208] sm:$0x3] %v28595_v48 }
 0x275   :  { %23698 = vmatmul.mubr.f32.gmra.mrb[40].mxu0 %v20032_v27  ;;  %219 = vst [vmem:[#allocation3 + $0x210] sm:$0xff] %v28595_v48  ;;  %220 = vst [vmem:[#allocation3 + $0x218] sm:$0xff] %v28595_v48 }
 0x276   :  { %221 = vst [vmem:[#allocation3 + $0x220] sm:$0x3] %v28595_v48  ;;  %222 = vst [vmem:[#allocation3 + $0x228] sm:$0xff] %v28595_v48  ;;  %23700 = vmatprep.mubr.f32.mxu0 %v30991_v24 }
 0x277   :  { %223 = vst [vmem:[#allocation3 + $0x230] sm:$0xff] %v28595_v48  ;;  %224 = vst [vmem:[#allocation3 + $0x238] sm:$0x3] %v28595_v48  ;;  %v31222_v21 = vpop.f32.mrb[0].mxu1 }
 0x278   :  { %225 = vst [vmem:[#allocation3 + $0x240] sm:$0xff] %v28595_v48  ;;  %226 = vst [vmem:[#allocation3 + $0x248] sm:$0xff] %v28595_v48  ;;  %v31228_v53 = vpop.f32.mrb[1].mxu1 }
 0x279   :  { %227 = vst [vmem:[#allocation3 + $0x250] sm:$0x3] %v28595_v48  ;;  %228 = vst [vmem:[#allocation3 + $0x258] sm:$0xff] %v28595_v48  ;;  %23701 = vmatmul.mubr.f32.gmra.mrb[42].mxu0 %v20034_v31 }
 0x27a   :  { %229 = vst [vmem:[#allocation3 + $0x260] sm:$0xff] %v28595_v48  ;;  %230 = vst [vmem:[#allocation3 + $0x268] sm:$0x3] %v28595_v48  ;;  %23703 = vmatprep.mubr.f32.mxu0 %v20035_v13 }
 0x27b   :  { %231 = vst [vmem:[#allocation3 + $0x270] sm:$0xff] %v28595_v48  ;;  %232 = vst [vmem:[#allocation3 + $0x278] sm:$0xff] %v28595_v48  ;;  %v31240_v29 = vpop.f32.mrb[2].mxu1 }
 0x27c   :  { %233 = vst [vmem:[#allocation3 + $0x280] sm:$0x3] %v28595_v48  ;;  %234 = vst [vmem:[#allocation3 + $0x288] sm:$0xff] %v28595_v48  ;;  %v31245_v6 = vpop.f32.mrb[3].mxu1 }
 0x27d   :  { %235 = vst [vmem:[#allocation3 + $0x290] sm:$0xff] %v28595_v48  ;;  %236 = vst [vmem:[#allocation3 + $0x298] sm:$0x3] %v28595_v48  ;;  %23704 = vmatmul.mubr.f32.gmra.mrb[44].mxu0 %v20036_v32 }
 0x27e   :  { %237 = vst [vmem:[#allocation3 + $0x2a0] sm:$0xff] %v28595_v48  ;;  %238 = vst [vmem:[#allocation3 + $0x2a8] sm:$0xff] %v28595_v48  ;;  %23706 = vmatprep.mubr.f32.mxu0 %v20037_v33 }
 0x27f   :  { %239 = vst [vmem:[#allocation3 + $0x2b0] sm:$0x3] %v28595_v48  ;;  %240 = vst [vmem:[#allocation3 + $0x2b8] sm:$0xff] %v28595_v48  ;;  %v31256_v60 = vpop.f32.mrb[4].mxu1 }
 0x280   :  { %241 = vst [vmem:[#allocation3 + $0x2c0] sm:$0xff] %v28595_v48  ;;  %242 = vst [vmem:[#allocation3 + $0x2c8] sm:$0x3] %v28595_v48  ;;  %v31261_v3 = vpop.f32.mrb[5].mxu1 }
 0x281   :  { %243 = vst [vmem:[#allocation3 + $0x2d0] sm:$0xff] %v28595_v48  ;;  %244 = vst [vmem:[#allocation3 + $0x2d8] sm:$0xff] %v28595_v48  ;;  %23707 = vmatmul.mubr.f32.gmra.mrb[46].mxu0 %v20038_v57  ;;  %v20073_v57 = vld [vmem:[%s35146_s4 + $0x80] sm:$0xff] }
 0x282   :  { %245 = vst [vmem:[#allocation3 + $0x2e0] sm:$0x3] %v28595_v48  ;;  %246 = vst [vmem:[#allocation3 + $0x2e8] sm:$0xff] %v28595_v48  ;;  %23709 = vmatprep.mubr.f32.mxu0 %v20039_v18  ;;  %v20074_v18 = vld [vmem:[%s35146_s4 + $0x88] sm:$0xff] }
 0x283   :  { %247 = vst [vmem:[#allocation3 + $0x2f0] sm:$0xff] %v28595_v48  ;;  %248 = vst [vmem:[#allocation3 + $0x2f8] sm:$0x3] %v28595_v48  ;;  %v31272_v58 = vpop.f32.mrb[6].mxu1  ;;  %v26392_v56 = vpack.c.bf16 %v20074_v18, %v20073_v57 }
 0x284   :  { %249 = vst [vmem:[#allocation3 + $0x300] sm:$0xff] %v28595_v48  ;;  %250 = vst [vmem:[#allocation3 + $0x308] sm:$0xff] %v28595_v48  ;;  %v31277_v12 = vpop.f32.mrb[7].mxu1 }
 0x285   :  { %251 = vst [vmem:[#allocation3 + $0x310] sm:$0x3] %v28595_v48  ;;  %252 = vst [vmem:[#allocation3 + $0x318] sm:$0xff] %v28595_v48  ;;  %23710 = vmatmul.mubr.f32.gmra.mrb[48].mxu0 %v20040_v10  ;;  %26393 = vmatprep.subr.bf16.mxu1 %v26392_v56 }
 0x286   :  { %253 = vst [vmem:[#allocation3 + $0x320] sm:$0xff] %v28595_v48  ;;  %254 = vst [vmem:[#allocation3 + $0x328] sm:$0x3] %v28595_v48  ;;  %23712 = vmatprep.mubr.f32.mxu0 %v20041_v19  ;;  %26395 = vmatpush3.bf16.msra.mxu1 %v26392_v56  ;;  %v20077_v56 = vld [vmem:[%s35146_s4 + $0xa0] sm:$0xff] }
 0x287   :  { %255 = vst [vmem:[#allocation3 + $0x330] sm:$0xff] %v28595_v48  ;;  %256 = vst [vmem:[#allocation3 + $0x338] sm:$0xff] %v28595_v48  ;;  %v31282_v25 = vpop.f32.mrb[8].mxu1 }
 0x288   :  { %257 = vst [vmem:[#allocation3 + $0x340] sm:$0x3] %v28595_v48  ;;  %258 = vst [vmem:[#allocation3 + $0x348] sm:$0xff] %v28595_v48  ;;  %v31288_v37 = vpop.f32.mrb[9].mxu1 }
 0x289   :  { %259 = vst [vmem:[#allocation3 + $0x350] sm:$0xff] %v28595_v48  ;;  %260 = vst [vmem:[#allocation3 + $0x358] sm:$0x3] %v28595_v48  ;;  %23713 = vmatmul.mubr.f32.gmra.mrb[50].mxu0 %v20042_v42 }
 0x28a   :  { %23715 = vmatprep.mubr.f32.mxu0 %v20043_v28 }
 0x28b   :  { %v31293_v59 = vpop.f32.mrb[10].mxu1 }
 0x28c   :  { %v31298_v49 = vpop.f32.mrb[11].mxu1 }
 0x28d   :  { %23716 = vmatmul.mubr.f32.gmra.mrb[52].mxu0 %v20044_v39 }
 0x28e   :  { %23718 = vmatprep.mubr.f32.mxu0 %v20045_v47 }
 0x28f   :  { %v31303_v61 = vpop.f32.mrb[12].mxu1 }
 0x290   :  { %v31308_v44 = vpop.f32.mrb[13].mxu1 }
 0x291   :  { %23719 = vmatmul.mubr.f32.gmra.mrb[54].mxu0 %v20046_v63  ;;  %v20075_v63 = vld [vmem:[%s35146_s4 + $0x90] sm:$0xff] }
 0x292   :  { %23721 = vmatprep.mubr.f32.mxu0 %v20047_v40  ;;  %v20076_v40 = vld [vmem:[%s35146_s4 + $0x98] sm:$0xff] }
 0x293   :  { %v31313_v23 = vpop.f32.mrb[14].mxu1 }
 0x294   :  { %v31318_v1 = vpop.f32.mrb[15].mxu1 }
 0x295   :  { %23722 = vmatmul.mubr.f32.gmra.mrb[56].mxu0 %v20048_v2 }
 0x296   :  { %23724 = vmatprep.mubr.f32.mxu0 %v20049_v35  ;;  %v26396_v35 = vpack.c.bf16 %v20076_v40, %v20075_v63  ;;  %v20078_v63 = vld [vmem:[%s35146_s4 + $0xa8] sm:$0xff] }
 0x297   :  { %v31323_v5 = vpop.f32.mrb[16].mxu1  ;;  %v26400_v40 = vpack.c.bf16 %v20078_v63, %v20077_v56  ;;  %v20081_v56 = vld [vmem:[%s35146_s4 + $0xc0] sm:$0xff]  ;;  %v20082_v63 = vld [vmem:[%s35146_s4 + $0xc8] sm:$0xff] }
 0x298   :  { %v31328_v41 = vpop.f32.mrb[17].mxu1  ;;  %26397 = vmatprep.subr.bf16.mxu1 %v26396_v35 }
 0x299   :  { %23725 = vmatmul.mubr.f32.gmra.mrb[58].mxu0 %v20050_v46  ;;  %26399 = vmatpush3.bf16.msra.mxu1 %v26396_v35 }
 0x29a   :  { %23727 = vmatprep.mubr.f32.mxu0 %v20051_v36  ;;  %26401 = vmatprep.subr.bf16.mxu1 %v26400_v40 }
 0x29b   :  { %v31333_v0 = vpop.f32.mrb[18].mxu1 }
 0x29c   :  { %v31338_v51 = vpop.f32.mrb[19].mxu1 }
 0x29d   :  { %23728 = vmatmul.mubr.f32.gmra.mrb[60].mxu0 %v20052_v45  ;;  %26403 = vmatpush3.bf16.msra.mxu1 %v26400_v40  ;;  %v26408_v40 = vpack.c.bf16 %v20082_v63, %v20081_v56  ;;  %v31477_v63 = vld [vmem:[%s35145_s3] ss:$0 sm:$0xff] }
 0x29e   :  { %23730 = vmatprep.mubr.f32.mxu0 %v20053_v15 }
 0x29f   :  { %v31343_v54 = vpop.f32.mrb[20].mxu1 }
 0x2a0   :  { %v31345_v62 = vpop.f32.mrb[21].mxu1 }
 0x2a1   :  { %23731 = vmatmul.mubr.f32.gmra.mrb[62].mxu0 %v20054_v17 }
 0x2a2   :  { %24917 = vmatprep.mubr.f32.mxu0 %v28595_v48 }
 0x2a3   :  { %v31348_v4 = vpop.f32.mrb[22].mxu1 }
 0x2a4   :  { %v31350_v7 = vpop.f32.mrb[23].mxu1 }
 0x2a7   :  { %v31352_v9 = vpop.f32.mrb[24].mxu1 }
 0x2a8   :  { %v31354_v14 = vpop.f32.mrb[25].mxu1 }
 0x2ab   :  { %v31356_v16 = vpop.f32.mrb[26].mxu1 }
 0x2ac   :  { %v31358_v20 = vpop.f32.mrb[27].mxu1 }
 0x2af   :  { %v31360_v27 = vpop.f32.mrb[28].mxu1 }
 0x2b0   :  { %v31362_v24 = vpop.f32.mrb[29].mxu1 }
 0x2b3   :  { %v31364_v30 = vpop.f32.mrb[30].mxu1 }
 0x2b4   :  { %v31366_v50 = vpop.f32.mrb[31].mxu1 }
 0x2b7   :  { %v31368_v43 = vpop.f32.mrb[32].mxu1 }
 0x2b8   :  { %v31370_v48 = vpop.f32.mrb[33].mxu1 }
 0x2bb   :  { %v31372_v31 = vpop.f32.mrb[34].mxu1 }
 0x2bc   :  { %v31374_v13 = vpop.f32.mrb[35].mxu1 }
 0x2bf   :  { %v31376_v26 = vpop.f32.mrb[36].mxu1 }
 0x2c0   :  { %v31378_v38 = vpop.f32.mrb[37].mxu1 }
 0x2c3   :  { %v31380_v34 = vpop.f32.mrb[38].mxu1 }
 0x2c4   :  { %v31382_v32 = vpop.f32.mrb[39].mxu1 }
 0x2c7   :  { %v31384_v33 = vpop.f32.mrb[40].mxu1 }
 0x2c8   :  { %v31386_v11 = vpop.f32.mrb[41].mxu1 }
 0x2cb   :  { %v31388_v55 = vpop.f32.mrb[42].mxu1 }
 0x2cc   :  { %v31390_v8 = vpop.f32.mrb[43].mxu1 }
 0x2cf   :  { %v31398_v22 = vpop.f32.mrb[44].mxu1 }
 0x2d0   :  { %v31400_v52 = vpop.f32.mrb[45].mxu1 }
 0x2d3   :  { %v31402_v10 = vpop.f32.mrb[46].mxu1 }
 0x2d4   :  { %v31404_v19 = vpop.f32.mrb[47].mxu1 }
 0x2d7   :  { %v31406_v42 = vpop.f32.mrb[48].mxu1 }
 0x2d8   :  { %35601 = vst [vmem:[#allocation21_spill] sm:$0xff] %v31406_v42  ;;  %v31408_v28 = vpop.f32.mrb[49].mxu1 }
 0x2d9   :  { %35602 = vst [vmem:[#allocation8_spill] sm:$0xff] %v31408_v28 }
 0x2db   :  { %v31410_v39 = vpop.f32.mrb[50].mxu1 }
 0x2dc   :  { %35603 = vst [vmem:[#allocation22_spill] sm:$0xff] %v31410_v39  ;;  %v31412_v47 = vpop.f32.mrb[51].mxu1 }
 0x2dd   :  { %35604 = vst [vmem:[#allocation9_spill] sm:$0xff] %v31412_v47 }
 0x2df   :  { %v31420_v2 = vpop.f32.mrb[52].mxu1 }
 0x2e0   :  { %35605 = vst [vmem:[#allocation10_spill] sm:$0xff] %v31420_v2  ;;  %v31422_v46 = vpop.f32.mrb[53].mxu1 }
 0x2e1   :  { %35606 = vst [vmem:[#allocation11_spill] sm:$0xff] %v31422_v46 }
 0x2e3   :  { %v31424_v36 = vpop.f32.mrb[54].mxu1 }
 0x2e4   :  { %35607 = vst [vmem:[#allocation12_spill] sm:$0xff] %v31424_v36  ;;  %v31426_v45 = vpop.f32.mrb[55].mxu1 }
 0x2e5   :  { %35608 = vst [vmem:[#allocation13_spill] sm:$0xff] %v31426_v45 }
 0x2e7   :  { %v31428_v15 = vpop.f32.mrb[56].mxu1 }
 0x2e8   :  { %35609 = vst [vmem:[#allocation14_spill] sm:$0xff] %v31428_v15  ;;  %v31430_v17 = vpop.f32.mrb[57].mxu1 }
 0x2e9   :  { %35610 = vst [vmem:[#allocation15_spill] sm:$0xff] %v31430_v17 }
 0x2eb   :  { %v31432_v57 = vpop.f32.mrb[58].mxu1 }
 0x2ec   :  { %35611 = vst [vmem:[#allocation16_spill] sm:$0xff] %v31432_v57  ;;  %v31434_v18 = vpop.f32.mrb[59].mxu1  ;;  %v20079_v57 = vld [vmem:[%s35146_s4 + $0xb0] sm:$0xff] }
 0x2ed   :  { %35612 = vst [vmem:[#allocation17_spill] sm:$0xff] %v31434_v18  ;;  %v20080_v18 = vld [vmem:[%s35146_s4 + $0xb8] sm:$0xff] }
 0x2ee   :  { %v26404_v17 = vpack.c.bf16 %v20080_v18, %v20079_v57  ;;  %v31465_v57 = vld [vmem:[%s35144_s2] ss:$0 sm:$0xff]  ;;  %v20084_v18 = vld [vmem:[%s35146_s4 + $0xd8] sm:$0xff] }
 0x2ef   :  { %v31442_v35 = vpop.f32.mrb[60].mxu1 }
 0x2f0   :  { %35613 = vst [vmem:[#allocation18_spill] sm:$0xff] %v31442_v35  ;;  %v31444_v45 = vpop.f32.mrb[61].mxu1  ;;  %26405 = vmatprep.subr.bf16.mxu1 %v26404_v17 }
 0x2f1   :  { %35614 = vst [vmem:[#allocation19_spill] sm:$0xff] %v31444_v45  ;;  %26407 = vmatpush3.bf16.msra.mxu1 %v26404_v17  ;;  %v20083_v17 = vld [vmem:[%s35146_s4 + $0xd0] sm:$0xff] }
 0x2f2   :  { %26409 = vmatprep.subr.bf16.mxu1 %v26408_v40  ;;  %v26412_v56 = vpack.c.bf16 %v20084_v18, %v20083_v17 }
 0x2f3   :  { %v31452_v15 = vpop.f32.mrb[62].mxu1 }
 0x2f4   :  { %35615 = vst [vmem:[#allocation20_spill] sm:$0xff] %v31452_v15  ;;  %v31454_v36 = vpop.f32.mrb[63].mxu1 }
 0x2f5   :  { %35616 = vst [vmem:[#allocation23_spill] sm:$0xff] %v31454_v36  ;;  %26411 = vmatpush3.bf16.msra.mxu1 %v26408_v40 }
 0x2f6   :  { %26413 = vmatprep.subr.bf16.mxu1 %v26412_v56 }
 0x2f8   :  { %v23639_v45 = vpop.f32.mrb[0].mxu0 }
 0x2f9   :  { %v27024_v36 = vadd.f32 %v23639_v45, %v31222_v21  ;;  %v5801_v15 = vpop.f32.mrb[1].mxu0  ;;  %26415 = vmatpush3.bf16.msra.mxu1 %v26412_v56  ;;  %v20085_v21 = vld [vmem:[%s35146_s4 + $0xe0] sm:$0xff]  ;;  %v20086_v45 = vld [vmem:[%s35146_s4 + $0xe8] sm:$0xff] }
 0x2fa   :  { %v27025_v35 = vadd.f32 %v5801_v15, %v31228_v53  ;;  %v26416_v15 = vpack.c.bf16 %v20086_v45, %v20085_v21 }
 0x2fb   :  { %v6320_v40 = vmul.f32 %v27024_v36, %v31465_v57 }
 0x2fc   :  { %v6319_v46 = vmul.f32 %v27025_v35, %v31465_v57  ;;  %v23642_v2 = vpop.f32.mrb[2].mxu0  ;;  %26417 = vmatprep.subr.bf16.mxu1 %v26416_v15 }
 0x2fd   :  { %v6391_v17 = vadd.f32 %v31477_v63, %v6320_v40  ;;  %v27026_v18 = vadd.f32 %v23642_v2, %v31240_v29  ;;  %v5811_v53 = vpop.f32.mrb[3].mxu0  ;;  %26419 = vmatpush3.bf16.msra.mxu1 %v26416_v15  ;;  %v20087_v40 = vld [vmem:[%s35146_s4 + $0xf0] sm:$0xff]  ;;  %v20088_v29 = vld [vmem:[%s35146_s4 + $0xf8] sm:$0xff] }
 0x2fe   :  { %v6390_v36 = vadd.f32 %v31477_v63, %v6319_v46  ;;  %v27027_v35 = vadd.f32 %v5811_v53, %v31245_v6  ;;  %v26420_v21 = vpack.c.bf16 %v20088_v29, %v20087_v40 }
 0x2ff   :  { %v6455_v47 = vmax.f32 %v6391_v17, 0.0  ;;  %v6322_v56 = vmul.f32 %v27026_v18, %v31465_v57 }
 0x300   :  { %v6454_v39 = vmax.f32 %v6390_v36, 0.0  ;;  %v6321_v28 = vmul.f32 %v27027_v35, %v31465_v57  ;;  %v23645_v42 = vpop.f32.mrb[4].mxu0  ;;  %26421 = vmatprep.subr.bf16.mxu1 %v26420_v21 }
 0x301   :  { %6520 = vst [vmem:[#allocation2 + $0x21] sm:$0xff] %v6455_v47  ;;  %v6393_v6 = vadd.f32 %v31477_v63, %v6322_v56  ;;  %v27028_v2 = vadd.f32 %v23645_v42, %v31256_v60  ;;  %v5821_v46 = vpop.f32.mrb[5].mxu0  ;;  %26423 = vmatpush3.bf16.msra.mxu1 %v26420_v21 }
 0x302   :  { %6519 = vst [vmem:[#allocation2 + $0x19] sm:$0xff] %v6454_v39  ;;  %v6392_v45 = vadd.f32 %v31477_v63, %v6321_v28  ;;  %v27029_v17 = vadd.f32 %v5821_v46, %v31261_v3 }
 0x303   :  { %v6457_v18 = vmax.f32 %v6393_v6, 0.0  ;;  %v6324_v53 = vmul.f32 %v27028_v2, %v31465_v57 }
 0x304   :  { %v6456_v15 = vmax.f32 %v6392_v45, 0.0  ;;  %v6323_v36 = vmul.f32 %v27029_v17, %v31465_v57  ;;  %v23648_v35 = vpop.f32.mrb[6].mxu0 }
 0x305   :  { %6522 = vst [vmem:[#allocation2 + $0x39] sm:$0xff] %v6457_v18  ;;  %v6395_v47 = vadd.f32 %v31477_v63, %v6324_v53  ;;  %v27030_v60 = vadd.f32 %v23648_v35, %v31272_v58  ;;  %v5831_v42 = vpop.f32.mrb[7].mxu0 }
 0x306   :  { %6521 = vst [vmem:[#allocation2 + $0x31] sm:$0xff] %v6456_v15  ;;  %v6394_v28 = vadd.f32 %v31477_v63, %v6323_v36  ;;  %v27031_v3 = vadd.f32 %v5831_v42, %v31277_v12 }
 0x307   :  { %v6459_v39 = vmax.f32 %v6395_v47, 0.0  ;;  %v6326_v56 = vmul.f32 %v27030_v60, %v31465_v57 }
 0x308   :  { %v6458_v40 = vmax.f32 %v6394_v28, 0.0  ;;  %v6325_v29 = vmul.f32 %v27031_v3, %v31465_v57  ;;  %v23651_v6 = vpop.f32.mrb[8].mxu0 }
 0x309   :  { %6524 = vst [vmem:[#allocation2 + $0x51] sm:$0xff] %v6459_v39  ;;  %v6397_v2 = vadd.f32 %v31477_v63, %v6326_v56  ;;  %v27032_v46 = vadd.f32 %v23651_v6, %v31282_v25  ;;  %v5841_v21 = vpop.f32.mrb[9].mxu0  ;;  %v6649_v58 = vld [vmem:[#allocation2 + $0x18] sm:$0xff]  ;;  %v6650_v45 = vld [vmem:[#allocation2 + $0x20] sm:$0xff] }
 0x30a   :  { %6523 = vst [vmem:[#allocation2 + $0x49] sm:$0xff] %v6458_v40  ;;  %v6396_v17 = vadd.f32 %v31477_v63, %v6325_v29  ;;  %v27033_v12 = vadd.f32 %v5841_v21, %v31288_v37  ;;  %23768 = vmatprep.mubr.f32.mxu1 %v6649_v58 }
 0x30b   :  { %v6461_v18 = vmax.f32 %v6397_v2, 0.0  ;;  %v6328_v53 = vmul.f32 %v27032_v46, %v31465_v57  ;;  %23769 = vmatmul.mubr.f32.gmra.mrb[66].mxu1 %v6650_v45 }
 0x30c   :  { %v6460_v15 = vmax.f32 %v6396_v17, 0.0  ;;  %v6327_v36 = vmul.f32 %v27033_v12, %v31465_v57  ;;  %v23654_v35 = vpop.f32.mrb[10].mxu0 }
 0x30d   :  { %6526 = vst [vmem:[#allocation2 + $0x69] sm:$0xff] %v6461_v18  ;;  %v6399_v25 = vadd.f32 %v31477_v63, %v6328_v53  ;;  %v27034_v47 = vadd.f32 %v23654_v35, %v31293_v59  ;;  %v5851_v60 = vpop.f32.mrb[11].mxu0  ;;  %v6651_v42 = vld [vmem:[#allocation2 + $0x30] sm:$0xff]  ;;  %v6652_v28 = vld [vmem:[#allocation2 + $0x38] sm:$0xff] }
 0x30e   :  { %6525 = vst [vmem:[#allocation2 + $0x61] sm:$0xff] %v6460_v15  ;;  %v31521_v37 = vadd.f32 %v31477_v63, %v6327_v36  ;;  %v27035_v3 = vadd.f32 %v5851_v60, %v31298_v49  ;;  %23771 = vmatprep.mubr.f32.mxu1 %v6651_v42 }
 0x30f   :  { %v6463_v39 = vmax.f32 %v6399_v25, 0.0  ;;  %v6330_v56 = vmul.f32 %v27034_v47, %v31465_v57  ;;  %23772 = vmatmul.mubr.f32.gmra.mrb[68].mxu1 %v6652_v28 }
 0x310   :  { %v35228_v40 = vmax.f32 %v31521_v37, 0.0  ;;  %v6329_v29 = vmul.f32 %v27035_v3, %v31465_v57  ;;  %v23657_v6 = vpop.f32.mrb[12].mxu0 }
 0x311   :  { %6528 = vst [vmem:[#allocation2 + $0x81] sm:$0xff] %v6463_v39  ;;  %v31528_v59 = vadd.f32 %v31477_v63, %v6330_v56  ;;  %v27036_v2 = vadd.f32 %v23657_v6, %v31303_v61  ;;  %v5861_v46 = vpop.f32.mrb[13].mxu0  ;;  %v6653_v21 = vld [vmem:[#allocation2 + $0x48] sm:$0xff]  ;;  %v6654_v58 = vld [vmem:[#allocation2 + $0x50] sm:$0xff] }
 0x312   :  { %6527 = vst [vmem:[#allocation2 + $0x79] sm:$0xff] %v35228_v40  ;;  %v31534_v49 = vadd.f32 %v31477_v63, %v6329_v29  ;;  %v27037_v45 = vadd.f32 %v5861_v46, %v31308_v44  ;;  %23774 = vmatprep.mubr.f32.mxu1 %v6653_v21 }
 0x313   :  { %v35224_v17 = vmax.f32 %v31528_v59, 0.0  ;;  %v6332_v12 = vmul.f32 %v27036_v2, %v31465_v57  ;;  %23775 = vmatmul.mubr.f32.gmra.mrb[70].mxu1 %v6654_v58 }
 0x314   :  { %v35225_v18 = vmax.f32 %v31534_v49, 0.0  ;;  %v6331_v61 = vmul.f32 %v27037_v45, %v31465_v57  ;;  %v23660_v53 = vpop.f32.mrb[14].mxu0 }
 0x315   :  { %6530 = vst [vmem:[#allocation2 + $0x99] sm:$0xff] %v35224_v17  ;;  %v31544_v15 = vadd.f32 %v31477_v63, %v6332_v12  ;;  %v27038_v36 = vadd.f32 %v23660_v53, %v31313_v23  ;;  %v5871_v44 = vpop.f32.mrb[15].mxu0  ;;  %v6655_v35 = vld [vmem:[#allocation2 + $0x60] sm:$0xff]  ;;  %v6656_v25 = vld [vmem:[#allocation2 + $0x68] sm:$0xff] }
 0x316   :  { %6529 = vst [vmem:[#allocation2 + $0x91] sm:$0xff] %v35225_v18  ;;  %v31550_v47 = vadd.f32 %v31477_v63, %v6331_v61  ;;  %v27039_v60 = vadd.f32 %v5871_v44, %v31318_v1  ;;  %23777 = vmatprep.mubr.f32.mxu1 %v6655_v35 }
 0x317   :  { %v35220_v42 = vmax.f32 %v31544_v15, 0.0  ;;  %v6334_v28 = vmul.f32 %v27038_v36, %v31465_v57  ;;  %23778 = vmatmul.mubr.f32.gmra.mrb[72].mxu1 %v6656_v25 }
 0x318   :  { %v35221_v3 = vmax.f32 %v31550_v47, 0.0  ;;  %v6333_v23 = vmul.f32 %v27039_v60, %v31465_v57  ;;  %v23663_v39 = vpop.f32.mrb[16].mxu0 }
 0x319   :  { %6532 = vst [vmem:[#allocation2 + $0xb1] sm:$0xff] %v35220_v42  ;;  %v31560_v56 = vadd.f32 %v31477_v63, %v6334_v28  ;;  %v27040_v29 = vadd.f32 %v23663_v39, %v31323_v5  ;;  %v5881_v1 = vpop.f32.mrb[17].mxu0  ;;  %v6657_v6 = vld [vmem:[#allocation2 + $0x78] sm:$0xff]  ;;  %v6658_v2 = vld [vmem:[#allocation2 + $0x80] sm:$0xff] }
 0x31a   :  { %6531 = vst [vmem:[#allocation2 + $0xa9] sm:$0xff] %v35221_v3  ;;  %v31566_v46 = vadd.f32 %v31477_v63, %v6333_v23  ;;  %v27041_v21 = vadd.f32 %v5881_v1, %v31328_v41  ;;  %23780 = vmatprep.mubr.f32.mxu1 %v6657_v6 }
 0x31b   :  { %v35216_v58 = vmax.f32 %v31560_v56, 0.0  ;;  %v6336_v45 = vmul.f32 %v27040_v29, %v31465_v57  ;;  %23781 = vmatmul.mubr.f32.gmra.mrb[74].mxu1 %v6658_v2 }
 0x31c   :  { %v35217_v12 = vmax.f32 %v31566_v46, 0.0  ;;  %v6335_v5 = vmul.f32 %v27041_v21, %v31465_v57  ;;  %v23666_v61 = vpop.f32.mrb[18].mxu0 }
 0x31d   :  { %6534 = vst [vmem:[#allocation2 + $0xc9] sm:$0xff] %v35216_v58  ;;  %v31576_v53 = vadd.f32 %v31477_v63, %v6336_v45  ;;  %v27042_v36 = vadd.f32 %v23666_v61, %v31333_v0  ;;  %v5891_v41 = vpop.f32.mrb[19].mxu0  ;;  %v6659_v44 = vld [vmem:[#allocation2 + $0x90] sm:$0xff]  ;;  %v6660_v35 = vld [vmem:[#allocation2 + $0x98] sm:$0xff] }
 0x31e   :  { %6533 = vst [vmem:[#allocation2 + $0xc1] sm:$0xff] %v35217_v12  ;;  %v31582_v25 = vadd.f32 %v31477_v63, %v6335_v5  ;;  %v27043_v60 = vadd.f32 %v5891_v41, %v31338_v51  ;;  %23783 = vmatprep.mubr.f32.mxu1 %v6659_v44 }
 0x31f   :  { %v35212_v28 = vmax.f32 %v31576_v53, 0.0  ;;  %v6338_v23 = vmul.f32 %v27042_v36, %v31465_v57  ;;  %23784 = vmatmul.mubr.f32.gmra.mrb[76].mxu1 %v6660_v35 }
 0x320   :  { %v35213_v39 = vmax.f32 %v31582_v25, 0.0  ;;  %v6337_v0 = vmul.f32 %v27043_v60, %v31465_v57  ;;  %v23669_v29 = vpop.f32.mrb[20].mxu0 }
 0x321   :  { %6536 = vst [vmem:[#allocation2 + $0xe1] sm:$0xff] %v35212_v28  ;;  %v31592_v1 = vadd.f32 %v31477_v63, %v6338_v23  ;;  %v27044_v6 = vadd.f32 %v23669_v29, %v31343_v54  ;;  %v5901_v51 = vpop.f32.mrb[21].mxu0  ;;  %v6661_v2 = vld [vmem:[#allocation2 + $0xa8] sm:$0xff]  ;;  %v6662_v21 = vld [vmem:[#allocation2 + $0xb0] sm:$0xff] }
 0x322   :  { %6535 = vst [vmem:[#allocation2 + $0xd9] sm:$0xff] %v35213_v39  ;;  %v31598_v45 = vadd.f32 %v31477_v63, %v6337_v0  ;;  %v27045_v5 = vadd.f32 %v5901_v51, %v31345_v62  ;;  %23786 = vmatprep.mubr.f32.mxu1 %v6661_v2 }
 0x323   :  { %v35193_v61 = vmax.f32 %v31592_v1, 0.0  ;;  %v6340_v36 = vmul.f32 %v27044_v6, %v31465_v57  ;;  %23787 = vmatmul.mubr.f32.gmra.mrb[78].mxu1 %v6662_v21 }
 0x324   :  { %v35195_v41 = vmax.f32 %v31598_v45, 0.0  ;;  %v6339_v54 = vmul.f32 %v27045_v5, %v31465_v57  ;;  %v23672_v44 = vpop.f32.mrb[22].mxu0 }
 0x325   :  { %6538 = vst [vmem:[#allocation2 + $0xf9] sm:$0xff] %v35193_v61  ;;  %v31608_v35 = vadd.f32 %v31477_v63, %v6340_v36  ;;  %v27046_v60 = vadd.f32 %v23672_v44, %v31348_v4  ;;  %v5911_v62 = vpop.f32.mrb[23].mxu0  ;;  %v6663_v23 = vld [vmem:[#allocation2 + $0xc0] sm:$0xff]  ;;  %v6664_v0 = vld [vmem:[#allocation2 + $0xc8] sm:$0xff] }
 0x326   :  { %6537 = vst [vmem:[#allocation2 + $0xf1] sm:$0xff] %v35195_v41  ;;  %v31614_v29 = vadd.f32 %v31477_v63, %v6339_v54  ;;  %v27047_v6 = vadd.f32 %v5911_v62, %v31350_v7  ;;  %23789 = vmatprep.mubr.f32.mxu1 %v6663_v23 }
 0x327   :  { %v35184_v51 = vmax.f32 %v31608_v35, 0.0  ;;  %v6342_v2 = vmul.f32 %v27046_v60, %v31465_v57  ;;  %23790 = vmatmul.mubr.f32.gmra.mrb[80].mxu1 %v6664_v0 }
 0x328   :  { %v35191_v21 = vmax.f32 %v31614_v29, 0.0  ;;  %v6341_v4 = vmul.f32 %v27047_v6, %v31465_v57  ;;  %v23675_v5 = vpop.f32.mrb[24].mxu0 }
 0x329   :  { %6540 = vst [vmem:[#allocation2 + $0x111] sm:$0xff] %v35184_v51  ;;  %v31624_v36 = vadd.f32 %v31477_v63, %v6342_v2  ;;  %v27048_v54 = vadd.f32 %v23675_v5, %v31352_v9  ;;  %v5921_v7 = vpop.f32.mrb[25].mxu0  ;;  %v6665_v44 = vld [vmem:[#allocation2 + $0xd8] sm:$0xff]  ;;  %v6666_v62 = vld [vmem:[#allocation2 + $0xe0] sm:$0xff] }
 0x32a   :  { %6539 = vst [vmem:[#allocation2 + $0x109] sm:$0xff] %v35191_v21  ;;  %v31630_v60 = vadd.f32 %v31477_v63, %v6341_v4  ;;  %v27049_v23 = vadd.f32 %v5921_v7, %v31354_v14  ;;  %23792 = vmatprep.mubr.f32.mxu1 %v6665_v44 }
 0x32b   :  { %v35185_v0 = vmax.f32 %v31624_v36, 0.0  ;;  %v6344_v6 = vmul.f32 %v27048_v54, %v31465_v57  ;;  %23793 = vmatmul.mubr.f32.gmra.mrb[82].mxu1 %v6666_v62 }
 0x32c   :  { %v35186_v2 = vmax.f32 %v31630_v60, 0.0  ;;  %v6343_v9 = vmul.f32 %v27049_v23, %v31465_v57  ;;  %v23678_v5 = vpop.f32.mrb[26].mxu0 }
 0x32d   :  { %6542 = vst [vmem:[#allocation2 + $0x129] sm:$0xff] %v35185_v0  ;;  %v31640_v51 = vadd.f32 %v31477_v63, %v6344_v6  ;;  %v27050_v4 = vadd.f32 %v23678_v5, %v31356_v16  ;;  %v5931_v14 = vpop.f32.mrb[27].mxu0  ;;  %v6667_v7 = vld [vmem:[#allocation2 + $0xf0] sm:$0xff]  ;;  %v6668_v44 = vld [vmem:[#allocation2 + $0xf8] sm:$0xff] }
 0x32e   :  { %6541 = vst [vmem:[#allocation2 + $0x121] sm:$0xff] %v35186_v2  ;;  %v31646_v54 = vadd.f32 %v31477_v63, %v6343_v9  ;;  %v27051_v62 = vadd.f32 %v5931_v14, %v31358_v20  ;;  %23795 = vmatprep.mubr.f32.mxu1 %v6667_v7 }
 0x32f   :  { %v35187_v23 = vmax.f32 %v31640_v51, 0.0  ;;  %v6346_v0 = vmul.f32 %v27050_v4, %v31465_v57  ;;  %23796 = vmatmul.mubr.f32.gmra.mrb[84].mxu1 %v6668_v44 }
 0x330   :  { %v35188_v6 = vmax.f32 %v31646_v54, 0.0  ;;  %v6345_v16 = vmul.f32 %v27051_v62, %v31465_v57  ;;  %v23681_v5 = vpop.f32.mrb[28].mxu0 }
 0x331   :  { %6544 = vst [vmem:[#allocation2 + $0x141] sm:$0xff] %v35187_v23  ;;  %v31656_v2 = vadd.f32 %v31477_v63, %v6346_v0  ;;  %v27052_v9 = vadd.f32 %v23681_v5, %v31360_v27  ;;  %v5941_v20 = vpop.f32.mrb[29].mxu0  ;;  %v6669_v14 = vld [vmem:[#allocation2 + $0x108] sm:$0xff]  ;;  %v6670_v7 = vld [vmem:[#allocation2 + $0x110] sm:$0xff] }
 0x332   :  { %6543 = vst [vmem:[#allocation2 + $0x139] sm:$0xff] %v35188_v6  ;;  %v31662_v4 = vadd.f32 %v31477_v63, %v6345_v16  ;;  %v27053_v44 = vadd.f32 %v5941_v20, %v31362_v24  ;;  %23798 = vmatprep.mubr.f32.mxu1 %v6669_v14 }
 0x333   :  { %v35189_v62 = vmax.f32 %v31656_v2, 0.0  ;;  %v6348_v23 = vmul.f32 %v27052_v9, %v31465_v57  ;;  %23799 = vmatmul.mubr.f32.gmra.mrb[86].mxu1 %v6670_v7 }
 0x334   :  { %v35190_v0 = vmax.f32 %v31662_v4, 0.0  ;;  %v6347_v27 = vmul.f32 %v27053_v44, %v31465_v57  ;;  %v23684_v5 = vpop.f32.mrb[30].mxu0 }
 0x335   :  { %6546 = vst [vmem:[#allocation2 + $0x159] sm:$0xff] %v35189_v62  ;;  %v31672_v6 = vadd.f32 %v31477_v63, %v6348_v23  ;;  %v27054_v16 = vadd.f32 %v23684_v5, %v31364_v30  ;;  %v5951_v24 = vpop.f32.mrb[31].mxu0  ;;  %v6671_v20 = vld [vmem:[#allocation2 + $0x120] sm:$0xff]  ;;  %v6672_v14 = vld [vmem:[#allocation2 + $0x128] sm:$0xff] }
 0x336   :  { %6545 = vst [vmem:[#allocation2 + $0x151] sm:$0xff] %v35190_v0  ;;  %v31678_v9 = vadd.f32 %v31477_v63, %v6347_v27  ;;  %v27055_v7 = vadd.f32 %v5951_v24, %v31366_v50  ;;  %23801 = vmatprep.mubr.f32.mxu1 %v6671_v20 }
 0x337   :  { %v35192_v44 = vmax.f32 %v31672_v6, 0.0  ;;  %v6350_v62 = vmul.f32 %v27054_v16, %v31465_v57  ;;  %23802 = vmatmul.mubr.f32.gmra.mrb[88].mxu1 %v6672_v14 }
 0x338   :  { %v35194_v23 = vmax.f32 %v31678_v9, 0.0  ;;  %v6349_v30 = vmul.f32 %v27055_v7, %v31465_v57  ;;  %v23687_v5 = vpop.f32.mrb[32].mxu0 }
 0x339   :  { %6548 = vst [vmem:[#allocation2 + $0x171] sm:$0xff] %v35192_v44  ;;  %v6421_v0 = vadd.f32 %v31477_v63, %v6350_v62  ;;  %v27056_v27 = vadd.f32 %v23687_v5, %v31368_v43  ;;  %v5961_v21 = vpop.f32.mrb[33].mxu0  ;;  %v6673_v50 = vld [vmem:[#allocation2 + $0x138] sm:$0xff]  ;;  %v6674_v24 = vld [vmem:[#allocation2 + $0x140] sm:$0xff] }
 0x33a   :  { %6547 = vst [vmem:[#allocation2 + $0x169] sm:$0xff] %v35194_v23  ;;  %v6420_v16 = vadd.f32 %v31477_v63, %v6349_v30  ;;  %v27057_v20 = vadd.f32 %v5961_v21, %v31370_v48  ;;  %23804 = vmatprep.mubr.f32.mxu1 %v6673_v50 }
 0x33b   :  { %v6485_v14 = vmax.f32 %v6421_v0, 0.0  ;;  %v6352_v7 = vmul.f32 %v27056_v27, %v31465_v57  ;;  %23805 = vmatmul.mubr.f32.gmra.mrb[90].mxu1 %v6674_v24 }
 0x33c   :  { %v6484_v44 = vmax.f32 %v6420_v16, 0.0  ;;  %v6351_v62 = vmul.f32 %v27057_v20, %v31465_v57  ;;  %v23690_v61 = vpop.f32.mrb[34].mxu0 }
 0x33d   :  { %6550 = vst [vmem:[#allocation2 + $0x189] sm:$0xff] %v6485_v14  ;;  %v31696_v43 = vadd.f32 %v31477_v63, %v6352_v7  ;;  %v27058_v5 = vadd.f32 %v23690_v61, %v31372_v31  ;;  %v5971_v23 = vpop.f32.mrb[35].mxu0  ;;  %v6675_v41 = vld [vmem:[#allocation2 + $0x150] sm:$0xff]  ;;  %v6676_v30 = vld [vmem:[#allocation2 + $0x158] sm:$0xff] }
 0x33e   :  { %6549 = vst [vmem:[#allocation2 + $0x181] sm:$0xff] %v6484_v44  ;;  %v31700_v48 = vadd.f32 %v31477_v63, %v6351_v62  ;;  %v27059_v21 = vadd.f32 %v5971_v23, %v31374_v13  ;;  %23807 = vmatprep.mubr.f32.mxu1 %v6675_v41 }
 0x33f   :  { %v35208_v0 = vmax.f32 %v31696_v43, 0.0  ;;  %v6354_v27 = vmul.f32 %v27058_v5, %v31465_v57  ;;  %23808 = vmatmul.mubr.f32.gmra.mrb[92].mxu1 %v6676_v30  ;;  %v28566_v30 = vld [vmem:[#allocation2] sm:$0xff] }
 0x340   :  { %v35209_v50 = vmax.f32 %v31700_v48, 0.0  ;;  %v6353_v24 = vmul.f32 %v27059_v21, %v31465_v57  ;;  %v23693_v31 = vpop.f32.mrb[36].mxu0  ;;  %v20089_v21 = vld [vmem:[%s35146_s4 + $0x100] sm:$0xff] }
 0x341   :  { %6552 = vst [vmem:[#allocation2 + $0x1d1] sm:$0xff] %v35208_v0  ;;  %v31710_v61 = vadd.f32 %v31477_v63, %v6354_v27  ;;  %v27060_v44 = vadd.f32 %v23693_v31, %v31376_v26  ;;  %v5981_v13 = vpop.f32.mrb[37].mxu0  ;;  %v6677_v41 = vld [vmem:[#allocation2 + $0x168] sm:$0xff]  ;;  %v6678_v23 = vld [vmem:[#allocation2 + $0x170] sm:$0xff] }
 0x342   :  { %6551 = vst [vmem:[#allocation2 + $0x1c9] sm:$0xff] %v35209_v50  ;;  %v31716_v16 = vadd.f32 %v31477_v63, %v6353_v24  ;;  %v27061_v20 = vadd.f32 %v5981_v13, %v31378_v38  ;;  %23810 = vmatprep.mubr.f32.mxu1 %v6677_v41  ;;  %v20090_v38 = vld [vmem:[%s35146_s4 + $0x108] sm:$0xff] }
 0x343   :  { %v35204_v14 = vmax.f32 %v31710_v61, 0.0  ;;  %v6356_v7 = vmul.f32 %v27060_v44, %v31465_v57  ;;  %23811 = vmatmul.mubr.f32.gmra.mrb[94].mxu1 %v6678_v23  ;;  %v31735_v44 = vpack.c.bf16 %v20090_v38, %v20089_v21 }
 0x344   :  { %v35205_v62 = vmax.f32 %v31716_v16, 0.0  ;;  %v6355_v26 = vmul.f32 %v27061_v20, %v31465_v57  ;;  %v23696_v5 = vpop.f32.mrb[38].mxu0  ;;  %23813 = vmatprep.mubr.f32.mxu1 %v28566_v30 }
 0x345   :  { %6554 = vst [vmem:[#allocation2 + $0x1e9] sm:$0xff] %v35204_v14  ;;  %v31732_v27 = vadd.f32 %v31477_v63, %v6356_v7  ;;  %v27062_v24 = vadd.f32 %v23696_v5, %v31380_v34  ;;  %v5991_v31 = vpop.f32.mrb[39].mxu0  ;;  %26425 = vmatprep.subr.bf16.mxu1 %v31735_v44 }
 0x346   :  { %6553 = vst [vmem:[#allocation2 + $0x1e1] sm:$0xff] %v35205_v62  ;;  %v31740_v13 = vadd.f32 %v31477_v63, %v6355_v26  ;;  %v27063_v41 = vadd.f32 %v5991_v31, %v31382_v32 }
 0x347   :  { %v35196_v23 = vmax.f32 %v31732_v27, 0.0  ;;  %v6358_v20 = vmul.f32 %v27062_v24, %v31465_v57  ;;  %23814 = vmatmul.mubr.f32.gmra.mrb[96].mxu1 %v28566_v30 }
 0x348   :  { %v35197_v34 = vmax.f32 %v31740_v13, 0.0  ;;  %v6357_v7 = vmul.f32 %v27063_v41, %v31465_v57  ;;  %v23699_v5 = vpop.f32.mrb[40].mxu0 }
 0x349   :  { %6556 = vst [vmem:[#allocation2 + $0x201] sm:$0xff] %v35196_v23  ;;  %v31751_v26 = vadd.f32 %v31477_v63, %v6358_v20  ;;  %v27064_v32 = vadd.f32 %v23699_v5, %v31384_v33  ;;  %v6001_v21 = vpop.f32.mrb[41].mxu0  ;;  %v6681_v38 = vld [vmem:[#allocation2 + $0x1c8] sm:$0xff]  ;;  %v6682_v31 = vld [vmem:[#allocation2 + $0x1d0] sm:$0xff] }
 0x34a   :  { %6555 = vst [vmem:[#allocation2 + $0x1f9] sm:$0xff] %v35197_v34  ;;  %v31757_v30 = vadd.f32 %v31477_v63, %v6357_v7  ;;  %v27065_v24 = vadd.f32 %v6001_v21, %v31386_v11  ;;  %23816 = vmatprep.mubr.f32.mxu1 %v6681_v38 }
 0x34b   :  { %v35198_v41 = vmax.f32 %v31751_v26, 0.0  ;;  %v6360_v23 = vmul.f32 %v27064_v32, %v31465_v57  ;;  %23817 = vmatmul.mubr.f32.gmra.mrb[98].mxu1 %v6682_v31 }
 0x34c   :  { %v35199_v20 = vmax.f32 %v31757_v30, 0.0  ;;  %v6359_v33 = vmul.f32 %v27065_v24, %v31465_v57  ;;  %v23702_v5 = vpop.f32.mrb[42].mxu0 }
 0x34d   :  { %6558 = vst [vmem:[#allocation2 + $0x219] sm:$0xff] %v35198_v41  ;;  %v31767_v34 = vadd.f32 %v31477_v63, %v6360_v23  ;;  %v27066_v7 = vadd.f32 %v23702_v5, %v31388_v55  ;;  %v6011_v11 = vpop.f32.mrb[43].mxu0  ;;  %v6683_v21 = vld [vmem:[#allocation2 + $0x1e0] sm:$0xff]  ;;  %v6684_v38 = vld [vmem:[#allocation2 + $0x1e8] sm:$0xff] }
 0x34e   :  { %6557 = vst [vmem:[#allocation2 + $0x211] sm:$0xff] %v35199_v20  ;;  %v31773_v32 = vadd.f32 %v31477_v63, %v6359_v33  ;;  %v27067_v31 = vadd.f32 %v6011_v11, %v31390_v8  ;;  %23819 = vmatprep.mubr.f32.mxu1 %v6683_v21 }
 0x34f   :  { %v35200_v24 = vmax.f32 %v31767_v34, 0.0  ;;  %v6362_v41 = vmul.f32 %v27066_v7, %v31465_v57  ;;  %23820 = vmatmul.mubr.f32.gmra.mrb[100].mxu1 %v6684_v38 }
 0x350   :  { %v35201_v23 = vmax.f32 %v31773_v32, 0.0  ;;  %v6361_v55 = vmul.f32 %v27067_v31, %v31465_v57  ;;  %v23705_v5 = vpop.f32.mrb[44].mxu0 }
 0x351   :  { %6560 = vst [vmem:[#allocation2 + $0x231] sm:$0xff] %v35200_v24  ;;  %v31783_v20 = vadd.f32 %v31477_v63, %v6362_v41  ;;  %v27068_v33 = vadd.f32 %v23705_v5, %v31398_v22  ;;  %v6021_v8 = vpop.f32.mrb[45].mxu0  ;;  %v6685_v11 = vld [vmem:[#allocation2 + $0x1f8] sm:$0xff]  ;;  %v6686_v21 = vld [vmem:[#allocation2 + $0x200] sm:$0xff] }
 0x352   :  { %6559 = vst [vmem:[#allocation2 + $0x229] sm:$0xff] %v35201_v23  ;;  %v31789_v7 = vadd.f32 %v31477_v63, %v6361_v55  ;;  %v27069_v38 = vadd.f32 %v6021_v8, %v31400_v52  ;;  %23822 = vmatprep.mubr.f32.mxu1 %v6685_v11 }
 0x353   :  { %v35202_v31 = vmax.f32 %v31783_v20, 0.0  ;;  %v6364_v24 = vmul.f32 %v27068_v33, %v31465_v57  ;;  %23823 = vmatmul.mubr.f32.gmra.mrb[102].mxu1 %v6686_v21 }
 0x354   :  { %v35203_v41 = vmax.f32 %v31789_v7, 0.0  ;;  %v6363_v22 = vmul.f32 %v27069_v38, %v31465_v57  ;;  %v23708_v5 = vpop.f32.mrb[46].mxu0 }
 0x355   :  { %6562 = vst [vmem:[#allocation2 + $0x249] sm:$0xff] %v35202_v31  ;;  %v31799_v23 = vadd.f32 %v31477_v63, %v6364_v24  ;;  %v27070_v55 = vadd.f32 %v23708_v5, %v31402_v10  ;;  %v6031_v52 = vpop.f32.mrb[47].mxu0  ;;  %v6687_v8 = vld [vmem:[#allocation2 + $0x210] sm:$0xff]  ;;  %v6688_v11 = vld [vmem:[#allocation2 + $0x218] sm:$0xff] }
 0x356   :  { %6561 = vst [vmem:[#allocation2 + $0x241] sm:$0xff] %v35203_v41  ;;  %v31805_v33 = vadd.f32 %v31477_v63, %v6363_v22  ;;  %v27071_v21 = vadd.f32 %v6031_v52, %v31404_v19  ;;  %23825 = vmatprep.mubr.f32.mxu1 %v6687_v8  ;;  %v35617_v22 = vld [vmem:[#allocation21_spill] sm:$0xff] }
 0x357   :  { %v35206_v38 = vmax.f32 %v31799_v23, 0.0  ;;  %v6366_v31 = vmul.f32 %v27070_v55, %v31465_v57  ;;  %23826 = vmatmul.mubr.f32.gmra.mrb[104].mxu1 %v6688_v11  ;;  %v35618_v11 = vld [vmem:[#allocation8_spill] sm:$0xff] }
 0x358   :  { %v35207_v24 = vmax.f32 %v31805_v33, 0.0  ;;  %v6365_v10 = vmul.f32 %v27071_v21, %v31465_v57  ;;  %v23711_v5 = vpop.f32.mrb[48].mxu0 }
 0x359   :  { %6564 = vst [vmem:[#allocation2 + $0x261] sm:$0xff] %v35206_v38  ;;  %v31815_v41 = vadd.f32 %v31477_v63, %v6366_v31  ;;  %v27072_v14 = vadd.f32 %v23711_v5, %v35617_v22  ;;  %v6041_v19 = vpop.f32.mrb[49].mxu0  ;;  %v6689_v52 = vld [vmem:[#allocation2 + $0x228] sm:$0xff]  ;;  %v6690_v8 = vld [vmem:[#allocation2 + $0x230] sm:$0xff] }
 0x35a   :  { %6563 = vst [vmem:[#allocation2 + $0x259] sm:$0xff] %v35207_v24  ;;  %v31821_v55 = vadd.f32 %v31477_v63, %v6365_v10  ;;  %v27073_v21 = vadd.f32 %v6041_v19, %v35618_v11  ;;  %23828 = vmatprep.mubr.f32.mxu1 %v6689_v52  ;;  %v35619_v10 = vld [vmem:[#allocation22_spill] sm:$0xff] }
 0x35b   :  { %v35210_v62 = vmax.f32 %v31815_v41, 0.0  ;;  %v6368_v38 = vmul.f32 %v27072_v14, %v31465_v57  ;;  %23829 = vmatmul.mubr.f32.gmra.mrb[106].mxu1 %v6690_v8  ;;  %v35620_v8 = vld [vmem:[#allocation9_spill] sm:$0xff] }
 0x35c   :  { %v35211_v31 = vmax.f32 %v31821_v55, 0.0  ;;  %v6367_v5 = vmul.f32 %v27073_v21, %v31465_v57  ;;  %v23714_v22 = vpop.f32.mrb[50].mxu0 }
 0x35d   :  { %6566 = vst [vmem:[#allocation2 + $0x279] sm:$0xff] %v35210_v62  ;;  %v31831_v24 = vadd.f32 %v31477_v63, %v6368_v38  ;;  %v27074_v0 = vadd.f32 %v23714_v22, %v35619_v10  ;;  %v6051_v19 = vpop.f32.mrb[51].mxu0  ;;  %v6691_v52 = vld [vmem:[#allocation2 + $0x240] sm:$0xff]  ;;  %v6692_v11 = vld [vmem:[#allocation2 + $0x248] sm:$0xff] }
 0x35e   :  { %6565 = vst [vmem:[#allocation2 + $0x271] sm:$0xff] %v35211_v31  ;;  %v31837_v14 = vadd.f32 %v31477_v63, %v6367_v5  ;;  %v27075_v21 = vadd.f32 %v6051_v19, %v35620_v8  ;;  %23831 = vmatprep.mubr.f32.mxu1 %v6691_v52  ;;  %v35621_v5 = vld [vmem:[#allocation10_spill] sm:$0xff] }
 0x35f   :  { %v35214_v50 = vmax.f32 %v31831_v24, 0.0  ;;  %v6370_v62 = vmul.f32 %v27074_v0, %v31465_v57  ;;  %23832 = vmatmul.mubr.f32.gmra.mrb[108].mxu1 %v6692_v11  ;;  %v35622_v11 = vld [vmem:[#allocation11_spill] sm:$0xff] }
 0x360   :  { %v35215_v38 = vmax.f32 %v31837_v14, 0.0  ;;  %v6369_v22 = vmul.f32 %v27075_v21, %v31465_v57  ;;  %v23717_v10 = vpop.f32.mrb[52].mxu0 }
 0x361   :  { %6568 = vst [vmem:[#allocation2 + $0x291] sm:$0xff] %v35214_v50  ;;  %v31847_v31 = vadd.f32 %v31477_v63, %v6370_v62  ;;  %v27076_v28 = vadd.f32 %v23717_v10, %v35621_v5  ;;  %v6061_v19 = vpop.f32.mrb[53].mxu0  ;;  %v6693_v52 = vld [vmem:[#allocation2 + $0x258] sm:$0xff]  ;;  %v6694_v8 = vld [vmem:[#allocation2 + $0x260] sm:$0xff] }
 0x362   :  { %6567 = vst [vmem:[#allocation2 + $0x289] sm:$0xff] %v35215_v38  ;;  %v31853_v0 = vadd.f32 %v31477_v63, %v6369_v22  ;;  %v27077_v21 = vadd.f32 %v6061_v19, %v35622_v11  ;;  %23834 = vmatprep.mubr.f32.mxu1 %v6693_v52  ;;  %v35623_v22 = vld [vmem:[#allocation12_spill] sm:$0xff] }
 0x363   :  { %v35218_v39 = vmax.f32 %v31847_v31, 0.0  ;;  %v6372_v50 = vmul.f32 %v27076_v28, %v31465_v57  ;;  %23835 = vmatmul.mubr.f32.gmra.mrb[110].mxu1 %v6694_v8  ;;  %v35624_v8 = vld [vmem:[#allocation13_spill] sm:$0xff] }
 0x364   :  { %v35219_v62 = vmax.f32 %v31853_v0, 0.0  ;;  %v6371_v10 = vmul.f32 %v27077_v21, %v31465_v57  ;;  %v23720_v5 = vpop.f32.mrb[54].mxu0 }
 0x365   :  { %6570 = vst [vmem:[#allocation2 + $0x2a9] sm:$0xff] %v35218_v39  ;;  %v31863_v38 = vadd.f32 %v31477_v63, %v6372_v50  ;;  %v27078_v58 = vadd.f32 %v23720_v5, %v35623_v22  ;;  %v6071_v19 = vpop.f32.mrb[55].mxu0  ;;  %v6695_v52 = vld [vmem:[#allocation2 + $0x270] sm:$0xff]  ;;  %v6696_v11 = vld [vmem:[#allocation2 + $0x278] sm:$0xff] }
 0x366   :  { %6569 = vst [vmem:[#allocation2 + $0x2a1] sm:$0xff] %v35219_v62  ;;  %v31869_v28 = vadd.f32 %v31477_v63, %v6371_v10  ;;  %v27079_v21 = vadd.f32 %v6071_v19, %v35624_v8  ;;  %23837 = vmatprep.mubr.f32.mxu1 %v6695_v52  ;;  %v35625_v10 = vld [vmem:[#allocation14_spill] sm:$0xff] }
 0x367   :  { %v35222_v12 = vmax.f32 %v31863_v38, 0.0  ;;  %v6374_v39 = vmul.f32 %v27078_v58, %v31465_v57  ;;  %23838 = vmatmul.mubr.f32.gmra.mrb[112].mxu1 %v6696_v11  ;;  %v35626_v11 = vld [vmem:[#allocation15_spill] sm:$0xff] }
 0x368   :  { %v35223_v50 = vmax.f32 %v31869_v28, 0.0  ;;  %v6373_v5 = vmul.f32 %v27079_v21, %v31465_v57  ;;  %v23723_v22 = vpop.f32.mrb[56].mxu0 }
 0x369   :  { %6572 = vst [vmem:[#allocation2 + $0x2c1] sm:$0xff] %v35222_v12  ;;  %v31879_v62 = vadd.f32 %v31477_v63, %v6374_v39  ;;  %v27080_v42 = vadd.f32 %v23723_v22, %v35625_v10  ;;  %v6081_v19 = vpop.f32.mrb[57].mxu0  ;;  %v6697_v52 = vld [vmem:[#allocation2 + $0x288] sm:$0xff]  ;;  %v6698_v8 = vld [vmem:[#allocation2 + $0x290] sm:$0xff] }
 0x36a   :  { %6571 = vst [vmem:[#allocation2 + $0x2b9] sm:$0xff] %v35223_v50  ;;  %v31885_v58 = vadd.f32 %v31477_v63, %v6373_v5  ;;  %v27081_v21 = vadd.f32 %v6081_v19, %v35626_v11  ;;  %23840 = vmatprep.mubr.f32.mxu1 %v6697_v52  ;;  %v35628_v5 = vld [vmem:[#allocation16_spill] sm:$0xff] }
 0x36b   :  { %v35226_v3 = vmax.f32 %v31879_v62, 0.0  ;;  %v6376_v12 = vmul.f32 %v27080_v42, %v31465_v57  ;;  %23841 = vmatmul.mubr.f32.gmra.mrb[114].mxu1 %v6698_v8  ;;  %v35630_v8 = vld [vmem:[#allocation17_spill] sm:$0xff] }
 0x36c   :  { %v35227_v39 = vmax.f32 %v31885_v58, 0.0  ;;  %v6375_v22 = vmul.f32 %v27081_v21, %v31465_v57  ;;  %v23726_v10 = vpop.f32.mrb[58].mxu0 }
 0x36d   :  { %6574 = vst [vmem:[#allocation2 + $0x2d9] sm:$0xff] %v35226_v3  ;;  %v31895_v50 = vadd.f32 %v31477_v63, %v6376_v12  ;;  %v27082_v17 = vadd.f32 %v23726_v10, %v35628_v5  ;;  %v6091_v19 = vpop.f32.mrb[59].mxu0  ;;  %v6699_v52 = vld [vmem:[#allocation2 + $0x2a0] sm:$0xff]  ;;  %v6700_v11 = vld [vmem:[#allocation2 + $0x2a8] sm:$0xff] }
 0x36e   :  { %6573 = vst [vmem:[#allocation2 + $0x2d1] sm:$0xff] %v35227_v39  ;;  %v31901_v42 = vadd.f32 %v31477_v63, %v6375_v22  ;;  %v27083_v21 = vadd.f32 %v6091_v19, %v35630_v8  ;;  %23843 = vmatprep.mubr.f32.mxu1 %v6699_v52  ;;  %v35631_v22 = vld [vmem:[#allocation18_spill] sm:$0xff] }
 0x36f   :  { %35627 = vst [vmem:[#allocation21_spill] sm:$0xff] %v31895_v50  ;;  %v35229_v18 = vmax.f32 %v31895_v50, 0.0  ;;  %v6378_v3 = vmul.f32 %v27082_v17, %v31465_v57  ;;  %23844 = vmatmul.mubr.f32.gmra.mrb[116].mxu1 %v6700_v11  ;;  %v35634_v11 = vld [vmem:[#allocation19_spill] sm:$0xff] }
 0x370   :  { %35629 = vst [vmem:[#allocation8_spill] sm:$0xff] %v31901_v42  ;;  %v35231_v12 = vmax.f32 %v31901_v42, 0.0  ;;  %v6377_v10 = vmul.f32 %v27083_v21, %v31465_v57  ;;  %v23729_v5 = vpop.f32.mrb[60].mxu0 }
 0x371   :  { %6576 = vst [vmem:[#allocation2 + $0x2f1] sm:$0xff] %v35229_v18  ;;  %v31911_v39 = vadd.f32 %v31477_v63, %v6378_v3  ;;  %v27084_v40 = vadd.f32 %v23729_v5, %v35631_v22  ;;  %v6101_v19 = vpop.f32.mrb[61].mxu0  ;;  %v31914_v52 = vld [vmem:[#allocation2 + $0x2b8] sm:$0xff]  ;;  %v31916_v8 = vld [vmem:[#allocation2 + $0x2c0] sm:$0xff] }
 0x372   :  { %35632 = vst [vmem:[#allocation22_spill] sm:$0xff] %v31914_v52  ;;  %35633 = vst [vmem:[#allocation9_spill] sm:$0xff] %v31916_v8  ;;  %v31921_v17 = vadd.f32 %v31477_v63, %v6377_v10  ;;  %v27085_v21 = vadd.f32 %v6101_v19, %v35634_v11  ;;  %23846 = vmatprep.mubr.f32.mxu1 %v31914_v52  ;;  %v35635_v19 = vld [vmem:[#allocation20_spill] sm:$0xff] }
 0x373   :  { %6575 = vst [vmem:[#allocation2 + $0x2e9] sm:$0xff] %v35231_v12  ;;  %v35235_v3 = vmax.f32 %v31911_v39, 0.0  ;;  %v6380_v18 = vmul.f32 %v27084_v40, %v31465_v57  ;;  %23847 = vmatmul.mubr.f32.gmra.mrb[118].mxu1 %v31916_v8 }
 0x374   :  { %v35236_v5 = vmax.f32 %v31921_v17, 0.0  ;;  %v6379_v22 = vmul.f32 %v27085_v21, %v31465_v57  ;;  %v23732_v50 = vpop.f32.mrb[62].mxu0  ;;  %v35636_v21 = vld [vmem:[#allocation23_spill] sm:$0xff] }
 0x375   :  { %6578 = vst [vmem:[#allocation2 + $0x309] sm:$0xff] %v35235_v3  ;;  %v31933_v10 = vadd.f32 %v31477_v63, %v6380_v18  ;;  %v27086_v11 = vadd.f32 %v23732_v50, %v35635_v19  ;;  %v6111_v12 = vpop.f32.mrb[63].mxu0  ;;  %v31936_v52 = vld [vmem:[#allocation2 + $0x2d0] sm:$0xff]  ;;  %v31938_v42 = vld [vmem:[#allocation2 + $0x2d8] sm:$0xff] }
 0x376   :  { %6577 = vst [vmem:[#allocation2 + $0x301] sm:$0xff] %v35236_v5  ;;  %v31943_v40 = vadd.f32 %v31477_v63, %v6379_v22  ;;  %v27087_v8 = vadd.f32 %v6111_v12, %v35636_v21  ;;  %23849 = vmatprep.mubr.f32.mxu1 %v31936_v52 }
 0x377   :  { %v35237_v18 = vmax.f32 %v31933_v10, 0.0  ;;  %v6382_v3 = vmul.f32 %v27086_v11, %v31465_v57  ;;  %23850 = vmatmul.mubr.f32.gmra.mrb[120].mxu1 %v31938_v42 }
 0x378   :  { %v35238_v50 = vmax.f32 %v31943_v40, 0.0  ;;  %v6381_v19 = vmul.f32 %v27087_v8, %v31465_v57 }
 0x379   :  { %6580 = vst [vmem:[#allocation2 + $0x321] sm:$0xff] %v35237_v18  ;;  %v6453_v22 = vadd.f32 %v31477_v63, %v6382_v3 }
 0x37a   :  { %v31955_v5 = vld [vmem:[#allocation2 + $0x2e8] sm:$0xff]  ;;  %v31957_v12 = vld [vmem:[#allocation2 + $0x2f0] sm:$0xff]  ;;  %6579 = vst [vmem:[#allocation2 + $0x319] sm:$0xff] %v35238_v50  ;;  %v6452_v11 = vadd.f32 %v31477_v63, %v6381_v19 }
 0x37b   :  { %23852 = vmatprep.mubr.f32.mxu1 %v31955_v5  ;;  %v6517_v21 = vmax.f32 %v6453_v22, 0.0  ;;  %v7304_v63 = vld [vmem:[#allocation2 + $0x1] sm:$0xff]  ;;  %v20091_v19 = vld [vmem:[%s35146_s4 + $0x110] sm:$0xff]  ;;  %v20092_v22 = vld [vmem:[%s35146_s4 + $0x118] sm:$0xff] }
 0x37c   :  { %23853 = vmatmul.mubr.f32.gmra.mrb[122].mxu1 %v31957_v12  ;;  %v6516_v57 = vmax.f32 %v6452_v11, 0.0  ;;  %v7305_v11 = vld [vmem:[#allocation2 + $0x9] sm:$0xff] }
 0x37d   :  { %6582 = vst [vmem:[#allocation2 + $0x339] sm:$0xff] %v6517_v21  ;;  %v31964_v8 = vld [vmem:[#allocation2 + $0x300] sm:$0xff]  ;;  %v31966_v18 = vld [vmem:[#allocation2 + $0x308] sm:$0xff]  ;;  %v26428_v21 = vpack.c.bf16 %v20092_v22, %v20091_v19  ;;  %v20095_v19 = vld [vmem:[%s35146_s4 + $0x130] sm:$0xff] }
 0x37e   :  { %35637 = vst [vmem:[#allocation10_spill] sm:$0xff] %v31966_v18  ;;  %6581 = vst [vmem:[#allocation2 + $0x331] sm:$0xff] %v6516_v57  ;;  %23855 = vmatprep.mubr.f32.mxu1 %v31964_v8  ;;  %v20093_v57 = vld [vmem:[%s35146_s4 + $0x120] sm:$0xff]  ;;  %v20096_v22 = vld [vmem:[%s35146_s4 + $0x138] sm:$0xff] }
 0x380   :  { %23856 = vmatmul.mubr.f32.gmra.mrb[124].mxu1 %v31966_v18  ;;  %v31988_v18 = vld [vmem:[#allocation2 + $0x19] sm:$0xff] }
 0x381   :  { %v31970_v3 = vld [vmem:[#allocation2 + $0x318] sm:$0xff]  ;;  %v31972_v50 = vld [vmem:[#allocation2 + $0x320] sm:$0xff]  ;;  %35640 = vst [vmem:[#allocation13_spill] sm:$0xff] %v31988_v18 }
 0x382   :  { %35638 = vst [vmem:[#allocation11_spill] sm:$0xff] %v31970_v3  ;;  %35639 = vst [vmem:[#allocation12_spill] sm:$0xff] %v31972_v50  ;;  %23858 = vmatprep.mubr.f32.mxu1 %v31970_v3  ;;  %v20094_v3 = vld [vmem:[%s35146_s4 + $0x128] sm:$0xff] }
 0x384   :  { %23859 = vmatmul.mubr.f32.gmra.mrb[126].mxu1 %v31972_v50  ;;  %v26432_v50 = vpack.c.bf16 %v20094_v3, %v20093_v57  ;;  %v32004_v3 = vld [vmem:[#allocation2 + $0x39] sm:$0xff] }
 0x385   :  { %23893 = vmatprep.mubr.f32.mxu1 %v7304_v63  ;;  %v31992_v63 = vld [vmem:[#allocation2 + $0x21] sm:$0xff]  ;;  %35643 = vst [vmem:[#allocation16_spill] sm:$0xff] %v32004_v3 }
 0x386   :  { %35641 = vst [vmem:[#allocation14_spill] sm:$0xff] %v31992_v63  ;;  %v20097_v57 = vld [vmem:[%s35146_s4 + $0x140] sm:$0xff] }
 0x388   :  { %23894 = vmatmul.mubr.f32.vlgmr.msra.gmra.mrb[64].mxu1 %v7305_v11  ;;  %v32001_v11 = vld [vmem:[#allocation2 + $0x31] sm:$0xff] }
 0x389   :  { %23896 = vmatprep.mubr.f32.mxu1 %v31988_v18  ;;  %26427 = vmatpush3.bf16.msra.mxu1 %v31735_v44  ;;  %35642 = vst [vmem:[#allocation15_spill] sm:$0xff] %v32001_v11  ;;  %v26436_v44 = vpack.c.bf16 %v20096_v22, %v20095_v19  ;;  %v20098_v18 = vld [vmem:[%s35146_s4 + $0x148] sm:$0xff]  ;;  %v32016_v19 = vld [vmem:[#allocation2 + $0x51] sm:$0xff] }
 0x38a   :  { %26429 = vmatprep.subr.bf16.mxu1 %v26428_v21  ;;  %35645 = vst [vmem:[#allocation18_spill] sm:$0xff] %v32016_v19  ;;  %v20099_v22 = vld [vmem:[%s35146_s4 + $0x150] sm:$0xff] }
 0x38c   :  { %23897 = vmatmul.mubr.f32.gmra.mrb[66].mxu1 %v31992_v63  ;;  %v32013_v63 = vld [vmem:[#allocation2 + $0x49] sm:$0xff] }
 0x38d   :  { %23899 = vmatprep.mubr.f32.mxu1 %v32001_v11  ;;  %26431 = vmatpush3.bf16.msra.mxu1 %v26428_v21  ;;  %35644 = vst [vmem:[#allocation17_spill] sm:$0xff] %v32013_v63  ;;  %v26440_v21 = vpack.c.bf16 %v20098_v18, %v20097_v57  ;;  %v20100_v11 = vld [vmem:[%s35146_s4 + $0x158] sm:$0xff]  ;;  %v32028_v18 = vld [vmem:[#allocation2 + $0x69] sm:$0xff]  ;;  %v20101_v57 = vld [vmem:[%s35146_s4 + $0x160] sm:$0xff] }
 0x38e   :  { %26433 = vmatprep.subr.bf16.mxu1 %v26432_v50  ;;  %35647 = vst [vmem:[#allocation20_spill] sm:$0xff] %v32028_v18 }
 0x390   :  { %23900 = vmatmul.mubr.f32.gmra.mrb[68].mxu1 %v32004_v3  ;;  %v32025_v3 = vld [vmem:[#allocation2 + $0x61] sm:$0xff] }
 0x391   :  { %23902 = vmatprep.mubr.f32.mxu1 %v32013_v63  ;;  %26435 = vmatpush3.bf16.msra.mxu1 %v26432_v50  ;;  %35646 = vst [vmem:[#allocation19_spill] sm:$0xff] %v32025_v3  ;;  %v26444_v50 = vpack.c.bf16 %v20100_v11, %v20099_v22  ;;  %v20102_v63 = vld [vmem:[%s35146_s4 + $0x168] sm:$0xff]  ;;  %v20103_v11 = vld [vmem:[%s35146_s4 + $0x170] sm:$0xff]  ;;  %v20104_v22 = vld [vmem:[%s35146_s4 + $0x178] sm:$0xff] }
 0x392   :  { %26437 = vmatprep.subr.bf16.mxu1 %v26436_v44 }
 0x394   :  { %23903 = vmatmul.mubr.f32.gmra.mrb[70].mxu1 %v32016_v19  ;;  %v35648_v19 = vmax.f32 %v31521_v37, 0.0  ;;  %v26452_v37 = vpack.c.bf16 %v20104_v22, %v20103_v11  ;;  %v35672_v11 = vmax.f32 %v31710_v61, 0.0  ;;  %v35673_v22 = vmax.f32 %v31740_v13, 0.0 }
 0x395   :  { %23905 = vmatprep.mubr.f32.mxu1 %v32025_v3  ;;  %26439 = vmatpush3.bf16.msra.mxu1 %v26436_v44  ;;  %v26448_v44 = vpack.c.bf16 %v20102_v63, %v20101_v57  ;;  %v32039_v3 = vld [vmem:[#allocation2 + $0x81] sm:$0xff]  ;;  %v35650_v63 = vmax.f32 %v31528_v59, 0.0  ;;  %v35653_v57 = vmax.f32 %v31566_v46, 0.0  ;;  %v35656_v59 = vmax.f32 %v31576_v53, 0.0 }
 0x396   :  { %26441 = vmatprep.subr.bf16.mxu1 %v26440_v21  ;;  %v35660_v46 = vmax.f32 %v31608_v35, 0.0  ;;  %v35663_v53 = vmax.f32 %v31646_v54, 0.0  ;;  %v35667_v35 = vmax.f32 %v31678_v9, 0.0  ;;  %v20106_v54 = vld [vmem:[%s35146_s4 + $0x188] sm:$0xff]  ;;  %v35670_v9 = vmax.f32 %v31696_v43, 0.0 }
 0x397   :  { %v35677_v43 = vmax.f32 %v31773_v32, 0.0  ;;  %v35679_v61 = vmax.f32 %v31789_v7, 0.0  ;;  %v35680_v13 = vmax.f32 %v31783_v20, 0.0  ;;  %v35684_v32 = vmax.f32 %v31815_v41, 0.0 }
 0x398   :  { %23906 = vmatmul.mubr.f32.gmra.mrb[72].mxu1 %v32028_v18  ;;  %v35649_v18 = vmax.f32 %v31534_v49, 0.0  ;;  %v35654_v49 = vmax.f32 %v31560_v56, 0.0  ;;  %v35661_v56 = vmax.f32 %v31630_v60, 0.0  ;;  %v7336_v60 = vld [vmem:[#allocation2 + $0x1b1] sm:$0xff]  ;;  %v35686_v7 = vmax.f32 %v31831_v24, 0.0  ;;  %v35693_v24 = vld [vmem:[#allocation8_spill] sm:$0xff] }
 0x399   :  { %23908 = vmatprep.mubr.f32.mxu1 %v35648_v19  ;;  %26443 = vmatpush3.bf16.msra.mxu1 %v26440_v21  ;;  %v35651_v21 = vmax.f32 %v31550_v47, 0.0  ;;  %v35652_v19 = vmax.f32 %v31544_v15, 0.0  ;;  %v35657_v47 = vmax.f32 %v31598_v45, 0.0  ;;  %v35659_v15 = vmax.f32 %v31614_v29, 0.0 }
 0x39a   :  { %26445 = vmatprep.subr.bf16.mxu1 %v26444_v50  ;;  %v35664_v45 = vmax.f32 %v31640_v51, 0.0  ;;  %v35666_v29 = vmax.f32 %v31656_v2, 0.0  ;;  %v20105_v51 = vld [vmem:[%s35146_s4 + $0x180] sm:$0xff]  ;;  %v35669_v2 = vmax.f32 %v31700_v48, 0.0  ;;  %v35676_v48 = vmax.f32 %v31751_v26, 0.0 }
 0x39b   :  { %v35683_v26 = vmax.f32 %v31821_v55, 0.0  ;;  %v35687_v20 = vmax.f32 %v31853_v0, 0.0  ;;  %v35690_v55 = vmax.f32 %v31863_v38, 0.0  ;;  %v35691_v41 = vmax.f32 %v31885_v58, 0.0  ;;  %v35695_v0 = vld [vmem:[#allocation21_spill] sm:$0xff]  ;;  %v7962_v58 = vld [vmem:[#allocation2 + $0x2] sm:$0xff] }
 0x39c   :  { %23909 = vmatmul.mubr.f32.gmra.mrb[74].mxu1 %v32039_v3  ;;  %v35699_v38 = vmax.f32 %v31943_v40, 0.0  ;;  %v20110_v40 = vld [vmem:[%s35146_s4 + $0x1a8] sm:$0xff] }
 0x39d   :  { %23911 = vmatprep.mubr.f32.mxu1 %v35649_v18  ;;  %26447 = vmatpush3.bf16.msra.mxu1 %v26444_v50  ;;  %v35655_v50 = vmax.f32 %v31582_v25, 0.0  ;;  %v35658_v18 = vmax.f32 %v31592_v1, 0.0  ;;  %v35662_v25 = vmax.f32 %v31624_v36, 0.0  ;;  %v35665_v1 = vmax.f32 %v31662_v4, 0.0  ;;  %v7337_v36 = vld [vmem:[#allocation2 + $0x1b9] sm:$0xff] }
 0x39e   :  { %26449 = vmatprep.subr.bf16.mxu1 %v26448_v44  ;;  %v26456_v4 = vpack.c.bf16 %v20106_v54, %v20105_v51  ;;  %v32205_v54 = vld [vmem:[#allocation2 + $0x6a] sm:$0xff] }
 0x3a0   :  { %23912 = vmatmul.mubr.f32.gmra.mrb[76].mxu1 %v35650_v63  ;;  %v35675_v63 = vmax.f32 %v31757_v30, 0.0  ;;  %v35682_v30 = vmax.f32 %v31799_v23, 0.0  ;;  %v35689_v23 = vmax.f32 %v31869_v28, 0.0  ;;  %v35698_v28 = vmax.f32 %v31911_v39, 0.0  ;;  %v20109_v39 = vld [vmem:[%s35146_s4 + $0x1a0] sm:$0xff] }
 0x3a1   :  { %23914 = vmatprep.mubr.f32.mxu1 %v35651_v21  ;;  %26451 = vmatpush3.bf16.msra.mxu1 %v26448_v44  ;;  %v35668_v44 = vmax.f32 %v31672_v6, 0.0  ;;  %v35671_v6 = vmax.f32 %v31716_v16, 0.0  ;;  %v35678_v16 = vmax.f32 %v31767_v34, 0.0  ;;  %v35685_v34 = vmax.f32 %v31837_v14, 0.0 }
 0x3a2   :  { %26453 = vmatprep.subr.bf16.mxu1 %v26452_v37  ;;  %v35692_v14 = vmax.f32 %v31879_v62, 0.0  ;;  %v35694_v21 = vmax.f32 %v35693_v24, 0.0  ;;  %v20107_v62 = vld [vmem:[%s35146_s4 + $0x190] sm:$0xff]  ;;  %v32277_v24 = vld [vmem:[#allocation2 + $0x15a] sm:$0xff] }
 0x3a4   :  { %23915 = vmatmul.mubr.f32.gmra.mrb[78].mxu1 %v35652_v19  ;;  %v35696_v19 = vmax.f32 %v35695_v0, 0.0  ;;  %v7994_v0 = vld [vmem:[#allocation2 + $0x1b2] sm:$0xff] }
 0x3a5   :  { %23917 = vmatprep.mubr.f32.mxu1 %v35653_v57  ;;  %26455 = vmatpush3.bf16.msra.mxu1 %v26452_v37  ;;  %v35674_v37 = vmax.f32 %v31732_v27, 0.0  ;;  %v35681_v27 = vmax.f32 %v31805_v33, 0.0  ;;  %v35688_v33 = vmax.f32 %v31847_v31, 0.0  ;;  %v35697_v31 = vmax.f32 %v31921_v17, 0.0  ;;  %v20108_v57 = vld [vmem:[%s35146_s4 + $0x198] sm:$0xff]  ;;  %v7963_v17 = vld [vmem:[#allocation2 + $0xa] sm:$0xff] }
 0x3a6   :  { %26457 = vmatprep.subr.bf16.mxu1 %v26456_v4 }
 0x3a8   :  { %23918 = vmatmul.mubr.f32.gmra.mrb[80].mxu1 %v35654_v49  ;;  %v35700_v49 = vmax.f32 %v31933_v10, 0.0  ;;  %v26464_v10 = vpack.c.bf16 %v20110_v40, %v20109_v39  ;;  %v32310_v39 = vld [vmem:[#allocation2 + $0x202] sm:$0xff]  ;;  %v32313_v40 = vld [vmem:[#allocation2 + $0x212] sm:$0xff] }
 0x3a9   :  { %23920 = vmatprep.mubr.f32.mxu1 %v35655_v50  ;;  %v26460_v50 = vpack.c.bf16 %v20108_v57, %v20107_v62  ;;  %v32294_v62 = vld [vmem:[#allocation2 + $0x1ca] sm:$0xff]  ;;  %v32298_v57 = vld [vmem:[#allocation2 + $0x1d2] sm:$0xff] }
 0x3ac   :  { %23921 = vmatmul.mubr.f32.gmra.mrb[82].mxu1 %v35656_v59  ;;  %v32166_v59 = vld [vmem:[#allocation2 + $0x1a] sm:$0xff] }
 0x3ad   :  { %23923 = vmatprep.mubr.f32.mxu1 %v35657_v47  ;;  %v32169_v47 = vld [vmem:[#allocation2 + $0x22] sm:$0xff] }
 0x3b0   :  { %23924 = vmatmul.mubr.f32.gmra.mrb[84].mxu1 %v35658_v18  ;;  %v20111_v18 = vld [vmem:[%s35146_s4 + $0x1b0] sm:$0xff] }
 0x3b1   :  { %23926 = vmatprep.mubr.f32.mxu1 %v35659_v15  ;;  %v20112_v15 = vld [vmem:[%s35146_s4 + $0x1b8] sm:$0xff] }
 0x3b4   :  { %23927 = vmatmul.mubr.f32.gmra.mrb[86].mxu1 %v35660_v46  ;;  %v32178_v46 = vld [vmem:[#allocation2 + $0x32] sm:$0xff] }
 0x3b5   :  { %23929 = vmatprep.mubr.f32.mxu1 %v35661_v56  ;;  %v26468_v56 = vpack.c.bf16 %v20112_v15, %v20111_v18  ;;  %v32319_v18 = vld [vmem:[#allocation2 + $0x22a] sm:$0xff]  ;;  %v32322_v15 = vld [vmem:[#allocation2 + $0x232] sm:$0xff] }
 0x3b8   :  { %23930 = vmatmul.mubr.f32.gmra.mrb[88].mxu1 %v35662_v25  ;;  %v32181_v25 = vld [vmem:[#allocation2 + $0x3a] sm:$0xff] }
 0x3b9   :  { %23932 = vmatprep.mubr.f32.mxu1 %v35663_v53  ;;  %v20113_v53 = vld [vmem:[%s35146_s4 + $0x1c0] sm:$0xff] }
 0x3bc   :  { %23933 = vmatmul.mubr.f32.gmra.mrb[90].mxu1 %v35664_v45  ;;  %v20114_v45 = vld [vmem:[%s35146_s4 + $0x1c8] sm:$0xff] }
 0x3bd   :  { %23935 = vmatprep.mubr.f32.mxu1 %v35665_v1  ;;  %v32190_v1 = vld [vmem:[#allocation2 + $0x4a] sm:$0xff] }
 0x3c0   :  { %23936 = vmatmul.mubr.f32.gmra.mrb[92].mxu1 %v35666_v29  ;;  %v26472_v29 = vpack.c.bf16 %v20114_v45, %v20113_v53  ;;  %v32328_v53 = vld [vmem:[#allocation2 + $0x24a] sm:$0xff]  ;;  %v32331_v45 = vld [vmem:[#allocation2 + $0x25a] sm:$0xff] }
 0x3c1   :  { %23938 = vmatprep.mubr.f32.mxu1 %v35667_v35  ;;  %v32193_v35 = vld [vmem:[#allocation2 + $0x52] sm:$0xff] }
 0x3c4   :  { %23939 = vmatmul.mubr.f32.gmra.mrb[94].mxu1 %v35668_v44  ;;  %v20116_v44 = vld [vmem:[%s35146_s4 + $0x1d8] sm:$0xff] }
 0x3c5   :  { %23941 = vmatprep.mubr.f32.mxu1 %v7336_v60  ;;  %v20115_v60 = vld [vmem:[%s35146_s4 + $0x1d0] sm:$0xff] }
 0x3c6   :  { %v26476_v51 = vpack.c.bf16 %v20116_v44, %v20115_v60  ;;  %v32337_v60 = vld [vmem:[#allocation2 + $0x272] sm:$0xff]  ;;  %v32340_v44 = vld [vmem:[#allocation2 + $0x27a] sm:$0xff] }
 0x3c8   :  { %23942 = vmatmul.mubr.f32.gmra.mrb[96].mxu1 %v7337_v36  ;;  %v32202_v36 = vld [vmem:[#allocation2 + $0x62] sm:$0xff] }
 0x3c9   :  { %23944 = vmatprep.mubr.f32.mxu1 %v35669_v2  ;;  %v20118_v2 = vld [vmem:[%s35146_s4 + $0x1e8] sm:$0xff] }
 0x3cc   :  { %23945 = vmatmul.mubr.f32.gmra.mrb[98].mxu1 %v35670_v9  ;;  %v32214_v9 = vld [vmem:[#allocation2 + $0x7a] sm:$0xff] }
 0x3cd   :  { %23947 = vmatprep.mubr.f32.mxu1 %v35671_v6 }
 0x3d0   :  { %23948 = vmatmul.mubr.f32.gmra.mrb[100].mxu1 %v35672_v11  ;;  %v32217_v11 = vld [vmem:[#allocation2 + $0x82] sm:$0xff] }
 0x3d1   :  { %23950 = vmatprep.mubr.f32.mxu1 %v35673_v22  ;;  %v20119_v22 = vld [vmem:[%s35146_s4 + $0x1f0] sm:$0xff] }
 0x3d4   :  { %23951 = vmatmul.mubr.f32.gmra.mrb[102].mxu1 %v35674_v37  ;;  %v20120_v37 = vld [vmem:[%s35146_s4 + $0x1f8] sm:$0xff] }
 0x3d5   :  { %23953 = vmatprep.mubr.f32.mxu1 %v35675_v63  ;;  %v32226_v63 = vld [vmem:[#allocation2 + $0x92] sm:$0xff] }
 0x3d8   :  { %23954 = vmatmul.mubr.f32.gmra.mrb[104].mxu1 %v35676_v48  ;;  %v26484_v48 = vpack.c.bf16 %v20120_v37, %v20119_v22  ;;  %v32355_v22 = vld [vmem:[#allocation2 + $0x2ba] sm:$0xff]  ;;  %v32358_v37 = vld [vmem:[#allocation2 + $0x2c2] sm:$0xff] }
 0x3d9   :  { %23956 = vmatprep.mubr.f32.mxu1 %v35677_v43  ;;  %v32229_v43 = vld [vmem:[#allocation2 + $0x9a] sm:$0xff]  ;;  %35703 = vst [vmem:[#allocation21_spill] sm:$0xff] %v32355_v22  ;;  %35704 = vst [vmem:[#allocation24_spill] sm:$0xff] %v32358_v37 }
 0x3dc   :  { %23957 = vmatmul.mubr.f32.gmra.mrb[106].mxu1 %v35678_v16  ;;  %v32232_v16 = vld [vmem:[#allocation2 + $0xaa] sm:$0xff] }
 0x3dd   :  { %23959 = vmatprep.mubr.f32.mxu1 %v35679_v61  ;;  %v32235_v61 = vld [vmem:[#allocation2 + $0xb2] sm:$0xff] }
 0x3e0   :  { %23960 = vmatmul.mubr.f32.gmra.mrb[108].mxu1 %v35680_v13  ;;  %v32238_v13 = vld [vmem:[#allocation2 + $0xc2] sm:$0xff] }
 0x3e1   :  { %23962 = vmatprep.mubr.f32.mxu1 %v35681_v27  ;;  %v32241_v27 = vld [vmem:[#allocation2 + $0xca] sm:$0xff] }
 0x3e4   :  { %23963 = vmatmul.mubr.f32.gmra.mrb[110].mxu1 %v35682_v30  ;;  %v32244_v30 = vld [vmem:[#allocation2 + $0xda] sm:$0xff] }
 0x3e5   :  { %23965 = vmatprep.mubr.f32.mxu1 %v35683_v26  ;;  %v32247_v26 = vld [vmem:[#allocation2 + $0xe2] sm:$0xff] }
 0x3e8   :  { %23966 = vmatmul.mubr.f32.gmra.mrb[112].mxu1 %v35684_v32  ;;  %v32250_v32 = vld [vmem:[#allocation2 + $0xf2] sm:$0xff] }
 0x3e9   :  { %23968 = vmatprep.mubr.f32.mxu1 %v35685_v34  ;;  %v32253_v34 = vld [vmem:[#allocation2 + $0xfa] sm:$0xff] }
 0x3ec   :  { %23969 = vmatmul.mubr.f32.gmra.mrb[114].mxu1 %v35686_v7  ;;  %v32256_v7 = vld [vmem:[#allocation2 + $0x10a] sm:$0xff] }
 0x3ed   :  { %23971 = vmatprep.mubr.f32.mxu1 %v35687_v20  ;;  %v32259_v20 = vld [vmem:[#allocation2 + $0x112] sm:$0xff] }
 0x3f0   :  { %23972 = vmatmul.mubr.f32.gmra.mrb[116].mxu1 %v35688_v33  ;;  %v32262_v33 = vld [vmem:[#allocation2 + $0x122] sm:$0xff] }
 0x3f1   :  { %23974 = vmatprep.mubr.f32.mxu1 %v35689_v23  ;;  %v32265_v23 = vld [vmem:[#allocation2 + $0x12a] sm:$0xff] }
 0x3f4   :  { %23975 = vmatmul.mubr.f32.gmra.mrb[118].mxu1 %v35690_v55  ;;  %v32268_v55 = vld [vmem:[#allocation2 + $0x13a] sm:$0xff] }
 0x3f5   :  { %23977 = vmatprep.mubr.f32.mxu1 %v35691_v41  ;;  %v32271_v41 = vld [vmem:[#allocation2 + $0x142] sm:$0xff] }
 0x3f8   :  { %23978 = vmatmul.mubr.f32.gmra.mrb[120].mxu1 %v35692_v14  ;;  %v32274_v14 = vld [vmem:[#allocation2 + $0x152] sm:$0xff] }
 0x3f9   :  { %23980 = vmatprep.mubr.f32.mxu1 %v35694_v21  ;;  %v32280_v21 = vld [vmem:[#allocation2 + $0x16a] sm:$0xff] }
 0x3fc   :  { %23981 = vmatmul.mubr.f32.gmra.mrb[122].mxu1 %v35696_v19  ;;  %v32283_v19 = vld [vmem:[#allocation2 + $0x172] sm:$0xff] }
 0x3fd   :  { %23983 = vmatprep.mubr.f32.mxu1 %v35697_v31  ;;  %v7995_v31 = vld [vmem:[#allocation2 + $0x1ba] sm:$0xff] }
 0x400   :  { %23984 = vmatmul.mubr.f32.gmra.mrb[124].mxu1 %v35698_v28  ;;  %v20121_v28 = vld [vmem:[%s35146_s4 + $0x200] sm:$0xff] }
 0x401   :  { %23986 = vmatprep.mubr.f32.mxu1 %v35699_v38  ;;  %v20122_v38 = vld [vmem:[%s35146_s4 + $0x208] sm:$0xff] }
 0x404   :  { %23987 = vmatmul.mubr.f32.gmra.mrb[126].mxu1 %v35700_v49  ;;  %v32301_v49 = vld [vmem:[#allocation2 + $0x1e2] sm:$0xff] }
 0x405   :  { %24021 = vmatprep.mubr.f32.mxu1 %v7962_v58  ;;  %v32292_v58 = vpack.c.bf16 %v20122_v38, %v20121_v28  ;;  %v32370_v28 = vld [vmem:[#allocation2 + $0x2f2] sm:$0xff]  ;;  %v32373_v38 = vld [vmem:[#allocation2 + $0x302] sm:$0xff] }
 0x406   :  { %35708 = vst [vmem:[#allocation28_spill] sm:$0xff] %v32370_v28  ;;  %35709 = vst [vmem:[#allocation29_spill] sm:$0xff] %v32373_v38 }
 0x408   :  { %24022 = vmatmul.mubr.f32.vlgmr.msra.gmra.mrb[64].mxu1 %v7963_v17  ;;  %v32304_v17 = vld [vmem:[#allocation2 + $0x1ea] sm:$0xff] }
 0x409   :  { %24024 = vmatprep.mubr.f32.mxu1 %v32166_v59  ;;  %26459 = vmatpush3.bf16.msra.mxu1 %v26456_v4  ;;  %v20117_v4 = vld [vmem:[%s35146_s4 + $0x1e0] sm:$0xff] }
 0x40a   :  { %26461 = vmatprep.subr.bf16.mxu1 %v26460_v50  ;;  %v26480_v6 = vpack.c.bf16 %v20118_v2, %v20117_v4  ;;  %v32346_v4 = vld [vmem:[#allocation2 + $0x292] sm:$0xff]  ;;  %v32349_v2 = vld [vmem:[#allocation2 + $0x2a2] sm:$0xff] }
 0x40b   :  { %35701 = vst [vmem:[#allocation23_spill] sm:$0xff] %v32349_v2 }
 0x40c   :  { %24025 = vmatmul.mubr.f32.gmra.mrb[66].mxu1 %v32169_v47 }
 0x40d   :  { %24027 = vmatprep.mubr.f32.mxu1 %v32178_v46  ;;  %26463 = vmatpush3.bf16.msra.mxu1 %v26460_v50  ;;  %v32307_v50 = vld [vmem:[#allocation2 + $0x1fa] sm:$0xff] }
 0x40e   :  { %26465 = vmatprep.subr.bf16.mxu1 %v26464_v10 }
 0x410   :  { %24028 = vmatmul.mubr.f32.gmra.mrb[68].mxu1 %v32181_v25 }
 0x411   :  { %24030 = vmatprep.mubr.f32.mxu1 %v32190_v1  ;;  %26467 = vmatpush3.bf16.msra.mxu1 %v26464_v10  ;;  %v32316_v10 = vld [vmem:[#allocation2 + $0x21a] sm:$0xff] }
 0x412   :  { %26469 = vmatprep.subr.bf16.mxu1 %v26468_v56 }
 0x414   :  { %24031 = vmatmul.mubr.f32.gmra.mrb[70].mxu1 %v32193_v35 }
 0x415   :  { %24033 = vmatprep.mubr.f32.mxu1 %v32202_v36  ;;  %26471 = vmatpush3.bf16.msra.mxu1 %v26468_v56  ;;  %v32325_v56 = vld [vmem:[#allocation2 + $0x242] sm:$0xff] }
 0x416   :  { %26473 = vmatprep.subr.bf16.mxu1 %v26472_v29 }
 0x418   :  { %24034 = vmatmul.mubr.f32.gmra.mrb[72].mxu1 %v32205_v54 }
 0x419   :  { %24036 = vmatprep.mubr.f32.mxu1 %v32214_v9  ;;  %26475 = vmatpush3.bf16.msra.mxu1 %v26472_v29  ;;  %v32334_v29 = vld [vmem:[#allocation2 + $0x262] sm:$0xff] }
 0x41a   :  { %26477 = vmatprep.subr.bf16.mxu1 %v26476_v51 }
 0x41c   :  { %24037 = vmatmul.mubr.f32.gmra.mrb[74].mxu1 %v32217_v11 }
 0x41d   :  { %24039 = vmatprep.mubr.f32.mxu1 %v32226_v63  ;;  %26479 = vmatpush3.bf16.msra.mxu1 %v26476_v51  ;;  %v32343_v51 = vld [vmem:[#allocation2 + $0x28a] sm:$0xff] }
 0x41e   :  { %26481 = vmatprep.subr.bf16.mxu1 %v26480_v6 }
 0x420   :  { %24040 = vmatmul.mubr.f32.gmra.mrb[76].mxu1 %v32229_v43 }
 0x421   :  { %24042 = vmatprep.mubr.f32.mxu1 %v32232_v16  ;;  %26483 = vmatpush3.bf16.msra.mxu1 %v26480_v6  ;;  %v32352_v6 = vld [vmem:[#allocation2 + $0x2aa] sm:$0xff] }
 0x422   :  { %26485 = vmatprep.subr.bf16.mxu1 %v26484_v48  ;;  %35702 = vst [vmem:[#allocation8_spill] sm:$0xff] %v32352_v6 }
 0x424   :  { %24043 = vmatmul.mubr.f32.gmra.mrb[78].mxu1 %v32235_v61 }
 0x425   :  { %24045 = vmatprep.mubr.f32.mxu1 %v32238_v13  ;;  %26487 = vmatpush3.bf16.msra.mxu1 %v26484_v48  ;;  %v32361_v48 = vld [vmem:[#allocation2 + $0x2d2] sm:$0xff] }
 0x426   :  { %26489 = vmatprep.subr.bf16.mxu1 %v32292_v58  ;;  %35705 = vst [vmem:[#allocation25_spill] sm:$0xff] %v32361_v48 }
 0x428   :  { %24046 = vmatmul.mubr.f32.gmra.mrb[80].mxu1 %v32241_v27 }
 0x429   :  { %24048 = vmatprep.mubr.f32.mxu1 %v32244_v30 }
 0x42c   :  { %24049 = vmatmul.mubr.f32.gmra.mrb[82].mxu1 %v32247_v26 }
 0x42d   :  { %24051 = vmatprep.mubr.f32.mxu1 %v32250_v32 }
 0x430   :  { %24052 = vmatmul.mubr.f32.gmra.mrb[84].mxu1 %v32253_v34 }
 0x431   :  { %24054 = vmatprep.mubr.f32.mxu1 %v32256_v7 }
 0x434   :  { %24055 = vmatmul.mubr.f32.gmra.mrb[86].mxu1 %v32259_v20 }
 0x435   :  { %24057 = vmatprep.mubr.f32.mxu1 %v32262_v33 }
 0x438   :  { %24058 = vmatmul.mubr.f32.gmra.mrb[88].mxu1 %v32265_v23 }
 0x439   :  { %24060 = vmatprep.mubr.f32.mxu1 %v32268_v55 }
 0x43c   :  { %24061 = vmatmul.mubr.f32.gmra.mrb[90].mxu1 %v32271_v41 }
 0x43d   :  { %24063 = vmatprep.mubr.f32.mxu1 %v32274_v14 }
 0x440   :  { %24064 = vmatmul.mubr.f32.gmra.mrb[92].mxu1 %v32277_v24 }
 0x441   :  { %24066 = vmatprep.mubr.f32.mxu1 %v32280_v21 }
 0x444   :  { %24067 = vmatmul.mubr.f32.gmra.mrb[94].mxu1 %v32283_v19 }
 0x445   :  { %24069 = vmatprep.mubr.f32.mxu1 %v7994_v0  ;;  %v32364_v0 = vld [vmem:[#allocation2 + $0x2da] sm:$0xff] }
 0x446   :  { %35706 = vst [vmem:[#allocation26_spill] sm:$0xff] %v32364_v0 }
 0x448   :  { %24070 = vmatmul.mubr.f32.gmra.mrb[96].mxu1 %v7995_v31  ;;  %v32367_v31 = vld [vmem:[#allocation2 + $0x2ea] sm:$0xff] }
 0x449   :  { %24072 = vmatprep.mubr.f32.mxu1 %v32294_v62  ;;  %35707 = vst [vmem:[#allocation27_spill] sm:$0xff] %v32367_v31 }
 0x44c   :  { %24073 = vmatmul.mubr.f32.gmra.mrb[98].mxu1 %v32298_v57 }
 0x44d   :  { %24075 = vmatprep.mubr.f32.mxu1 %v32301_v49 }
 0x450   :  { %24076 = vmatmul.mubr.f32.gmra.mrb[100].mxu1 %v32304_v17 }
 0x451   :  { %24078 = vmatprep.mubr.f32.mxu1 %v32307_v50 }
 0x454   :  { %24079 = vmatmul.mubr.f32.gmra.mrb[102].mxu1 %v32310_v39 }
 0x455   :  { %24081 = vmatprep.mubr.f32.mxu1 %v32313_v40 }
 0x458   :  { %24082 = vmatmul.mubr.f32.gmra.mrb[104].mxu1 %v32316_v10 }
 0x459   :  { %24084 = vmatprep.mubr.f32.mxu1 %v32319_v18 }
 0x45c   :  { %24085 = vmatmul.mubr.f32.gmra.mrb[106].mxu1 %v32322_v15 }
 0x45d   :  { %24087 = vmatprep.mubr.f32.mxu1 %v32325_v56 }
 0x460   :  { %24088 = vmatmul.mubr.f32.gmra.mrb[108].mxu1 %v32328_v53 }
 0x461   :  { %24090 = vmatprep.mubr.f32.mxu1 %v32331_v45 }
 0x464   :  { %24091 = vmatmul.mubr.f32.gmra.mrb[110].mxu1 %v32334_v29 }
 0x465   :  { %24093 = vmatprep.mubr.f32.mxu1 %v32337_v60 }
 0x468   :  { %24094 = vmatmul.mubr.f32.gmra.mrb[112].mxu1 %v32340_v44 }
 0x469   :  { %24096 = vmatprep.mubr.f32.mxu1 %v32343_v51 }
 0x46c   :  { %24097 = vmatmul.mubr.f32.gmra.mrb[114].mxu1 %v32346_v4 }
 0x46d   :  { %24099 = vmatprep.mubr.f32.mxu1 %v32349_v2  ;;  %v32397_v2 = vld [vmem:[#allocation2 + $0x30] sm:$0xff] }
 0x46e   :  { %35713 = vst [vmem:[#allocation33_spill] sm:$0xff] %v32397_v2 }
 0x470   :  { %24100 = vmatmul.mubr.f32.gmra.mrb[116].mxu1 %v32352_v6  ;;  %v20126_v6 = vld [vmem:[%s35146_s4 + $0x228] sm:$0xff] }
 0x471   :  { %24102 = vmatprep.mubr.f32.mxu1 %v32355_v22 }
 0x474   :  { %24103 = vmatmul.mubr.f32.gmra.mrb[118].mxu1 %v32358_v37  ;;  %v32376_v37 = vld [vmem:[#allocation2 + $0x30a] sm:$0xff] }
 0x475   :  { %24105 = vmatprep.mubr.f32.mxu1 %v32361_v48  ;;  %35710 = vst [vmem:[#allocation30_spill] sm:$0xff] %v32376_v37  ;;  %v32379_v48 = vld [vmem:[#allocation2 + $0x31a] sm:$0xff] }
 0x476   :  { %35711 = vst [vmem:[#allocation31_spill] sm:$0xff] %v32379_v48 }
 0x478   :  { %24106 = vmatmul.mubr.f32.gmra.mrb[120].mxu1 %v32364_v0  ;;  %v32382_v0 = vld [vmem:[#allocation2 + $0x322] sm:$0xff] }
 0x479   :  { %24108 = vmatprep.mubr.f32.mxu1 %v32367_v31  ;;  %35712 = vst [vmem:[#allocation32_spill] sm:$0xff] %v32382_v0  ;;  %v20123_v31 = vld [vmem:[%s35146_s4 + $0x210] sm:$0xff] }
 0x47c   :  { %24109 = vmatmul.mubr.f32.gmra.mrb[122].mxu1 %v32370_v28  ;;  %v20124_v28 = vld [vmem:[%s35146_s4 + $0x218] sm:$0xff] }
 0x47d   :  { %24111 = vmatprep.mubr.f32.mxu1 %v32373_v38  ;;  %v8620_v38 = vld [vmem:[#allocation2 + $0x18] sm:$0xff]  ;;  %v26492_v22 = vpack.c.bf16 %v20124_v28, %v20123_v31  ;;  %v20127_v31 = vld [vmem:[%s35146_s4 + $0x230] sm:$0xff] }
 0x47e   :  { %v20128_v28 = vld [vmem:[%s35146_s4 + $0x238] sm:$0xff] }
 0x480   :  { %24112 = vmatmul.mubr.f32.gmra.mrb[124].mxu1 %v32376_v37  ;;  %v8621_v37 = vld [vmem:[#allocation2 + $0x20] sm:$0xff] }
 0x481   :  { %24114 = vmatprep.mubr.f32.mxu1 %v32379_v48  ;;  %v20125_v48 = vld [vmem:[%s35146_s4 + $0x220] sm:$0xff] }
 0x484   :  { %24115 = vmatmul.mubr.f32.gmra.mrb[126].mxu1 %v32382_v0  ;;  %v26496_v0 = vpack.c.bf16 %v20126_v6, %v20125_v48  ;;  %v32413_v6 = vld [vmem:[#allocation2 + $0x50] sm:$0xff]  ;;  %v20129_v48 = vld [vmem:[%s35146_s4 + $0x240] sm:$0xff] }
 0x485   :  { %24149 = vmatprep.mubr.f32.mxu1 %v8620_v38  ;;  %v32401_v38 = vld [vmem:[#allocation2 + $0x38] sm:$0xff]  ;;  %35716 = vst [vmem:[#allocation36_spill] sm:$0xff] %v32413_v6 }
 0x486   :  { %35714 = vst [vmem:[#allocation34_spill] sm:$0xff] %v32401_v38 }
 0x488   :  { %24150 = vmatmul.mubr.f32.vlgmr.msra.gmra.mrb[64].mxu1 %v8621_v37  ;;  %v32410_v37 = vld [vmem:[#allocation2 + $0x48] sm:$0xff] }
 0x489   :  { %24152 = vmatprep.mubr.f32.mxu1 %v32397_v2  ;;  %26491 = vmatpush3.bf16.msra.mxu1 %v32292_v58  ;;  %35715 = vst [vmem:[#allocation35_spill] sm:$0xff] %v32410_v37  ;;  %v26500_v58 = vpack.c.bf16 %v20128_v28, %v20127_v31  ;;  %v20130_v2 = vld [vmem:[%s35146_s4 + $0x248] sm:$0xff]  ;;  %v20131_v28 = vld [vmem:[%s35146_s4 + $0x250] sm:$0xff] }
 0x48a   :  { %26493 = vmatprep.subr.bf16.mxu1 %v26492_v22  ;;  %v32425_v31 = vld [vmem:[#allocation2 + $0x68] sm:$0xff] }
 0x48b   :  { %35718 = vst [vmem:[#allocation38_spill] sm:$0xff] %v32425_v31 }
 0x48c   :  { %24153 = vmatmul.mubr.f32.gmra.mrb[66].mxu1 %v32401_v38  ;;  %v32422_v38 = vld [vmem:[#allocation2 + $0x60] sm:$0xff] }
 0x48d   :  { %24155 = vmatprep.mubr.f32.mxu1 %v32410_v37  ;;  %26495 = vmatpush3.bf16.msra.mxu1 %v26492_v22  ;;  %35717 = vst [vmem:[#allocation37_spill] sm:$0xff] %v32422_v38  ;;  %v26504_v22 = vpack.c.bf16 %v20130_v2, %v20129_v48  ;;  %v20132_v37 = vld [vmem:[%s35146_s4 + $0x258] sm:$0xff]  ;;  %v32437_v2 = vld [vmem:[#allocation2 + $0x80] sm:$0xff] }
 0x48e   :  { %26497 = vmatprep.subr.bf16.mxu1 %v26496_v0  ;;  %35720 = vst [vmem:[#allocation40_spill] sm:$0xff] %v32437_v2  ;;  %v20133_v48 = vld [vmem:[%s35146_s4 + $0x260] sm:$0xff] }
 0x490   :  { %24156 = vmatmul.mubr.f32.gmra.mrb[68].mxu1 %v32413_v6  ;;  %v32434_v6 = vld [vmem:[#allocation2 + $0x78] sm:$0xff] }
 0x491   :  { %24158 = vmatprep.mubr.f32.mxu1 %v32422_v38  ;;  %26499 = vmatpush3.bf16.msra.mxu1 %v26496_v0  ;;  %35719 = vst [vmem:[#allocation39_spill] sm:$0xff] %v32434_v6  ;;  %v26508_v0 = vpack.c.bf16 %v20132_v37, %v20131_v28  ;;  %v20134_v38 = vld [vmem:[%s35146_s4 + $0x268] sm:$0xff]  ;;  %v32449_v37 = vld [vmem:[#allocation2 + $0x98] sm:$0xff]  ;;  %v20135_v28 = vld [vmem:[%s35146_s4 + $0x270] sm:$0xff] }
 0x492   :  { %26501 = vmatprep.subr.bf16.mxu1 %v26500_v58  ;;  %35722 = vst [vmem:[#allocation42_spill] sm:$0xff] %v32449_v37 }
 0x494   :  { %24159 = vmatmul.mubr.f32.gmra.mrb[70].mxu1 %v32425_v31  ;;  %v32446_v31 = vld [vmem:[#allocation2 + $0x90] sm:$0xff] }
 0x495   :  { %24161 = vmatprep.mubr.f32.mxu1 %v32434_v6  ;;  %26503 = vmatpush3.bf16.msra.mxu1 %v26500_v58  ;;  %35721 = vst [vmem:[#allocation41_spill] sm:$0xff] %v32446_v31  ;;  %v26512_v58 = vpack.c.bf16 %v20134_v38, %v20133_v48  ;;  %v20136_v6 = vld [vmem:[%s35146_s4 + $0x278] sm:$0xff]  ;;  %v32461_v38 = vld [vmem:[#allocation2 + $0xb0] sm:$0xff]  ;;  %v32464_v48 = vld [vmem:[#allocation2 + $0xc0] sm:$0xff] }
 0x496   :  { %26505 = vmatprep.subr.bf16.mxu1 %v26504_v22  ;;  %35723 = vst [vmem:[#allocation43_spill] sm:$0xff] %v32464_v48 }
 0x498   :  { %24162 = vmatmul.mubr.f32.gmra.mrb[72].mxu1 %v32437_v2  ;;  %v32458_v2 = vld [vmem:[#allocation2 + $0xa8] sm:$0xff] }
 0x499   :  { %24164 = vmatprep.mubr.f32.mxu1 %v32446_v31  ;;  %26507 = vmatpush3.bf16.msra.mxu1 %v26504_v22  ;;  %v26516_v22 = vpack.c.bf16 %v20136_v6, %v20135_v28  ;;  %v32467_v31 = vld [vmem:[#allocation2 + $0xc8] sm:$0xff]  ;;  %v32473_v6 = vld [vmem:[#allocation2 + $0xe0] sm:$0xff]  ;;  %v32479_v28 = vld [vmem:[#allocation2 + $0xf8] sm:$0xff] }
 0x49a   :  { %26509 = vmatprep.subr.bf16.mxu1 %v26508_v0  ;;  %35724 = vst [vmem:[#allocation44_spill] sm:$0xff] %v32467_v31  ;;  %35726 = vst [vmem:[#allocation46_spill] sm:$0xff] %v32473_v6 }
 0x49b   :  { %35728 = vst [vmem:[#allocation48_spill] sm:$0xff] %v32479_v28 }
 0x49c   :  { %24165 = vmatmul.mubr.f32.gmra.mrb[74].mxu1 %v32449_v37  ;;  %v32470_v37 = vld [vmem:[#allocation2 + $0xd8] sm:$0xff] }
 0x49d   :  { %24167 = vmatprep.mubr.f32.mxu1 %v32458_v2  ;;  %26511 = vmatpush3.bf16.msra.mxu1 %v26508_v0  ;;  %35725 = vst [vmem:[#allocation45_spill] sm:$0xff] %v32470_v37  ;;  %v32476_v0 = vld [vmem:[#allocation2 + $0xf0] sm:$0xff] }
 0x49e   :  { %26513 = vmatprep.subr.bf16.mxu1 %v26512_v58  ;;  %35727 = vst [vmem:[#allocation47_spill] sm:$0xff] %v32476_v0 }
 0x4a0   :  { %24168 = vmatmul.mubr.f32.gmra.mrb[76].mxu1 %v32461_v38 }
 0x4a1   :  { %24170 = vmatprep.mubr.f32.mxu1 %v32464_v48  ;;  %26515 = vmatpush3.bf16.msra.mxu1 %v26512_v58  ;;  %v32482_v58 = vld [vmem:[#allocation2 + $0x108] sm:$0xff]  ;;  %v32524_v48 = vld [vmem:[#allocation2 + $0x1e0] sm:$0xff] }
 0x4a2   :  { %26517 = vmatprep.subr.bf16.mxu1 %v26516_v22  ;;  %35729 = vst [vmem:[#allocation49_spill] sm:$0xff] %v32482_v58  ;;  %35741 = vst [vmem:[#allocation61_spill] sm:$0xff] %v32524_v48 }
 0x4a4   :  { %24171 = vmatmul.mubr.f32.gmra.mrb[78].mxu1 %v32467_v31  ;;  %v32485_v31 = vld [vmem:[#allocation2 + $0x110] sm:$0xff] }
 0x4a5   :  { %24173 = vmatprep.mubr.f32.mxu1 %v32470_v37  ;;  %26519 = vmatpush3.bf16.msra.mxu1 %v26516_v22  ;;  %35730 = vst [vmem:[#allocation50_spill] sm:$0xff] %v32485_v31  ;;  %v32488_v22 = vld [vmem:[#allocation2 + $0x120] sm:$0xff] }
 0x4a6   :  { %35731 = vst [vmem:[#allocation51_spill] sm:$0xff] %v32488_v22 }
 0x4a8   :  { %24174 = vmatmul.mubr.f32.gmra.mrb[80].mxu1 %v32473_v6  ;;  %v32491_v6 = vld [vmem:[#allocation2 + $0x128] sm:$0xff] }
 0x4a9   :  { %24176 = vmatprep.mubr.f32.mxu1 %v32476_v0  ;;  %35732 = vst [vmem:[#allocation52_spill] sm:$0xff] %v32491_v6  ;;  %v32494_v0 = vld [vmem:[#allocation2 + $0x138] sm:$0xff] }
 0x4aa   :  { %35733 = vst [vmem:[#allocation53_spill] sm:$0xff] %v32494_v0 }
 0x4ac   :  { %24177 = vmatmul.mubr.f32.gmra.mrb[82].mxu1 %v32479_v28  ;;  %v32497_v28 = vld [vmem:[#allocation2 + $0x140] sm:$0xff] }
 0x4ad   :  { %24179 = vmatprep.mubr.f32.mxu1 %v32482_v58  ;;  %35734 = vst [vmem:[#allocation54_spill] sm:$0xff] %v32497_v28  ;;  %v32500_v58 = vld [vmem:[#allocation2 + $0x150] sm:$0xff] }
 0x4ae   :  { %35735 = vst [vmem:[#allocation55_spill] sm:$0xff] %v32500_v58 }
 0x4b0   :  { %24180 = vmatmul.mubr.f32.gmra.mrb[84].mxu1 %v32485_v31  ;;  %v32503_v31 = vld [vmem:[#allocation2 + $0x158] sm:$0xff] }
 0x4b1   :  { %24182 = vmatprep.mubr.f32.mxu1 %v32488_v22  ;;  %35736 = vst [vmem:[#allocation56_spill] sm:$0xff] %v32503_v31  ;;  %v32506_v22 = vld [vmem:[#allocation2 + $0x168] sm:$0xff] }
 0x4b2   :  { %35737 = vst [vmem:[#allocation57_spill] sm:$0xff] %v32506_v22 }
 0x4b4   :  { %24183 = vmatmul.mubr.f32.gmra.mrb[86].mxu1 %v32491_v6  ;;  %v32509_v6 = vld [vmem:[#allocation2 + $0x170] sm:$0xff] }
 0x4b5   :  { %24185 = vmatprep.mubr.f32.mxu1 %v32494_v0  ;;  %35738 = vst [vmem:[#allocation58_spill] sm:$0xff] %v32509_v6  ;;  %v32512_v0 = vld [vmem:[#allocation2 + $0x180] sm:$0xff] }
 0x4b6   :  { %35739 = vst [vmem:[#allocation59_spill] sm:$0xff] %v32512_v0 }
 0x4b8   :  { %24186 = vmatmul.mubr.f32.gmra.mrb[88].mxu1 %v32497_v28  ;;  %v32515_v28 = vld [vmem:[#allocation2 + $0x188] sm:$0xff] }
 0x4b9   :  { %24188 = vmatprep.mubr.f32.mxu1 %v32500_v58  ;;  %35740 = vst [vmem:[#allocation60_spill] sm:$0xff] %v32515_v28  ;;  %v8652_v58 = vld [vmem:[#allocation2 + $0x1c8] sm:$0xff] }
 0x4bc   :  { %24189 = vmatmul.mubr.f32.gmra.mrb[90].mxu1 %v32503_v31  ;;  %v20137_v31 = vld [vmem:[%s35146_s4 + $0x280] sm:$0xff] }
 0x4bd   :  { %24191 = vmatprep.mubr.f32.mxu1 %v32506_v22  ;;  %v20138_v22 = vld [vmem:[%s35146_s4 + $0x288] sm:$0xff] }
 0x4be   :  { %v26520_v37 = vpack.c.bf16 %v20138_v22, %v20137_v31  ;;  %v32536_v31 = vld [vmem:[#allocation2 + $0x210] sm:$0xff]  ;;  %v32542_v22 = vld [vmem:[#allocation2 + $0x228] sm:$0xff] }
 0x4bf   :  { %35745 = vst [vmem:[#allocation65_spill] sm:$0xff] %v32536_v31  ;;  %35747 = vst [vmem:[#allocation67_spill] sm:$0xff] %v32542_v22 }
 0x4c0   :  { %24192 = vmatmul.mubr.f32.gmra.mrb[92].mxu1 %v32509_v6  ;;  %v8653_v6 = vld [vmem:[#allocation2 + $0x1d0] sm:$0xff]  ;;  %26521 = vmatprep.subr.bf16.mxu1 %v26520_v37 }
 0x4c1   :  { %24194 = vmatprep.mubr.f32.mxu1 %v32512_v0  ;;  %v32527_v0 = vld [vmem:[#allocation2 + $0x1e8] sm:$0xff] }
 0x4c2   :  { %35742 = vst [vmem:[#allocation62_spill] sm:$0xff] %v32527_v0 }
 0x4c4   :  { %24195 = vmatmul.mubr.f32.gmra.mrb[94].mxu1 %v32515_v28  ;;  %v32533_v28 = vld [vmem:[#allocation2 + $0x200] sm:$0xff] }
 0x4c5   :  { %24197 = vmatprep.mubr.f32.mxu1 %v8652_v58  ;;  %v32530_v58 = vld [vmem:[#allocation2 + $0x1f8] sm:$0xff]  ;;  %35744 = vst [vmem:[#allocation64_spill] sm:$0xff] %v32533_v28 }
 0x4c6   :  { %35743 = vst [vmem:[#allocation63_spill] sm:$0xff] %v32530_v58 }
 0x4c8   :  { %24198 = vmatmul.mubr.f32.gmra.mrb[96].mxu1 %v8653_v6  ;;  %v32539_v6 = vld [vmem:[#allocation2 + $0x218] sm:$0xff] }
 0x4c9   :  { %24200 = vmatprep.mubr.f32.mxu1 %v32524_v48  ;;  %35746 = vst [vmem:[#allocation66_spill] sm:$0xff] %v32539_v6  ;;  %v35759_v48 = vld [vmem:[#allocation9_spill] sm:$0xff] }
 0x4cc   :  { %24201 = vmatmul.mubr.f32.gmra.mrb[98].mxu1 %v32527_v0  ;;  %v32545_v0 = vld [vmem:[#allocation2 + $0x230] sm:$0xff] }
 0x4cd   :  { %24203 = vmatprep.mubr.f32.mxu1 %v32530_v58  ;;  %35748 = vst [vmem:[#allocation68_spill] sm:$0xff] %v32545_v0  ;;  %v32548_v58 = vld [vmem:[#allocation2 + $0x240] sm:$0xff] }
 0x4ce   :  { %35749 = vst [vmem:[#allocation69_spill] sm:$0xff] %v32548_v58 }
 0x4d0   :  { %24204 = vmatmul.mubr.f32.gmra.mrb[100].mxu1 %v32533_v28  ;;  %v32551_v28 = vld [vmem:[#allocation2 + $0x248] sm:$0xff] }
 0x4d1   :  { %24206 = vmatprep.mubr.f32.mxu1 %v32536_v31  ;;  %35750 = vst [vmem:[#allocation70_spill] sm:$0xff] %v32551_v28  ;;  %v32554_v31 = vld [vmem:[#allocation2 + $0x258] sm:$0xff] }
 0x4d2   :  { %35751 = vst [vmem:[#allocation71_spill] sm:$0xff] %v32554_v31 }
 0x4d4   :  { %24207 = vmatmul.mubr.f32.gmra.mrb[102].mxu1 %v32539_v6  ;;  %v32557_v6 = vld [vmem:[#allocation2 + $0x260] sm:$0xff] }
 0x4d5   :  { %24209 = vmatprep.mubr.f32.mxu1 %v32542_v22  ;;  %35752 = vst [vmem:[#allocation72_spill] sm:$0xff] %v32557_v6  ;;  %v32560_v22 = vld [vmem:[#allocation2 + $0x270] sm:$0xff] }
 0x4d6   :  { %35753 = vst [vmem:[#allocation73_spill] sm:$0xff] %v32560_v22 }
 0x4d8   :  { %24210 = vmatmul.mubr.f32.gmra.mrb[104].mxu1 %v32545_v0  ;;  %v32563_v0 = vld [vmem:[#allocation2 + $0x278] sm:$0xff] }
 0x4d9   :  { %24212 = vmatprep.mubr.f32.mxu1 %v32548_v58  ;;  %v32566_v58 = vld [vmem:[#allocation2 + $0x288] sm:$0xff] }
 0x4da   :  { %35754 = vst [vmem:[#allocation74_spill] sm:$0xff] %v32566_v58 }
 0x4dc   :  { %24213 = vmatmul.mubr.f32.gmra.mrb[106].mxu1 %v32551_v28  ;;  %v32569_v28 = vld [vmem:[#allocation2 + $0x290] sm:$0xff] }
 0x4dd   :  { %24215 = vmatprep.mubr.f32.mxu1 %v32554_v31  ;;  %35755 = vst [vmem:[#allocation75_spill] sm:$0xff] %v32569_v28  ;;  %v32572_v31 = vld [vmem:[#allocation2 + $0x2a0] sm:$0xff] }
 0x4de   :  { %35756 = vst [vmem:[#allocation76_spill] sm:$0xff] %v32572_v31 }
 0x4e0   :  { %24216 = vmatmul.mubr.f32.gmra.mrb[108].mxu1 %v32557_v6  ;;  %v32575_v6 = vld [vmem:[#allocation2 + $0x2a8] sm:$0xff] }
 0x4e1   :  { %24218 = vmatprep.mubr.f32.mxu1 %v32560_v22  ;;  %35757 = vst [vmem:[#allocation77_spill] sm:$0xff] %v32575_v6  ;;  %v35758_v22 = vld [vmem:[#allocation22_spill] sm:$0xff] }
 0x4e4   :  { %24219 = vmatmul.mubr.f32.gmra.mrb[110].mxu1 %v32563_v0 }
 0x4e5   :  { %24221 = vmatprep.mubr.f32.mxu1 %v32566_v58  ;;  %v35762_v58 = vld [vmem:[#allocation12_spill] sm:$0xff] }
 0x4e8   :  { %24222 = vmatmul.mubr.f32.gmra.mrb[112].mxu1 %v32569_v28  ;;  %v35760_v28 = vld [vmem:[#allocation10_spill] sm:$0xff] }
 0x4e9   :  { %24224 = vmatprep.mubr.f32.mxu1 %v32572_v31  ;;  %v35761_v31 = vld [vmem:[#allocation11_spill] sm:$0xff] }
 0x4ec   :  { %24225 = vmatmul.mubr.f32.gmra.mrb[114].mxu1 %v32575_v6  ;;  %v32588_v6 = vld [vmem:[#allocation2 + $0x330] sm:$0xff] }
 0x4ed   :  { %24227 = vmatprep.mubr.f32.mxu1 %v35758_v22 }
 0x4f0   :  { %24228 = vmatmul.mubr.f32.gmra.mrb[116].mxu1 %v35759_v48  ;;  %v32591_v48 = vld [vmem:[#allocation2 + $0x338] sm:$0xff] }
 0x4f1   :  { %24230 = vmatprep.mubr.f32.mxu1 %v31936_v52  ;;  %35763 = vst [vmem:[#allocation22_spill] sm:$0xff] %v32591_v48  ;;  %v20140_v52 = vld [vmem:[%s35146_s4 + $0x298] sm:$0xff] }
 0x4f4   :  { %24231 = vmatmul.mubr.f32.gmra.mrb[118].mxu1 %v31938_v42  ;;  %v20139_v42 = vld [vmem:[%s35146_s4 + $0x290] sm:$0xff] }
 0x4f5   :  { %24233 = vmatprep.mubr.f32.mxu1 %v31955_v5  ;;  %v35764_v5 = vld [vmem:[#allocation13_spill] sm:$0xff] }
 0x4f8   :  { %24234 = vmatmul.mubr.f32.gmra.mrb[120].mxu1 %v31957_v12  ;;  %v26524_v12 = vpack.c.bf16 %v20140_v52, %v20139_v42  ;;  %v20144_v42 = vld [vmem:[%s35146_s4 + $0x2b8] sm:$0xff]  ;;  %v35767_v52 = vld [vmem:[#allocation16_spill] sm:$0xff] }
 0x4f9   :  { %24236 = vmatprep.mubr.f32.mxu1 %v31964_v8  ;;  %v20141_v8 = vld [vmem:[%s35146_s4 + $0x2a0] sm:$0xff] }
 0x4fc   :  { %24237 = vmatmul.mubr.f32.gmra.mrb[122].mxu1 %v35760_v28  ;;  %v20142_v28 = vld [vmem:[%s35146_s4 + $0x2a8] sm:$0xff] }
 0x4fd   :  { %24239 = vmatprep.mubr.f32.mxu1 %v35761_v31  ;;  %v35766_v31 = vld [vmem:[#allocation15_spill] sm:$0xff]  ;;  %v26528_v22 = vpack.c.bf16 %v20142_v28, %v20141_v8  ;;  %v20146_v8 = vld [vmem:[%s35146_s4 + $0x2c8] sm:$0xff]  ;;  %v35769_v28 = vld [vmem:[#allocation18_spill] sm:$0xff] }
 0x500   :  { %24240 = vmatmul.mubr.f32.gmra.mrb[124].mxu1 %v35762_v58  ;;  %v35765_v58 = vld [vmem:[#allocation14_spill] sm:$0xff] }
 0x501   :  { %24242 = vmatprep.mubr.f32.mxu1 %v32588_v6 }
 0x504   :  { %24243 = vmatmul.mubr.f32.gmra.mrb[126].mxu1 %v32591_v48  ;;  %v35768_v48 = vld [vmem:[#allocation17_spill] sm:$0xff] }
 0x505   :  { %24277 = vmatprep.mubr.f32.mxu1 %v35764_v5  ;;  %v20143_v5 = vld [vmem:[%s35146_s4 + $0x2b0] sm:$0xff] }
 0x508   :  { %24278 = vmatmul.mubr.f32.vlgmr.msra.gmra.mrb[64].mxu1 %v35765_v58  ;;  %v26532_v58 = vpack.c.bf16 %v20144_v42, %v20143_v5  ;;  %v35771_v5 = vld [vmem:[#allocation20_spill] sm:$0xff]  ;;  %v32632_v42 = vld [vmem:[#allocation2 + $0x79] sm:$0xff] }
 0x509   :  { %24280 = vmatprep.mubr.f32.mxu1 %v35766_v31  ;;  %26523 = vmatpush3.bf16.msra.mxu1 %v26520_v37  ;;  %v20145_v37 = vld [vmem:[%s35146_s4 + $0x2c0] sm:$0xff] }
 0x50a   :  { %26525 = vmatprep.subr.bf16.mxu1 %v26524_v12  ;;  %v35770_v31 = vld [vmem:[#allocation19_spill] sm:$0xff] }
 0x50c   :  { %24281 = vmatmul.mubr.f32.gmra.mrb[66].mxu1 %v35767_v52  ;;  %v26536_v52 = vpack.c.bf16 %v20146_v8, %v20145_v37  ;;  %v20150_v37 = vld [vmem:[%s35146_s4 + $0x2e8] sm:$0xff]  ;;  %v32642_v8 = vld [vmem:[#allocation2 + $0x91] sm:$0xff] }
 0x50d   :  { %24283 = vmatprep.mubr.f32.mxu1 %v35768_v48  ;;  %26527 = vmatpush3.bf16.msra.mxu1 %v26524_v12  ;;  %v20147_v48 = vld [vmem:[%s35146_s4 + $0x2d0] sm:$0xff]  ;;  %v20148_v12 = vld [vmem:[%s35146_s4 + $0x2d8] sm:$0xff] }
 0x50e   :  { %26529 = vmatprep.subr.bf16.mxu1 %v26528_v22 }
 0x510   :  { %24284 = vmatmul.mubr.f32.gmra.mrb[68].mxu1 %v35769_v28  ;;  %v26540_v28 = vpack.c.bf16 %v20148_v12, %v20147_v48  ;;  %v20151_v48 = vld [vmem:[%s35146_s4 + $0x2f0] sm:$0xff]  ;;  %v20152_v12 = vld [vmem:[%s35146_s4 + $0x2f8] sm:$0xff] }
 0x511   :  { %24286 = vmatprep.mubr.f32.mxu1 %v35770_v31  ;;  %26531 = vmatpush3.bf16.msra.mxu1 %v26528_v22  ;;  %v20149_v22 = vld [vmem:[%s35146_s4 + $0x2e0] sm:$0xff] }
 0x512   :  { %26533 = vmatprep.subr.bf16.mxu1 %v26532_v58  ;;  %v26544_v31 = vpack.c.bf16 %v20150_v37, %v20149_v22  ;;  %v32660_v22 = vld [vmem:[#allocation2 + $0xc1] sm:$0xff]  ;;  %v32663_v37 = vld [vmem:[#allocation2 + $0xc9] sm:$0xff] }
 0x513   :  { %35773 = vst [vmem:[#allocation10_spill] sm:$0xff] %v32660_v22  ;;  %35774 = vst [vmem:[#allocation11_spill] sm:$0xff] %v32663_v37 }
 0x514   :  { %24287 = vmatmul.mubr.f32.gmra.mrb[70].mxu1 %v35771_v5  ;;  %v32657_v5 = vld [vmem:[#allocation2 + $0xb1] sm:$0xff] }
 0x515   :  { %24289 = vmatprep.mubr.f32.mxu1 %v32632_v42  ;;  %26535 = vmatpush3.bf16.msra.mxu1 %v26532_v58  ;;  %v32645_v58 = vld [vmem:[#allocation2 + $0x99] sm:$0xff] }
 0x516   :  { %26537 = vmatprep.subr.bf16.mxu1 %v26536_v52  ;;  %35772 = vst [vmem:[#allocation9_spill] sm:$0xff] %v32645_v58 }
 0x518   :  { %24290 = vmatmul.mubr.f32.gmra.mrb[72].mxu1 %v32039_v3  ;;  %v32654_v3 = vld [vmem:[#allocation2 + $0xa9] sm:$0xff] }
 0x519   :  { %24292 = vmatprep.mubr.f32.mxu1 %v32642_v8  ;;  %26539 = vmatpush3.bf16.msra.mxu1 %v26536_v52  ;;  %v26548_v52 = vpack.c.bf16 %v20152_v12, %v20151_v48  ;;  %v32672_v48 = vld [vmem:[#allocation2 + $0xf1] sm:$0xff]  ;;  %v32675_v12 = vld [vmem:[#allocation2 + $0xf9] sm:$0xff] }
 0x51a   :  { %26541 = vmatprep.subr.bf16.mxu1 %v26540_v28  ;;  %35777 = vst [vmem:[#allocation14_spill] sm:$0xff] %v32672_v48  ;;  %35778 = vst [vmem:[#allocation15_spill] sm:$0xff] %v32675_v12 }
 0x51c   :  { %24293 = vmatmul.mubr.f32.gmra.mrb[74].mxu1 %v32645_v58  ;;  %v32666_v58 = vld [vmem:[#allocation2 + $0xd9] sm:$0xff] }
 0x51d   :  { %24295 = vmatprep.mubr.f32.mxu1 %v32654_v3  ;;  %26543 = vmatpush3.bf16.msra.mxu1 %v26540_v28  ;;  %35775 = vst [vmem:[#allocation12_spill] sm:$0xff] %v32666_v58  ;;  %v32669_v28 = vld [vmem:[#allocation2 + $0xe1] sm:$0xff] }
 0x51e   :  { %26545 = vmatprep.subr.bf16.mxu1 %v26544_v31  ;;  %35776 = vst [vmem:[#allocation13_spill] sm:$0xff] %v32669_v28 }
 0x520   :  { %24296 = vmatmul.mubr.f32.gmra.mrb[76].mxu1 %v32657_v5 }
 0x521   :  { %24298 = vmatprep.mubr.f32.mxu1 %v32660_v22  ;;  %26547 = vmatpush3.bf16.msra.mxu1 %v26544_v31  ;;  %v32678_v31 = vld [vmem:[#allocation2 + $0x109] sm:$0xff]  ;;  %v32722_v22 = vld [vmem:[#allocation2 + $0x1e1] sm:$0xff] }
 0x522   :  { %26549 = vmatprep.subr.bf16.mxu1 %v26548_v52  ;;  %35779 = vst [vmem:[#allocation16_spill] sm:$0xff] %v32678_v31  ;;  %35791 = vst [vmem:[#allocation85_spill] sm:$0xff] %v32722_v22 }
 0x524   :  { %24299 = vmatmul.mubr.f32.gmra.mrb[78].mxu1 %v32663_v37  ;;  %v32681_v37 = vld [vmem:[#allocation2 + $0x111] sm:$0xff] }
 0x525   :  { %24301 = vmatprep.mubr.f32.mxu1 %v32666_v58  ;;  %26551 = vmatpush3.bf16.msra.mxu1 %v26548_v52  ;;  %35780 = vst [vmem:[#allocation17_spill] sm:$0xff] %v32681_v37  ;;  %v32684_v52 = vld [vmem:[#allocation2 + $0x121] sm:$0xff] }
 0x526   :  { %35781 = vst [vmem:[#allocation18_spill] sm:$0xff] %v32684_v52 }
 0x528   :  { %24302 = vmatmul.mubr.f32.gmra.mrb[80].mxu1 %v32669_v28  ;;  %v32687_v28 = vld [vmem:[#allocation2 + $0x129] sm:$0xff] }
 0x529   :  { %24304 = vmatprep.mubr.f32.mxu1 %v32672_v48  ;;  %35782 = vst [vmem:[#allocation19_spill] sm:$0xff] %v32687_v28  ;;  %v32690_v48 = vld [vmem:[#allocation2 + $0x139] sm:$0xff] }
 0x52a   :  { %35783 = vst [vmem:[#allocation20_spill] sm:$0xff] %v32690_v48 }
 0x52c   :  { %24305 = vmatmul.mubr.f32.gmra.mrb[82].mxu1 %v32675_v12  ;;  %v32693_v12 = vld [vmem:[#allocation2 + $0x141] sm:$0xff] }
 0x52d   :  { %24307 = vmatprep.mubr.f32.mxu1 %v32678_v31  ;;  %35784 = vst [vmem:[#allocation78_spill] sm:$0xff] %v32693_v12  ;;  %v32696_v31 = vld [vmem:[#allocation2 + $0x151] sm:$0xff] }
 0x52e   :  { %35785 = vst [vmem:[#allocation79_spill] sm:$0xff] %v32696_v31 }
 0x530   :  { %24308 = vmatmul.mubr.f32.gmra.mrb[84].mxu1 %v32681_v37  ;;  %v32699_v37 = vld [vmem:[#allocation2 + $0x159] sm:$0xff] }
 0x531   :  { %24310 = vmatprep.mubr.f32.mxu1 %v32684_v52  ;;  %35786 = vst [vmem:[#allocation80_spill] sm:$0xff] %v32699_v37  ;;  %v32702_v52 = vld [vmem:[#allocation2 + $0x169] sm:$0xff] }
 0x532   :  { %35787 = vst [vmem:[#allocation81_spill] sm:$0xff] %v32702_v52 }
 0x534   :  { %24311 = vmatmul.mubr.f32.gmra.mrb[86].mxu1 %v32687_v28  ;;  %v32705_v28 = vld [vmem:[#allocation2 + $0x171] sm:$0xff] }
 0x535   :  { %24313 = vmatprep.mubr.f32.mxu1 %v32690_v48  ;;  %35788 = vst [vmem:[#allocation82_spill] sm:$0xff] %v32705_v28  ;;  %v32708_v48 = vld [vmem:[#allocation2 + $0x181] sm:$0xff] }
 0x536   :  { %35789 = vst [vmem:[#allocation83_spill] sm:$0xff] %v32708_v48 }
 0x538   :  { %24314 = vmatmul.mubr.f32.gmra.mrb[88].mxu1 %v32693_v12  ;;  %v32711_v12 = vld [vmem:[#allocation2 + $0x189] sm:$0xff] }
 0x539   :  { %24316 = vmatprep.mubr.f32.mxu1 %v32696_v31  ;;  %35790 = vst [vmem:[#allocation84_spill] sm:$0xff] %v32711_v12  ;;  %v9310_v31 = vld [vmem:[#allocation2 + $0x1c9] sm:$0xff] }
 0x53c   :  { %24317 = vmatmul.mubr.f32.gmra.mrb[90].mxu1 %v32699_v37  ;;  %v20153_v37 = vld [vmem:[%s35146_s4 + $0x300] sm:$0xff] }
 0x53d   :  { %24319 = vmatprep.mubr.f32.mxu1 %v32702_v52  ;;  %v20154_v52 = vld [vmem:[%s35146_s4 + $0x308] sm:$0xff] }
 0x53e   :  { %v32720_v58 = vpack.c.bf16 %v20154_v52, %v20153_v37  ;;  %v32735_v37 = vld [vmem:[#allocation2 + $0x211] sm:$0xff]  ;;  %v32741_v52 = vld [vmem:[#allocation2 + $0x229] sm:$0xff] }
 0x53f   :  { %35795 = vst [vmem:[#allocation89_spill] sm:$0xff] %v32735_v37  ;;  %35797 = vst [vmem:[#allocation91_spill] sm:$0xff] %v32741_v52 }
 0x540   :  { %24320 = vmatmul.mubr.f32.gmra.mrb[92].mxu1 %v32705_v28  ;;  %v9311_v28 = vld [vmem:[#allocation2 + $0x1d1] sm:$0xff]  ;;  %26553 = vmatprep.subr.bf16.mxu1 %v32720_v58 }
 0x541   :  { %24322 = vmatprep.mubr.f32.mxu1 %v32708_v48  ;;  %v32732_v48 = vld [vmem:[#allocation2 + $0x201] sm:$0xff] }
 0x542   :  { %35794 = vst [vmem:[#allocation88_spill] sm:$0xff] %v32732_v48 }
 0x544   :  { %24323 = vmatmul.mubr.f32.gmra.mrb[94].mxu1 %v32711_v12  ;;  %v32726_v12 = vld [vmem:[#allocation2 + $0x1e9] sm:$0xff] }
 0x545   :  { %24325 = vmatprep.mubr.f32.mxu1 %v9310_v31  ;;  %35792 = vst [vmem:[#allocation86_spill] sm:$0xff] %v32726_v12  ;;  %v32729_v31 = vld [vmem:[#allocation2 + $0x1f9] sm:$0xff] }
 0x546   :  { %35793 = vst [vmem:[#allocation87_spill] sm:$0xff] %v32729_v31 }
 0x548   :  { %24326 = vmatmul.mubr.f32.gmra.mrb[96].mxu1 %v9311_v28  ;;  %v32738_v28 = vld [vmem:[#allocation2 + $0x219] sm:$0xff] }
 0x549   :  { %24328 = vmatprep.mubr.f32.mxu1 %v32722_v22  ;;  %35796 = vst [vmem:[#allocation90_spill] sm:$0xff] %v32738_v28 }
 0x54c   :  { %24329 = vmatmul.mubr.f32.gmra.mrb[98].mxu1 %v32726_v12  ;;  %v32744_v12 = vld [vmem:[#allocation2 + $0x231] sm:$0xff] }
 0x54d   :  { %24331 = vmatprep.mubr.f32.mxu1 %v32729_v31  ;;  %35798 = vst [vmem:[#allocation92_spill] sm:$0xff] %v32744_v12  ;;  %v32747_v31 = vld [vmem:[#allocation2 + $0x241] sm:$0xff] }
 0x54e   :  { %35799 = vst [vmem:[#allocation93_spill] sm:$0xff] %v32747_v31 }
 0x550   :  { %24332 = vmatmul.mubr.f32.gmra.mrb[100].mxu1 %v32732_v48  ;;  %v32750_v48 = vld [vmem:[#allocation2 + $0x249] sm:$0xff] }
 0x551   :  { %24334 = vmatprep.mubr.f32.mxu1 %v32735_v37  ;;  %35800 = vst [vmem:[#allocation94_spill] sm:$0xff] %v32750_v48  ;;  %v32753_v37 = vld [vmem:[#allocation2 + $0x259] sm:$0xff] }
 0x552   :  { %35801 = vst [vmem:[#allocation95_spill] sm:$0xff] %v32753_v37 }
 0x554   :  { %24335 = vmatmul.mubr.f32.gmra.mrb[102].mxu1 %v32738_v28  ;;  %v32756_v28 = vld [vmem:[#allocation2 + $0x261] sm:$0xff] }
 0x555   :  { %24337 = vmatprep.mubr.f32.mxu1 %v32741_v52  ;;  %35802 = vst [vmem:[#allocation96_spill] sm:$0xff] %v32756_v28  ;;  %v32759_v52 = vld [vmem:[#allocation2 + $0x271] sm:$0xff] }
 0x556   :  { %35803 = vst [vmem:[#allocation97_spill] sm:$0xff] %v32759_v52 }
 0x558   :  { %24338 = vmatmul.mubr.f32.gmra.mrb[104].mxu1 %v32744_v12  ;;  %v32762_v12 = vld [vmem:[#allocation2 + $0x279] sm:$0xff] }
 0x559   :  { %24340 = vmatprep.mubr.f32.mxu1 %v32747_v31  ;;  %35804 = vst [vmem:[#allocation98_spill] sm:$0xff] %v32762_v12  ;;  %v32765_v31 = vld [vmem:[#allocation2 + $0x289] sm:$0xff] }
 0x55a   :  { %35805 = vst [vmem:[#allocation99_spill] sm:$0xff] %v32765_v31 }
 0x55c   :  { %24341 = vmatmul.mubr.f32.gmra.mrb[106].mxu1 %v32750_v48  ;;  %v32768_v48 = vld [vmem:[#allocation2 + $0x291] sm:$0xff] }
 0x55d   :  { %24343 = vmatprep.mubr.f32.mxu1 %v32753_v37  ;;  %35806 = vst [vmem:[#allocation100_spill] sm:$0xff] %v32768_v48  ;;  %v32771_v37 = vld [vmem:[#allocation2 + $0x2a1] sm:$0xff] }
 0x55e   :  { %35807 = vst [vmem:[#allocation101_spill] sm:$0xff] %v32771_v37 }
 0x560   :  { %24344 = vmatmul.mubr.f32.gmra.mrb[108].mxu1 %v32756_v28  ;;  %v32774_v28 = vld [vmem:[#allocation2 + $0x2a9] sm:$0xff] }
 0x561   :  { %24346 = vmatprep.mubr.f32.mxu1 %v32759_v52  ;;  %35808 = vst [vmem:[#allocation102_spill] sm:$0xff] %v32774_v28  ;;  %v32777_v52 = vld [vmem:[#allocation2 + $0x2b9] sm:$0xff] }
 0x562   :  { %35809 = vst [vmem:[#allocation103_spill] sm:$0xff] %v32777_v52 }
 0x564   :  { %24347 = vmatmul.mubr.f32.gmra.mrb[110].mxu1 %v32762_v12  ;;  %v32780_v12 = vld [vmem:[#allocation2 + $0x2c1] sm:$0xff] }
 0x565   :  { %24349 = vmatprep.mubr.f32.mxu1 %v32765_v31  ;;  %35810 = vst [vmem:[#allocation104_spill] sm:$0xff] %v32780_v12  ;;  %v32783_v31 = vld [vmem:[#allocation2 + $0x2d1] sm:$0xff] }
 0x566   :  { %35811 = vst [vmem:[#allocation105_spill] sm:$0xff] %v32783_v31 }
 0x568   :  { %24350 = vmatmul.mubr.f32.gmra.mrb[112].mxu1 %v32768_v48  ;;  %v32786_v48 = vld [vmem:[#allocation2 + $0x2d9] sm:$0xff] }
 0x569   :  { %24352 = vmatprep.mubr.f32.mxu1 %v32771_v37  ;;  %35812 = vst [vmem:[#allocation106_spill] sm:$0xff] %v32786_v48  ;;  %v32789_v37 = vld [vmem:[#allocation2 + $0x2e9] sm:$0xff] }
 0x56a   :  { %35813 = vst [vmem:[#allocation107_spill] sm:$0xff] %v32789_v37 }
 0x56c   :  { %24353 = vmatmul.mubr.f32.gmra.mrb[114].mxu1 %v32774_v28  ;;  %v32792_v28 = vld [vmem:[#allocation2 + $0x2f1] sm:$0xff] }
 0x56d   :  { %24355 = vmatprep.mubr.f32.mxu1 %v32777_v52  ;;  %35814 = vst [vmem:[#allocation108_spill] sm:$0xff] %v32792_v28  ;;  %v32795_v52 = vld [vmem:[#allocation2 + $0x301] sm:$0xff] }
 0x56e   :  { %35815 = vst [vmem:[#allocation109_spill] sm:$0xff] %v32795_v52 }
 0x570   :  { %24356 = vmatmul.mubr.f32.gmra.mrb[116].mxu1 %v32780_v12  ;;  %v32798_v12 = vld [vmem:[#allocation2 + $0x309] sm:$0xff] }
 0x571   :  { %24358 = vmatprep.mubr.f32.mxu1 %v32783_v31  ;;  %35816 = vst [vmem:[#allocation110_spill] sm:$0xff] %v32798_v12  ;;  %v32801_v31 = vld [vmem:[#allocation2 + $0x319] sm:$0xff] }
 0x572   :  { %35817 = vst [vmem:[#allocation111_spill] sm:$0xff] %v32801_v31 }
 0x574   :  { %24359 = vmatmul.mubr.f32.gmra.mrb[118].mxu1 %v32786_v48  ;;  %v32804_v48 = vld [vmem:[#allocation2 + $0x321] sm:$0xff] }
 0x575   :  { %24361 = vmatprep.mubr.f32.mxu1 %v32789_v37  ;;  %35818 = vst [vmem:[#allocation112_spill] sm:$0xff] %v32804_v48  ;;  %v32807_v37 = vld [vmem:[#allocation2 + $0x331] sm:$0xff] }
 0x576   :  { %35819 = vst [vmem:[#allocation113_spill] sm:$0xff] %v32807_v37 }
 0x578   :  { %24362 = vmatmul.mubr.f32.gmra.mrb[120].mxu1 %v32792_v28  ;;  %v32810_v28 = vld [vmem:[#allocation2 + $0x339] sm:$0xff] }
 0x579   :  { %24364 = vmatprep.mubr.f32.mxu1 %v32795_v52  ;;  %v20155_v52 = vld [vmem:[%s35146_s4 + $0x310] sm:$0xff] }
 0x57c   :  { %24365 = vmatmul.mubr.f32.gmra.mrb[122].mxu1 %v32798_v12  ;;  %v20156_v12 = vld [vmem:[%s35146_s4 + $0x318] sm:$0xff] }
 0x57d   :  { %24367 = vmatprep.mubr.f32.mxu1 %v32801_v31  ;;  %v26556_v31 = vpack.c.bf16 %v20156_v12, %v20155_v52  ;;  %v20160_v12 = vld [vmem:[%s35146_s4 + $0x338] sm:$0xff] }
 0x57e   :  { %v20180_v52 = vld [vmem:[%s35146_s4 + $0x3d8] sm:$0xff] }
 0x580   :  { %24368 = vmatmul.mubr.f32.gmra.mrb[124].mxu1 %v32804_v48  ;;  %v20157_v48 = vld [vmem:[%s35146_s4 + $0x320] sm:$0xff] }
 0x581   :  { %24370 = vmatprep.mubr.f32.mxu1 %v32807_v37  ;;  %v20158_v37 = vld [vmem:[%s35146_s4 + $0x328] sm:$0xff] }
 0x582   :  { %v26560_v22 = vpack.c.bf16 %v20158_v37, %v20157_v48  ;;  %v20164_v48 = vld [vmem:[%s35146_s4 + $0x358] sm:$0xff]  ;;  %v20179_v37 = vld [vmem:[%s35146_s4 + $0x3d0] sm:$0xff] }
 0x584   :  { %24371 = vmatmul.mubr.f32.gmra.mrb[126].mxu1 %v32810_v28 }
 0x585   :  { %24405 = vmatprep.mubr.f32.mxu1 %v32166_v59  ;;  %v20159_v59 = vld [vmem:[%s35146_s4 + $0x330] sm:$0xff] }
 0x588   :  { %24406 = vmatmul.mubr.f32.vlgmr.msra.gmra.mrb[64].mxu1 %v32169_v47  ;;  %v26564_v47 = vpack.c.bf16 %v20160_v12, %v20159_v59  ;;  %v35839_v59 = vld [vmem:[#allocation40_spill] sm:$0xff]  ;;  %v35840_v12 = vld [vmem:[#allocation41_spill] sm:$0xff] }
 0x589   :  { %24408 = vmatprep.mubr.f32.mxu1 %v32178_v46  ;;  %26555 = vmatpush3.bf16.msra.mxu1 %v32720_v58  ;;  %v20161_v46 = vld [vmem:[%s35146_s4 + $0x340] sm:$0xff]  ;;  %v20162_v58 = vld [vmem:[%s35146_s4 + $0x348] sm:$0xff] }
 0x58a   :  { %26557 = vmatprep.subr.bf16.mxu1 %v26556_v31 }
 0x58c   :  { %24409 = vmatmul.mubr.f32.gmra.mrb[66].mxu1 %v32181_v25  ;;  %v26568_v25 = vpack.c.bf16 %v20162_v58, %v20161_v46  ;;  %v20181_v46 = vld [vmem:[%s35146_s4 + $0x3e0] sm:$0xff]  ;;  %v20182_v58 = vld [vmem:[%s35146_s4 + $0x3e8] sm:$0xff] }
 0x58d   :  { %24411 = vmatprep.mubr.f32.mxu1 %v32190_v1  ;;  %26559 = vmatpush3.bf16.msra.mxu1 %v26556_v31  ;;  %v20163_v1 = vld [vmem:[%s35146_s4 + $0x350] sm:$0xff]  ;;  %v20168_v31 = vld [vmem:[%s35146_s4 + $0x378] sm:$0xff] }
 0x58e   :  { %26561 = vmatprep.subr.bf16.mxu1 %v26560_v22 }
 0x590   :  { %24412 = vmatmul.mubr.f32.gmra.mrb[68].mxu1 %v32193_v35  ;;  %v26572_v35 = vpack.c.bf16 %v20164_v48, %v20163_v1  ;;  %v26608_v1 = vpack.c.bf16 %v20182_v58, %v20181_v46  ;;  %v20183_v48 = vld [vmem:[%s35146_s4 + $0x3f0] sm:$0xff]  ;;  %v10653_v46 = vld [vmem:[#allocation2 + $0x318] sm:$0xff]  ;;  %v10654_v58 = vld [vmem:[#allocation2 + $0x320] sm:$0xff] }
 0x591   :  { %24414 = vmatprep.mubr.f32.mxu1 %v32202_v36  ;;  %26563 = vmatpush3.bf16.msra.mxu1 %v26560_v22  ;;  %v20165_v36 = vld [vmem:[%s35146_s4 + $0x360] sm:$0xff]  ;;  %v20166_v22 = vld [vmem:[%s35146_s4 + $0x368] sm:$0xff] }
 0x592   :  { %26565 = vmatprep.subr.bf16.mxu1 %v26564_v47 }
 0x594   :  { %24415 = vmatmul.mubr.f32.gmra.mrb[70].mxu1 %v32205_v54  ;;  %v26576_v54 = vpack.c.bf16 %v20166_v22, %v20165_v36  ;;  %v35842_v36 = vld [vmem:[#allocation43_spill] sm:$0xff] }
 0x595   :  { %24417 = vmatprep.mubr.f32.mxu1 %v32214_v9  ;;  %26567 = vmatpush3.bf16.msra.mxu1 %v26564_v47  ;;  %v20167_v9 = vld [vmem:[%s35146_s4 + $0x370] sm:$0xff]  ;;  %v26604_v47 = vpack.c.bf16 %v20180_v52, %v20179_v37  ;;  %v10648_v52 = vld [vmem:[#allocation2 + $0x2d8] sm:$0xff] }
 0x596   :  { %26569 = vmatprep.subr.bf16.mxu1 %v26568_v25  ;;  %v10647_v37 = vld [vmem:[#allocation2 + $0x2d0] sm:$0xff] }
 0x598   :  { %24418 = vmatmul.mubr.f32.gmra.mrb[72].mxu1 %v32217_v11  ;;  %v26580_v11 = vpack.c.bf16 %v20168_v31, %v20167_v9  ;;  %v35845_v9 = vld [vmem:[#allocation46_spill] sm:$0xff]  ;;  %v35846_v31 = vld [vmem:[#allocation47_spill] sm:$0xff] }
 0x599   :  { %24420 = vmatprep.mubr.f32.mxu1 %v32226_v63  ;;  %26571 = vmatpush3.bf16.msra.mxu1 %v26568_v25  ;;  %v32886_v63 = vld [vmem:[#allocation2 + $0x182] sm:$0xff]  ;;  %v35841_v25 = vld [vmem:[#allocation42_spill] sm:$0xff] }
 0x59a   :  { %26573 = vmatprep.subr.bf16.mxu1 %v26572_v35 }
 0x59c   :  { %24421 = vmatmul.mubr.f32.gmra.mrb[74].mxu1 %v32229_v43  ;;  %v32889_v43 = vld [vmem:[#allocation2 + $0x18a] sm:$0xff] }
 0x59d   :  { %24423 = vmatprep.mubr.f32.mxu1 %v32232_v16  ;;  %26575 = vmatpush3.bf16.msra.mxu1 %v26572_v35  ;;  %v20169_v16 = vld [vmem:[%s35146_s4 + $0x380] sm:$0xff]  ;;  %v20184_v35 = vld [vmem:[%s35146_s4 + $0x3f8] sm:$0xff] }
 0x59e   :  { %26577 = vmatprep.subr.bf16.mxu1 %v26576_v54  ;;  %v26612_v22 = vpack.c.bf16 %v20184_v35, %v20183_v48  ;;  %v20188_v48 = vld [vmem:[%s35146_s4 + $0x418] sm:$0xff] }
 0x59f   :  { %v11253_v35 = vld [vmem:[#allocation2 + $0x31] sm:$0xff] }
 0x5a0   :  { %24424 = vmatmul.mubr.f32.gmra.mrb[76].mxu1 %v32235_v61  ;;  %v20170_v61 = vld [vmem:[%s35146_s4 + $0x388] sm:$0xff] }
 0x5a1   :  { %24426 = vmatprep.mubr.f32.mxu1 %v32238_v13  ;;  %26579 = vmatpush3.bf16.msra.mxu1 %v26576_v54  ;;  %v26584_v13 = vpack.c.bf16 %v20170_v61, %v20169_v16  ;;  %v35843_v54 = vld [vmem:[#allocation44_spill] sm:$0xff]  ;;  %v35848_v16 = vld [vmem:[#allocation49_spill] sm:$0xff]  ;;  %v35850_v61 = vld [vmem:[#allocation51_spill] sm:$0xff] }
 0x5a2   :  { %26581 = vmatprep.subr.bf16.mxu1 %v26580_v11 }
 0x5a4   :  { %24427 = vmatmul.mubr.f32.gmra.mrb[78].mxu1 %v32241_v27  ;;  %v35820_v27 = vld [vmem:[#allocation23_spill] sm:$0xff] }
 0x5a5   :  { %24429 = vmatprep.mubr.f32.mxu1 %v32244_v30  ;;  %26583 = vmatpush3.bf16.msra.mxu1 %v26580_v11  ;;  %v35821_v30 = vld [vmem:[#allocation8_spill] sm:$0xff] }
 0x5a6   :  { %26585 = vmatprep.subr.bf16.mxu1 %v26584_v13  ;;  %v35847_v11 = vld [vmem:[#allocation48_spill] sm:$0xff] }
 0x5a8   :  { %24430 = vmatmul.mubr.f32.gmra.mrb[80].mxu1 %v32247_v26  ;;  %v35822_v26 = vld [vmem:[#allocation21_spill] sm:$0xff] }
 0x5a9   :  { %24432 = vmatprep.mubr.f32.mxu1 %v32250_v32  ;;  %v35823_v32 = vld [vmem:[#allocation24_spill] sm:$0xff] }
 0x5ac   :  { %24433 = vmatmul.mubr.f32.gmra.mrb[82].mxu1 %v32253_v34  ;;  %v35824_v34 = vld [vmem:[#allocation25_spill] sm:$0xff] }
 0x5ad   :  { %24435 = vmatprep.mubr.f32.mxu1 %v32256_v7  ;;  %v35825_v7 = vld [vmem:[#allocation26_spill] sm:$0xff] }
 0x5b0   :  { %24436 = vmatmul.mubr.f32.gmra.mrb[84].mxu1 %v32259_v20  ;;  %v35826_v20 = vld [vmem:[#allocation27_spill] sm:$0xff] }
 0x5b1   :  { %24438 = vmatprep.mubr.f32.mxu1 %v32262_v33  ;;  %v35827_v33 = vld [vmem:[#allocation28_spill] sm:$0xff] }
 0x5b4   :  { %24439 = vmatmul.mubr.f32.gmra.mrb[86].mxu1 %v32265_v23  ;;  %v35828_v23 = vld [vmem:[#allocation29_spill] sm:$0xff] }
 0x5b5   :  { %24441 = vmatprep.mubr.f32.mxu1 %v32268_v55  ;;  %v35829_v55 = vld [vmem:[#allocation30_spill] sm:$0xff] }
 0x5b8   :  { %24442 = vmatmul.mubr.f32.gmra.mrb[88].mxu1 %v32271_v41  ;;  %v35830_v41 = vld [vmem:[#allocation31_spill] sm:$0xff] }
 0x5b9   :  { %24444 = vmatprep.mubr.f32.mxu1 %v32274_v14  ;;  %v35831_v14 = vld [vmem:[#allocation32_spill] sm:$0xff] }
 0x5bc   :  { %24445 = vmatmul.mubr.f32.gmra.mrb[90].mxu1 %v32277_v24  ;;  %v32928_v24 = vld [vmem:[#allocation2 + $0x332] sm:$0xff] }
 0x5bd   :  { %24447 = vmatprep.mubr.f32.mxu1 %v32280_v21  ;;  %v32931_v21 = vld [vmem:[#allocation2 + $0x33a] sm:$0xff] }
 0x5c0   :  { %24448 = vmatmul.mubr.f32.gmra.mrb[92].mxu1 %v32283_v19  ;;  %v20171_v19 = vld [vmem:[%s35146_s4 + $0x390] sm:$0xff] }
 0x5c1   :  { %24450 = vmatprep.mubr.f32.mxu1 %v32886_v63 }
 0x5c4   :  { %24451 = vmatmul.mubr.f32.gmra.mrb[94].mxu1 %v32889_v43 }
 0x5c5   :  { %24453 = vmatprep.mubr.f32.mxu1 %v32294_v62  ;;  %v20172_v62 = vld [vmem:[%s35146_s4 + $0x398] sm:$0xff] }
 0x5c8   :  { %24454 = vmatmul.mubr.f32.gmra.mrb[96].mxu1 %v32298_v57  ;;  %v35832_v57 = vld [vmem:[#allocation33_spill] sm:$0xff] }
 0x5c9   :  { %24456 = vmatprep.mubr.f32.mxu1 %v32301_v49  ;;  %v26588_v49 = vpack.c.bf16 %v20172_v62, %v20171_v19  ;;  %v35861_v62 = vld [vmem:[#allocation62_spill] sm:$0xff] }
 0x5cc   :  { %24457 = vmatmul.mubr.f32.gmra.mrb[98].mxu1 %v32304_v17  ;;  %v20173_v17 = vld [vmem:[%s35146_s4 + $0x3a0] sm:$0xff] }
 0x5cd   :  { %24459 = vmatprep.mubr.f32.mxu1 %v32307_v50  ;;  %v20174_v50 = vld [vmem:[%s35146_s4 + $0x3a8] sm:$0xff] }
 0x5d0   :  { %24460 = vmatmul.mubr.f32.gmra.mrb[100].mxu1 %v32310_v39  ;;  %v35833_v39 = vld [vmem:[#allocation34_spill] sm:$0xff] }
 0x5d1   :  { %24462 = vmatprep.mubr.f32.mxu1 %v32313_v40  ;;  %v35834_v40 = vld [vmem:[#allocation35_spill] sm:$0xff] }
 0x5d4   :  { %24463 = vmatmul.mubr.f32.gmra.mrb[102].mxu1 %v32316_v10  ;;  %v26592_v10 = vpack.c.bf16 %v20174_v50, %v20173_v17  ;;  %v35864_v17 = vld [vmem:[#allocation65_spill] sm:$0xff]  ;;  %v35865_v50 = vld [vmem:[#allocation66_spill] sm:$0xff] }
 0x5d5   :  { %24465 = vmatprep.mubr.f32.mxu1 %v32319_v18  ;;  %v20175_v18 = vld [vmem:[%s35146_s4 + $0x3b0] sm:$0xff] }
 0x5d8   :  { %24466 = vmatmul.mubr.f32.gmra.mrb[104].mxu1 %v32322_v15  ;;  %v20176_v15 = vld [vmem:[%s35146_s4 + $0x3b8] sm:$0xff] }
 0x5d9   :  { %24468 = vmatprep.mubr.f32.mxu1 %v32325_v56  ;;  %v35835_v56 = vld [vmem:[#allocation36_spill] sm:$0xff] }
 0x5dc   :  { %24469 = vmatmul.mubr.f32.gmra.mrb[106].mxu1 %v32328_v53  ;;  %v35836_v53 = vld [vmem:[#allocation37_spill] sm:$0xff] }
 0x5dd   :  { %24471 = vmatprep.mubr.f32.mxu1 %v32331_v45  ;;  %v26596_v45 = vpack.c.bf16 %v20176_v15, %v20175_v18  ;;  %v35869_v18 = vld [vmem:[#allocation70_spill] sm:$0xff]  ;;  %v35870_v15 = vld [vmem:[#allocation71_spill] sm:$0xff] }
 0x5e0   :  { %24472 = vmatmul.mubr.f32.gmra.mrb[108].mxu1 %v32334_v29  ;;  %v20177_v29 = vld [vmem:[%s35146_s4 + $0x3c0] sm:$0xff] }
 0x5e1   :  { %24474 = vmatprep.mubr.f32.mxu1 %v32337_v60  ;;  %v20178_v60 = vld [vmem:[%s35146_s4 + $0x3c8] sm:$0xff] }
 0x5e4   :  { %24475 = vmatmul.mubr.f32.gmra.mrb[110].mxu1 %v32340_v44  ;;  %v35837_v44 = vld [vmem:[#allocation38_spill] sm:$0xff] }
 0x5e5   :  { %24477 = vmatprep.mubr.f32.mxu1 %v32343_v51  ;;  %v35838_v51 = vld [vmem:[#allocation39_spill] sm:$0xff] }
 0x5e8   :  { %24478 = vmatmul.mubr.f32.gmra.mrb[112].mxu1 %v32346_v4  ;;  %v26600_v4 = vpack.c.bf16 %v20178_v60, %v20177_v29  ;;  %v35874_v29 = vld [vmem:[#allocation75_spill] sm:$0xff]  ;;  %v35875_v60 = vld [vmem:[#allocation76_spill] sm:$0xff] }
 0x5e9   :  { %24480 = vmatprep.mubr.f32.mxu1 %v35820_v27  ;;  %v35852_v27 = vld [vmem:[#allocation53_spill] sm:$0xff] }
 0x5ec   :  { %24481 = vmatmul.mubr.f32.gmra.mrb[114].mxu1 %v35821_v30  ;;  %v35853_v30 = vld [vmem:[#allocation54_spill] sm:$0xff] }
 0x5ed   :  { %24483 = vmatprep.mubr.f32.mxu1 %v35822_v26  ;;  %v35854_v26 = vld [vmem:[#allocation55_spill] sm:$0xff] }
 0x5f0   :  { %24484 = vmatmul.mubr.f32.gmra.mrb[116].mxu1 %v35823_v32  ;;  %v35855_v32 = vld [vmem:[#allocation56_spill] sm:$0xff] }
 0x5f1   :  { %24486 = vmatprep.mubr.f32.mxu1 %v35824_v34  ;;  %v35856_v34 = vld [vmem:[#allocation57_spill] sm:$0xff] }
 0x5f4   :  { %24487 = vmatmul.mubr.f32.gmra.mrb[118].mxu1 %v35825_v7  ;;  %v35857_v7 = vld [vmem:[#allocation58_spill] sm:$0xff] }
 0x5f5   :  { %24489 = vmatprep.mubr.f32.mxu1 %v35826_v20  ;;  %v35858_v20 = vld [vmem:[#allocation59_spill] sm:$0xff] }
 0x5f8   :  { %24490 = vmatmul.mubr.f32.gmra.mrb[120].mxu1 %v35827_v33  ;;  %v35859_v33 = vld [vmem:[#allocation60_spill] sm:$0xff] }
 0x5f9   :  { %24492 = vmatprep.mubr.f32.mxu1 %v35828_v23  ;;  %v33006_v23 = vld [vmem:[#allocation2] sm:$0xff] }
 0x5fc   :  { %24493 = vmatmul.mubr.f32.gmra.mrb[122].mxu1 %v35829_v55  ;;  %v35860_v55 = vld [vmem:[#allocation61_spill] sm:$0xff] }
 0x5fd   :  { %24495 = vmatprep.mubr.f32.mxu1 %v35830_v41  ;;  %v20185_v41 = vld [vmem:[%s35146_s4 + $0x400] sm:$0xff] }
 0x600   :  { %24496 = vmatmul.mubr.f32.gmra.mrb[124].mxu1 %v35831_v14  ;;  %v20186_v14 = vld [vmem:[%s35146_s4 + $0x408] sm:$0xff] }
 0x601   :  { %24498 = vmatprep.mubr.f32.mxu1 %v32928_v24  ;;  %v26616_v19 = vpack.c.bf16 %v20186_v14, %v20185_v41  ;;  %v20200_v14 = vld [vmem:[%s35146_s4 + $0x478] sm:$0xff] }
 0x604   :  { %24499 = vmatmul.mubr.f32.gmra.mrb[126].mxu1 %v32931_v21 }
 0x605   :  { %24533 = vmatprep.mubr.f32.mxu1 %v35832_v57  ;;  %v35862_v57 = vld [vmem:[#allocation63_spill] sm:$0xff] }
 0x608   :  { %24534 = vmatmul.mubr.f32.vlgmr.msra.gmra.mrb[64].mxu1 %v35833_v39  ;;  %v35866_v39 = vld [vmem:[#allocation67_spill] sm:$0xff] }
 0x609   :  { %24536 = vmatprep.mubr.f32.mxu1 %v35834_v40  ;;  %26587 = vmatpush3.bf16.msra.mxu1 %v26584_v13  ;;  %v35851_v13 = vld [vmem:[#allocation52_spill] sm:$0xff] }
 0x60a   :  { %26589 = vmatprep.subr.bf16.mxu1 %v26588_v49  ;;  %v35867_v40 = vld [vmem:[#allocation68_spill] sm:$0xff] }
 0x60c   :  { %24537 = vmatmul.mubr.f32.gmra.mrb[66].mxu1 %v35835_v56  ;;  %v35871_v56 = vld [vmem:[#allocation72_spill] sm:$0xff] }
 0x60d   :  { %24539 = vmatprep.mubr.f32.mxu1 %v35836_v53  ;;  %26591 = vmatpush3.bf16.msra.mxu1 %v26588_v49  ;;  %v35863_v49 = vld [vmem:[#allocation64_spill] sm:$0xff]  ;;  %v35872_v53 = vld [vmem:[#allocation73_spill] sm:$0xff] }
 0x60e   :  { %26593 = vmatprep.subr.bf16.mxu1 %v26592_v10 }
 0x610   :  { %24540 = vmatmul.mubr.f32.gmra.mrb[68].mxu1 %v35837_v44  ;;  %v35876_v44 = vld [vmem:[#allocation77_spill] sm:$0xff] }
 0x611   :  { %24542 = vmatprep.mubr.f32.mxu1 %v35838_v51  ;;  %26595 = vmatpush3.bf16.msra.mxu1 %v26592_v10  ;;  %v35868_v10 = vld [vmem:[#allocation69_spill] sm:$0xff]  ;;  %v10645_v51 = vld [vmem:[#allocation2 + $0x2b8] sm:$0xff] }
 0x612   :  { %26597 = vmatprep.subr.bf16.mxu1 %v26596_v45 }
 0x614   :  { %24543 = vmatmul.mubr.f32.gmra.mrb[70].mxu1 %v35839_v59  ;;  %v10649_v59 = vld [vmem:[#allocation2 + $0x2e8] sm:$0xff] }
 0x615   :  { %24545 = vmatprep.mubr.f32.mxu1 %v35840_v12  ;;  %26599 = vmatpush3.bf16.msra.mxu1 %v26596_v45  ;;  %v35873_v45 = vld [vmem:[#allocation74_spill] sm:$0xff] }
 0x616   :  { %26601 = vmatprep.subr.bf16.mxu1 %v26600_v4  ;;  %v10650_v12 = vld [vmem:[#allocation2 + $0x2f0] sm:$0xff] }
 0x618   :  { %24546 = vmatmul.mubr.f32.gmra.mrb[72].mxu1 %v35841_v25  ;;  %v35877_v25 = vld [vmem:[#allocation22_spill] sm:$0xff] }
 0x619   :  { %24548 = vmatprep.mubr.f32.mxu1 %v32458_v2  ;;  %26603 = vmatpush3.bf16.msra.mxu1 %v26600_v4  ;;  %v35844_v2 = vld [vmem:[#allocation45_spill] sm:$0xff]  ;;  %v10646_v4 = vld [vmem:[#allocation2 + $0x2c0] sm:$0xff] }
 0x61a   :  { %26605 = vmatprep.subr.bf16.mxu1 %v26604_v47 }
 0x61c   :  { %24549 = vmatmul.mubr.f32.gmra.mrb[74].mxu1 %v32461_v38  ;;  %v35849_v38 = vld [vmem:[#allocation50_spill] sm:$0xff] }
 0x61d   :  { %24551 = vmatprep.mubr.f32.mxu1 %v35842_v36  ;;  %26607 = vmatpush3.bf16.msra.mxu1 %v26604_v47  ;;  %v10652_v47 = vld [vmem:[#allocation2 + $0x308] sm:$0xff] }
 0x61e   :  { %26609 = vmatprep.subr.bf16.mxu1 %v26608_v1 }
 0x620   :  { %24552 = vmatmul.mubr.f32.gmra.mrb[76].mxu1 %v35843_v54  ;;  %v20190_v54 = vld [vmem:[%s35146_s4 + $0x428] sm:$0xff] }
 0x621   :  { %24554 = vmatprep.mubr.f32.mxu1 %v35844_v2  ;;  %26611 = vmatpush3.bf16.msra.mxu1 %v26608_v1  ;;  %v20187_v1 = vld [vmem:[%s35146_s4 + $0x410] sm:$0xff] }
 0x622   :  { %26613 = vmatprep.subr.bf16.mxu1 %v26612_v22  ;;  %v26620_v36 = vpack.c.bf16 %v20188_v48, %v20187_v1  ;;  %v11255_v2 = vld [vmem:[#allocation2 + $0x49] sm:$0xff]  ;;  %v35906_v1 = vld [vmem:[#allocation94_spill] sm:$0xff]  ;;  %v35907_v48 = vld [vmem:[#allocation95_spill] sm:$0xff] }
 0x624   :  { %24555 = vmatmul.mubr.f32.gmra.mrb[78].mxu1 %v35845_v9 }
 0x625   :  { %24557 = vmatprep.mubr.f32.mxu1 %v35846_v31  ;;  %26615 = vmatpush3.bf16.msra.mxu1 %v26612_v22  ;;  %v11254_v22 = vld [vmem:[#allocation2 + $0x39] sm:$0xff]  ;;  %v11256_v31 = vld [vmem:[#allocation2 + $0x51] sm:$0xff] }
 0x626   :  { %26617 = vmatprep.subr.bf16.mxu1 %v26616_v19 }
 0x628   :  { %24558 = vmatmul.mubr.f32.gmra.mrb[80].mxu1 %v35847_v11  ;;  %v20191_v11 = vld [vmem:[%s35146_s4 + $0x430] sm:$0xff] }
 0x629   :  { %24560 = vmatprep.mubr.f32.mxu1 %v35848_v16  ;;  %v20192_v16 = vld [vmem:[%s35146_s4 + $0x438] sm:$0xff] }
 0x62c   :  { %24561 = vmatmul.mubr.f32.gmra.mrb[82].mxu1 %v35849_v38  ;;  %v11257_v38 = vld [vmem:[#allocation2 + $0x61] sm:$0xff] }
 0x62d   :  { %24563 = vmatprep.mubr.f32.mxu1 %v35850_v61  ;;  %v26628_v61 = vpack.c.bf16 %v20192_v16, %v20191_v11  ;;  %v35916_v11 = vld [vmem:[#allocation104_spill] sm:$0xff]  ;;  %v35917_v16 = vld [vmem:[#allocation105_spill] sm:$0xff] }
 0x630   :  { %24564 = vmatmul.mubr.f32.gmra.mrb[84].mxu1 %v35851_v13  ;;  %v11258_v13 = vld [vmem:[#allocation2 + $0x69] sm:$0xff] }
 0x631   :  { %24566 = vmatprep.mubr.f32.mxu1 %v35852_v27  ;;  %v20193_v27 = vld [vmem:[%s35146_s4 + $0x440] sm:$0xff] }
 0x634   :  { %24567 = vmatmul.mubr.f32.gmra.mrb[86].mxu1 %v35853_v30  ;;  %v20194_v30 = vld [vmem:[%s35146_s4 + $0x448] sm:$0xff] }
 0x635   :  { %24569 = vmatprep.mubr.f32.mxu1 %v35854_v26  ;;  %v26632_v26 = vpack.c.bf16 %v20194_v30, %v20193_v27  ;;  %v35921_v27 = vld [vmem:[#allocation109_spill] sm:$0xff]  ;;  %v35922_v30 = vld [vmem:[#allocation110_spill] sm:$0xff] }
 0x638   :  { %24570 = vmatmul.mubr.f32.gmra.mrb[88].mxu1 %v35855_v32  ;;  %v11260_v32 = vld [vmem:[#allocation2 + $0x81] sm:$0xff] }
 0x639   :  { %24572 = vmatprep.mubr.f32.mxu1 %v35856_v34  ;;  %v20195_v34 = vld [vmem:[%s35146_s4 + $0x450] sm:$0xff] }
 0x63c   :  { %24573 = vmatmul.mubr.f32.gmra.mrb[90].mxu1 %v35857_v7  ;;  %v20196_v7 = vld [vmem:[%s35146_s4 + $0x458] sm:$0xff] }
 0x63d   :  { %24575 = vmatprep.mubr.f32.mxu1 %v35858_v20  ;;  %v26636_v20 = vpack.c.bf16 %v20196_v7, %v20195_v34  ;;  %v35925_v34 = vld [vmem:[#allocation113_spill] sm:$0xff] }
 0x63e   :  { %v11315_v7 = vld [vmem:[#allocation2 + $0x349] sm:$0xff] }
 0x640   :  { %24576 = vmatmul.mubr.f32.gmra.mrb[92].mxu1 %v35859_v33  ;;  %v20198_v33 = vld [vmem:[%s35146_s4 + $0x468] sm:$0xff] }
 0x641   :  { %24578 = vmatprep.mubr.f32.mxu1 %v33006_v23 }
 0x644   :  { %24579 = vmatmul.mubr.f32.gmra.mrb[94].mxu1 %v33006_v23 }
 0x645   :  { %24581 = vmatprep.mubr.f32.mxu1 %v35860_v55  ;;  %v35878_v55 = vld [vmem:[#allocation9_spill] sm:$0xff] }
 0x648   :  { %24582 = vmatmul.mubr.f32.gmra.mrb[96].mxu1 %v35861_v62 }
 0x649   :  { %24584 = vmatprep.mubr.f32.mxu1 %v35862_v57  ;;  %v35880_v57 = vld [vmem:[#allocation11_spill] sm:$0xff] }
 0x64c   :  { %24585 = vmatmul.mubr.f32.gmra.mrb[98].mxu1 %v35863_v49  ;;  %v35882_v49 = vld [vmem:[#allocation13_spill] sm:$0xff] }
 0x64d   :  { %24587 = vmatprep.mubr.f32.mxu1 %v35864_v17  ;;  %v35883_v17 = vld [vmem:[#allocation14_spill] sm:$0xff] }
 0x650   :  { %24588 = vmatmul.mubr.f32.gmra.mrb[100].mxu1 %v35865_v50  ;;  %v35884_v50 = vld [vmem:[#allocation15_spill] sm:$0xff] }
 0x651   :  { %24590 = vmatprep.mubr.f32.mxu1 %v35866_v39  ;;  %v35885_v39 = vld [vmem:[#allocation16_spill] sm:$0xff] }
 0x654   :  { %24591 = vmatmul.mubr.f32.gmra.mrb[102].mxu1 %v35867_v40  ;;  %v35887_v40 = vld [vmem:[#allocation18_spill] sm:$0xff] }
 0x655   :  { %24593 = vmatprep.mubr.f32.mxu1 %v35868_v10  ;;  %v35888_v10 = vld [vmem:[#allocation19_spill] sm:$0xff] }
 0x658   :  { %24594 = vmatmul.mubr.f32.gmra.mrb[104].mxu1 %v35869_v18  ;;  %v35889_v18 = vld [vmem:[#allocation20_spill] sm:$0xff] }
 0x659   :  { %24596 = vmatprep.mubr.f32.mxu1 %v35870_v15  ;;  %v35890_v15 = vld [vmem:[#allocation78_spill] sm:$0xff] }
 0x65c   :  { %24597 = vmatmul.mubr.f32.gmra.mrb[106].mxu1 %v35871_v56  ;;  %v35891_v56 = vld [vmem:[#allocation79_spill] sm:$0xff] }
 0x65d   :  { %24599 = vmatprep.mubr.f32.mxu1 %v35872_v53  ;;  %v35892_v53 = vld [vmem:[#allocation80_spill] sm:$0xff] }
 0x660   :  { %24600 = vmatmul.mubr.f32.gmra.mrb[108].mxu1 %v32563_v0  ;;  %v10651_v0 = vld [vmem:[#allocation2 + $0x300] sm:$0xff] }
 0x661   :  { %24602 = vmatprep.mubr.f32.mxu1 %v35873_v45  ;;  %v35893_v45 = vld [vmem:[#allocation81_spill] sm:$0xff] }
 0x664   :  { %24603 = vmatmul.mubr.f32.gmra.mrb[110].mxu1 %v35874_v29  ;;  %v35894_v29 = vld [vmem:[#allocation82_spill] sm:$0xff] }
 0x665   :  { %24605 = vmatprep.mubr.f32.mxu1 %v35875_v60  ;;  %v35895_v60 = vld [vmem:[#allocation83_spill] sm:$0xff] }
 0x668   :  { %24606 = vmatmul.mubr.f32.gmra.mrb[112].mxu1 %v35876_v44  ;;  %v11283_v44 = vld [vmem:[#allocation2 + $0x199] sm:$0xff] }
 0x669   :  { %24608 = vmatprep.mubr.f32.mxu1 %v10645_v51  ;;  %v35896_v51 = vld [vmem:[#allocation84_spill] sm:$0xff] }
 0x66c   :  { %24609 = vmatmul.mubr.f32.gmra.mrb[114].mxu1 %v10646_v4  ;;  %v11284_v4 = vld [vmem:[#allocation2 + $0x1a1] sm:$0xff] }
 0x66d   :  { %24611 = vmatprep.mubr.f32.mxu1 %v10647_v37  ;;  %v35897_v37 = vld [vmem:[#allocation85_spill] sm:$0xff] }
 0x670   :  { %24612 = vmatmul.mubr.f32.gmra.mrb[116].mxu1 %v10648_v52  ;;  %v35898_v52 = vld [vmem:[#allocation86_spill] sm:$0xff] }
 0x671   :  { %24614 = vmatprep.mubr.f32.mxu1 %v10649_v59  ;;  %v35899_v59 = vld [vmem:[#allocation87_spill] sm:$0xff] }
 0x674   :  { %24615 = vmatmul.mubr.f32.gmra.mrb[118].mxu1 %v10650_v12  ;;  %v35900_v12 = vld [vmem:[#allocation88_spill] sm:$0xff] }
 0x675   :  { %24617 = vmatprep.mubr.f32.mxu1 %v10651_v0  ;;  %v35901_v0 = vld [vmem:[#allocation89_spill] sm:$0xff] }
 0x678   :  { %24618 = vmatmul.mubr.f32.gmra.mrb[120].mxu1 %v10652_v47  ;;  %v35902_v47 = vld [vmem:[#allocation90_spill] sm:$0xff] }
 0x679   :  { %24620 = vmatprep.mubr.f32.mxu1 %v10653_v46  ;;  %v35903_v46 = vld [vmem:[#allocation91_spill] sm:$0xff] }
 0x67c   :  { %24621 = vmatmul.mubr.f32.gmra.mrb[122].mxu1 %v10654_v58  ;;  %v35904_v58 = vld [vmem:[#allocation92_spill] sm:$0xff] }
 0x67d   :  { %24623 = vmatprep.mubr.f32.mxu1 %v32588_v6  ;;  %v20189_v6 = vld [vmem:[%s35146_s4 + $0x420] sm:$0xff] }
 0x67e   :  { %v26624_v9 = vpack.c.bf16 %v20190_v54, %v20189_v6  ;;  %v35911_v6 = vld [vmem:[#allocation99_spill] sm:$0xff]  ;;  %v35912_v54 = vld [vmem:[#allocation100_spill] sm:$0xff] }
 0x680   :  { %24624 = vmatmul.mubr.f32.gmra.mrb[124].mxu1 %v35877_v25  ;;  %v35905_v25 = vld [vmem:[#allocation93_spill] sm:$0xff] }
 0x681   :  { %24626 = vmatprep.mubr.f32.mxu1 %v33006_v23 }
 0x684   :  { %24627 = vmatmul.mubr.f32.gmra.mrb[126].mxu1 %v33006_v23 }
 0x685   :  { %24661 = vmatprep.mubr.f32.mxu1 %v11253_v35  ;;  %v35908_v35 = vld [vmem:[#allocation96_spill] sm:$0xff] }
 0x688   :  { %24662 = vmatmul.mubr.f32.vlgmr.msra.gmra.mrb[64].mxu1 %v11254_v22  ;;  %v35910_v22 = vld [vmem:[#allocation98_spill] sm:$0xff] }
 0x689   :  { %24664 = vmatprep.mubr.f32.mxu1 %v11255_v2  ;;  %26619 = vmatpush3.bf16.msra.mxu1 %v26616_v19  ;;  %v35879_v19 = vld [vmem:[#allocation10_spill] sm:$0xff]  ;;  %v35913_v2 = vld [vmem:[#allocation101_spill] sm:$0xff] }
 0x68a   :  { %26621 = vmatprep.subr.bf16.mxu1 %v26620_v36 }
 0x68c   :  { %24665 = vmatmul.mubr.f32.gmra.mrb[66].mxu1 %v11256_v31  ;;  %v35915_v31 = vld [vmem:[#allocation103_spill] sm:$0xff] }
 0x68d   :  { %24667 = vmatprep.mubr.f32.mxu1 %v11257_v38  ;;  %26623 = vmatpush3.bf16.msra.mxu1 %v26620_v36  ;;  %v35909_v36 = vld [vmem:[#allocation97_spill] sm:$0xff]  ;;  %v35918_v38 = vld [vmem:[#allocation106_spill] sm:$0xff] }
 0x68e   :  { %26625 = vmatprep.subr.bf16.mxu1 %v26624_v9 }
 0x690   :  { %24668 = vmatmul.mubr.f32.gmra.mrb[68].mxu1 %v11258_v13  ;;  %v35920_v13 = vld [vmem:[#allocation108_spill] sm:$0xff] }
 0x691   :  { %24670 = vmatprep.mubr.f32.mxu1 %v32632_v42  ;;  %26627 = vmatpush3.bf16.msra.mxu1 %v26624_v9  ;;  %v20197_v42 = vld [vmem:[%s35146_s4 + $0x460] sm:$0xff]  ;;  %v35914_v9 = vld [vmem:[#allocation102_spill] sm:$0xff] }
 0x692   :  { %26629 = vmatprep.subr.bf16.mxu1 %v26628_v61  ;;  %v26640_v41 = vpack.c.bf16 %v20198_v33, %v20197_v42  ;;  %v11911_v42 = vld [vmem:[#allocation2 + $0x32] sm:$0xff]  ;;  %v13160_v33 = vld [vmem:[%s35149_s7] sm:$0xff] }
 0x694   :  { %24671 = vmatmul.mubr.f32.gmra.mrb[70].mxu1 %v11260_v32  ;;  %v35924_v32 = vld [vmem:[#allocation112_spill] sm:$0xff] }
 0x695   :  { %24673 = vmatprep.mubr.f32.mxu1 %v32642_v8  ;;  %26631 = vmatpush3.bf16.msra.mxu1 %v26628_v61  ;;  %v20199_v8 = vld [vmem:[%s35146_s4 + $0x470] sm:$0xff]  ;;  %v35919_v61 = vld [vmem:[#allocation107_spill] sm:$0xff] }
 0x696   :  { %26633 = vmatprep.subr.bf16.mxu1 %v26632_v26  ;;  %v26644_v62 = vpack.c.bf16 %v20200_v14, %v20199_v8 }
 0x698   :  { %24674 = vmatmul.mubr.f32.gmra.mrb[72].mxu1 %v35878_v55  ;;  %v13161_v55 = vld [vmem:[%s35149_s7 + $0x8] sm:$0xff] }
 0x699   :  { %24676 = vmatprep.mubr.f32.mxu1 %v32654_v3  ;;  %26635 = vmatpush3.bf16.msra.mxu1 %v26632_v26  ;;  %v35881_v3 = vld [vmem:[#allocation12_spill] sm:$0xff]  ;;  %v35923_v26 = vld [vmem:[#allocation111_spill] sm:$0xff]  ;;  %v26648_v8 = vpack.c.bf16 %v13161_v55, %v13160_v33  ;;  %v11958_v55 = vld [vmem:[#allocation2 + $0x292] sm:$0xff] }
 0x69a   :  { %26637 = vmatprep.subr.bf16.mxu1 %v26636_v20 }
 0x69b   :  { %26649 = vmatprep.subr.bf16.mxu0 %v26648_v8 }
 0x69c   :  { %24677 = vmatmul.mubr.f32.gmra.mrb[74].mxu1 %v32657_v5  ;;  %v35886_v5 = vld [vmem:[#allocation17_spill] sm:$0xff]  ;;  %26651 = vmatpush3.bf16.msra.mxu0 %v26648_v8 }
 0x69d   :  { %24679 = vmatprep.mubr.f32.mxu1 %v35879_v19  ;;  %26639 = vmatpush3.bf16.msra.mxu1 %v26636_v20  ;;  %v11316_v20 = vld [vmem:[#allocation2 + $0x351] sm:$0xff]  ;;  %v13164_v19 = vld [vmem:[%s35149_s7 + $0x20] sm:$0xff]  ;;  %v13173_v8 = vld [vmem:[%s35149_s7 + $0x68] sm:$0xff] }
 0x69e   :  { %26641 = vmatprep.subr.bf16.mxu1 %v26640_v41 }
 0x6a0   :  { %24680 = vmatmul.mubr.f32.gmra.mrb[76].mxu1 %v35880_v57  ;;  %v11912_v57 = vld [vmem:[#allocation2 + $0x3a] sm:$0xff] }
 0x6a1   :  { %24682 = vmatprep.mubr.f32.mxu1 %v35881_v3  ;;  %26643 = vmatpush3.bf16.msra.mxu1 %v26640_v41  ;;  %v13162_v41 = vld [vmem:[%s35149_s7 + $0x10] sm:$0xff] }
 0x6a2   :  { %26645 = vmatprep.subr.bf16.mxu1 %v26644_v62  ;;  %v11913_v3 = vld [vmem:[#allocation2 + $0x4a] sm:$0xff] }
 0x6a4   :  { %24683 = vmatmul.mubr.f32.gmra.mrb[78].mxu1 %v35882_v49 }
 0x6a5   :  { %24685 = vmatprep.mubr.f32.mxu1 %v35883_v17  ;;  %26647 = vmatpush3.bf16.msra.mxu1 %v26644_v62  ;;  %v13165_v62 = vld [vmem:[%s35149_s7 + $0x28] sm:$0xff]  ;;  %v13166_v17 = vld [vmem:[%s35149_s7 + $0x30] sm:$0xff] }
 0x6a6   :  { %v26656_v49 = vpack.c.bf16 %v13165_v62, %v13164_v19  ;;  %v11960_v19 = vld [vmem:[#allocation2 + $0x2aa] sm:$0xff] }
 0x6a7   :  { %v13174_v62 = vld [vmem:[%s35149_s7 + $0x70] sm:$0xff] }
 0x6a8   :  { %24686 = vmatmul.mubr.f32.gmra.mrb[80].mxu1 %v35884_v50  ;;  %v13167_v50 = vld [vmem:[%s35149_s7 + $0x38] sm:$0xff] }
 0x6a9   :  { %24688 = vmatprep.mubr.f32.mxu1 %v35885_v39  ;;  %v11914_v39 = vld [vmem:[#allocation2 + $0x52] sm:$0xff] }
 0x6ac   :  { %24689 = vmatmul.mubr.f32.gmra.mrb[82].mxu1 %v35886_v5  ;;  %v11915_v5 = vld [vmem:[#allocation2 + $0x62] sm:$0xff] }
 0x6ad   :  { %24691 = vmatprep.mubr.f32.mxu1 %v35887_v40  ;;  %v26660_v40 = vpack.c.bf16 %v13167_v50, %v13166_v17  ;;  %v11962_v17 = vld [vmem:[#allocation2 + $0x2c2] sm:$0xff]  ;;  %v11963_v50 = vld [vmem:[#allocation2 + $0x2d2] sm:$0xff] }
 0x6b0   :  { %24692 = vmatmul.mubr.f32.gmra.mrb[84].mxu1 %v35888_v10  ;;  %v13168_v10 = vld [vmem:[%s35149_s7 + $0x40] sm:$0xff] }
 0x6b1   :  { %24694 = vmatprep.mubr.f32.mxu1 %v35889_v18  ;;  %v13169_v18 = vld [vmem:[%s35149_s7 + $0x48] sm:$0xff] }
 0x6b4   :  { %24695 = vmatmul.mubr.f32.gmra.mrb[86].mxu1 %v35890_v15  ;;  %v11916_v15 = vld [vmem:[#allocation2 + $0x6a] sm:$0xff] }
 0x6b5   :  { %24697 = vmatprep.mubr.f32.mxu1 %v35891_v56  ;;  %v11917_v56 = vld [vmem:[#allocation2 + $0x7a] sm:$0xff] }
 0x6b8   :  { %24698 = vmatmul.mubr.f32.gmra.mrb[88].mxu1 %v35892_v53  ;;  %v26664_v53 = vpack.c.bf16 %v13169_v18, %v13168_v10  ;;  %v11967_v10 = vld [vmem:[#allocation2 + $0x302] sm:$0xff]  ;;  %v11968_v18 = vld [vmem:[#allocation2 + $0x30a] sm:$0xff] }
 0x6b9   :  { %24700 = vmatprep.mubr.f32.mxu1 %v35893_v45  ;;  %v11918_v45 = vld [vmem:[#allocation2 + $0x82] sm:$0xff] }
 0x6bc   :  { %24701 = vmatmul.mubr.f32.gmra.mrb[90].mxu1 %v35894_v29  ;;  %v11919_v29 = vld [vmem:[#allocation2 + $0x92] sm:$0xff] }
 0x6bd   :  { %24703 = vmatprep.mubr.f32.mxu1 %v35895_v60  ;;  %v11920_v60 = vld [vmem:[#allocation2 + $0x9a] sm:$0xff] }
 0x6c0   :  { %24704 = vmatmul.mubr.f32.gmra.mrb[92].mxu1 %v35896_v51  ;;  %v11922_v51 = vld [vmem:[#allocation2 + $0xb2] sm:$0xff] }
 0x6c1   :  { %24706 = vmatprep.mubr.f32.mxu1 %v11283_v44  ;;  %v11921_v44 = vld [vmem:[#allocation2 + $0xaa] sm:$0xff] }
 0x6c4   :  { %24707 = vmatmul.mubr.f32.gmra.mrb[94].mxu1 %v11284_v4  ;;  %v11923_v4 = vld [vmem:[#allocation2 + $0xc2] sm:$0xff] }
 0x6c5   :  { %24709 = vmatprep.mubr.f32.mxu1 %v35897_v37  ;;  %v11924_v37 = vld [vmem:[#allocation2 + $0xca] sm:$0xff] }
 0x6c8   :  { %24710 = vmatmul.mubr.f32.gmra.mrb[96].mxu1 %v35898_v52  ;;  %v11925_v52 = vld [vmem:[#allocation2 + $0xda] sm:$0xff] }
 0x6c9   :  { %24712 = vmatprep.mubr.f32.mxu1 %v35899_v59  ;;  %v11926_v59 = vld [vmem:[#allocation2 + $0xe2] sm:$0xff] }
 0x6cc   :  { %24713 = vmatmul.mubr.f32.gmra.mrb[98].mxu1 %v35900_v12  ;;  %v11927_v12 = vld [vmem:[#allocation2 + $0xf2] sm:$0xff] }
 0x6cd   :  { %24715 = vmatprep.mubr.f32.mxu1 %v35901_v0  ;;  %v11928_v0 = vld [vmem:[#allocation2 + $0xfa] sm:$0xff] }
 0x6d0   :  { %24716 = vmatmul.mubr.f32.gmra.mrb[100].mxu1 %v35902_v47  ;;  %v11929_v47 = vld [vmem:[#allocation2 + $0x10a] sm:$0xff] }
 0x6d1   :  { %24718 = vmatprep.mubr.f32.mxu1 %v35903_v46  ;;  %v11930_v46 = vld [vmem:[#allocation2 + $0x112] sm:$0xff] }
 0x6d4   :  { %24719 = vmatmul.mubr.f32.gmra.mrb[102].mxu1 %v35904_v58  ;;  %v11931_v58 = vld [vmem:[#allocation2 + $0x122] sm:$0xff] }
 0x6d5   :  { %24721 = vmatprep.mubr.f32.mxu1 %v35905_v25  ;;  %v11932_v25 = vld [vmem:[#allocation2 + $0x12a] sm:$0xff] }
 0x6d8   :  { %24722 = vmatmul.mubr.f32.gmra.mrb[104].mxu1 %v35906_v1  ;;  %v11933_v1 = vld [vmem:[#allocation2 + $0x13a] sm:$0xff] }
 0x6d9   :  { %24724 = vmatprep.mubr.f32.mxu1 %v35907_v48  ;;  %v11934_v48 = vld [vmem:[#allocation2 + $0x142] sm:$0xff] }
 0x6dc   :  { %24725 = vmatmul.mubr.f32.gmra.mrb[106].mxu1 %v35908_v35  ;;  %v11935_v35 = vld [vmem:[#allocation2 + $0x152] sm:$0xff] }
 0x6dd   :  { %24727 = vmatprep.mubr.f32.mxu1 %v35909_v36  ;;  %v11936_v36 = vld [vmem:[#allocation2 + $0x15a] sm:$0xff] }
 0x6e0   :  { %24728 = vmatmul.mubr.f32.gmra.mrb[108].mxu1 %v35910_v22  ;;  %v11937_v22 = vld [vmem:[#allocation2 + $0x16a] sm:$0xff] }
 0x6e1   :  { %24730 = vmatprep.mubr.f32.mxu1 %v35911_v6  ;;  %v11938_v6 = vld [vmem:[#allocation2 + $0x172] sm:$0xff] }
 0x6e4   :  { %24731 = vmatmul.mubr.f32.gmra.mrb[110].mxu1 %v35912_v54  ;;  %v11941_v54 = vld [vmem:[#allocation2 + $0x19a] sm:$0xff] }
 0x6e5   :  { %24733 = vmatprep.mubr.f32.mxu1 %v35913_v2  ;;  %v11942_v2 = vld [vmem:[#allocation2 + $0x1a2] sm:$0xff] }
 0x6e8   :  { %24734 = vmatmul.mubr.f32.gmra.mrb[112].mxu1 %v35914_v9  ;;  %v11943_v9 = vld [vmem:[#allocation2 + $0x1e2] sm:$0xff] }
 0x6e9   :  { %24736 = vmatprep.mubr.f32.mxu1 %v35915_v31  ;;  %v11944_v31 = vld [vmem:[#allocation2 + $0x1ea] sm:$0xff] }
 0x6ec   :  { %24737 = vmatmul.mubr.f32.gmra.mrb[114].mxu1 %v35916_v11  ;;  %v11945_v11 = vld [vmem:[#allocation2 + $0x1fa] sm:$0xff] }
 0x6ed   :  { %24739 = vmatprep.mubr.f32.mxu1 %v35917_v16  ;;  %v11946_v16 = vld [vmem:[#allocation2 + $0x202] sm:$0xff] }
 0x6f0   :  { %24740 = vmatmul.mubr.f32.gmra.mrb[116].mxu1 %v35918_v38  ;;  %v11947_v38 = vld [vmem:[#allocation2 + $0x212] sm:$0xff] }
 0x6f1   :  { %24742 = vmatprep.mubr.f32.mxu1 %v35919_v61  ;;  %v11948_v61 = vld [vmem:[#allocation2 + $0x21a] sm:$0xff] }
 0x6f4   :  { %24743 = vmatmul.mubr.f32.gmra.mrb[118].mxu1 %v35920_v13  ;;  %v11949_v13 = vld [vmem:[#allocation2 + $0x22a] sm:$0xff] }
 0x6f5   :  { %24745 = vmatprep.mubr.f32.mxu1 %v35921_v27  ;;  %v11952_v27 = vld [vmem:[#allocation2 + $0x24a] sm:$0xff] }
 0x6f8   :  { %24746 = vmatmul.mubr.f32.gmra.mrb[120].mxu1 %v35922_v30  ;;  %v11953_v30 = vld [vmem:[#allocation2 + $0x25a] sm:$0xff] }
 0x6f9   :  { %24748 = vmatprep.mubr.f32.mxu1 %v35923_v26  ;;  %v11954_v26 = vld [vmem:[#allocation2 + $0x262] sm:$0xff] }
 0x6fc   :  { %24749 = vmatmul.mubr.f32.gmra.mrb[122].mxu1 %v35924_v32  ;;  %v11955_v32 = vld [vmem:[#allocation2 + $0x272] sm:$0xff] }
 0x6fd   :  { %24751 = vmatprep.mubr.f32.mxu1 %v35925_v34  ;;  %v11956_v34 = vld [vmem:[#allocation2 + $0x27a] sm:$0xff] }
 0x700   :  { %24752 = vmatmul.mubr.f32.gmra.mrb[124].mxu1 %v32810_v28  ;;  %v13163_v28 = vld [vmem:[%s35149_s7 + $0x18] sm:$0xff] }
 0x701   :  { %24754 = vmatprep.mubr.f32.mxu1 %v11315_v7  ;;  %v26652_v14 = vpack.c.bf16 %v13163_v28, %v13162_v41  ;;  %v13170_v7 = vld [vmem:[%s35149_s7 + $0x50] sm:$0xff]  ;;  %v13172_v41 = vld [vmem:[%s35149_s7 + $0x60] sm:$0xff] }
 0x702   :  { %v11959_v28 = vld [vmem:[#allocation2 + $0x2a2] sm:$0xff] }
 0x703   :  { %26653 = vmatprep.subr.bf16.mxu0 %v26652_v14 }
 0x704   :  { %24755 = vmatmul.mubr.f32.gmra.mrb[126].mxu1 %v11316_v20  ;;  %26655 = vmatpush3.bf16.msra.mxu0 %v26652_v14  ;;  %v13171_v20 = vld [vmem:[%s35149_s7 + $0x58] sm:$0xff]  ;;  %v26672_v14 = vpack.c.bf16 %v13173_v8, %v13172_v41 }
 0x705   :  { %24789 = vmatprep.mubr.f32.mxu1 %v11911_v42  ;;  %26657 = vmatprep.subr.bf16.mxu0 %v26656_v49  ;;  %v11957_v42 = vld [vmem:[#allocation2 + $0x28a] sm:$0xff]  ;;  %v26668_v33 = vpack.c.bf16 %v13171_v20, %v13170_v7 }
 0x708   :  { %24790 = vmatmul.mubr.f32.vlgmr.msra.gmra.mrb[64].mxu1 %v11912_v57  ;;  %26659 = vmatpush3.bf16.msra.mxu0 %v26656_v49  ;;  %v13175_v57 = vld [vmem:[%s35149_s7 + $0x78] sm:$0xff] }
 0x709   :  { %24792 = vmatprep.mubr.f32.mxu1 %v11913_v3  ;;  %26661 = vmatprep.subr.bf16.mxu0 %v26660_v40  ;;  %v11961_v3 = vld [vmem:[#allocation2 + $0x2ba] sm:$0xff]  ;;  %v26676_v49 = vpack.c.bf16 %v13175_v57, %v13174_v62 }
 0x70c   :  { %24793 = vmatmul.mubr.f32.gmra.mrb[66].mxu1 %v11914_v39  ;;  %26663 = vmatpush3.bf16.msra.mxu0 %v26660_v40  ;;  %v11964_v39 = vld [vmem:[#allocation2 + $0x2da] sm:$0xff]  ;;  %v11966_v40 = vld [vmem:[#allocation2 + $0x2f2] sm:$0xff] }
 0x70d   :  { %24795 = vmatprep.mubr.f32.mxu1 %v11915_v5  ;;  %26665 = vmatprep.subr.bf16.mxu0 %v26664_v53  ;;  %v11965_v5 = vld [vmem:[#allocation2 + $0x2ea] sm:$0xff] }
 0x710   :  { %24796 = vmatmul.mubr.f32.gmra.mrb[68].mxu1 %v11916_v15  ;;  %26667 = vmatpush3.bf16.msra.mxu0 %v26664_v53  ;;  %v11969_v15 = vld [vmem:[#allocation2 + $0x31a] sm:$0xff]  ;;  %v11973_v53 = vld [vmem:[#allocation2 + $0x34a] sm:$0xff] }
 0x711   :  { %24798 = vmatprep.mubr.f32.mxu1 %v11917_v56  ;;  %26669 = vmatprep.subr.bf16.mxu0 %v26668_v33  ;;  %v11970_v56 = vld [vmem:[#allocation2 + $0x322] sm:$0xff] }
 0x714   :  { %24799 = vmatmul.mubr.f32.gmra.mrb[70].mxu1 %v11918_v45  ;;  %26671 = vmatpush3.bf16.msra.mxu0 %v26668_v33  ;;  %v20203_v45 = vld [vmem:[%s35149_s7 + $0x80] sm:$0xff]  ;;  %v20218_v33 = vld [vmem:[%s35149_s7 + $0xf8] sm:$0xff] }
 0x715   :  { %24801 = vmatprep.mubr.f32.mxu1 %v11919_v29  ;;  %26673 = vmatprep.subr.bf16.mxu0 %v26672_v14  ;;  %v20204_v29 = vld [vmem:[%s35149_s7 + $0x88] sm:$0xff] }
 0x718   :  { %24802 = vmatmul.mubr.f32.gmra.mrb[72].mxu1 %v11920_v60  ;;  %26675 = vmatpush3.bf16.msra.mxu0 %v26672_v14  ;;  %v26680_v60 = vpack.c.bf16 %v20204_v29, %v20203_v45 }
 0x719   :  { %24804 = vmatprep.mubr.f32.mxu1 %v11921_v44  ;;  %26677 = vmatprep.subr.bf16.mxu0 %v26676_v49 }
 0x71c   :  { %24805 = vmatmul.mubr.f32.gmra.mrb[74].mxu1 %v11922_v51  ;;  %26679 = vmatpush3.bf16.msra.mxu0 %v26676_v49  ;;  %v20207_v51 = vld [vmem:[%s35149_s7 + $0xa0] sm:$0xff] }
 0x71d   :  { %24807 = vmatprep.mubr.f32.mxu1 %v11923_v4  ;;  %26681 = vmatprep.subr.bf16.mxu0 %v26680_v60  ;;  %v20208_v4 = vld [vmem:[%s35149_s7 + $0xa8] sm:$0xff] }
 0x71f   :  { %24918 = vmatmul.mubr.f32.vlgmr.msra.gmra.mrb[64].mxu0 %v33006_v23  ;;  %v11974_v23 = vld [vmem:[#allocation2 + $0x352] sm:$0xff] }
 0x720   :  { %24808 = vmatmul.mubr.f32.gmra.mrb[76].mxu1 %v11924_v37  ;;  %26683 = vmatpush3.bf16.msra.mxu0 %v26680_v60  ;;  %v26688_v37 = vpack.c.bf16 %v20208_v4, %v20207_v51 }
 0x721   :  { %24810 = vmatprep.mubr.f32.mxu1 %v11925_v52  ;;  %v20209_v52 = vld [vmem:[%s35149_s7 + $0xb0] sm:$0xff] }
 0x724   :  { %24811 = vmatmul.mubr.f32.gmra.mrb[78].mxu1 %v11926_v59  ;;  %v20210_v59 = vld [vmem:[%s35149_s7 + $0xb8] sm:$0xff] }
 0x725   :  { %24813 = vmatprep.mubr.f32.mxu1 %v11927_v12  ;;  %v26692_v12 = vpack.c.bf16 %v20210_v59, %v20209_v52 }
 0x728   :  { %24814 = vmatmul.mubr.f32.gmra.mrb[80].mxu1 %v11928_v0  ;;  %v33213_v0 = vld [vmem:[%s35147_s5] ss:$0 sm:$0xff] }
 0x729   :  { %24816 = vmatprep.mubr.f32.mxu1 %v11929_v47 }
 0x72c   :  { %24817 = vmatmul.mubr.f32.gmra.mrb[82].mxu1 %v11930_v46  ;;  %v33218_v46 = vld [vmem:[%s35148_s6] ss:$0 sm:$0xff] }
 0x72d   :  { %24819 = vmatprep.mubr.f32.mxu1 %v11931_v58  ;;  %v20211_v58 = vld [vmem:[%s35149_s7 + $0xc0] sm:$0xff] }
 0x730   :  { %24820 = vmatmul.mubr.f32.gmra.mrb[84].mxu1 %v11932_v25  ;;  %v20212_v25 = vld [vmem:[%s35149_s7 + $0xc8] sm:$0xff] }
 0x731   :  { %24822 = vmatprep.mubr.f32.mxu1 %v11933_v1 }
 0x734   :  { %24823 = vmatmul.mubr.f32.gmra.mrb[86].mxu1 %v11934_v48 }
 0x735   :  { %24825 = vmatprep.mubr.f32.mxu1 %v11935_v35  ;;  %v26696_v35 = vpack.c.bf16 %v20212_v25, %v20211_v58 }
 0x738   :  { %24826 = vmatmul.mubr.f32.gmra.mrb[88].mxu1 %v11936_v36 }
 0x739   :  { %24828 = vmatprep.mubr.f32.mxu1 %v11937_v22 }
 0x73c   :  { %24829 = vmatmul.mubr.f32.gmra.mrb[90].mxu1 %v11938_v6 }
 0x73d   :  { %24831 = vmatprep.mubr.f32.mxu1 %v32886_v63  ;;  %v11950_v63 = vld [vmem:[#allocation2 + $0x232] sm:$0xff] }
 0x740   :  { %24832 = vmatmul.mubr.f32.gmra.mrb[92].mxu1 %v32889_v43  ;;  %v11951_v43 = vld [vmem:[#allocation2 + $0x242] sm:$0xff] }
 0x741   :  { %24834 = vmatprep.mubr.f32.mxu1 %v11941_v54 }
 0x744   :  { %24835 = vmatmul.mubr.f32.gmra.mrb[94].mxu1 %v11942_v2  ;;  %v20213_v2 = vld [vmem:[%s35149_s7 + $0xd0] sm:$0xff] }
 0x745   :  { %24837 = vmatprep.mubr.f32.mxu1 %v11943_v9  ;;  %v20214_v9 = vld [vmem:[%s35149_s7 + $0xd8] sm:$0xff] }
 0x748   :  { %24838 = vmatmul.mubr.f32.gmra.mrb[96].mxu1 %v11944_v31 }
 0x749   :  { %24840 = vmatprep.mubr.f32.mxu1 %v11945_v11 }
 0x74c   :  { %24841 = vmatmul.mubr.f32.gmra.mrb[98].mxu1 %v11946_v16 }
 0x74d   :  { %24843 = vmatprep.mubr.f32.mxu1 %v11947_v38  ;;  %v26700_v38 = vpack.c.bf16 %v20214_v9, %v20213_v2 }
 0x750   :  { %24844 = vmatmul.mubr.f32.gmra.mrb[100].mxu1 %v11948_v61  ;;  %v20215_v61 = vld [vmem:[%s35149_s7 + $0xe0] sm:$0xff] }
 0x751   :  { %24846 = vmatprep.mubr.f32.mxu1 %v11949_v13  ;;  %v20216_v13 = vld [vmem:[%s35149_s7 + $0xe8] sm:$0xff] }
 0x754   :  { %24847 = vmatmul.mubr.f32.gmra.mrb[102].mxu1 %v11950_v63 }
 0x755   :  { %24849 = vmatprep.mubr.f32.mxu1 %v11951_v43 }
 0x758   :  { %24850 = vmatmul.mubr.f32.gmra.mrb[104].mxu1 %v11952_v27  ;;  %v26704_v27 = vpack.c.bf16 %v20216_v13, %v20215_v61 }
 0x759   :  { %24852 = vmatprep.mubr.f32.mxu1 %v11953_v30 }
 0x75c   :  { %24853 = vmatmul.mubr.f32.gmra.mrb[106].mxu1 %v11954_v26 }
 0x75d   :  { %24855 = vmatprep.mubr.f32.mxu1 %v11955_v32 }
 0x760   :  { %24856 = vmatmul.mubr.f32.gmra.mrb[108].mxu1 %v11956_v34 }
 0x761   :  { %24858 = vmatprep.mubr.f32.mxu1 %v11957_v42  ;;  %v20217_v42 = vld [vmem:[%s35149_s7 + $0xf0] sm:$0xff] }
 0x762   :  { %v26708_v8 = vpack.c.bf16 %v20218_v33, %v20217_v42 }
 0x764   :  { %24859 = vmatmul.mubr.f32.gmra.mrb[110].mxu1 %v11958_v55 }
 0x765   :  { %24861 = vmatprep.mubr.f32.mxu1 %v11959_v28 }
 0x768   :  { %24862 = vmatmul.mubr.f32.gmra.mrb[112].mxu1 %v11960_v19 }
 0x769   :  { %24864 = vmatprep.mubr.f32.mxu1 %v11961_v3 }
 0x76c   :  { %24865 = vmatmul.mubr.f32.gmra.mrb[114].mxu1 %v11962_v17 }
 0x76d   :  { %24867 = vmatprep.mubr.f32.mxu1 %v11963_v50 }
 0x770   :  { %24868 = vmatmul.mubr.f32.gmra.mrb[116].mxu1 %v11964_v39 }
 0x771   :  { %24870 = vmatprep.mubr.f32.mxu1 %v11965_v5 }
 0x774   :  { %24871 = vmatmul.mubr.f32.gmra.mrb[118].mxu1 %v11966_v40 }
 0x775   :  { %24873 = vmatprep.mubr.f32.mxu1 %v11967_v10 }
 0x778   :  { %24874 = vmatmul.mubr.f32.gmra.mrb[120].mxu1 %v11968_v18 }
 0x779   :  { %24876 = vmatprep.mubr.f32.mxu1 %v11969_v15 }
 0x77c   :  { %24877 = vmatmul.mubr.f32.gmra.mrb[122].mxu1 %v11970_v56 }
 0x77d   :  { %24879 = vmatprep.mubr.f32.mxu1 %v32928_v24  ;;  %v20205_v24 = vld [vmem:[%s35149_s7 + $0x90] sm:$0xff] }
 0x780   :  { %24880 = vmatmul.mubr.f32.gmra.mrb[124].mxu1 %v32931_v21  ;;  %v20206_v21 = vld [vmem:[%s35149_s7 + $0x98] sm:$0xff] }
 0x781   :  { %24882 = vmatprep.mubr.f32.mxu1 %v11973_v53  ;;  %v26684_v44 = vpack.c.bf16 %v20206_v21, %v20205_v24 }
 0x783   :  { %26685 = vmatprep.subr.bf16.mxu0 %v26684_v44 }
 0x784   :  { %24883 = vmatmul.mubr.f32.gmra.mrb[126].mxu1 %v11974_v23  ;;  %26687 = vmatpush3.bf16.msra.mxu0 %v26684_v44 }
 0x785   :  { %26689 = vmatprep.subr.bf16.mxu0 %v26688_v37 }
 0x788   :  { %26691 = vmatpush3.bf16.msra.mxu0 %v26688_v37 }
 0x789   :  { %26693 = vmatprep.subr.bf16.mxu0 %v26692_v12 }
 0x78c   :  { %26695 = vmatpush3.bf16.msra.mxu0 %v26692_v12 }
 0x78d   :  { %26697 = vmatprep.subr.bf16.mxu0 %v26696_v35 }
 0x790   :  { %26699 = vmatpush3.bf16.msra.mxu0 %v26696_v35 }
 0x791   :  { %26701 = vmatprep.subr.bf16.mxu0 %v26700_v38 }
 0x794   :  { %26703 = vmatpush3.bf16.msra.mxu0 %v26700_v38 }
 0x795   :  { %26705 = vmatprep.subr.bf16.mxu0 %v26704_v27 }
 0x798   :  { %26707 = vmatpush3.bf16.msra.mxu0 %v26704_v27 }
 0x799   :  { %26709 = vmatprep.subr.bf16.mxu0 %v26708_v8 }
 0x79c   :  { %26711 = vmatpush3.bf16.msra.mxu0 %v26708_v8 }
 0x7db   :  { %v24791_v47 = vpop.f32.mrb[64].mxu1 }
 0x7dc   :  { %v12641_v1 = vmul.f32 %v24791_v47, %v33213_v0  ;;  %v12122_v48 = vpop.f32.mrb[65].mxu1 }
 0x7dd   :  { %v12640_v36 = vmul.f32 %v33213_v0, %v12122_v48 }
 0x7de   :  { %v33229_v22 = vadd.f32 %v33218_v46, %v12641_v1 }
 0x7df   :  { %v33232_v6 = vadd.f32 %v33218_v46, %v12640_v36  ;;  %v24794_v54 = vpop.f32.mrb[66].mxu1 }
 0x7e0   :  { %v35400_v31 = vmax.f32 %v33229_v22, 0.0  ;;  %v12643_v11 = vmul.f32 %v24794_v54, %v33213_v0  ;;  %v12132_v16 = vpop.f32.mrb[67].mxu1 }
 0x7e1   :  { %v35403_v63 = vmax.f32 %v33232_v6, 0.0  ;;  %v12642_v43 = vmul.f32 %v33213_v0, %v12132_v16 }
 0x7e2   :  { %12841 = vst [vmem:[#allocation3 + $0x21] sm:$0xff] %v35400_v31  ;;  %v33253_v30 = vadd.f32 %v33218_v46, %v12643_v11 }
 0x7e3   :  { %12840 = vst [vmem:[#allocation3 + $0x19] sm:$0xff] %v35403_v63  ;;  %v33258_v26 = vadd.f32 %v33218_v46, %v12642_v43  ;;  %v24797_v32 = vpop.f32.mrb[68].mxu1 }
 0x7e4   :  { %v35396_v34 = vmax.f32 %v33253_v30, 0.0  ;;  %v12645_v7 = vmul.f32 %v24797_v32, %v33213_v0  ;;  %v12142_v20 = vpop.f32.mrb[69].mxu1 }
 0x7e5   :  { %v35399_v55 = vmax.f32 %v33258_v26, 0.0  ;;  %v12644_v41 = vmul.f32 %v33213_v0, %v12142_v20 }
 0x7e6   :  { %12843 = vst [vmem:[#allocation3 + $0x39] sm:$0xff] %v35396_v34  ;;  %v33273_v28 = vadd.f32 %v33218_v46, %v12645_v7 }
 0x7e7   :  { %12842 = vst [vmem:[#allocation3 + $0x31] sm:$0xff] %v35399_v55  ;;  %v33278_v14 = vadd.f32 %v33218_v46, %v12644_v41  ;;  %v24800_v19 = vpop.f32.mrb[70].mxu1 }
 0x7e8   :  { %v35392_v62 = vmax.f32 %v33273_v28, 0.0  ;;  %v12647_v57 = vmul.f32 %v24800_v19, %v33213_v0  ;;  %v12152_v3 = vpop.f32.mrb[71].mxu1 }
 0x7e9   :  { %v35395_v49 = vmax.f32 %v33278_v14, 0.0  ;;  %v12646_v17 = vmul.f32 %v33213_v0, %v12152_v3 }
 0x7ea   :  { %12845 = vst [vmem:[#allocation3 + $0x51] sm:$0xff] %v35392_v62  ;;  %v33287_v50 = vadd.f32 %v33218_v46, %v12647_v57  ;;  %v13034_v39 = vld [vmem:[#allocation3 + $0x18] sm:$0xff]  ;;  %v13035_v5 = vld [vmem:[#allocation3 + $0x20] sm:$0xff] }
 0x7eb   :  { %12844 = vst [vmem:[#allocation3 + $0x49] sm:$0xff] %v35395_v49  ;;  %v33292_v40 = vadd.f32 %v33218_v46, %v12646_v17  ;;  %v24803_v10 = vpop.f32.mrb[72].mxu1  ;;  %24920 = vmatprep.mubr.f32.mxu0 %v13034_v39 }
 0x7ec   :  { %v35388_v18 = vmax.f32 %v33287_v50, 0.0  ;;  %v12649_v15 = vmul.f32 %v24803_v10, %v33213_v0  ;;  %v12162_v56 = vpop.f32.mrb[73].mxu1  ;;  %24921 = vmatmul.mubr.f32.gmra.mrb[66].mxu0 %v13035_v5 }
 0x7ed   :  { %v35391_v53 = vmax.f32 %v33292_v40, 0.0  ;;  %v12648_v23 = vmul.f32 %v33213_v0, %v12162_v56 }
 0x7ee   :  { %12847 = vst [vmem:[#allocation3 + $0x69] sm:$0xff] %v35388_v18  ;;  %v33301_v45 = vadd.f32 %v33218_v46, %v12649_v15  ;;  %v13036_v29 = vld [vmem:[#allocation3 + $0x30] sm:$0xff]  ;;  %v13037_v60 = vld [vmem:[#allocation3 + $0x38] sm:$0xff] }
 0x7ef   :  { %12846 = vst [vmem:[#allocation3 + $0x61] sm:$0xff] %v35391_v53  ;;  %v33306_v24 = vadd.f32 %v33218_v46, %v12648_v23  ;;  %v24806_v21 = vpop.f32.mrb[74].mxu1  ;;  %24923 = vmatprep.mubr.f32.mxu0 %v13036_v29 }
 0x7f0   :  { %v35384_v44 = vmax.f32 %v33301_v45, 0.0  ;;  %v12651_v51 = vmul.f32 %v24806_v21, %v33213_v0  ;;  %v12172_v4 = vpop.f32.mrb[75].mxu1  ;;  %24924 = vmatmul.mubr.f32.gmra.mrb[68].mxu0 %v13037_v60 }
 0x7f1   :  { %v35387_v37 = vmax.f32 %v33306_v24, 0.0  ;;  %v12650_v52 = vmul.f32 %v33213_v0, %v12172_v4 }
 0x7f2   :  { %12849 = vst [vmem:[#allocation3 + $0x81] sm:$0xff] %v35384_v44  ;;  %v33315_v59 = vadd.f32 %v33218_v46, %v12651_v51  ;;  %v13038_v12 = vld [vmem:[#allocation3 + $0x48] sm:$0xff]  ;;  %v13039_v47 = vld [vmem:[#allocation3 + $0x50] sm:$0xff] }
 0x7f3   :  { %12848 = vst [vmem:[#allocation3 + $0x79] sm:$0xff] %v35387_v37  ;;  %v33320_v58 = vadd.f32 %v33218_v46, %v12650_v52  ;;  %v24809_v25 = vpop.f32.mrb[76].mxu1  ;;  %24926 = vmatprep.mubr.f32.mxu0 %v13038_v12 }
 0x7f4   :  { %v35380_v1 = vmax.f32 %v33315_v59, 0.0  ;;  %v12653_v48 = vmul.f32 %v24809_v25, %v33213_v0  ;;  %v12182_v35 = vpop.f32.mrb[77].mxu1  ;;  %24927 = vmatmul.mubr.f32.gmra.mrb[70].mxu0 %v13039_v47 }
 0x7f5   :  { %v35383_v36 = vmax.f32 %v33320_v58, 0.0  ;;  %v12652_v54 = vmul.f32 %v33213_v0, %v12182_v35 }
 0x7f6   :  { %12851 = vst [vmem:[#allocation3 + $0x99] sm:$0xff] %v35380_v1  ;;  %v33329_v2 = vadd.f32 %v33218_v46, %v12653_v48  ;;  %v13040_v9 = vld [vmem:[#allocation3 + $0x60] sm:$0xff]  ;;  %v13041_v11 = vld [vmem:[#allocation3 + $0x68] sm:$0xff] }
 0x7f7   :  { %12850 = vst [vmem:[#allocation3 + $0x91] sm:$0xff] %v35383_v36  ;;  %v33334_v16 = vadd.f32 %v33218_v46, %v12652_v54  ;;  %v24812_v38 = vpop.f32.mrb[78].mxu1  ;;  %24929 = vmatprep.mubr.f32.mxu0 %v13040_v9 }
 0x7f8   :  { %v35376_v61 = vmax.f32 %v33329_v2, 0.0  ;;  %v12655_v13 = vmul.f32 %v24812_v38, %v33213_v0  ;;  %v12192_v43 = vpop.f32.mrb[79].mxu1  ;;  %24930 = vmatmul.mubr.f32.gmra.mrb[72].mxu0 %v13041_v11 }
 0x7f9   :  { %v35379_v27 = vmax.f32 %v33334_v16, 0.0  ;;  %v12654_v32 = vmul.f32 %v33213_v0, %v12192_v43 }
 0x7fa   :  { %12853 = vst [vmem:[#allocation3 + $0xb1] sm:$0xff] %v35376_v61  ;;  %v33343_v7 = vadd.f32 %v33218_v46, %v12655_v13  ;;  %v13042_v20 = vld [vmem:[#allocation3 + $0x78] sm:$0xff]  ;;  %v13043_v42 = vld [vmem:[#allocation3 + $0x80] sm:$0xff] }
 0x7fb   :  { %12852 = vst [vmem:[#allocation3 + $0xa9] sm:$0xff] %v35379_v27  ;;  %v33348_v33 = vadd.f32 %v33218_v46, %v12654_v32  ;;  %v24815_v41 = vpop.f32.mrb[80].mxu1  ;;  %24932 = vmatprep.mubr.f32.mxu0 %v13042_v20 }
 0x7fc   :  { %v35372_v8 = vmax.f32 %v33343_v7, 0.0  ;;  %v12657_v19 = vmul.f32 %v24815_v41, %v33213_v0  ;;  %v12202_v57 = vpop.f32.mrb[81].mxu1  ;;  %24933 = vmatmul.mubr.f32.gmra.mrb[74].mxu0 %v13043_v42 }
 0x7fd   :  { %v35373_v3 = vmax.f32 %v33348_v33, 0.0  ;;  %v12656_v17 = vmul.f32 %v33213_v0, %v12202_v57 }
 0x7fe   :  { %12855 = vst [vmem:[#allocation3 + $0xc9] sm:$0xff] %v35372_v8  ;;  %v33357_v39 = vadd.f32 %v33218_v46, %v12657_v19  ;;  %v13044_v5 = vld [vmem:[#allocation3 + $0x90] sm:$0xff]  ;;  %v13045_v10 = vld [vmem:[#allocation3 + $0x98] sm:$0xff] }
 0x7ff   :  { %12854 = vst [vmem:[#allocation3 + $0xc1] sm:$0xff] %v35373_v3  ;;  %v33362_v15 = vadd.f32 %v33218_v46, %v12656_v17  ;;  %v24818_v56 = vpop.f32.mrb[82].mxu1  ;;  %24935 = vmatprep.mubr.f32.mxu0 %v13044_v5 }
 0x800   :  { %v35367_v23 = vmax.f32 %v33357_v39, 0.0  ;;  %v12659_v29 = vmul.f32 %v24818_v56, %v33213_v0  ;;  %v12212_v60 = vpop.f32.mrb[83].mxu1  ;;  %24936 = vmatmul.mubr.f32.gmra.mrb[76].mxu0 %v13045_v10 }
 0x801   :  { %v35371_v21 = vmax.f32 %v33362_v15, 0.0  ;;  %v12658_v51 = vmul.f32 %v33213_v0, %v12212_v60 }
 0x802   :  { %12857 = vst [vmem:[#allocation3 + $0xe1] sm:$0xff] %v35367_v23  ;;  %v33371_v4 = vadd.f32 %v33218_v46, %v12659_v29  ;;  %v13046_v52 = vld [vmem:[#allocation3 + $0xa8] sm:$0xff]  ;;  %v13047_v12 = vld [vmem:[#allocation3 + $0xb0] sm:$0xff] }
 0x803   :  { %12856 = vst [vmem:[#allocation3 + $0xd9] sm:$0xff] %v35371_v21  ;;  %v33376_v47 = vadd.f32 %v33218_v46, %v12658_v51  ;;  %v24821_v25 = vpop.f32.mrb[84].mxu1  ;;  %24938 = vmatprep.mubr.f32.mxu0 %v13046_v52 }
 0x804   :  { %v35364_v48 = vmax.f32 %v33371_v4, 0.0  ;;  %v12661_v35 = vmul.f32 %v24821_v25, %v33213_v0  ;;  %v12222_v54 = vpop.f32.mrb[85].mxu1  ;;  %24939 = vmatmul.mubr.f32.gmra.mrb[78].mxu0 %v13047_v12 }
 0x805   :  { %v35365_v9 = vmax.f32 %v33376_v47, 0.0  ;;  %v12660_v11 = vmul.f32 %v33213_v0, %v12222_v54 }
 0x806   :  { %12859 = vst [vmem:[#allocation3 + $0xf9] sm:$0xff] %v35364_v48  ;;  %v33385_v38 = vadd.f32 %v33218_v46, %v12661_v35  ;;  %v13048_v13 = vld [vmem:[#allocation3 + $0xc0] sm:$0xff]  ;;  %v13049_v43 = vld [vmem:[#allocation3 + $0xc8] sm:$0xff] }
 0x807   :  { %12858 = vst [vmem:[#allocation3 + $0xf1] sm:$0xff] %v35365_v9  ;;  %v33390_v32 = vadd.f32 %v33218_v46, %v12660_v11  ;;  %v24824_v20 = vpop.f32.mrb[86].mxu1  ;;  %24941 = vmatprep.mubr.f32.mxu0 %v13048_v13 }
 0x808   :  { %v35362_v42 = vmax.f32 %v33385_v38, 0.0  ;;  %v12663_v41 = vmul.f32 %v24824_v20, %v33213_v0  ;;  %v12232_v19 = vpop.f32.mrb[87].mxu1  ;;  %24942 = vmatmul.mubr.f32.gmra.mrb[80].mxu0 %v13049_v43 }
 0x809   :  { %v35363_v57 = vmax.f32 %v33390_v32, 0.0  ;;  %v12662_v17 = vmul.f32 %v33213_v0, %v12232_v19 }
 0x80a   :  { %12861 = vst [vmem:[#allocation3 + $0x111] sm:$0xff] %v35362_v42  ;;  %v33399_v5 = vadd.f32 %v33218_v46, %v12663_v41  ;;  %v13050_v10 = vld [vmem:[#allocation3 + $0xd8] sm:$0xff]  ;;  %v13051_v56 = vld [vmem:[#allocation3 + $0xe0] sm:$0xff] }
 0x80b   :  { %12860 = vst [vmem:[#allocation3 + $0x109] sm:$0xff] %v35363_v57  ;;  %v33404_v29 = vadd.f32 %v33218_v46, %v12662_v17  ;;  %v24827_v60 = vpop.f32.mrb[88].mxu1  ;;  %24944 = vmatprep.mubr.f32.mxu0 %v13050_v10 }
 0x80c   :  { %v35358_v51 = vmax.f32 %v33399_v5, 0.0  ;;  %v12665_v52 = vmul.f32 %v24827_v60, %v33213_v0  ;;  %v12242_v12 = vpop.f32.mrb[89].mxu1  ;;  %24945 = vmatmul.mubr.f32.gmra.mrb[82].mxu0 %v13051_v56 }
 0x80d   :  { %v35359_v25 = vmax.f32 %v33404_v29, 0.0  ;;  %v12664_v35 = vmul.f32 %v33213_v0, %v12242_v12 }
 0x80e   :  { %12863 = vst [vmem:[#allocation3 + $0x129] sm:$0xff] %v35358_v51  ;;  %v33413_v54 = vadd.f32 %v33218_v46, %v12665_v52  ;;  %v13052_v11 = vld [vmem:[#allocation3 + $0xf0] sm:$0xff]  ;;  %v13053_v13 = vld [vmem:[#allocation3 + $0xf8] sm:$0xff] }
 0x80f   :  { %12862 = vst [vmem:[#allocation3 + $0x121] sm:$0xff] %v35359_v25  ;;  %v33418_v43 = vadd.f32 %v33218_v46, %v12664_v35  ;;  %v24830_v20 = vpop.f32.mrb[90].mxu1  ;;  %24947 = vmatprep.mubr.f32.mxu0 %v13052_v11 }
 0x810   :  { %v35356_v41 = vmax.f32 %v33413_v54, 0.0  ;;  %v12667_v19 = vmul.f32 %v24830_v20, %v33213_v0  ;;  %v12252_v17 = vpop.f32.mrb[91].mxu1  ;;  %24948 = vmatmul.mubr.f32.gmra.mrb[84].mxu0 %v13053_v13 }
 0x811   :  { %v35357_v10 = vmax.f32 %v33418_v43, 0.0  ;;  %v12666_v56 = vmul.f32 %v33213_v0, %v12252_v17 }
 0x812   :  { %12865 = vst [vmem:[#allocation3 + $0x141] sm:$0xff] %v35356_v41  ;;  %v33427_v60 = vadd.f32 %v33218_v46, %v12667_v19  ;;  %v13054_v52 = vld [vmem:[#allocation3 + $0x108] sm:$0xff]  ;;  %v13055_v12 = vld [vmem:[#allocation3 + $0x110] sm:$0xff] }
 0x813   :  { %12864 = vst [vmem:[#allocation3 + $0x139] sm:$0xff] %v35357_v10  ;;  %v33432_v35 = vadd.f32 %v33218_v46, %v12666_v56  ;;  %v24833_v11 = vpop.f32.mrb[92].mxu1  ;;  %24950 = vmatprep.mubr.f32.mxu0 %v13054_v52 }
 0x814   :  { %v35360_v13 = vmax.f32 %v33427_v60, 0.0  ;;  %v12669_v20 = vmul.f32 %v24833_v11, %v33213_v0  ;;  %v12262_v17 = vpop.f32.mrb[93].mxu1  ;;  %24951 = vmatmul.mubr.f32.gmra.mrb[86].mxu0 %v13055_v12 }
 0x815   :  { %v35361_v41 = vmax.f32 %v33432_v35, 0.0  ;;  %v12668_v19 = vmul.f32 %v33213_v0, %v12262_v17 }
 0x816   :  { %12867 = vst [vmem:[#allocation3 + $0x159] sm:$0xff] %v35360_v13  ;;  %v33441_v10 = vadd.f32 %v33218_v46, %v12669_v20  ;;  %v13056_v56 = vld [vmem:[#allocation3 + $0x120] sm:$0xff]  ;;  %v13057_v51 = vld [vmem:[#allocation3 + $0x128] sm:$0xff] }
 0x817   :  { %12866 = vst [vmem:[#allocation3 + $0x151] sm:$0xff] %v35361_v41  ;;  %v33446_v52 = vadd.f32 %v33218_v46, %v12668_v19  ;;  %v24836_v11 = vpop.f32.mrb[94].mxu1  ;;  %24953 = vmatprep.mubr.f32.mxu0 %v13056_v56 }
 0x818   :  { %v35366_v12 = vmax.f32 %v33441_v10, 0.0  ;;  %v12671_v17 = vmul.f32 %v24836_v11, %v33213_v0  ;;  %v12272_v25 = vpop.f32.mrb[95].mxu1  ;;  %24954 = vmatmul.mubr.f32.gmra.mrb[88].mxu0 %v13057_v51 }
 0x819   :  { %v35368_v13 = vmax.f32 %v33446_v52, 0.0  ;;  %v12670_v20 = vmul.f32 %v33213_v0, %v12272_v25 }
 0x81a   :  { %12869 = vst [vmem:[#allocation3 + $0x171] sm:$0xff] %v35366_v12  ;;  %v12742_v41 = vadd.f32 %v33218_v46, %v12671_v17  ;;  %v13058_v42 = vld [vmem:[#allocation3 + $0x138] sm:$0xff]  ;;  %v13059_v19 = vld [vmem:[#allocation3 + $0x140] sm:$0xff] }
 0x81b   :  { %12868 = vst [vmem:[#allocation3 + $0x169] sm:$0xff] %v35368_v13  ;;  %v12741_v56 = vadd.f32 %v33218_v46, %v12670_v20  ;;  %v24839_v57 = vpop.f32.mrb[96].mxu1  ;;  %24956 = vmatprep.mubr.f32.mxu0 %v13058_v42 }
 0x81c   :  { %v12806_v11 = vmax.f32 %v12742_v41, 0.0  ;;  %v12673_v51 = vmul.f32 %v24839_v57, %v33213_v0  ;;  %v12282_v48 = vpop.f32.mrb[97].mxu1  ;;  %24957 = vmatmul.mubr.f32.gmra.mrb[90].mxu0 %v13059_v19 }
 0x81d   :  { %v12805_v25 = vmax.f32 %v12741_v56, 0.0  ;;  %v12672_v9 = vmul.f32 %v33213_v0, %v12282_v48 }
 0x81e   :  { %12871 = vst [vmem:[#allocation3 + $0x189] sm:$0xff] %v12806_v11  ;;  %v33461_v17 = vadd.f32 %v33218_v46, %v12673_v51  ;;  %v13060_v12 = vld [vmem:[#allocation3 + $0x150] sm:$0xff]  ;;  %v13061_v23 = vld [vmem:[#allocation3 + $0x158] sm:$0xff] }
 0x81f   :  { %12870 = vst [vmem:[#allocation3 + $0x181] sm:$0xff] %v12805_v25  ;;  %v33464_v13 = vadd.f32 %v33218_v46, %v12672_v9  ;;  %v24842_v20 = vpop.f32.mrb[98].mxu1  ;;  %24959 = vmatprep.mubr.f32.mxu0 %v13060_v12 }
 0x820   :  { %v35369_v42 = vmax.f32 %v33461_v17, 0.0  ;;  %v12675_v57 = vmul.f32 %v24842_v20, %v33213_v0  ;;  %v12292_v41 = vpop.f32.mrb[99].mxu1  ;;  %24960 = vmatmul.mubr.f32.gmra.mrb[92].mxu0 %v13061_v23 }
 0x821   :  { %v35370_v48 = vmax.f32 %v33464_v13, 0.0  ;;  %v12674_v19 = vmul.f32 %v33213_v0, %v12292_v41 }
 0x822   :  { %12873 = vst [vmem:[#allocation3 + $0x1d1] sm:$0xff] %v35369_v42  ;;  %v33473_v56 = vadd.f32 %v33218_v46, %v12675_v57  ;;  %v13062_v9 = vld [vmem:[#allocation3 + $0x168] sm:$0xff]  ;;  %v13063_v11 = vld [vmem:[#allocation3 + $0x170] sm:$0xff]  ;;  %v28568_v42 = vld [vmem:[#allocation2] sm:$0xff] }
 0x823   :  { %12872 = vst [vmem:[#allocation3 + $0x1c9] sm:$0xff] %v35370_v48  ;;  %v33478_v12 = vadd.f32 %v33218_v46, %v12674_v19  ;;  %v24845_v51 = vpop.f32.mrb[100].mxu1  ;;  %24962 = vmatprep.mubr.f32.mxu0 %v13062_v9  ;;  %v20219_v48 = vld [vmem:[%s35149_s7 + $0x100] sm:$0xff]  ;;  %v20220_v19 = vld [vmem:[%s35149_s7 + $0x108] sm:$0xff] }
 0x824   :  { %v35374_v23 = vmax.f32 %v33473_v56, 0.0  ;;  %v12677_v25 = vmul.f32 %v24845_v51, %v33213_v0  ;;  %v12302_v20 = vpop.f32.mrb[101].mxu1  ;;  %24963 = vmatmul.mubr.f32.gmra.mrb[94].mxu0 %v13063_v11  ;;  %v33495_v11 = vpack.c.bf16 %v20220_v19, %v20219_v48 }
 0x825   :  { %v35375_v41 = vmax.f32 %v33478_v12, 0.0  ;;  %v12676_v57 = vmul.f32 %v33213_v0, %v12302_v20  ;;  %24965 = vmatprep.mubr.f32.mxu0 %v28568_v42 }
 0x826   :  { %12875 = vst [vmem:[#allocation3 + $0x1e9] sm:$0xff] %v35374_v23  ;;  %v33493_v9 = vadd.f32 %v33218_v46, %v12677_v25  ;;  %26713 = vmatprep.subr.bf16.mxu0 %v33495_v11 }
 0x827   :  { %12874 = vst [vmem:[#allocation3 + $0x1e1] sm:$0xff] %v35375_v41  ;;  %v33500_v51 = vadd.f32 %v33218_v46, %v12676_v57  ;;  %v24848_v20 = vpop.f32.mrb[102].mxu1 }
 0x828   :  { %v35377_v21 = vmax.f32 %v33493_v9, 0.0  ;;  %v12679_v8 = vmul.f32 %v24848_v20, %v33213_v0  ;;  %v12312_v3 = vpop.f32.mrb[103].mxu1  ;;  %24966 = vmatmul.mubr.f32.gmra.mrb[96].mxu0 %v28568_v42 }
 0x829   :  { %v35378_v25 = vmax.f32 %v33500_v51, 0.0  ;;  %v12678_v48 = vmul.f32 %v33213_v0, %v12312_v3 }
 0x82a   :  { %12877 = vst [vmem:[#allocation3 + $0x201] sm:$0xff] %v35377_v21  ;;  %v33510_v19 = vadd.f32 %v33218_v46, %v12679_v8  ;;  %v13066_v57 = vld [vmem:[#allocation3 + $0x1c8] sm:$0xff]  ;;  %v13067_v23 = vld [vmem:[#allocation3 + $0x1d0] sm:$0xff] }
 0x82b   :  { %12876 = vst [vmem:[#allocation3 + $0x1f9] sm:$0xff] %v35378_v25  ;;  %v33515_v20 = vadd.f32 %v33218_v46, %v12678_v48  ;;  %v24851_v42 = vpop.f32.mrb[104].mxu1  ;;  %24968 = vmatprep.mubr.f32.mxu0 %v13066_v57 }
 0x82c   :  { %v35381_v41 = vmax.f32 %v33510_v19, 0.0  ;;  %v12681_v3 = vmul.f32 %v24851_v42, %v33213_v0  ;;  %v12322_v61 = vpop.f32.mrb[105].mxu1  ;;  %24969 = vmatmul.mubr.f32.gmra.mrb[98].mxu0 %v13067_v23 }
 0x82d   :  { %v35382_v21 = vmax.f32 %v33515_v20, 0.0  ;;  %v12680_v8 = vmul.f32 %v33213_v0, %v12322_v61 }
 0x82e   :  { %12879 = vst [vmem:[#allocation3 + $0x219] sm:$0xff] %v35381_v41  ;;  %v33524_v25 = vadd.f32 %v33218_v46, %v12681_v3  ;;  %v13068_v48 = vld [vmem:[#allocation3 + $0x1e0] sm:$0xff]  ;;  %v13069_v27 = vld [vmem:[#allocation3 + $0x1e8] sm:$0xff] }
 0x82f   :  { %12878 = vst [vmem:[#allocation3 + $0x211] sm:$0xff] %v35382_v21  ;;  %v33529_v57 = vadd.f32 %v33218_v46, %v12680_v8  ;;  %v24854_v42 = vpop.f32.mrb[106].mxu1  ;;  %24971 = vmatprep.mubr.f32.mxu0 %v13068_v48 }
 0x830   :  { %v35385_v23 = vmax.f32 %v33524_v25, 0.0  ;;  %v12683_v61 = vmul.f32 %v24854_v42, %v33213_v0  ;;  %v12332_v1 = vpop.f32.mrb[107].mxu1  ;;  %24972 = vmatmul.mubr.f32.gmra.mrb[100].mxu0 %v13069_v27 }
 0x831   :  { %v35386_v41 = vmax.f32 %v33529_v57, 0.0  ;;  %v12682_v3 = vmul.f32 %v33213_v0, %v12332_v1 }
 0x832   :  { %12881 = vst [vmem:[#allocation3 + $0x231] sm:$0xff] %v35385_v23  ;;  %v33538_v21 = vadd.f32 %v33218_v46, %v12683_v61  ;;  %v13070_v8 = vld [vmem:[#allocation3 + $0x1f8] sm:$0xff]  ;;  %v13071_v36 = vld [vmem:[#allocation3 + $0x200] sm:$0xff] }
 0x833   :  { %12880 = vst [vmem:[#allocation3 + $0x229] sm:$0xff] %v35386_v41  ;;  %v33543_v48 = vadd.f32 %v33218_v46, %v12682_v3  ;;  %v24857_v42 = vpop.f32.mrb[108].mxu1  ;;  %24974 = vmatprep.mubr.f32.mxu0 %v13070_v8 }
 0x834   :  { %v35389_v27 = vmax.f32 %v33538_v21, 0.0  ;;  %v12685_v1 = vmul.f32 %v24857_v42, %v33213_v0  ;;  %v12342_v44 = vpop.f32.mrb[109].mxu1  ;;  %24975 = vmatmul.mubr.f32.gmra.mrb[102].mxu0 %v13071_v36 }
 0x835   :  { %v35390_v23 = vmax.f32 %v33543_v48, 0.0  ;;  %v12684_v61 = vmul.f32 %v33213_v0, %v12342_v44 }
 0x836   :  { %12883 = vst [vmem:[#allocation3 + $0x249] sm:$0xff] %v35389_v27  ;;  %v33552_v41 = vadd.f32 %v33218_v46, %v12685_v1  ;;  %v13072_v3 = vld [vmem:[#allocation3 + $0x210] sm:$0xff]  ;;  %v13073_v37 = vld [vmem:[#allocation3 + $0x218] sm:$0xff] }
 0x837   :  { %12882 = vst [vmem:[#allocation3 + $0x241] sm:$0xff] %v35390_v23  ;;  %v33557_v8 = vadd.f32 %v33218_v46, %v12684_v61  ;;  %v24860_v42 = vpop.f32.mrb[110].mxu1  ;;  %24977 = vmatprep.mubr.f32.mxu0 %v13072_v3 }
 0x838   :  { %v35393_v36 = vmax.f32 %v33552_v41, 0.0  ;;  %v12687_v44 = vmul.f32 %v24860_v42, %v33213_v0  ;;  %v12352_v18 = vpop.f32.mrb[111].mxu1  ;;  %24978 = vmatmul.mubr.f32.gmra.mrb[104].mxu0 %v13073_v37 }
 0x839   :  { %v35394_v27 = vmax.f32 %v33557_v8, 0.0  ;;  %v12686_v1 = vmul.f32 %v33213_v0, %v12352_v18 }
 0x83a   :  { %12885 = vst [vmem:[#allocation3 + $0x261] sm:$0xff] %v35393_v36  ;;  %v33566_v23 = vadd.f32 %v33218_v46, %v12687_v44  ;;  %v13074_v61 = vld [vmem:[#allocation3 + $0x228] sm:$0xff]  ;;  %v13075_v53 = vld [vmem:[#allocation3 + $0x230] sm:$0xff] }
 0x83b   :  { %12884 = vst [vmem:[#allocation3 + $0x259] sm:$0xff] %v35394_v27  ;;  %v33571_v3 = vadd.f32 %v33218_v46, %v12686_v1  ;;  %v24863_v42 = vpop.f32.mrb[112].mxu1  ;;  %24980 = vmatprep.mubr.f32.mxu0 %v13074_v61 }
 0x83c   :  { %v35397_v37 = vmax.f32 %v33566_v23, 0.0  ;;  %v12689_v18 = vmul.f32 %v24863_v42, %v33213_v0  ;;  %v12362_v62 = vpop.f32.mrb[113].mxu1  ;;  %24981 = vmatmul.mubr.f32.gmra.mrb[106].mxu0 %v13075_v53 }
 0x83d   :  { %v35398_v36 = vmax.f32 %v33571_v3, 0.0  ;;  %v12688_v44 = vmul.f32 %v33213_v0, %v12362_v62 }
 0x83e   :  { %12887 = vst [vmem:[#allocation3 + $0x279] sm:$0xff] %v35397_v37  ;;  %v33580_v27 = vadd.f32 %v33218_v46, %v12689_v18  ;;  %v13076_v1 = vld [vmem:[#allocation3 + $0x240] sm:$0xff]  ;;  %v13077_v49 = vld [vmem:[#allocation3 + $0x248] sm:$0xff] }
 0x83f   :  { %12886 = vst [vmem:[#allocation3 + $0x271] sm:$0xff] %v35398_v36  ;;  %v33585_v61 = vadd.f32 %v33218_v46, %v12688_v44  ;;  %v24866_v42 = vpop.f32.mrb[114].mxu1  ;;  %24983 = vmatprep.mubr.f32.mxu0 %v13076_v1 }
 0x840   :  { %35926 = vst [vmem:[#allocation23_spill] sm:$0xff] %v33580_v27  ;;  %v35401_v53 = vmax.f32 %v33580_v27, 0.0  ;;  %v12691_v62 = vmul.f32 %v24866_v42, %v33213_v0  ;;  %v12372_v34 = vpop.f32.mrb[115].mxu1  ;;  %24984 = vmatmul.mubr.f32.gmra.mrb[108].mxu0 %v13077_v49 }
 0x841   :  { %v35402_v37 = vmax.f32 %v33585_v61, 0.0  ;;  %v12690_v18 = vmul.f32 %v33213_v0, %v12372_v34 }
 0x842   :  { %12889 = vst [vmem:[#allocation3 + $0x291] sm:$0xff] %v35401_v53  ;;  %v33594_v36 = vadd.f32 %v33218_v46, %v12691_v62  ;;  %v13078_v44 = vld [vmem:[#allocation3 + $0x258] sm:$0xff]  ;;  %v13079_v55 = vld [vmem:[#allocation3 + $0x260] sm:$0xff] }
 0x843   :  { %12888 = vst [vmem:[#allocation3 + $0x289] sm:$0xff] %v35402_v37  ;;  %v33599_v1 = vadd.f32 %v33218_v46, %v12690_v18  ;;  %v24869_v42 = vpop.f32.mrb[116].mxu1  ;;  %24986 = vmatprep.mubr.f32.mxu0 %v13078_v44 }
 0x844   :  { %35927 = vst [vmem:[#allocation8_spill] sm:$0xff] %v33594_v36  ;;  %v35405_v49 = vmax.f32 %v33594_v36, 0.0  ;;  %v12693_v34 = vmul.f32 %v24869_v42, %v33213_v0  ;;  %v12382_v31 = vpop.f32.mrb[117].mxu1  ;;  %24987 = vmatmul.mubr.f32.gmra.mrb[110].mxu0 %v13079_v55 }
 0x845   :  { %35928 = vst [vmem:[#allocation21_spill] sm:$0xff] %v33599_v1  ;;  %v35406_v53 = vmax.f32 %v33599_v1, 0.0  ;;  %v12692_v62 = vmul.f32 %v33213_v0, %v12382_v31 }
 0x846   :  { %12891 = vst [vmem:[#allocation3 + $0x2a9] sm:$0xff] %v35405_v49  ;;  %v33608_v37 = vadd.f32 %v33218_v46, %v12693_v34  ;;  %v13080_v18 = vld [vmem:[#allocation3 + $0x270] sm:$0xff]  ;;  %v13081_v63 = vld [vmem:[#allocation3 + $0x278] sm:$0xff] }
 0x847   :  { %12890 = vst [vmem:[#allocation3 + $0x2a1] sm:$0xff] %v35406_v53  ;;  %v33613_v44 = vadd.f32 %v33218_v46, %v12692_v62  ;;  %v24872_v42 = vpop.f32.mrb[118].mxu1  ;;  %24989 = vmatprep.mubr.f32.mxu0 %v13080_v18 }
 0x848   :  { %35929 = vst [vmem:[#allocation24_spill] sm:$0xff] %v33608_v37  ;;  %v35409_v55 = vmax.f32 %v33608_v37, 0.0  ;;  %v12695_v31 = vmul.f32 %v24872_v42, %v33213_v0  ;;  %v12392_v27 = vpop.f32.mrb[119].mxu1  ;;  %24990 = vmatmul.mubr.f32.gmra.mrb[112].mxu0 %v13081_v63 }
 0x849   :  { %35930 = vst [vmem:[#allocation25_spill] sm:$0xff] %v33613_v44  ;;  %v35410_v49 = vmax.f32 %v33613_v44, 0.0  ;;  %v12694_v34 = vmul.f32 %v33213_v0, %v12392_v27 }
 0x84a   :  { %12893 = vst [vmem:[#allocation3 + $0x2c1] sm:$0xff] %v35409_v55  ;;  %v33622_v53 = vadd.f32 %v33218_v46, %v12695_v31  ;;  %v13082_v62 = vld [vmem:[#allocation3 + $0x288] sm:$0xff]  ;;  %v13083_v36 = vld [vmem:[#allocation3 + $0x290] sm:$0xff] }
 0x84b   :  { %12892 = vst [vmem:[#allocation3 + $0x2b9] sm:$0xff] %v35410_v49  ;;  %v33627_v18 = vadd.f32 %v33218_v46, %v12694_v34  ;;  %v24875_v42 = vpop.f32.mrb[120].mxu1  ;;  %24992 = vmatprep.mubr.f32.mxu0 %v13082_v62 }
 0x84c   :  { %35931 = vst [vmem:[#allocation26_spill] sm:$0xff] %v33622_v53  ;;  %v35413_v63 = vmax.f32 %v33622_v53, 0.0  ;;  %v12697_v27 = vmul.f32 %v24875_v42, %v33213_v0  ;;  %v12402_v1 = vpop.f32.mrb[121].mxu1  ;;  %24993 = vmatmul.mubr.f32.gmra.mrb[114].mxu0 %v13083_v36 }
 0x84d   :  { %v35414_v55 = vmax.f32 %v33627_v18, 0.0  ;;  %v12696_v31 = vmul.f32 %v33213_v0, %v12402_v1 }
 0x84e   :  { %12895 = vst [vmem:[#allocation3 + $0x2d9] sm:$0xff] %v35413_v63  ;;  %v33636_v49 = vadd.f32 %v33218_v46, %v12697_v27  ;;  %v13084_v34 = vld [vmem:[#allocation3 + $0x2a0] sm:$0xff]  ;;  %v13085_v37 = vld [vmem:[#allocation3 + $0x2a8] sm:$0xff] }
 0x84f   :  { %12894 = vst [vmem:[#allocation3 + $0x2d1] sm:$0xff] %v35414_v55  ;;  %v33641_v62 = vadd.f32 %v33218_v46, %v12696_v31  ;;  %v24878_v42 = vpop.f32.mrb[122].mxu1  ;;  %24995 = vmatprep.mubr.f32.mxu0 %v13084_v34 }
 0x850   :  { %35932 = vst [vmem:[#allocation27_spill] sm:$0xff] %v33636_v49  ;;  %v35417_v36 = vmax.f32 %v33636_v49, 0.0  ;;  %v12699_v1 = vmul.f32 %v24878_v42, %v33213_v0  ;;  %v12412_v44 = vpop.f32.mrb[123].mxu1  ;;  %24996 = vmatmul.mubr.f32.gmra.mrb[116].mxu0 %v13085_v37 }
 0x851   :  { %35933 = vst [vmem:[#allocation28_spill] sm:$0xff] %v33641_v62  ;;  %v35418_v63 = vmax.f32 %v33641_v62, 0.0  ;;  %v12698_v27 = vmul.f32 %v33213_v0, %v12412_v44 }
 0x852   :  { %12897 = vst [vmem:[#allocation3 + $0x2f1] sm:$0xff] %v35417_v36  ;;  %v33650_v55 = vadd.f32 %v33218_v46, %v12699_v1  ;;  %v13086_v31 = vld [vmem:[#allocation3 + $0x2b8] sm:$0xff]  ;;  %v33652_v53 = vld [vmem:[#allocation3 + $0x2c0] sm:$0xff] }
 0x853   :  { %35935 = vst [vmem:[#allocation30_spill] sm:$0xff] %v33652_v53  ;;  %12896 = vst [vmem:[#allocation3 + $0x2e9] sm:$0xff] %v35418_v63  ;;  %v33657_v34 = vadd.f32 %v33218_v46, %v12698_v27  ;;  %v24881_v37 = vpop.f32.mrb[124].mxu1  ;;  %24998 = vmatprep.mubr.f32.mxu0 %v13086_v31 }
 0x854   :  { %35934 = vst [vmem:[#allocation29_spill] sm:$0xff] %v33650_v55  ;;  %v35420_v42 = vmax.f32 %v33650_v55, 0.0  ;;  %v12701_v44 = vmul.f32 %v24881_v37, %v33213_v0  ;;  %v12422_v49 = vpop.f32.mrb[125].mxu1  ;;  %24999 = vmatmul.mubr.f32.gmra.mrb[118].mxu0 %v33652_v53 }
 0x855   :  { %35936 = vst [vmem:[#allocation31_spill] sm:$0xff] %v33657_v34  ;;  %v35423_v1 = vmax.f32 %v33657_v34, 0.0  ;;  %v12700_v36 = vmul.f32 %v33213_v0, %v12422_v49 }
 0x856   :  { %12899 = vst [vmem:[#allocation3 + $0x309] sm:$0xff] %v35420_v42  ;;  %v33667_v63 = vadd.f32 %v33218_v46, %v12701_v44  ;;  %v33669_v27 = vld [vmem:[#allocation3 + $0x2d0] sm:$0xff]  ;;  %v33671_v31 = vld [vmem:[#allocation3 + $0x2d8] sm:$0xff] }
 0x857   :  { %35937 = vst [vmem:[#allocation32_spill] sm:$0xff] %v33671_v31  ;;  %12898 = vst [vmem:[#allocation3 + $0x301] sm:$0xff] %v35423_v1  ;;  %v33676_v37 = vadd.f32 %v33218_v46, %v12700_v36  ;;  %v24884_v53 = vpop.f32.mrb[126].mxu1  ;;  %25001 = vmatprep.mubr.f32.mxu0 %v33669_v27 }
 0x858   :  { %v35426_v49 = vmax.f32 %v33667_v63, 0.0  ;;  %v12703_v42 = vmul.f32 %v24884_v53, %v33213_v0  ;;  %v12432_v55 = vpop.f32.mrb[127].mxu1  ;;  %25002 = vmatmul.mubr.f32.gmra.mrb[120].mxu0 %v33671_v31 }
 0x859   :  { %v35427_v44 = vmax.f32 %v33676_v37, 0.0  ;;  %v12702_v62 = vmul.f32 %v33213_v0, %v12432_v55 }
 0x85a   :  { %12901 = vst [vmem:[#allocation3 + $0x321] sm:$0xff] %v35426_v49  ;;  %v12774_v36 = vadd.f32 %v33218_v46, %v12703_v42  ;;  %v33687_v1 = vld [vmem:[#allocation3 + $0x2e8] sm:$0xff]  ;;  %v33689_v34 = vld [vmem:[#allocation3 + $0x2f0] sm:$0xff] }
 0x85b   :  { %12900 = vst [vmem:[#allocation3 + $0x319] sm:$0xff] %v35427_v44  ;;  %v12773_v53 = vadd.f32 %v33218_v46, %v12702_v62  ;;  %25004 = vmatprep.mubr.f32.mxu0 %v33687_v1  ;;  %v13689_v46 = vld [vmem:[#allocation3 + $0x1] sm:$0xff]  ;;  %v20221_v62 = vld [vmem:[%s35149_s7 + $0x110] sm:$0xff] }
 0x85c   :  { %v12838_v31 = vmax.f32 %v12774_v36, 0.0  ;;  %25005 = vmatmul.mubr.f32.gmra.mrb[122].mxu0 %v33689_v34  ;;  %v13690_v36 = vld [vmem:[#allocation3 + $0x9] sm:$0xff] }
 0x85d   :  { %v12837_v0 = vmax.f32 %v12773_v53, 0.0 }
 0x85e   :  { %12903 = vst [vmem:[#allocation3 + $0x339] sm:$0xff] %v12838_v31  ;;  %v33696_v55 = vld [vmem:[#allocation3 + $0x300] sm:$0xff]  ;;  %v33698_v49 = vld [vmem:[#allocation3 + $0x308] sm:$0xff]  ;;  %v20222_v31 = vld [vmem:[%s35149_s7 + $0x118] sm:$0xff] }
 0x85f   :  { %35938 = vst [vmem:[#allocation33_spill] sm:$0xff] %v33696_v55  ;;  %35939 = vst [vmem:[#allocation34_spill] sm:$0xff] %v33698_v49  ;;  %25007 = vmatprep.mubr.f32.mxu0 %v33696_v55  ;;  %v26716_v53 = vpack.c.bf16 %v20222_v31, %v20221_v62  ;;  %v20226_v62 = vld [vmem:[%s35149_s7 + $0x138] sm:$0xff]  ;;  %v35942_v31 = vmax.f32 %v33229_v22, 0.0  ;;  %v35945_v22 = vmax.f32 %v33278_v14, 0.0 }
 0x860   :  { %12902 = vst [vmem:[#allocation3 + $0x331] sm:$0xff] %v12837_v0  ;;  %25008 = vmatmul.mubr.f32.gmra.mrb[124].mxu0 %v33698_v49  ;;  %v20223_v0 = vld [vmem:[%s35149_s7 + $0x120] sm:$0xff]  ;;  %v35941_v49 = vmax.f32 %v33232_v6, 0.0 }
 0x862   :  { %v33702_v42 = vld [vmem:[#allocation3 + $0x318] sm:$0xff]  ;;  %v33704_v44 = vld [vmem:[#allocation3 + $0x320] sm:$0xff] }
 0x863   :  { %35940 = vst [vmem:[#allocation35_spill] sm:$0xff] %v33702_v42  ;;  %25010 = vmatprep.mubr.f32.mxu0 %v33702_v42  ;;  %v20224_v42 = vld [vmem:[%s35149_s7 + $0x128] sm:$0xff] }
 0x864   :  { %25011 = vmatmul.mubr.f32.gmra.mrb[126].mxu0 %v33704_v44  ;;  %v26720_v55 = vpack.c.bf16 %v20224_v42, %v20223_v0  ;;  %v35944_v42 = vmax.f32 %v33253_v30, 0.0  ;;  %v20230_v0 = vld [vmem:[%s35149_s7 + $0x158] sm:$0xff]  ;;  %v35947_v30 = vmax.f32 %v33292_v40, 0.0 }
 0x865   :  { %25045 = vmatprep.mubr.f32.mxu0 %v13689_v46  ;;  %v20225_v46 = vld [vmem:[%s35149_s7 + $0x130] sm:$0xff] }
 0x866   :  { %v26724_v6 = vpack.c.bf16 %v20226_v62, %v20225_v46  ;;  %v35946_v46 = vmax.f32 %v33273_v28, 0.0  ;;  %v20232_v62 = vld [vmem:[%s35149_s7 + $0x168] sm:$0xff]  ;;  %v35949_v28 = vmax.f32 %v33306_v24, 0.0 }
 0x868   :  { %25046 = vmatmul.mubr.f32.vlgmr.msra.gmra.mrb[64].mxu0 %v13690_v36  ;;  %v35943_v36 = vmax.f32 %v33258_v26, 0.0 }
 0x869   :  { %25048 = vmatprep.mubr.f32.mxu0 %v35941_v49  ;;  %26715 = vmatpush3.bf16.msra.mxu0 %v33495_v11  ;;  %v20227_v11 = vld [vmem:[%s35149_s7 + $0x140] sm:$0xff]  ;;  %v20228_v49 = vld [vmem:[%s35149_s7 + $0x148] sm:$0xff] }
 0x86a   :  { %26717 = vmatprep.subr.bf16.mxu0 %v26716_v53  ;;  %v26728_v26 = vpack.c.bf16 %v20228_v49, %v20227_v11  ;;  %v35950_v11 = vmax.f32 %v33301_v45, 0.0  ;;  %v35952_v49 = vmax.f32 %v33315_v59, 0.0  ;;  %v35955_v45 = vmax.f32 %v33348_v33, 0.0 }
 0x86b   :  { %v35958_v59 = vmax.f32 %v33357_v39, 0.0  ;;  %v35962_v33 = vmax.f32 %v33385_v38, 0.0  ;;  %v35965_v39 = vmax.f32 %v33418_v43, 0.0  ;;  %v35969_v38 = vmax.f32 %v33446_v52, 0.0  ;;  %v20236_v43 = vld [vmem:[%s35149_s7 + $0x188] sm:$0xff] }
 0x86c   :  { %25049 = vmatmul.mubr.f32.gmra.mrb[66].mxu0 %v35942_v31  ;;  %v35948_v31 = vmax.f32 %v33287_v50, 0.0  ;;  %v35951_v50 = vmax.f32 %v33320_v58, 0.0  ;;  %v35956_v58 = vmax.f32 %v33343_v7, 0.0  ;;  %v35963_v7 = vmax.f32 %v33404_v29, 0.0  ;;  %v13721_v29 = vld [vmem:[#allocation3 + $0x1b1] sm:$0xff] }
 0x86d   :  { %25051 = vmatprep.mubr.f32.mxu0 %v35943_v36  ;;  %26719 = vmatpush3.bf16.msra.mxu0 %v26716_v53  ;;  %v20229_v53 = vld [vmem:[%s35149_s7 + $0x150] sm:$0xff]  ;;  %v35972_v52 = vmax.f32 %v33461_v17, 0.0  ;;  %v35979_v17 = vmax.f32 %v33529_v57, 0.0  ;;  %v35986_v57 = vmax.f32 %v33566_v23, 0.0  ;;  %v35998_v23 = vmax.f32 %v33627_v18, 0.0  ;;  %v14347_v18 = vld [vmem:[#allocation3 + $0x2] sm:$0xff] }
 0x86e   :  { %26721 = vmatprep.subr.bf16.mxu0 %v26720_v55  ;;  %v26732_v14 = vpack.c.bf16 %v20230_v0, %v20229_v53  ;;  %v20233_v36 = vld [vmem:[%s35149_s7 + $0x170] sm:$0xff]  ;;  %v35960_v53 = vmax.f32 %v33371_v4, 0.0  ;;  %v35967_v4 = vmax.f32 %v33432_v35, 0.0  ;;  %v35970_v0 = vmax.f32 %v33441_v10, 0.0 }
 0x86f   :  { %v35973_v10 = vmax.f32 %v33478_v12, 0.0  ;;  %v35980_v12 = vmax.f32 %v33524_v25, 0.0  ;;  %v35987_v25 = vmax.f32 %v33585_v61, 0.0  ;;  %v35999_v61 = vld [vmem:[#allocation26_spill] sm:$0xff] }
 0x870   :  { %25052 = vmatmul.mubr.f32.gmra.mrb[68].mxu0 %v35944_v42  ;;  %v35953_v42 = vmax.f32 %v33334_v16, 0.0  ;;  %v35959_v16 = vmax.f32 %v33376_v47, 0.0  ;;  %v35966_v47 = vmax.f32 %v33413_v54, 0.0  ;;  %v20235_v54 = vld [vmem:[%s35149_s7 + $0x180] sm:$0xff] }
 0x871   :  { %25054 = vmatprep.mubr.f32.mxu0 %v35945_v22  ;;  %26723 = vmatpush3.bf16.msra.mxu0 %v26720_v55  ;;  %v20231_v55 = vld [vmem:[%s35149_s7 + $0x160] sm:$0xff]  ;;  %v35954_v22 = vmax.f32 %v33329_v2, 0.0  ;;  %v35961_v2 = vmax.f32 %v33390_v32, 0.0  ;;  %v35968_v32 = vmax.f32 %v33427_v60, 0.0  ;;  %v26744_v35 = vpack.c.bf16 %v20236_v43, %v20235_v54  ;;  %v33913_v54 = vld [vmem:[#allocation3 + $0x4a] sm:$0xff] }
 0x872   :  { %26725 = vmatprep.subr.bf16.mxu0 %v26724_v6  ;;  %v26736_v40 = vpack.c.bf16 %v20232_v62, %v20231_v55  ;;  %v35971_v60 = vmax.f32 %v33464_v13, 0.0  ;;  %v35977_v55 = vmax.f32 %v33515_v20, 0.0  ;;  %v35978_v13 = vmax.f32 %v33510_v19, 0.0 }
 0x873   :  { %v35984_v20 = vmax.f32 %v33552_v41, 0.0  ;;  %v35985_v19 = vmax.f32 %v33571_v3, 0.0  ;;  %v35994_v41 = vld [vmem:[#allocation25_spill] sm:$0xff]  ;;  %v35996_v3 = vld [vmem:[#allocation24_spill] sm:$0xff] }
 0x874   :  { %25055 = vmatmul.mubr.f32.gmra.mrb[70].mxu0 %v35946_v46  ;;  %v35974_v46 = vmax.f32 %v33473_v56, 0.0  ;;  %v35981_v56 = vmax.f32 %v33543_v48, 0.0  ;;  %v35988_v48 = vld [vmem:[#allocation23_spill] sm:$0xff] }
 0x875   :  { %25057 = vmatprep.mubr.f32.mxu0 %v35947_v30  ;;  %26727 = vmatpush3.bf16.msra.mxu0 %v26724_v6  ;;  %v20234_v6 = vld [vmem:[%s35149_s7 + $0x178] sm:$0xff]  ;;  %v35975_v30 = vmax.f32 %v33500_v51, 0.0  ;;  %v35982_v51 = vmax.f32 %v33538_v21, 0.0  ;;  %v35989_v62 = vmax.f32 %v35988_v48, 0.0  ;;  %v35990_v21 = vld [vmem:[#allocation21_spill] sm:$0xff]  ;;  %v33961_v48 = vld [vmem:[#allocation3 + $0xc2] sm:$0xff] }
 0x876   :  { %26729 = vmatprep.subr.bf16.mxu0 %v26728_v26  ;;  %v26740_v24 = vpack.c.bf16 %v20234_v6, %v20233_v36  ;;  %v35997_v36 = vmax.f32 %v35996_v3, 0.0  ;;  %v36000_v6 = vmax.f32 %v35999_v61, 0.0  ;;  %v33985_v3 = vld [vmem:[#allocation3 + $0x122] sm:$0xff] }
 0x877   :  { %v33994_v61 = vld [vmem:[#allocation3 + $0x142] sm:$0xff] }
 0x878   :  { %25058 = vmatmul.mubr.f32.gmra.mrb[72].mxu0 %v35948_v31  ;;  %v35991_v31 = vmax.f32 %v35990_v21, 0.0  ;;  %v33967_v21 = vld [vmem:[#allocation3 + $0xda] sm:$0xff] }
 0x879   :  { %25060 = vmatprep.mubr.f32.mxu0 %v35949_v28  ;;  %26731 = vmatpush3.bf16.msra.mxu0 %v26728_v26  ;;  %v35957_v26 = vmax.f32 %v33362_v15, 0.0  ;;  %v35964_v15 = vmax.f32 %v33399_v5, 0.0  ;;  %v13722_v5 = vld [vmem:[#allocation3 + $0x1b9] sm:$0xff] }
 0x87a   :  { %26733 = vmatprep.subr.bf16.mxu0 %v26732_v14 }
 0x87c   :  { %25061 = vmatmul.mubr.f32.gmra.mrb[74].mxu0 %v35950_v11  ;;  %v36001_v11 = vld [vmem:[#allocation28_spill] sm:$0xff] }
 0x87d   :  { %25063 = vmatprep.mubr.f32.mxu0 %v35951_v50  ;;  %26735 = vmatpush3.bf16.msra.mxu0 %v26732_v14  ;;  %v35976_v14 = vmax.f32 %v33493_v9, 0.0  ;;  %v35983_v9 = vmax.f32 %v33557_v8, 0.0  ;;  %v35992_v8 = vld [vmem:[#allocation8_spill] sm:$0xff]  ;;  %v36002_v50 = vmax.f32 %v36001_v11, 0.0  ;;  %v34000_v11 = vld [vmem:[#allocation3 + $0x15a] sm:$0xff] }
 0x87e   :  { %26737 = vmatprep.subr.bf16.mxu0 %v26736_v40  ;;  %v35993_v28 = vmax.f32 %v35992_v8, 0.0  ;;  %v33973_v8 = vld [vmem:[#allocation3 + $0xf2] sm:$0xff] }
 0x880   :  { %25064 = vmatmul.mubr.f32.gmra.mrb[76].mxu0 %v35952_v49 }
 0x881   :  { %25066 = vmatprep.mubr.f32.mxu0 %v35953_v42  ;;  %26739 = vmatpush3.bf16.msra.mxu0 %v26736_v40  ;;  %v35995_v40 = vmax.f32 %v35994_v41, 0.0  ;;  %v36005_v42 = vld [vmem:[#allocation31_spill] sm:$0xff]  ;;  %v33979_v41 = vld [vmem:[#allocation3 + $0x10a] sm:$0xff] }
 0x882   :  { %26741 = vmatprep.subr.bf16.mxu0 %v26740_v24 }
 0x884   :  { %25067 = vmatmul.mubr.f32.gmra.mrb[78].mxu0 %v35954_v22  ;;  %v36006_v22 = vmax.f32 %v36005_v42, 0.0  ;;  %v14380_v42 = vld [vmem:[#allocation3 + $0x1ba] sm:$0xff] }
 0x885   :  { %25069 = vmatprep.mubr.f32.mxu0 %v35955_v45  ;;  %26743 = vmatpush3.bf16.msra.mxu0 %v26740_v24  ;;  %v36003_v24 = vld [vmem:[#allocation27_spill] sm:$0xff]  ;;  %v36007_v45 = vld [vmem:[#allocation29_spill] sm:$0xff] }
 0x886   :  { %26745 = vmatprep.subr.bf16.mxu0 %v26744_v35  ;;  %v36004_v49 = vmax.f32 %v36003_v24, 0.0  ;;  %v14379_v24 = vld [vmem:[#allocation3 + $0x1b2] sm:$0xff] }
 0x888   :  { %25070 = vmatmul.mubr.f32.gmra.mrb[80].mxu0 %v35956_v58  ;;  %v36008_v58 = vmax.f32 %v36007_v45, 0.0  ;;  %v20252_v45 = vld [vmem:[%s35149_s7 + $0x208] sm:$0xff] }
 0x889   :  { %25072 = vmatprep.mubr.f32.mxu0 %v35957_v26  ;;  %v36009_v26 = vmax.f32 %v33676_v37, 0.0  ;;  %v20239_v37 = vld [vmem:[%s35149_s7 + $0x1a0] sm:$0xff] }
 0x88c   :  { %25073 = vmatmul.mubr.f32.gmra.mrb[82].mxu0 %v35958_v59  ;;  %v20237_v59 = vld [vmem:[%s35149_s7 + $0x190] sm:$0xff] }
 0x88d   :  { %25075 = vmatprep.mubr.f32.mxu0 %v35959_v16  ;;  %v20238_v16 = vld [vmem:[%s35149_s7 + $0x198] sm:$0xff] }
 0x890   :  { %25076 = vmatmul.mubr.f32.gmra.mrb[84].mxu0 %v35960_v53  ;;  %v36010_v53 = vmax.f32 %v33667_v63, 0.0 }
 0x891   :  { %25078 = vmatprep.mubr.f32.mxu0 %v35961_v2  ;;  %v14348_v2 = vld [vmem:[#allocation3 + $0xa] sm:$0xff] }
 0x894   :  { %25079 = vmatmul.mubr.f32.gmra.mrb[86].mxu0 %v35962_v33  ;;  %v26748_v33 = vpack.c.bf16 %v20238_v16, %v20237_v59  ;;  %v34024_v59 = vld [vmem:[#allocation3 + $0x1e2] sm:$0xff]  ;;  %v34027_v16 = vld [vmem:[#allocation3 + $0x1ea] sm:$0xff] }
 0x895   :  { %25081 = vmatprep.mubr.f32.mxu0 %v35963_v7  ;;  %v20240_v7 = vld [vmem:[%s35149_s7 + $0x1a8] sm:$0xff] }
 0x896   :  { %v26752_v63 = vpack.c.bf16 %v20240_v7, %v20239_v37  ;;  %v34039_v37 = vld [vmem:[#allocation3 + $0x21a] sm:$0xff]  ;;  %v34042_v7 = vld [vmem:[#allocation3 + $0x22a] sm:$0xff] }
 0x898   :  { %25082 = vmatmul.mubr.f32.gmra.mrb[88].mxu0 %v35964_v15  ;;  %v33889_v15 = vld [vmem:[#allocation3 + $0x1a] sm:$0xff] }
 0x899   :  { %25084 = vmatprep.mubr.f32.mxu0 %v35965_v39  ;;  %v33892_v39 = vld [vmem:[#allocation3 + $0x22] sm:$0xff] }
 0x89c   :  { %25085 = vmatmul.mubr.f32.gmra.mrb[90].mxu0 %v35966_v47  ;;  %v20241_v47 = vld [vmem:[%s35149_s7 + $0x1b0] sm:$0xff] }
 0x89d   :  { %25087 = vmatprep.mubr.f32.mxu0 %v35967_v4  ;;  %v20242_v4 = vld [vmem:[%s35149_s7 + $0x1b8] sm:$0xff] }
 0x8a0   :  { %25088 = vmatmul.mubr.f32.gmra.mrb[92].mxu0 %v35968_v32  ;;  %v33901_v32 = vld [vmem:[#allocation3 + $0x32] sm:$0xff] }
 0x8a1   :  { %25090 = vmatprep.mubr.f32.mxu0 %v35969_v38  ;;  %v26756_v38 = vpack.c.bf16 %v20242_v4, %v20241_v47  ;;  %v34048_v47 = vld [vmem:[#allocation3 + $0x242] sm:$0xff]  ;;  %v34051_v4 = vld [vmem:[#allocation3 + $0x24a] sm:$0xff] }
 0x8a4   :  { %25091 = vmatmul.mubr.f32.gmra.mrb[94].mxu0 %v35970_v0  ;;  %v20243_v0 = vld [vmem:[%s35149_s7 + $0x1c0] sm:$0xff] }
 0x8a5   :  { %25093 = vmatprep.mubr.f32.mxu0 %v13721_v29  ;;  %v33904_v29 = vld [vmem:[#allocation3 + $0x3a] sm:$0xff] }
 0x8a8   :  { %25094 = vmatmul.mubr.f32.gmra.mrb[96].mxu0 %v13722_v5  ;;  %v20244_v5 = vld [vmem:[%s35149_s7 + $0x1c8] sm:$0xff] }
 0x8a9   :  { %25096 = vmatprep.mubr.f32.mxu0 %v35971_v60  ;;  %v26760_v43 = vpack.c.bf16 %v20244_v5, %v20243_v0  ;;  %v20245_v60 = vld [vmem:[%s35149_s7 + $0x1d0] sm:$0xff]  ;;  %v34057_v0 = vld [vmem:[#allocation3 + $0x262] sm:$0xff] }
 0x8aa   :  { %v34060_v5 = vld [vmem:[#allocation3 + $0x272] sm:$0xff] }
 0x8ac   :  { %25097 = vmatmul.mubr.f32.gmra.mrb[98].mxu0 %v35972_v52  ;;  %v20246_v52 = vld [vmem:[%s35149_s7 + $0x1d8] sm:$0xff] }
 0x8ad   :  { %25099 = vmatprep.mubr.f32.mxu0 %v35973_v10  ;;  %v33925_v10 = vld [vmem:[#allocation3 + $0x62] sm:$0xff] }
 0x8b0   :  { %25100 = vmatmul.mubr.f32.gmra.mrb[100].mxu0 %v35974_v46  ;;  %v26764_v46 = vpack.c.bf16 %v20246_v52, %v20245_v60  ;;  %v34066_v60 = vld [vmem:[#allocation3 + $0x28a] sm:$0xff]  ;;  %v34069_v52 = vld [vmem:[#allocation3 + $0x292] sm:$0xff] }
 0x8b1   :  { %25102 = vmatprep.mubr.f32.mxu0 %v35975_v30  ;;  %v33928_v30 = vld [vmem:[#allocation3 + $0x6a] sm:$0xff] }
 0x8b4   :  { %25103 = vmatmul.mubr.f32.gmra.mrb[102].mxu0 %v35976_v14  ;;  %v20247_v14 = vld [vmem:[%s35149_s7 + $0x1e0] sm:$0xff] }
 0x8b5   :  { %25105 = vmatprep.mubr.f32.mxu0 %v35977_v55  ;;  %v20248_v55 = vld [vmem:[%s35149_s7 + $0x1e8] sm:$0xff] }
 0x8b8   :  { %25106 = vmatmul.mubr.f32.gmra.mrb[104].mxu0 %v35978_v13  ;;  %v33937_v13 = vld [vmem:[#allocation3 + $0x7a] sm:$0xff] }
 0x8b9   :  { %25108 = vmatprep.mubr.f32.mxu0 %v35979_v17  ;;  %v26768_v17 = vpack.c.bf16 %v20248_v55, %v20247_v14  ;;  %v34075_v14 = vld [vmem:[#allocation3 + $0x2aa] sm:$0xff]  ;;  %v34078_v55 = vld [vmem:[#allocation3 + $0x2ba] sm:$0xff] }
 0x8ba   :  { %36011 = vst [vmem:[#allocation36_spill] sm:$0xff] %v34078_v55 }
 0x8bc   :  { %25109 = vmatmul.mubr.f32.gmra.mrb[106].mxu0 %v35980_v12  ;;  %v33940_v12 = vld [vmem:[#allocation3 + $0x82] sm:$0xff] }
 0x8bd   :  { %25111 = vmatprep.mubr.f32.mxu0 %v35981_v56  ;;  %v20249_v56 = vld [vmem:[%s35149_s7 + $0x1f0] sm:$0xff] }
 0x8c0   :  { %25112 = vmatmul.mubr.f32.gmra.mrb[108].mxu0 %v35982_v51  ;;  %v20250_v51 = vld [vmem:[%s35149_s7 + $0x1f8] sm:$0xff] }
 0x8c1   :  { %25114 = vmatprep.mubr.f32.mxu0 %v35983_v9  ;;  %v33949_v9 = vld [vmem:[#allocation3 + $0x92] sm:$0xff] }
 0x8c4   :  { %25115 = vmatmul.mubr.f32.gmra.mrb[110].mxu0 %v35984_v20  ;;  %v26772_v20 = vpack.c.bf16 %v20250_v51, %v20249_v56  ;;  %v34084_v56 = vld [vmem:[#allocation3 + $0x2d2] sm:$0xff]  ;;  %v34087_v51 = vld [vmem:[#allocation3 + $0x2da] sm:$0xff] }
 0x8c5   :  { %25117 = vmatprep.mubr.f32.mxu0 %v35985_v19  ;;  %v33952_v19 = vld [vmem:[#allocation3 + $0x9a] sm:$0xff]  ;;  %36013 = vst [vmem:[#allocation38_spill] sm:$0xff] %v34084_v56  ;;  %36014 = vst [vmem:[#allocation39_spill] sm:$0xff] %v34087_v51 }
 0x8c8   :  { %25118 = vmatmul.mubr.f32.gmra.mrb[112].mxu0 %v35986_v57  ;;  %v33955_v57 = vld [vmem:[#allocation3 + $0xaa] sm:$0xff] }
 0x8c9   :  { %25120 = vmatprep.mubr.f32.mxu0 %v35987_v25  ;;  %v33958_v25 = vld [vmem:[#allocation3 + $0xb2] sm:$0xff] }
 0x8cc   :  { %25121 = vmatmul.mubr.f32.gmra.mrb[114].mxu0 %v35989_v62  ;;  %v33964_v62 = vld [vmem:[#allocation3 + $0xca] sm:$0xff] }
 0x8cd   :  { %25123 = vmatprep.mubr.f32.mxu0 %v35991_v31  ;;  %v33970_v31 = vld [vmem:[#allocation3 + $0xe2] sm:$0xff] }
 0x8d0   :  { %25124 = vmatmul.mubr.f32.gmra.mrb[116].mxu0 %v35993_v28  ;;  %v33976_v28 = vld [vmem:[#allocation3 + $0xfa] sm:$0xff] }
 0x8d1   :  { %25126 = vmatprep.mubr.f32.mxu0 %v35995_v40  ;;  %v33982_v40 = vld [vmem:[#allocation3 + $0x112] sm:$0xff] }
 0x8d4   :  { %25127 = vmatmul.mubr.f32.gmra.mrb[118].mxu0 %v35997_v36  ;;  %v33988_v36 = vld [vmem:[#allocation3 + $0x12a] sm:$0xff] }
 0x8d5   :  { %25129 = vmatprep.mubr.f32.mxu0 %v35998_v23  ;;  %v33991_v23 = vld [vmem:[#allocation3 + $0x13a] sm:$0xff] }
 0x8d8   :  { %25130 = vmatmul.mubr.f32.gmra.mrb[120].mxu0 %v36000_v6  ;;  %v33997_v6 = vld [vmem:[#allocation3 + $0x152] sm:$0xff] }
 0x8d9   :  { %25132 = vmatprep.mubr.f32.mxu0 %v36002_v50  ;;  %v34003_v50 = vld [vmem:[#allocation3 + $0x16a] sm:$0xff] }
 0x8dc   :  { %25133 = vmatmul.mubr.f32.gmra.mrb[122].mxu0 %v36004_v49  ;;  %v34006_v49 = vld [vmem:[#allocation3 + $0x172] sm:$0xff] }
 0x8dd   :  { %25135 = vmatprep.mubr.f32.mxu0 %v36006_v22  ;;  %v20251_v22 = vld [vmem:[%s35149_s7 + $0x200] sm:$0xff] }
 0x8e0   :  { %25136 = vmatmul.mubr.f32.gmra.mrb[124].mxu0 %v36008_v58  ;;  %v34015_v58 = vpack.c.bf16 %v20252_v45, %v20251_v22  ;;  %v34099_v22 = vld [vmem:[#allocation3 + $0x30a] sm:$0xff]  ;;  %v34102_v45 = vld [vmem:[#allocation3 + $0x31a] sm:$0xff] }
 0x8e1   :  { %25138 = vmatprep.mubr.f32.mxu0 %v36009_v26  ;;  %v34017_v26 = vld [vmem:[#allocation3 + $0x1ca] sm:$0xff]  ;;  %36018 = vst [vmem:[#allocation43_spill] sm:$0xff] %v34099_v22  ;;  %36019 = vst [vmem:[#allocation44_spill] sm:$0xff] %v34102_v45 }
 0x8e4   :  { %25139 = vmatmul.mubr.f32.gmra.mrb[126].mxu0 %v36010_v53  ;;  %v34030_v53 = vld [vmem:[#allocation3 + $0x1fa] sm:$0xff] }
 0x8e5   :  { %25173 = vmatprep.mubr.f32.mxu0 %v14347_v18  ;;  %v34021_v18 = vld [vmem:[#allocation3 + $0x1d2] sm:$0xff] }
 0x8e8   :  { %25174 = vmatmul.mubr.f32.vlgmr.msra.gmra.mrb[64].mxu0 %v14348_v2  ;;  %v34033_v2 = vld [vmem:[#allocation3 + $0x202] sm:$0xff] }
 0x8e9   :  { %25176 = vmatprep.mubr.f32.mxu0 %v33889_v15  ;;  %26747 = vmatpush3.bf16.msra.mxu0 %v26744_v35  ;;  %v33916_v35 = vld [vmem:[#allocation3 + $0x52] sm:$0xff] }
 0x8ea   :  { %26749 = vmatprep.subr.bf16.mxu0 %v26748_v33 }
 0x8ec   :  { %25177 = vmatmul.mubr.f32.gmra.mrb[66].mxu0 %v33892_v39 }
 0x8ed   :  { %25179 = vmatprep.mubr.f32.mxu0 %v33901_v32  ;;  %26751 = vmatpush3.bf16.msra.mxu0 %v26748_v33  ;;  %v34036_v33 = vld [vmem:[#allocation3 + $0x212] sm:$0xff] }
 0x8ee   :  { %26753 = vmatprep.subr.bf16.mxu0 %v26752_v63 }
 0x8f0   :  { %25180 = vmatmul.mubr.f32.gmra.mrb[68].mxu0 %v33904_v29 }
 0x8f1   :  { %25182 = vmatprep.mubr.f32.mxu0 %v33913_v54  ;;  %26755 = vmatpush3.bf16.msra.mxu0 %v26752_v63  ;;  %v34045_v63 = vld [vmem:[#allocation3 + $0x232] sm:$0xff] }
 0x8f2   :  { %26757 = vmatprep.subr.bf16.mxu0 %v26756_v38 }
 0x8f4   :  { %25183 = vmatmul.mubr.f32.gmra.mrb[70].mxu0 %v33916_v35 }
 0x8f5   :  { %25185 = vmatprep.mubr.f32.mxu0 %v33925_v10  ;;  %26759 = vmatpush3.bf16.msra.mxu0 %v26756_v38  ;;  %v34054_v38 = vld [vmem:[#allocation3 + $0x25a] sm:$0xff] }
 0x8f6   :  { %26761 = vmatprep.subr.bf16.mxu0 %v26760_v43 }
 0x8f8   :  { %25186 = vmatmul.mubr.f32.gmra.mrb[72].mxu0 %v33928_v30 }
 0x8f9   :  { %25188 = vmatprep.mubr.f32.mxu0 %v33937_v13  ;;  %26763 = vmatpush3.bf16.msra.mxu0 %v26760_v43  ;;  %v34063_v43 = vld [vmem:[#allocation3 + $0x27a] sm:$0xff] }
 0x8fa   :  { %26765 = vmatprep.subr.bf16.mxu0 %v26764_v46 }
 0x8fc   :  { %25189 = vmatmul.mubr.f32.gmra.mrb[74].mxu0 %v33940_v12 }
 0x8fd   :  { %25191 = vmatprep.mubr.f32.mxu0 %v33949_v9  ;;  %26767 = vmatpush3.bf16.msra.mxu0 %v26764_v46  ;;  %v34072_v46 = vld [vmem:[#allocation3 + $0x2a2] sm:$0xff] }
 0x8fe   :  { %26769 = vmatprep.subr.bf16.mxu0 %v26768_v17 }
 0x900   :  { %25192 = vmatmul.mubr.f32.gmra.mrb[76].mxu0 %v33952_v19 }
 0x901   :  { %25194 = vmatprep.mubr.f32.mxu0 %v33955_v57  ;;  %26771 = vmatpush3.bf16.msra.mxu0 %v26768_v17  ;;  %v34081_v17 = vld [vmem:[#allocation3 + $0x2c2] sm:$0xff] }
 0x902   :  { %26773 = vmatprep.subr.bf16.mxu0 %v26772_v20  ;;  %36012 = vst [vmem:[#allocation37_spill] sm:$0xff] %v34081_v17 }
 0x904   :  { %25195 = vmatmul.mubr.f32.gmra.mrb[78].mxu0 %v33958_v25 }
 0x905   :  { %25197 = vmatprep.mubr.f32.mxu0 %v33961_v48  ;;  %26775 = vmatpush3.bf16.msra.mxu0 %v26772_v20  ;;  %v34090_v20 = vld [vmem:[#allocation3 + $0x2ea] sm:$0xff] }
 0x906   :  { %26777 = vmatprep.subr.bf16.mxu0 %v34015_v58  ;;  %36015 = vst [vmem:[#allocation40_spill] sm:$0xff] %v34090_v20 }
 0x908   :  { %25198 = vmatmul.mubr.f32.gmra.mrb[80].mxu0 %v33964_v62 }
 0x909   :  { %25200 = vmatprep.mubr.f32.mxu0 %v33967_v21 }
 0x90c   :  { %25201 = vmatmul.mubr.f32.gmra.mrb[82].mxu0 %v33970_v31 }
 0x90d   :  { %25203 = vmatprep.mubr.f32.mxu0 %v33973_v8 }
 0x910   :  { %25204 = vmatmul.mubr.f32.gmra.mrb[84].mxu0 %v33976_v28 }
 0x911   :  { %25206 = vmatprep.mubr.f32.mxu0 %v33979_v41 }
 0x914   :  { %25207 = vmatmul.mubr.f32.gmra.mrb[86].mxu0 %v33982_v40 }
 0x915   :  { %25209 = vmatprep.mubr.f32.mxu0 %v33985_v3 }
 0x918   :  { %25210 = vmatmul.mubr.f32.gmra.mrb[88].mxu0 %v33988_v36 }
 0x919   :  { %25212 = vmatprep.mubr.f32.mxu0 %v33991_v23 }
 0x91c   :  { %25213 = vmatmul.mubr.f32.gmra.mrb[90].mxu0 %v33994_v61 }
 0x91d   :  { %25215 = vmatprep.mubr.f32.mxu0 %v33997_v6 }
 0x920   :  { %25216 = vmatmul.mubr.f32.gmra.mrb[92].mxu0 %v34000_v11 }
 0x921   :  { %25218 = vmatprep.mubr.f32.mxu0 %v34003_v50 }
 0x924   :  { %25219 = vmatmul.mubr.f32.gmra.mrb[94].mxu0 %v34006_v49 }
 0x925   :  { %25221 = vmatprep.mubr.f32.mxu0 %v14379_v24  ;;  %v34093_v24 = vld [vmem:[#allocation3 + $0x2f2] sm:$0xff] }
 0x926   :  { %36016 = vst [vmem:[#allocation41_spill] sm:$0xff] %v34093_v24 }
 0x928   :  { %25222 = vmatmul.mubr.f32.gmra.mrb[96].mxu0 %v14380_v42  ;;  %v34096_v42 = vld [vmem:[#allocation3 + $0x302] sm:$0xff] }
 0x929   :  { %25224 = vmatprep.mubr.f32.mxu0 %v34017_v26  ;;  %36017 = vst [vmem:[#allocation42_spill] sm:$0xff] %v34096_v42 }
 0x92c   :  { %25225 = vmatmul.mubr.f32.gmra.mrb[98].mxu0 %v34021_v18 }
 0x92d   :  { %25227 = vmatprep.mubr.f32.mxu0 %v34024_v59 }
 0x930   :  { %25228 = vmatmul.mubr.f32.gmra.mrb[100].mxu0 %v34027_v16 }
 0x931   :  { %25230 = vmatprep.mubr.f32.mxu0 %v34030_v53 }
 0x934   :  { %25231 = vmatmul.mubr.f32.gmra.mrb[102].mxu0 %v34033_v2 }
 0x935   :  { %25233 = vmatprep.mubr.f32.mxu0 %v34036_v33 }
 0x938   :  { %25234 = vmatmul.mubr.f32.gmra.mrb[104].mxu0 %v34039_v37 }
 0x939   :  { %25236 = vmatprep.mubr.f32.mxu0 %v34042_v7 }
 0x93c   :  { %25237 = vmatmul.mubr.f32.gmra.mrb[106].mxu0 %v34045_v63 }
 0x93d   :  { %25239 = vmatprep.mubr.f32.mxu0 %v34048_v47 }
 0x940   :  { %25240 = vmatmul.mubr.f32.gmra.mrb[108].mxu0 %v34051_v4 }
 0x941   :  { %25242 = vmatprep.mubr.f32.mxu0 %v34054_v38 }
 0x944   :  { %25243 = vmatmul.mubr.f32.gmra.mrb[110].mxu0 %v34057_v0 }
 0x945   :  { %25245 = vmatprep.mubr.f32.mxu0 %v34060_v5 }
 0x948   :  { %25246 = vmatmul.mubr.f32.gmra.mrb[112].mxu0 %v34063_v43 }
 0x949   :  { %25248 = vmatprep.mubr.f32.mxu0 %v34066_v60 }
 0x94c   :  { %25249 = vmatmul.mubr.f32.gmra.mrb[114].mxu0 %v34069_v52 }
 0x94d   :  { %25251 = vmatprep.mubr.f32.mxu0 %v34072_v46 }
 0x950   :  { %25252 = vmatmul.mubr.f32.gmra.mrb[116].mxu0 %v34075_v14 }
 0x951   :  { %25254 = vmatprep.mubr.f32.mxu0 %v34078_v55  ;;  %v34120_v55 = vld [vmem:[#allocation3 + $0x30] sm:$0xff] }
 0x952   :  { %36021 = vst [vmem:[#allocation46_spill] sm:$0xff] %v34120_v55 }
 0x954   :  { %25255 = vmatmul.mubr.f32.gmra.mrb[118].mxu0 %v34081_v17  ;;  %v20256_v17 = vld [vmem:[%s35149_s7 + $0x228] sm:$0xff] }
 0x955   :  { %25257 = vmatprep.mubr.f32.mxu0 %v34084_v56 }
 0x958   :  { %25258 = vmatmul.mubr.f32.gmra.mrb[120].mxu0 %v34087_v51  ;;  %v34105_v51 = vld [vmem:[#allocation3 + $0x322] sm:$0xff] }
 0x959   :  { %25260 = vmatprep.mubr.f32.mxu0 %v34090_v20  ;;  %36020 = vst [vmem:[#allocation45_spill] sm:$0xff] %v34105_v51  ;;  %v20253_v20 = vld [vmem:[%s35149_s7 + $0x210] sm:$0xff] }
 0x95c   :  { %25261 = vmatmul.mubr.f32.gmra.mrb[122].mxu0 %v34093_v24  ;;  %v20254_v24 = vld [vmem:[%s35149_s7 + $0x218] sm:$0xff] }
 0x95d   :  { %25263 = vmatprep.mubr.f32.mxu0 %v34096_v42  ;;  %v15005_v42 = vld [vmem:[#allocation3 + $0x18] sm:$0xff]  ;;  %v26780_v56 = vpack.c.bf16 %v20254_v24, %v20253_v20  ;;  %v20257_v20 = vld [vmem:[%s35149_s7 + $0x230] sm:$0xff] }
 0x95e   :  { %v20258_v24 = vld [vmem:[%s35149_s7 + $0x238] sm:$0xff] }
 0x960   :  { %25264 = vmatmul.mubr.f32.gmra.mrb[124].mxu0 %v34099_v22  ;;  %v15006_v22 = vld [vmem:[#allocation3 + $0x20] sm:$0xff] }
 0x961   :  { %25266 = vmatprep.mubr.f32.mxu0 %v34102_v45  ;;  %v20255_v45 = vld [vmem:[%s35149_s7 + $0x220] sm:$0xff] }
 0x964   :  { %25267 = vmatmul.mubr.f32.gmra.mrb[126].mxu0 %v34105_v51  ;;  %v26784_v51 = vpack.c.bf16 %v20256_v17, %v20255_v45  ;;  %v34136_v17 = vld [vmem:[#allocation3 + $0x50] sm:$0xff]  ;;  %v20259_v45 = vld [vmem:[%s35149_s7 + $0x240] sm:$0xff] }
 0x965   :  { %25301 = vmatprep.mubr.f32.mxu0 %v15005_v42  ;;  %v34124_v42 = vld [vmem:[#allocation3 + $0x38] sm:$0xff]  ;;  %36024 = vst [vmem:[#allocation49_spill] sm:$0xff] %v34136_v17 }
 0x966   :  { %36022 = vst [vmem:[#allocation47_spill] sm:$0xff] %v34124_v42 }
 0x968   :  { %25302 = vmatmul.mubr.f32.vlgmr.msra.gmra.mrb[64].mxu0 %v15006_v22  ;;  %v34133_v22 = vld [vmem:[#allocation3 + $0x48] sm:$0xff] }
 0x969   :  { %25304 = vmatprep.mubr.f32.mxu0 %v34120_v55  ;;  %26779 = vmatpush3.bf16.msra.mxu0 %v34015_v58  ;;  %36023 = vst [vmem:[#allocation48_spill] sm:$0xff] %v34133_v22  ;;  %v26788_v58 = vpack.c.bf16 %v20258_v24, %v20257_v20  ;;  %v20260_v55 = vld [vmem:[%s35149_s7 + $0x248] sm:$0xff]  ;;  %v20261_v24 = vld [vmem:[%s35149_s7 + $0x250] sm:$0xff] }
 0x96a   :  { %26781 = vmatprep.subr.bf16.mxu0 %v26780_v56  ;;  %v34148_v20 = vld [vmem:[#allocation3 + $0x68] sm:$0xff] }
 0x96b   :  { %36026 = vst [vmem:[#allocation51_spill] sm:$0xff] %v34148_v20 }
 0x96c   :  { %25305 = vmatmul.mubr.f32.gmra.mrb[66].mxu0 %v34124_v42  ;;  %v34145_v42 = vld [vmem:[#allocation3 + $0x60] sm:$0xff] }
 0x96d   :  { %25307 = vmatprep.mubr.f32.mxu0 %v34133_v22  ;;  %26783 = vmatpush3.bf16.msra.mxu0 %v26780_v56  ;;  %36025 = vst [vmem:[#allocation50_spill] sm:$0xff] %v34145_v42  ;;  %v26792_v56 = vpack.c.bf16 %v20260_v55, %v20259_v45  ;;  %v20262_v22 = vld [vmem:[%s35149_s7 + $0x258] sm:$0xff]  ;;  %v34160_v55 = vld [vmem:[#allocation3 + $0x80] sm:$0xff] }
 0x96e   :  { %26785 = vmatprep.subr.bf16.mxu0 %v26784_v51  ;;  %36028 = vst [vmem:[#allocation53_spill] sm:$0xff] %v34160_v55  ;;  %v20263_v45 = vld [vmem:[%s35149_s7 + $0x260] sm:$0xff] }
 0x970   :  { %25308 = vmatmul.mubr.f32.gmra.mrb[68].mxu0 %v34136_v17  ;;  %v34157_v17 = vld [vmem:[#allocation3 + $0x78] sm:$0xff] }
 0x971   :  { %25310 = vmatprep.mubr.f32.mxu0 %v34145_v42  ;;  %26787 = vmatpush3.bf16.msra.mxu0 %v26784_v51  ;;  %36027 = vst [vmem:[#allocation52_spill] sm:$0xff] %v34157_v17  ;;  %v26796_v51 = vpack.c.bf16 %v20262_v22, %v20261_v24  ;;  %v20264_v42 = vld [vmem:[%s35149_s7 + $0x268] sm:$0xff]  ;;  %v34172_v22 = vld [vmem:[#allocation3 + $0x98] sm:$0xff]  ;;  %v20265_v24 = vld [vmem:[%s35149_s7 + $0x270] sm:$0xff] }
 0x972   :  { %26789 = vmatprep.subr.bf16.mxu0 %v26788_v58  ;;  %36030 = vst [vmem:[#allocation55_spill] sm:$0xff] %v34172_v22 }
 0x974   :  { %25311 = vmatmul.mubr.f32.gmra.mrb[70].mxu0 %v34148_v20  ;;  %v34169_v20 = vld [vmem:[#allocation3 + $0x90] sm:$0xff] }
 0x975   :  { %25313 = vmatprep.mubr.f32.mxu0 %v34157_v17  ;;  %26791 = vmatpush3.bf16.msra.mxu0 %v26788_v58  ;;  %36029 = vst [vmem:[#allocation54_spill] sm:$0xff] %v34169_v20  ;;  %v26800_v58 = vpack.c.bf16 %v20264_v42, %v20263_v45  ;;  %v20266_v17 = vld [vmem:[%s35149_s7 + $0x278] sm:$0xff]  ;;  %v34184_v42 = vld [vmem:[#allocation3 + $0xb0] sm:$0xff]  ;;  %v34187_v45 = vld [vmem:[#allocation3 + $0xc0] sm:$0xff] }
 0x976   :  { %26793 = vmatprep.subr.bf16.mxu0 %v26792_v56  ;;  %36031 = vst [vmem:[#allocation56_spill] sm:$0xff] %v34187_v45 }
 0x978   :  { %25314 = vmatmul.mubr.f32.gmra.mrb[72].mxu0 %v34160_v55  ;;  %v34181_v55 = vld [vmem:[#allocation3 + $0xa8] sm:$0xff] }
 0x979   :  { %25316 = vmatprep.mubr.f32.mxu0 %v34169_v20  ;;  %26795 = vmatpush3.bf16.msra.mxu0 %v26792_v56  ;;  %v26804_v56 = vpack.c.bf16 %v20266_v17, %v20265_v24  ;;  %v34190_v20 = vld [vmem:[#allocation3 + $0xc8] sm:$0xff]  ;;  %v34196_v17 = vld [vmem:[#allocation3 + $0xe0] sm:$0xff]  ;;  %v34202_v24 = vld [vmem:[#allocation3 + $0xf8] sm:$0xff] }
 0x97a   :  { %26797 = vmatprep.subr.bf16.mxu0 %v26796_v51  ;;  %36032 = vst [vmem:[#allocation57_spill] sm:$0xff] %v34190_v20  ;;  %36034 = vst [vmem:[#allocation59_spill] sm:$0xff] %v34196_v17 }
 0x97b   :  { %36036 = vst [vmem:[#allocation61_spill] sm:$0xff] %v34202_v24 }
 0x97c   :  { %25317 = vmatmul.mubr.f32.gmra.mrb[74].mxu0 %v34172_v22  ;;  %v34193_v22 = vld [vmem:[#allocation3 + $0xd8] sm:$0xff] }
 0x97d   :  { %25319 = vmatprep.mubr.f32.mxu0 %v34181_v55  ;;  %26799 = vmatpush3.bf16.msra.mxu0 %v26796_v51  ;;  %36033 = vst [vmem:[#allocation58_spill] sm:$0xff] %v34193_v22  ;;  %v34199_v51 = vld [vmem:[#allocation3 + $0xf0] sm:$0xff] }
 0x97e   :  { %26801 = vmatprep.subr.bf16.mxu0 %v26800_v58  ;;  %36035 = vst [vmem:[#allocation60_spill] sm:$0xff] %v34199_v51 }
 0x980   :  { %25320 = vmatmul.mubr.f32.gmra.mrb[76].mxu0 %v34184_v42 }
 0x981   :  { %25322 = vmatprep.mubr.f32.mxu0 %v34187_v45  ;;  %26803 = vmatpush3.bf16.msra.mxu0 %v26800_v58  ;;  %v34205_v58 = vld [vmem:[#allocation3 + $0x108] sm:$0xff]  ;;  %v34249_v45 = vld [vmem:[#allocation3 + $0x1e0] sm:$0xff] }
 0x982   :  { %26805 = vmatprep.subr.bf16.mxu0 %v26804_v56  ;;  %36037 = vst [vmem:[#allocation62_spill] sm:$0xff] %v34205_v58  ;;  %36049 = vst [vmem:[#allocation74_spill] sm:$0xff] %v34249_v45 }
 0x984   :  { %25323 = vmatmul.mubr.f32.gmra.mrb[78].mxu0 %v34190_v20  ;;  %v34208_v20 = vld [vmem:[#allocation3 + $0x110] sm:$0xff] }
 0x985   :  { %25325 = vmatprep.mubr.f32.mxu0 %v34193_v22  ;;  %26807 = vmatpush3.bf16.msra.mxu0 %v26804_v56  ;;  %36038 = vst [vmem:[#allocation63_spill] sm:$0xff] %v34208_v20  ;;  %v34211_v56 = vld [vmem:[#allocation3 + $0x120] sm:$0xff] }
 0x986   :  { %36039 = vst [vmem:[#allocation64_spill] sm:$0xff] %v34211_v56 }
 0x988   :  { %25326 = vmatmul.mubr.f32.gmra.mrb[80].mxu0 %v34196_v17  ;;  %v34214_v17 = vld [vmem:[#allocation3 + $0x128] sm:$0xff] }
 0x989   :  { %25328 = vmatprep.mubr.f32.mxu0 %v34199_v51  ;;  %36040 = vst [vmem:[#allocation65_spill] sm:$0xff] %v34214_v17  ;;  %v34217_v51 = vld [vmem:[#allocation3 + $0x138] sm:$0xff] }
 0x98a   :  { %36041 = vst [vmem:[#allocation66_spill] sm:$0xff] %v34217_v51 }
 0x98c   :  { %25329 = vmatmul.mubr.f32.gmra.mrb[82].mxu0 %v34202_v24  ;;  %v34220_v24 = vld [vmem:[#allocation3 + $0x140] sm:$0xff] }
 0x98d   :  { %25331 = vmatprep.mubr.f32.mxu0 %v34205_v58  ;;  %36042 = vst [vmem:[#allocation67_spill] sm:$0xff] %v34220_v24  ;;  %v34223_v58 = vld [vmem:[#allocation3 + $0x150] sm:$0xff] }
 0x98e   :  { %36043 = vst [vmem:[#allocation68_spill] sm:$0xff] %v34223_v58 }
 0x990   :  { %25332 = vmatmul.mubr.f32.gmra.mrb[84].mxu0 %v34208_v20  ;;  %v34226_v20 = vld [vmem:[#allocation3 + $0x158] sm:$0xff] }
 0x991   :  { %25334 = vmatprep.mubr.f32.mxu0 %v34211_v56  ;;  %36044 = vst [vmem:[#allocation69_spill] sm:$0xff] %v34226_v20  ;;  %v34229_v56 = vld [vmem:[#allocation3 + $0x168] sm:$0xff] }
 0x992   :  { %36045 = vst [vmem:[#allocation70_spill] sm:$0xff] %v34229_v56 }
 0x994   :  { %25335 = vmatmul.mubr.f32.gmra.mrb[86].mxu0 %v34214_v17  ;;  %v34232_v17 = vld [vmem:[#allocation3 + $0x170] sm:$0xff] }
 0x995   :  { %25337 = vmatprep.mubr.f32.mxu0 %v34217_v51  ;;  %36046 = vst [vmem:[#allocation71_spill] sm:$0xff] %v34232_v17  ;;  %v34235_v51 = vld [vmem:[#allocation3 + $0x180] sm:$0xff] }
 0x996   :  { %36047 = vst [vmem:[#allocation72_spill] sm:$0xff] %v34235_v51 }
 0x998   :  { %25338 = vmatmul.mubr.f32.gmra.mrb[88].mxu0 %v34220_v24  ;;  %v34238_v24 = vld [vmem:[#allocation3 + $0x188] sm:$0xff] }
 0x999   :  { %25340 = vmatprep.mubr.f32.mxu0 %v34223_v58  ;;  %36048 = vst [vmem:[#allocation73_spill] sm:$0xff] %v34238_v24  ;;  %v15037_v58 = vld [vmem:[#allocation3 + $0x1c8] sm:$0xff] }
 0x99c   :  { %25341 = vmatmul.mubr.f32.gmra.mrb[90].mxu0 %v34226_v20  ;;  %v20267_v20 = vld [vmem:[%s35149_s7 + $0x280] sm:$0xff] }
 0x99d   :  { %25343 = vmatprep.mubr.f32.mxu0 %v34229_v56  ;;  %v20268_v56 = vld [vmem:[%s35149_s7 + $0x288] sm:$0xff] }
 0x99e   :  { %v34247_v22 = vpack.c.bf16 %v20268_v56, %v20267_v20  ;;  %v34262_v20 = vld [vmem:[#allocation3 + $0x210] sm:$0xff]  ;;  %v34268_v56 = vld [vmem:[#allocation3 + $0x228] sm:$0xff] }
 0x99f   :  { %36053 = vst [vmem:[#allocation22_spill] sm:$0xff] %v34262_v20  ;;  %36055 = vst [vmem:[#allocation10_spill] sm:$0xff] %v34268_v56 }
 0x9a0   :  { %25344 = vmatmul.mubr.f32.gmra.mrb[92].mxu0 %v34232_v17  ;;  %v15038_v17 = vld [vmem:[#allocation3 + $0x1d0] sm:$0xff]  ;;  %26809 = vmatprep.subr.bf16.mxu0 %v34247_v22 }
 0x9a1   :  { %25346 = vmatprep.mubr.f32.mxu0 %v34235_v51  ;;  %v34259_v51 = vld [vmem:[#allocation3 + $0x200] sm:$0xff] }
 0x9a2   :  { %36052 = vst [vmem:[#allocation77_spill] sm:$0xff] %v34259_v51 }
 0x9a4   :  { %25347 = vmatmul.mubr.f32.gmra.mrb[94].mxu0 %v34238_v24  ;;  %v34253_v24 = vld [vmem:[#allocation3 + $0x1e8] sm:$0xff] }
 0x9a5   :  { %25349 = vmatprep.mubr.f32.mxu0 %v15037_v58  ;;  %36050 = vst [vmem:[#allocation75_spill] sm:$0xff] %v34253_v24  ;;  %v34256_v58 = vld [vmem:[#allocation3 + $0x1f8] sm:$0xff] }
 0x9a6   :  { %36051 = vst [vmem:[#allocation76_spill] sm:$0xff] %v34256_v58 }
 0x9a8   :  { %25350 = vmatmul.mubr.f32.gmra.mrb[96].mxu0 %v15038_v17  ;;  %v34265_v17 = vld [vmem:[#allocation3 + $0x218] sm:$0xff] }
 0x9a9   :  { %25352 = vmatprep.mubr.f32.mxu0 %v34249_v45  ;;  %36054 = vst [vmem:[#allocation9_spill] sm:$0xff] %v34265_v17  ;;  %v36071_v45 = vld [vmem:[#allocation35_spill] sm:$0xff] }
 0x9ac   :  { %25353 = vmatmul.mubr.f32.gmra.mrb[98].mxu0 %v34253_v24  ;;  %v34271_v24 = vld [vmem:[#allocation3 + $0x230] sm:$0xff] }
 0x9ad   :  { %25355 = vmatprep.mubr.f32.mxu0 %v34256_v58  ;;  %36056 = vst [vmem:[#allocation11_spill] sm:$0xff] %v34271_v24  ;;  %v34274_v58 = vld [vmem:[#allocation3 + $0x240] sm:$0xff] }
 0x9ae   :  { %36057 = vst [vmem:[#allocation12_spill] sm:$0xff] %v34274_v58 }
 0x9b0   :  { %25356 = vmatmul.mubr.f32.gmra.mrb[100].mxu0 %v34259_v51  ;;  %v34277_v51 = vld [vmem:[#allocation3 + $0x248] sm:$0xff] }
 0x9b1   :  { %25358 = vmatprep.mubr.f32.mxu0 %v34262_v20  ;;  %36058 = vst [vmem:[#allocation13_spill] sm:$0xff] %v34277_v51  ;;  %v34280_v20 = vld [vmem:[#allocation3 + $0x258] sm:$0xff] }
 0x9b2   :  { %36059 = vst [vmem:[#allocation14_spill] sm:$0xff] %v34280_v20 }
 0x9b4   :  { %25359 = vmatmul.mubr.f32.gmra.mrb[102].mxu0 %v34265_v17  ;;  %v34283_v17 = vld [vmem:[#allocation3 + $0x260] sm:$0xff] }
 0x9b5   :  { %25361 = vmatprep.mubr.f32.mxu0 %v34268_v56  ;;  %36060 = vst [vmem:[#allocation15_spill] sm:$0xff] %v34283_v17  ;;  %v34286_v56 = vld [vmem:[#allocation3 + $0x270] sm:$0xff] }
 0x9b6   :  { %36061 = vst [vmem:[#allocation16_spill] sm:$0xff] %v34286_v56 }
 0x9b8   :  { %25362 = vmatmul.mubr.f32.gmra.mrb[104].mxu0 %v34271_v24  ;;  %v34289_v24 = vld [vmem:[#allocation3 + $0x278] sm:$0xff] }
 0x9b9   :  { %25364 = vmatprep.mubr.f32.mxu0 %v34274_v58  ;;  %36062 = vst [vmem:[#allocation17_spill] sm:$0xff] %v34289_v24  ;;  %v34292_v58 = vld [vmem:[#allocation3 + $0x288] sm:$0xff] }
 0x9ba   :  { %36063 = vst [vmem:[#allocation18_spill] sm:$0xff] %v34292_v58 }
 0x9bc   :  { %25365 = vmatmul.mubr.f32.gmra.mrb[106].mxu0 %v34277_v51  ;;  %v34295_v51 = vld [vmem:[#allocation3 + $0x290] sm:$0xff] }
 0x9bd   :  { %25367 = vmatprep.mubr.f32.mxu0 %v34280_v20  ;;  %36064 = vst [vmem:[#allocation19_spill] sm:$0xff] %v34295_v51  ;;  %v34298_v20 = vld [vmem:[#allocation3 + $0x2a0] sm:$0xff] }
 0x9be   :  { %36065 = vst [vmem:[#allocation20_spill] sm:$0xff] %v34298_v20 }
 0x9c0   :  { %25368 = vmatmul.mubr.f32.gmra.mrb[108].mxu0 %v34283_v17  ;;  %v34301_v17 = vld [vmem:[#allocation3 + $0x2a8] sm:$0xff] }
 0x9c1   :  { %25370 = vmatprep.mubr.f32.mxu0 %v34286_v56  ;;  %36066 = vst [vmem:[#allocation78_spill] sm:$0xff] %v34301_v17  ;;  %v34304_v56 = vld [vmem:[#allocation3 + $0x2b8] sm:$0xff] }
 0x9c4   :  { %25371 = vmatmul.mubr.f32.gmra.mrb[110].mxu0 %v34289_v24  ;;  %v36067_v24 = vld [vmem:[#allocation30_spill] sm:$0xff] }
 0x9c5   :  { %25373 = vmatprep.mubr.f32.mxu0 %v34292_v58  ;;  %v36068_v58 = vld [vmem:[#allocation32_spill] sm:$0xff] }
 0x9c8   :  { %25374 = vmatmul.mubr.f32.gmra.mrb[112].mxu0 %v34295_v51  ;;  %v36069_v51 = vld [vmem:[#allocation33_spill] sm:$0xff] }
 0x9c9   :  { %25376 = vmatprep.mubr.f32.mxu0 %v34298_v20  ;;  %v36070_v20 = vld [vmem:[#allocation34_spill] sm:$0xff] }
 0x9cc   :  { %25377 = vmatmul.mubr.f32.gmra.mrb[114].mxu0 %v34301_v17  ;;  %v34316_v17 = vld [vmem:[#allocation3 + $0x330] sm:$0xff] }
 0x9cd   :  { %25379 = vmatprep.mubr.f32.mxu0 %v34304_v56 }
 0x9d0   :  { %25380 = vmatmul.mubr.f32.gmra.mrb[116].mxu0 %v36067_v24  ;;  %v34319_v24 = vld [vmem:[#allocation3 + $0x338] sm:$0xff] }
 0x9d1   :  { %25382 = vmatprep.mubr.f32.mxu0 %v33669_v27  ;;  %36072 = vst [vmem:[#allocation79_spill] sm:$0xff] %v34319_v24  ;;  %v15663_v27 = vld [vmem:[#allocation3 + $0x19] sm:$0xff] }
 0x9d4   :  { %25383 = vmatmul.mubr.f32.gmra.mrb[118].mxu0 %v36068_v58  ;;  %v20272_v58 = vld [vmem:[%s35149_s7 + $0x2a8] sm:$0xff] }
 0x9d5   :  { %25385 = vmatprep.mubr.f32.mxu0 %v33687_v1  ;;  %v20269_v1 = vld [vmem:[%s35149_s7 + $0x290] sm:$0xff] }
 0x9d8   :  { %25386 = vmatmul.mubr.f32.gmra.mrb[120].mxu0 %v33689_v34  ;;  %v20270_v34 = vld [vmem:[%s35149_s7 + $0x298] sm:$0xff] }
 0x9d9   :  { %25388 = vmatprep.mubr.f32.mxu0 %v36069_v51  ;;  %v20271_v51 = vld [vmem:[%s35149_s7 + $0x2a0] sm:$0xff] }
 0x9dc   :  { %25389 = vmatmul.mubr.f32.gmra.mrb[122].mxu0 %v36070_v20  ;;  %v34334_v20 = vld [vmem:[#allocation3 + $0x31] sm:$0xff] }
 0x9dd   :  { %25391 = vmatprep.mubr.f32.mxu0 %v36071_v45  ;;  %v26812_v45 = vpack.c.bf16 %v20270_v34, %v20269_v1  ;;  %36073 = vst [vmem:[#allocation80_spill] sm:$0xff] %v34334_v20  ;;  %v20273_v1 = vld [vmem:[%s35149_s7 + $0x2b0] sm:$0xff]  ;;  %v20274_v34 = vld [vmem:[%s35149_s7 + $0x2b8] sm:$0xff] }
 0x9e0   :  { %25392 = vmatmul.mubr.f32.gmra.mrb[124].mxu0 %v33704_v44  ;;  %v15664_v44 = vld [vmem:[#allocation3 + $0x21] sm:$0xff] }
 0x9e1   :  { %25394 = vmatprep.mubr.f32.mxu0 %v34316_v17 }
 0x9e4   :  { %25395 = vmatmul.mubr.f32.gmra.mrb[126].mxu0 %v34319_v24  ;;  %v26816_v24 = vpack.c.bf16 %v20272_v58, %v20271_v51  ;;  %v34350_v51 = vld [vmem:[#allocation3 + $0x51] sm:$0xff]  ;;  %v20275_v58 = vld [vmem:[%s35149_s7 + $0x2c0] sm:$0xff] }
 0x9e5   :  { %25429 = vmatprep.mubr.f32.mxu0 %v15663_v27  ;;  %v34338_v27 = vld [vmem:[#allocation3 + $0x39] sm:$0xff]  ;;  %36076 = vst [vmem:[#allocation83_spill] sm:$0xff] %v34350_v51 }
 0x9e6   :  { %36074 = vst [vmem:[#allocation81_spill] sm:$0xff] %v34338_v27 }
 0x9e8   :  { %25430 = vmatmul.mubr.f32.vlgmr.msra.gmra.mrb[64].mxu0 %v15664_v44  ;;  %v34347_v44 = vld [vmem:[#allocation3 + $0x49] sm:$0xff] }
 0x9e9   :  { %25432 = vmatprep.mubr.f32.mxu0 %v34334_v20  ;;  %26811 = vmatpush3.bf16.msra.mxu0 %v34247_v22  ;;  %36075 = vst [vmem:[#allocation82_spill] sm:$0xff] %v34347_v44  ;;  %v26820_v22 = vpack.c.bf16 %v20274_v34, %v20273_v1  ;;  %v20276_v20 = vld [vmem:[%s35149_s7 + $0x2c8] sm:$0xff]  ;;  %v20277_v34 = vld [vmem:[%s35149_s7 + $0x2d0] sm:$0xff] }
 0x9ea   :  { %26813 = vmatprep.subr.bf16.mxu0 %v26812_v45  ;;  %v34362_v1 = vld [vmem:[#allocation3 + $0x69] sm:$0xff] }
 0x9eb   :  { %36078 = vst [vmem:[#allocation85_spill] sm:$0xff] %v34362_v1 }
 0x9ec   :  { %25433 = vmatmul.mubr.f32.gmra.mrb[66].mxu0 %v34338_v27  ;;  %v34359_v27 = vld [vmem:[#allocation3 + $0x61] sm:$0xff] }
 0x9ed   :  { %25435 = vmatprep.mubr.f32.mxu0 %v34347_v44  ;;  %26815 = vmatpush3.bf16.msra.mxu0 %v26812_v45  ;;  %36077 = vst [vmem:[#allocation84_spill] sm:$0xff] %v34359_v27  ;;  %v26824_v45 = vpack.c.bf16 %v20276_v20, %v20275_v58  ;;  %v20278_v44 = vld [vmem:[%s35149_s7 + $0x2d8] sm:$0xff]  ;;  %v34374_v20 = vld [vmem:[#allocation3 + $0x81] sm:$0xff] }
 0x9ee   :  { %26817 = vmatprep.subr.bf16.mxu0 %v26816_v24  ;;  %36080 = vst [vmem:[#allocation87_spill] sm:$0xff] %v34374_v20  ;;  %v20279_v58 = vld [vmem:[%s35149_s7 + $0x2e0] sm:$0xff] }
 0x9f0   :  { %25436 = vmatmul.mubr.f32.gmra.mrb[68].mxu0 %v34350_v51  ;;  %v34371_v51 = vld [vmem:[#allocation3 + $0x79] sm:$0xff] }
 0x9f1   :  { %25438 = vmatprep.mubr.f32.mxu0 %v34359_v27  ;;  %26819 = vmatpush3.bf16.msra.mxu0 %v26816_v24  ;;  %36079 = vst [vmem:[#allocation86_spill] sm:$0xff] %v34371_v51  ;;  %v26828_v24 = vpack.c.bf16 %v20278_v44, %v20277_v34  ;;  %v20280_v27 = vld [vmem:[%s35149_s7 + $0x2e8] sm:$0xff]  ;;  %v34386_v44 = vld [vmem:[#allocation3 + $0x99] sm:$0xff]  ;;  %v20281_v34 = vld [vmem:[%s35149_s7 + $0x2f0] sm:$0xff] }
 0x9f2   :  { %26821 = vmatprep.subr.bf16.mxu0 %v26820_v22  ;;  %36082 = vst [vmem:[#allocation89_spill] sm:$0xff] %v34386_v44 }
 0x9f4   :  { %25439 = vmatmul.mubr.f32.gmra.mrb[70].mxu0 %v34362_v1  ;;  %v34383_v1 = vld [vmem:[#allocation3 + $0x91] sm:$0xff] }
 0x9f5   :  { %25441 = vmatprep.mubr.f32.mxu0 %v34371_v51  ;;  %26823 = vmatpush3.bf16.msra.mxu0 %v26820_v22  ;;  %36081 = vst [vmem:[#allocation88_spill] sm:$0xff] %v34383_v1  ;;  %v26832_v22 = vpack.c.bf16 %v20280_v27, %v20279_v58  ;;  %v20282_v51 = vld [vmem:[%s35149_s7 + $0x2f8] sm:$0xff]  ;;  %v34401_v58 = vld [vmem:[#allocation3 + $0xc1] sm:$0xff] }
 0x9f6   :  { %26825 = vmatprep.subr.bf16.mxu0 %v26824_v45  ;;  %v34398_v27 = vld [vmem:[#allocation3 + $0xb1] sm:$0xff]  ;;  %36083 = vst [vmem:[#allocation90_spill] sm:$0xff] %v34401_v58 }
 0x9f8   :  { %25442 = vmatmul.mubr.f32.gmra.mrb[72].mxu0 %v34374_v20  ;;  %v34395_v20 = vld [vmem:[#allocation3 + $0xa9] sm:$0xff] }
 0x9f9   :  { %25444 = vmatprep.mubr.f32.mxu0 %v34383_v1  ;;  %26827 = vmatpush3.bf16.msra.mxu0 %v26824_v45  ;;  %v26836_v45 = vpack.c.bf16 %v20282_v51, %v20281_v34  ;;  %v34404_v1 = vld [vmem:[#allocation3 + $0xc9] sm:$0xff]  ;;  %v34410_v51 = vld [vmem:[#allocation3 + $0xe1] sm:$0xff]  ;;  %v34416_v34 = vld [vmem:[#allocation3 + $0xf9] sm:$0xff] }
 0x9fa   :  { %26829 = vmatprep.subr.bf16.mxu0 %v26828_v24  ;;  %36084 = vst [vmem:[#allocation91_spill] sm:$0xff] %v34404_v1  ;;  %36086 = vst [vmem:[#allocation93_spill] sm:$0xff] %v34410_v51 }
 0x9fb   :  { %36088 = vst [vmem:[#allocation95_spill] sm:$0xff] %v34416_v34 }
 0x9fc   :  { %25445 = vmatmul.mubr.f32.gmra.mrb[74].mxu0 %v34386_v44  ;;  %v34407_v44 = vld [vmem:[#allocation3 + $0xd9] sm:$0xff] }
 0x9fd   :  { %25447 = vmatprep.mubr.f32.mxu0 %v34395_v20  ;;  %26831 = vmatpush3.bf16.msra.mxu0 %v26828_v24  ;;  %36085 = vst [vmem:[#allocation92_spill] sm:$0xff] %v34407_v44  ;;  %v34413_v24 = vld [vmem:[#allocation3 + $0xf1] sm:$0xff] }
 0x9fe   :  { %26833 = vmatprep.subr.bf16.mxu0 %v26832_v22  ;;  %36087 = vst [vmem:[#allocation94_spill] sm:$0xff] %v34413_v24 }
 0xa00   :  { %25448 = vmatmul.mubr.f32.gmra.mrb[76].mxu0 %v34398_v27 }
 0xa01   :  { %25450 = vmatprep.mubr.f32.mxu0 %v34401_v58  ;;  %26835 = vmatpush3.bf16.msra.mxu0 %v26832_v22  ;;  %v34419_v22 = vld [vmem:[#allocation3 + $0x109] sm:$0xff]  ;;  %v34463_v58 = vld [vmem:[#allocation3 + $0x1e1] sm:$0xff] }
 0xa02   :  { %26837 = vmatprep.subr.bf16.mxu0 %v26836_v45  ;;  %36089 = vst [vmem:[#allocation96_spill] sm:$0xff] %v34419_v22  ;;  %36101 = vst [vmem:[#allocation108_spill] sm:$0xff] %v34463_v58 }
 0xa04   :  { %25451 = vmatmul.mubr.f32.gmra.mrb[78].mxu0 %v34404_v1  ;;  %v34422_v1 = vld [vmem:[#allocation3 + $0x111] sm:$0xff] }
 0xa05   :  { %25453 = vmatprep.mubr.f32.mxu0 %v34407_v44  ;;  %26839 = vmatpush3.bf16.msra.mxu0 %v26836_v45  ;;  %36090 = vst [vmem:[#allocation97_spill] sm:$0xff] %v34422_v1  ;;  %v34425_v45 = vld [vmem:[#allocation3 + $0x121] sm:$0xff] }
 0xa06   :  { %36091 = vst [vmem:[#allocation98_spill] sm:$0xff] %v34425_v45 }
 0xa08   :  { %25454 = vmatmul.mubr.f32.gmra.mrb[80].mxu0 %v34410_v51  ;;  %v34428_v51 = vld [vmem:[#allocation3 + $0x129] sm:$0xff] }
 0xa09   :  { %25456 = vmatprep.mubr.f32.mxu0 %v34413_v24  ;;  %36092 = vst [vmem:[#allocation99_spill] sm:$0xff] %v34428_v51  ;;  %v34431_v24 = vld [vmem:[#allocation3 + $0x139] sm:$0xff] }
 0xa0a   :  { %36093 = vst [vmem:[#allocation100_spill] sm:$0xff] %v34431_v24 }
 0xa0c   :  { %25457 = vmatmul.mubr.f32.gmra.mrb[82].mxu0 %v34416_v34  ;;  %v34434_v34 = vld [vmem:[#allocation3 + $0x141] sm:$0xff] }
 0xa0d   :  { %25459 = vmatprep.mubr.f32.mxu0 %v34419_v22  ;;  %36094 = vst [vmem:[#allocation101_spill] sm:$0xff] %v34434_v34  ;;  %v34437_v22 = vld [vmem:[#allocation3 + $0x151] sm:$0xff] }
 0xa0e   :  { %36095 = vst [vmem:[#allocation102_spill] sm:$0xff] %v34437_v22 }
 0xa10   :  { %25460 = vmatmul.mubr.f32.gmra.mrb[84].mxu0 %v34422_v1  ;;  %v34440_v1 = vld [vmem:[#allocation3 + $0x159] sm:$0xff] }
 0xa11   :  { %25462 = vmatprep.mubr.f32.mxu0 %v34425_v45  ;;  %36096 = vst [vmem:[#allocation103_spill] sm:$0xff] %v34440_v1  ;;  %v34443_v45 = vld [vmem:[#allocation3 + $0x169] sm:$0xff] }
 0xa12   :  { %36097 = vst [vmem:[#allocation104_spill] sm:$0xff] %v34443_v45 }
 0xa14   :  { %25463 = vmatmul.mubr.f32.gmra.mrb[86].mxu0 %v34428_v51  ;;  %v34446_v51 = vld [vmem:[#allocation3 + $0x171] sm:$0xff] }
 0xa15   :  { %25465 = vmatprep.mubr.f32.mxu0 %v34431_v24  ;;  %36098 = vst [vmem:[#allocation105_spill] sm:$0xff] %v34446_v51  ;;  %v34449_v24 = vld [vmem:[#allocation3 + $0x181] sm:$0xff] }
 0xa16   :  { %36099 = vst [vmem:[#allocation106_spill] sm:$0xff] %v34449_v24 }
 0xa18   :  { %25466 = vmatmul.mubr.f32.gmra.mrb[88].mxu0 %v34434_v34  ;;  %v34452_v34 = vld [vmem:[#allocation3 + $0x189] sm:$0xff] }
 0xa19   :  { %25468 = vmatprep.mubr.f32.mxu0 %v34437_v22  ;;  %36100 = vst [vmem:[#allocation107_spill] sm:$0xff] %v34452_v34  ;;  %v15695_v22 = vld [vmem:[#allocation3 + $0x1c9] sm:$0xff] }
 0xa1c   :  { %25469 = vmatmul.mubr.f32.gmra.mrb[90].mxu0 %v34440_v1  ;;  %v20283_v1 = vld [vmem:[%s35149_s7 + $0x300] sm:$0xff] }
 0xa1d   :  { %25471 = vmatprep.mubr.f32.mxu0 %v34443_v45  ;;  %v20284_v45 = vld [vmem:[%s35149_s7 + $0x308] sm:$0xff] }
 0xa1e   :  { %v34461_v44 = vpack.c.bf16 %v20284_v45, %v20283_v1  ;;  %v34476_v1 = vld [vmem:[#allocation3 + $0x211] sm:$0xff]  ;;  %v34482_v45 = vld [vmem:[#allocation3 + $0x229] sm:$0xff] }
 0xa1f   :  { %36105 = vst [vmem:[#allocation112_spill] sm:$0xff] %v34476_v1  ;;  %36107 = vst [vmem:[#allocation23_spill] sm:$0xff] %v34482_v45 }
 0xa20   :  { %25472 = vmatmul.mubr.f32.gmra.mrb[92].mxu0 %v34446_v51  ;;  %v15696_v51 = vld [vmem:[#allocation3 + $0x1d1] sm:$0xff]  ;;  %26841 = vmatprep.subr.bf16.mxu0 %v34461_v44 }
 0xa21   :  { %25474 = vmatprep.mubr.f32.mxu0 %v34449_v24  ;;  %v34473_v24 = vld [vmem:[#allocation3 + $0x201] sm:$0xff] }
 0xa22   :  { %36104 = vst [vmem:[#allocation111_spill] sm:$0xff] %v34473_v24 }
 0xa24   :  { %25475 = vmatmul.mubr.f32.gmra.mrb[94].mxu0 %v34452_v34  ;;  %v34467_v34 = vld [vmem:[#allocation3 + $0x1e9] sm:$0xff] }
 0xa25   :  { %25477 = vmatprep.mubr.f32.mxu0 %v15695_v22  ;;  %36102 = vst [vmem:[#allocation109_spill] sm:$0xff] %v34467_v34  ;;  %v34470_v22 = vld [vmem:[#allocation3 + $0x1f9] sm:$0xff] }
 0xa26   :  { %36103 = vst [vmem:[#allocation110_spill] sm:$0xff] %v34470_v22 }
 0xa28   :  { %25478 = vmatmul.mubr.f32.gmra.mrb[96].mxu0 %v15696_v51  ;;  %v34479_v51 = vld [vmem:[#allocation3 + $0x219] sm:$0xff] }
 0xa29   :  { %25480 = vmatprep.mubr.f32.mxu0 %v34463_v58  ;;  %36106 = vst [vmem:[#allocation113_spill] sm:$0xff] %v34479_v51 }
 0xa2c   :  { %25481 = vmatmul.mubr.f32.gmra.mrb[98].mxu0 %v34467_v34  ;;  %v34485_v34 = vld [vmem:[#allocation3 + $0x231] sm:$0xff] }
 0xa2d   :  { %25483 = vmatprep.mubr.f32.mxu0 %v34470_v22  ;;  %36108 = vst [vmem:[#allocation21_spill] sm:$0xff] %v34485_v34  ;;  %v34488_v22 = vld [vmem:[#allocation3 + $0x241] sm:$0xff] }
 0xa2e   :  { %36109 = vst [vmem:[#allocation8_spill] sm:$0xff] %v34488_v22 }
 0xa30   :  { %25484 = vmatmul.mubr.f32.gmra.mrb[100].mxu0 %v34473_v24  ;;  %v34491_v24 = vld [vmem:[#allocation3 + $0x249] sm:$0xff] }
 0xa31   :  { %25486 = vmatprep.mubr.f32.mxu0 %v34476_v1  ;;  %36110 = vst [vmem:[#allocation25_spill] sm:$0xff] %v34491_v24  ;;  %v34494_v1 = vld [vmem:[#allocation3 + $0x259] sm:$0xff] }
 0xa32   :  { %36111 = vst [vmem:[#allocation24_spill] sm:$0xff] %v34494_v1 }
 0xa34   :  { %25487 = vmatmul.mubr.f32.gmra.mrb[102].mxu0 %v34479_v51  ;;  %v34497_v51 = vld [vmem:[#allocation3 + $0x261] sm:$0xff] }
 0xa35   :  { %25489 = vmatprep.mubr.f32.mxu0 %v34482_v45  ;;  %36112 = vst [vmem:[#allocation26_spill] sm:$0xff] %v34497_v51  ;;  %v34500_v45 = vld [vmem:[#allocation3 + $0x271] sm:$0xff] }
 0xa36   :  { %36113 = vst [vmem:[#allocation28_spill] sm:$0xff] %v34500_v45 }
 0xa38   :  { %25490 = vmatmul.mubr.f32.gmra.mrb[104].mxu0 %v34485_v34  ;;  %v34503_v34 = vld [vmem:[#allocation3 + $0x279] sm:$0xff] }
 0xa39   :  { %25492 = vmatprep.mubr.f32.mxu0 %v34488_v22  ;;  %36114 = vst [vmem:[#allocation27_spill] sm:$0xff] %v34503_v34  ;;  %v34506_v22 = vld [vmem:[#allocation3 + $0x289] sm:$0xff] }
 0xa3a   :  { %36115 = vst [vmem:[#allocation31_spill] sm:$0xff] %v34506_v22 }
 0xa3c   :  { %25493 = vmatmul.mubr.f32.gmra.mrb[106].mxu0 %v34491_v24  ;;  %v34509_v24 = vld [vmem:[#allocation3 + $0x291] sm:$0xff] }
 0xa3d   :  { %25495 = vmatprep.mubr.f32.mxu0 %v34494_v1  ;;  %36116 = vst [vmem:[#allocation29_spill] sm:$0xff] %v34509_v24  ;;  %v34512_v1 = vld [vmem:[#allocation3 + $0x2a1] sm:$0xff] }
 0xa3e   :  { %36117 = vst [vmem:[#allocation30_spill] sm:$0xff] %v34512_v1 }
 0xa40   :  { %25496 = vmatmul.mubr.f32.gmra.mrb[108].mxu0 %v34497_v51  ;;  %v34515_v51 = vld [vmem:[#allocation3 + $0x2a9] sm:$0xff] }
 0xa41   :  { %25498 = vmatprep.mubr.f32.mxu0 %v34500_v45  ;;  %36118 = vst [vmem:[#allocation32_spill] sm:$0xff] %v34515_v51  ;;  %v34518_v45 = vld [vmem:[#allocation3 + $0x2b9] sm:$0xff] }
 0xa42   :  { %36119 = vst [vmem:[#allocation33_spill] sm:$0xff] %v34518_v45 }
 0xa44   :  { %25499 = vmatmul.mubr.f32.gmra.mrb[110].mxu0 %v34503_v34  ;;  %v34521_v34 = vld [vmem:[#allocation3 + $0x2c1] sm:$0xff] }
 0xa45   :  { %25501 = vmatprep.mubr.f32.mxu0 %v34506_v22  ;;  %36120 = vst [vmem:[#allocation34_spill] sm:$0xff] %v34521_v34  ;;  %v34524_v22 = vld [vmem:[#allocation3 + $0x2d1] sm:$0xff] }
 0xa46   :  { %36121 = vst [vmem:[#allocation35_spill] sm:$0xff] %v34524_v22 }
 0xa48   :  { %25502 = vmatmul.mubr.f32.gmra.mrb[112].mxu0 %v34509_v24  ;;  %v34527_v24 = vld [vmem:[#allocation3 + $0x2d9] sm:$0xff] }
 0xa49   :  { %25504 = vmatprep.mubr.f32.mxu0 %v34512_v1  ;;  %36122 = vst [vmem:[#allocation114_spill] sm:$0xff] %v34527_v24  ;;  %v34530_v1 = vld [vmem:[#allocation3 + $0x2e9] sm:$0xff] }
 0xa4a   :  { %36123 = vst [vmem:[#allocation115_spill] sm:$0xff] %v34530_v1 }
 0xa4c   :  { %25505 = vmatmul.mubr.f32.gmra.mrb[114].mxu0 %v34515_v51  ;;  %v34533_v51 = vld [vmem:[#allocation3 + $0x2f1] sm:$0xff] }
 0xa4d   :  { %25507 = vmatprep.mubr.f32.mxu0 %v34518_v45  ;;  %36124 = vst [vmem:[#allocation116_spill] sm:$0xff] %v34533_v51  ;;  %v34536_v45 = vld [vmem:[#allocation3 + $0x301] sm:$0xff] }
 0xa4e   :  { %36125 = vst [vmem:[#allocation117_spill] sm:$0xff] %v34536_v45 }
 0xa50   :  { %25508 = vmatmul.mubr.f32.gmra.mrb[116].mxu0 %v34521_v34  ;;  %v34539_v34 = vld [vmem:[#allocation3 + $0x309] sm:$0xff] }
 0xa51   :  { %25510 = vmatprep.mubr.f32.mxu0 %v34524_v22  ;;  %36126 = vst [vmem:[#allocation118_spill] sm:$0xff] %v34539_v34  ;;  %v34542_v22 = vld [vmem:[#allocation3 + $0x319] sm:$0xff] }
 0xa52   :  { %36127 = vst [vmem:[#allocation119_spill] sm:$0xff] %v34542_v22 }
 0xa54   :  { %25511 = vmatmul.mubr.f32.gmra.mrb[118].mxu0 %v34527_v24  ;;  %v34545_v24 = vld [vmem:[#allocation3 + $0x321] sm:$0xff] }
 0xa55   :  { %25513 = vmatprep.mubr.f32.mxu0 %v34530_v1  ;;  %36128 = vst [vmem:[#allocation120_spill] sm:$0xff] %v34545_v24  ;;  %v34548_v1 = vld [vmem:[#allocation3 + $0x331] sm:$0xff] }
 0xa56   :  { %36129 = vst [vmem:[#allocation121_spill] sm:$0xff] %v34548_v1 }
 0xa58   :  { %25514 = vmatmul.mubr.f32.gmra.mrb[120].mxu0 %v34533_v51  ;;  %v34551_v51 = vld [vmem:[#allocation3 + $0x339] sm:$0xff] }
 0xa59   :  { %25516 = vmatprep.mubr.f32.mxu0 %v34536_v45  ;;  %v20285_v45 = vld [vmem:[%s35149_s7 + $0x310] sm:$0xff] }
 0xa5c   :  { %25517 = vmatmul.mubr.f32.gmra.mrb[122].mxu0 %v34539_v34  ;;  %v20286_v34 = vld [vmem:[%s35149_s7 + $0x318] sm:$0xff] }
 0xa5d   :  { %25519 = vmatprep.mubr.f32.mxu0 %v34542_v22  ;;  %v26844_v22 = vpack.c.bf16 %v20286_v34, %v20285_v45  ;;  %v20290_v34 = vld [vmem:[%s35149_s7 + $0x338] sm:$0xff]  ;;  %v20311_v45 = vld [vmem:[%s35149_s7 + $0x3e0] sm:$0xff] }
 0xa60   :  { %25520 = vmatmul.mubr.f32.gmra.mrb[124].mxu0 %v34545_v24  ;;  %v20287_v24 = vld [vmem:[%s35149_s7 + $0x320] sm:$0xff] }
 0xa61   :  { %25522 = vmatprep.mubr.f32.mxu0 %v34548_v1  ;;  %v20288_v1 = vld [vmem:[%s35149_s7 + $0x328] sm:$0xff] }
 0xa62   :  { %v26848_v58 = vpack.c.bf16 %v20288_v1, %v20287_v24  ;;  %v20294_v24 = vld [vmem:[%s35149_s7 + $0x358] sm:$0xff] }
 0xa64   :  { %25523 = vmatmul.mubr.f32.gmra.mrb[126].mxu0 %v34551_v51 }
 0xa65   :  { %25557 = vmatprep.mubr.f32.mxu0 %v33889_v15  ;;  %v20289_v15 = vld [vmem:[%s35149_s7 + $0x330] sm:$0xff] }
 0xa68   :  { %25558 = vmatmul.mubr.f32.vlgmr.msra.gmra.mrb[64].mxu0 %v33892_v39  ;;  %v26852_v39 = vpack.c.bf16 %v20290_v34, %v20289_v15  ;;  %v20312_v15 = vld [vmem:[%s35149_s7 + $0x3e8] sm:$0xff]  ;;  %v36149_v34 = vld [vmem:[#allocation55_spill] sm:$0xff] }
 0xa69   :  { %25560 = vmatprep.mubr.f32.mxu0 %v33901_v32  ;;  %26843 = vmatpush3.bf16.msra.mxu0 %v34461_v44  ;;  %v20291_v32 = vld [vmem:[%s35149_s7 + $0x340] sm:$0xff]  ;;  %v20292_v44 = vld [vmem:[%s35149_s7 + $0x348] sm:$0xff] }
 0xa6a   :  { %26845 = vmatprep.subr.bf16.mxu0 %v26844_v22 }
 0xa6c   :  { %25561 = vmatmul.mubr.f32.gmra.mrb[66].mxu0 %v33904_v29  ;;  %v26856_v29 = vpack.c.bf16 %v20292_v44, %v20291_v32  ;;  %v20313_v32 = vld [vmem:[%s35149_s7 + $0x3f0] sm:$0xff]  ;;  %v20314_v44 = vld [vmem:[%s35149_s7 + $0x3f8] sm:$0xff] }
 0xa6d   :  { %25563 = vmatprep.mubr.f32.mxu0 %v33913_v54  ;;  %26847 = vmatpush3.bf16.msra.mxu0 %v26844_v22  ;;  %v20293_v54 = vld [vmem:[%s35149_s7 + $0x350] sm:$0xff]  ;;  %v20298_v22 = vld [vmem:[%s35149_s7 + $0x378] sm:$0xff] }
 0xa6e   :  { %26849 = vmatprep.subr.bf16.mxu0 %v26848_v58 }
 0xa70   :  { %25564 = vmatmul.mubr.f32.gmra.mrb[68].mxu0 %v33916_v35  ;;  %v26860_v35 = vpack.c.bf16 %v20294_v24, %v20293_v54  ;;  %v26900_v54 = vpack.c.bf16 %v20314_v44, %v20313_v32  ;;  %v36151_v24 = vld [vmem:[#allocation57_spill] sm:$0xff]  ;;  %v20319_v44 = vld [vmem:[%s35149_s7 + $0x420] sm:$0xff] }
 0xa71   :  { %25566 = vmatprep.mubr.f32.mxu0 %v33925_v10  ;;  %26851 = vmatpush3.bf16.msra.mxu0 %v26848_v58  ;;  %v20295_v10 = vld [vmem:[%s35149_s7 + $0x360] sm:$0xff]  ;;  %v20296_v58 = vld [vmem:[%s35149_s7 + $0x368] sm:$0xff] }
 0xa72   :  { %26853 = vmatprep.subr.bf16.mxu0 %v26852_v39 }
 0xa74   :  { %25567 = vmatmul.mubr.f32.gmra.mrb[70].mxu0 %v33928_v30  ;;  %v26864_v30 = vpack.c.bf16 %v20296_v58, %v20295_v10  ;;  %v36154_v10 = vld [vmem:[#allocation60_spill] sm:$0xff]  ;;  %v36155_v58 = vld [vmem:[#allocation61_spill] sm:$0xff] }
 0xa75   :  { %25569 = vmatprep.mubr.f32.mxu0 %v33937_v13  ;;  %26855 = vmatpush3.bf16.msra.mxu0 %v26852_v39  ;;  %v20297_v13 = vld [vmem:[%s35149_s7 + $0x370] sm:$0xff]  ;;  %v26896_v39 = vpack.c.bf16 %v20312_v15, %v20311_v45  ;;  %v17039_v45 = vld [vmem:[#allocation3 + $0x320] sm:$0xff] }
 0xa76   :  { %26857 = vmatprep.subr.bf16.mxu0 %v26856_v29  ;;  %v20317_v15 = vld [vmem:[%s35149_s7 + $0x410] sm:$0xff] }
 0xa78   :  { %25570 = vmatmul.mubr.f32.gmra.mrb[72].mxu0 %v33940_v12  ;;  %v26868_v12 = vpack.c.bf16 %v20298_v22, %v20297_v13  ;;  %v36158_v13 = vld [vmem:[#allocation64_spill] sm:$0xff]  ;;  %v36159_v22 = vld [vmem:[#allocation65_spill] sm:$0xff] }
 0xa79   :  { %25572 = vmatprep.mubr.f32.mxu0 %v33949_v9  ;;  %26859 = vmatpush3.bf16.msra.mxu0 %v26856_v29  ;;  %v34627_v9 = vld [vmem:[#allocation3 + $0x182] sm:$0xff] }
 0xa7a   :  { %26861 = vmatprep.subr.bf16.mxu0 %v26860_v35  ;;  %v36150_v29 = vld [vmem:[#allocation56_spill] sm:$0xff] }
 0xa7c   :  { %25573 = vmatmul.mubr.f32.gmra.mrb[74].mxu0 %v33952_v19  ;;  %v34630_v19 = vld [vmem:[#allocation3 + $0x18a] sm:$0xff] }
 0xa7d   :  { %25575 = vmatprep.mubr.f32.mxu0 %v33955_v57  ;;  %26863 = vmatpush3.bf16.msra.mxu0 %v26860_v35  ;;  %v20299_v57 = vld [vmem:[%s35149_s7 + $0x380] sm:$0xff] }
 0xa7e   :  { %26865 = vmatprep.subr.bf16.mxu0 %v26864_v30  ;;  %v36153_v35 = vld [vmem:[#allocation59_spill] sm:$0xff] }
 0xa80   :  { %25576 = vmatmul.mubr.f32.gmra.mrb[76].mxu0 %v33958_v25  ;;  %v20300_v25 = vld [vmem:[%s35149_s7 + $0x388] sm:$0xff] }
 0xa81   :  { %25578 = vmatprep.mubr.f32.mxu0 %v33961_v48  ;;  %26867 = vmatpush3.bf16.msra.mxu0 %v26864_v30  ;;  %v26872_v48 = vpack.c.bf16 %v20300_v25, %v20299_v57  ;;  %v36156_v30 = vld [vmem:[#allocation62_spill] sm:$0xff]  ;;  %v36161_v57 = vld [vmem:[#allocation67_spill] sm:$0xff]  ;;  %v36162_v25 = vld [vmem:[#allocation68_spill] sm:$0xff] }
 0xa82   :  { %26869 = vmatprep.subr.bf16.mxu0 %v26868_v12 }
 0xa84   :  { %25579 = vmatmul.mubr.f32.gmra.mrb[78].mxu0 %v33964_v62  ;;  %v36130_v62 = vld [vmem:[#allocation36_spill] sm:$0xff] }
 0xa85   :  { %25581 = vmatprep.mubr.f32.mxu0 %v33967_v21  ;;  %26871 = vmatpush3.bf16.msra.mxu0 %v26868_v12  ;;  %v36131_v21 = vld [vmem:[#allocation37_spill] sm:$0xff]  ;;  %v36160_v12 = vld [vmem:[#allocation66_spill] sm:$0xff] }
 0xa86   :  { %26873 = vmatprep.subr.bf16.mxu0 %v26872_v48 }
 0xa88   :  { %25582 = vmatmul.mubr.f32.gmra.mrb[80].mxu0 %v33970_v31  ;;  %v36132_v31 = vld [vmem:[#allocation38_spill] sm:$0xff] }
 0xa89   :  { %25584 = vmatprep.mubr.f32.mxu0 %v33973_v8  ;;  %v36133_v8 = vld [vmem:[#allocation39_spill] sm:$0xff] }
 0xa8c   :  { %25585 = vmatmul.mubr.f32.gmra.mrb[82].mxu0 %v33976_v28  ;;  %v36134_v28 = vld [vmem:[#allocation40_spill] sm:$0xff] }
 0xa8d   :  { %25587 = vmatprep.mubr.f32.mxu0 %v33979_v41  ;;  %v36135_v41 = vld [vmem:[#allocation41_spill] sm:$0xff] }
 0xa90   :  { %25588 = vmatmul.mubr.f32.gmra.mrb[84].mxu0 %v33982_v40  ;;  %v36136_v40 = vld [vmem:[#allocation42_spill] sm:$0xff] }
 0xa91   :  { %25590 = vmatprep.mubr.f32.mxu0 %v33985_v3  ;;  %v36137_v3 = vld [vmem:[#allocation43_spill] sm:$0xff] }
 0xa94   :  { %25591 = vmatmul.mubr.f32.gmra.mrb[86].mxu0 %v33988_v36  ;;  %v36138_v36 = vld [vmem:[#allocation44_spill] sm:$0xff] }
 0xa95   :  { %25593 = vmatprep.mubr.f32.mxu0 %v33991_v23  ;;  %v36139_v23 = vld [vmem:[#allocation45_spill] sm:$0xff] }
 0xa98   :  { %25594 = vmatmul.mubr.f32.gmra.mrb[88].mxu0 %v33994_v61  ;;  %v34669_v61 = vld [vmem:[#allocation3 + $0x332] sm:$0xff] }
 0xa99   :  { %25596 = vmatprep.mubr.f32.mxu0 %v33997_v6  ;;  %v34672_v6 = vld [vmem:[#allocation3 + $0x33a] sm:$0xff] }
 0xa9c   :  { %25597 = vmatmul.mubr.f32.gmra.mrb[90].mxu0 %v34000_v11  ;;  %v20301_v11 = vld [vmem:[%s35149_s7 + $0x390] sm:$0xff] }
 0xa9d   :  { %25599 = vmatprep.mubr.f32.mxu0 %v34003_v50  ;;  %v20302_v50 = vld [vmem:[%s35149_s7 + $0x398] sm:$0xff] }
 0xaa0   :  { %25600 = vmatmul.mubr.f32.gmra.mrb[92].mxu0 %v34006_v49  ;;  %v36140_v49 = vld [vmem:[#allocation46_spill] sm:$0xff] }
 0xaa1   :  { %25602 = vmatprep.mubr.f32.mxu0 %v34627_v9 }
 0xaa4   :  { %25603 = vmatmul.mubr.f32.gmra.mrb[94].mxu0 %v34630_v19 }
 0xaa5   :  { %25605 = vmatprep.mubr.f32.mxu0 %v34017_v26  ;;  %v26876_v26 = vpack.c.bf16 %v20302_v50, %v20301_v11  ;;  %v36170_v11 = vld [vmem:[#allocation76_spill] sm:$0xff]  ;;  %v36171_v50 = vld [vmem:[#allocation77_spill] sm:$0xff] }
 0xaa8   :  { %25606 = vmatmul.mubr.f32.gmra.mrb[96].mxu0 %v34021_v18  ;;  %v20303_v18 = vld [vmem:[%s35149_s7 + $0x3a0] sm:$0xff] }
 0xaa9   :  { %25608 = vmatprep.mubr.f32.mxu0 %v34024_v59  ;;  %v20304_v59 = vld [vmem:[%s35149_s7 + $0x3a8] sm:$0xff] }
 0xaac   :  { %25609 = vmatmul.mubr.f32.gmra.mrb[98].mxu0 %v34027_v16  ;;  %v36141_v16 = vld [vmem:[#allocation47_spill] sm:$0xff] }
 0xaad   :  { %25611 = vmatprep.mubr.f32.mxu0 %v34030_v53  ;;  %v36142_v53 = vld [vmem:[#allocation48_spill] sm:$0xff] }
 0xab0   :  { %25612 = vmatmul.mubr.f32.gmra.mrb[100].mxu0 %v34033_v2  ;;  %v26880_v2 = vpack.c.bf16 %v20304_v59, %v20303_v18  ;;  %v36174_v18 = vld [vmem:[#allocation10_spill] sm:$0xff]  ;;  %v36175_v59 = vld [vmem:[#allocation11_spill] sm:$0xff] }
 0xab1   :  { %25614 = vmatprep.mubr.f32.mxu0 %v34036_v33  ;;  %v20305_v33 = vld [vmem:[%s35149_s7 + $0x3b0] sm:$0xff] }
 0xab4   :  { %25615 = vmatmul.mubr.f32.gmra.mrb[102].mxu0 %v34039_v37  ;;  %v20306_v37 = vld [vmem:[%s35149_s7 + $0x3b8] sm:$0xff] }
 0xab5   :  { %25617 = vmatprep.mubr.f32.mxu0 %v34042_v7  ;;  %v36143_v7 = vld [vmem:[#allocation49_spill] sm:$0xff] }
 0xab8   :  { %25618 = vmatmul.mubr.f32.gmra.mrb[104].mxu0 %v34045_v63  ;;  %v36144_v63 = vld [vmem:[#allocation50_spill] sm:$0xff] }
 0xab9   :  { %25620 = vmatprep.mubr.f32.mxu0 %v34048_v47  ;;  %v26884_v47 = vpack.c.bf16 %v20306_v37, %v20305_v33  ;;  %v36179_v33 = vld [vmem:[#allocation15_spill] sm:$0xff]  ;;  %v36180_v37 = vld [vmem:[#allocation16_spill] sm:$0xff] }
 0xabc   :  { %25621 = vmatmul.mubr.f32.gmra.mrb[106].mxu0 %v34051_v4  ;;  %v20307_v4 = vld [vmem:[%s35149_s7 + $0x3c0] sm:$0xff] }
 0xabd   :  { %25623 = vmatprep.mubr.f32.mxu0 %v34054_v38  ;;  %v20308_v38 = vld [vmem:[%s35149_s7 + $0x3c8] sm:$0xff] }
 0xac0   :  { %25624 = vmatmul.mubr.f32.gmra.mrb[108].mxu0 %v34057_v0  ;;  %v36145_v0 = vld [vmem:[#allocation51_spill] sm:$0xff] }
 0xac1   :  { %25626 = vmatprep.mubr.f32.mxu0 %v34060_v5  ;;  %v36146_v5 = vld [vmem:[#allocation52_spill] sm:$0xff] }
 0xac4   :  { %25627 = vmatmul.mubr.f32.gmra.mrb[110].mxu0 %v34063_v43  ;;  %v26888_v43 = vpack.c.bf16 %v20308_v38, %v20307_v4  ;;  %v36184_v4 = vld [vmem:[#allocation20_spill] sm:$0xff]  ;;  %v36185_v38 = vld [vmem:[#allocation78_spill] sm:$0xff] }
 0xac5   :  { %25629 = vmatprep.mubr.f32.mxu0 %v34066_v60  ;;  %v20309_v60 = vld [vmem:[%s35149_s7 + $0x3d0] sm:$0xff] }
 0xac8   :  { %25630 = vmatmul.mubr.f32.gmra.mrb[112].mxu0 %v34069_v52  ;;  %v20310_v52 = vld [vmem:[%s35149_s7 + $0x3d8] sm:$0xff] }
 0xac9   :  { %25632 = vmatprep.mubr.f32.mxu0 %v34072_v46  ;;  %v36147_v46 = vld [vmem:[#allocation53_spill] sm:$0xff]  ;;  %v26892_v1 = vpack.c.bf16 %v20310_v52, %v20309_v60 }
 0xaca   :  { %v17034_v60 = vld [vmem:[#allocation3 + $0x2e8] sm:$0xff]  ;;  %v17035_v52 = vld [vmem:[#allocation3 + $0x2f0] sm:$0xff] }
 0xacc   :  { %25633 = vmatmul.mubr.f32.gmra.mrb[114].mxu0 %v34075_v14  ;;  %v36148_v14 = vld [vmem:[#allocation54_spill] sm:$0xff] }
 0xacd   :  { %25635 = vmatprep.mubr.f32.mxu0 %v36130_v62  ;;  %v36164_v62 = vld [vmem:[#allocation70_spill] sm:$0xff] }
 0xad0   :  { %25636 = vmatmul.mubr.f32.gmra.mrb[116].mxu0 %v36131_v21  ;;  %v36165_v21 = vld [vmem:[#allocation71_spill] sm:$0xff] }
 0xad1   :  { %25638 = vmatprep.mubr.f32.mxu0 %v36132_v31  ;;  %v36166_v31 = vld [vmem:[#allocation72_spill] sm:$0xff] }
 0xad4   :  { %25639 = vmatmul.mubr.f32.gmra.mrb[118].mxu0 %v36133_v8  ;;  %v36167_v8 = vld [vmem:[#allocation73_spill] sm:$0xff] }
 0xad5   :  { %25641 = vmatprep.mubr.f32.mxu0 %v36134_v28  ;;  %v28569_v28 = vld [vmem:[#allocation2] sm:$0xff] }
 0xad8   :  { %25642 = vmatmul.mubr.f32.gmra.mrb[120].mxu0 %v36135_v41  ;;  %v36168_v41 = vld [vmem:[#allocation74_spill] sm:$0xff] }
 0xad9   :  { %25644 = vmatprep.mubr.f32.mxu0 %v36136_v40  ;;  %v20315_v40 = vld [vmem:[%s35149_s7 + $0x400] sm:$0xff] }
 0xadc   :  { %25645 = vmatmul.mubr.f32.gmra.mrb[122].mxu0 %v36137_v3  ;;  %v20316_v3 = vld [vmem:[%s35149_s7 + $0x408] sm:$0xff] }
 0xadd   :  { %25647 = vmatprep.mubr.f32.mxu0 %v36138_v36  ;;  %v26904_v36 = vpack.c.bf16 %v20316_v3, %v20315_v40  ;;  %v20329_v3 = vld [vmem:[%s35149_s7 + $0x470] sm:$0xff] }
 0xae0   :  { %25648 = vmatmul.mubr.f32.gmra.mrb[124].mxu0 %v36139_v23  ;;  %v36169_v23 = vld [vmem:[#allocation75_spill] sm:$0xff] }
 0xae1   :  { %25650 = vmatprep.mubr.f32.mxu0 %v34669_v61 }
 0xae4   :  { %25651 = vmatmul.mubr.f32.gmra.mrb[126].mxu0 %v34672_v6 }
 0xae5   :  { %25685 = vmatprep.mubr.f32.mxu0 %v36140_v49  ;;  %v36172_v49 = vld [vmem:[#allocation22_spill] sm:$0xff] }
 0xae8   :  { %25686 = vmatmul.mubr.f32.vlgmr.msra.gmra.mrb[64].mxu0 %v36141_v16  ;;  %v36176_v16 = vld [vmem:[#allocation12_spill] sm:$0xff] }
 0xae9   :  { %25688 = vmatprep.mubr.f32.mxu0 %v36142_v53  ;;  %26875 = vmatpush3.bf16.msra.mxu0 %v26872_v48  ;;  %v36163_v48 = vld [vmem:[#allocation69_spill] sm:$0xff] }
 0xaea   :  { %26877 = vmatprep.subr.bf16.mxu0 %v26876_v26  ;;  %v36177_v53 = vld [vmem:[#allocation13_spill] sm:$0xff] }
 0xaec   :  { %25689 = vmatmul.mubr.f32.gmra.mrb[66].mxu0 %v36143_v7  ;;  %v36181_v7 = vld [vmem:[#allocation17_spill] sm:$0xff] }
 0xaed   :  { %25691 = vmatprep.mubr.f32.mxu0 %v36144_v63  ;;  %26879 = vmatpush3.bf16.msra.mxu0 %v26876_v26  ;;  %v36173_v26 = vld [vmem:[#allocation9_spill] sm:$0xff]  ;;  %v36182_v63 = vld [vmem:[#allocation18_spill] sm:$0xff] }
 0xaee   :  { %26881 = vmatprep.subr.bf16.mxu0 %v26880_v2 }
 0xaf0   :  { %25692 = vmatmul.mubr.f32.gmra.mrb[68].mxu0 %v36145_v0  ;;  %v17031_v0 = vld [vmem:[#allocation3 + $0x2c0] sm:$0xff] }
 0xaf1   :  { %25694 = vmatprep.mubr.f32.mxu0 %v36146_v5  ;;  %26883 = vmatpush3.bf16.msra.mxu0 %v26880_v2  ;;  %v36178_v2 = vld [vmem:[#allocation14_spill] sm:$0xff] }
 0xaf2   :  { %26885 = vmatprep.subr.bf16.mxu0 %v26884_v47  ;;  %v17032_v5 = vld [vmem:[#allocation3 + $0x2d0] sm:$0xff] }
 0xaf4   :  { %25695 = vmatmul.mubr.f32.gmra.mrb[70].mxu0 %v36147_v46  ;;  %v17036_v46 = vld [vmem:[#allocation3 + $0x300] sm:$0xff] }
 0xaf5   :  { %25697 = vmatprep.mubr.f32.mxu0 %v36148_v14  ;;  %26887 = vmatpush3.bf16.msra.mxu0 %v26884_v47  ;;  %v36183_v47 = vld [vmem:[#allocation19_spill] sm:$0xff]  ;;  %v17037_v14 = vld [vmem:[#allocation3 + $0x308] sm:$0xff] }
 0xaf6   :  { %26889 = vmatprep.subr.bf16.mxu0 %v26888_v43 }
 0xaf8   :  { %25698 = vmatmul.mubr.f32.gmra.mrb[72].mxu0 %v36149_v34  ;;  %v20318_v34 = vld [vmem:[%s35149_s7 + $0x418] sm:$0xff] }
 0xaf9   :  { %25700 = vmatprep.mubr.f32.mxu0 %v34181_v55  ;;  %26891 = vmatpush3.bf16.msra.mxu0 %v26888_v43  ;;  %v36152_v55 = vld [vmem:[#allocation58_spill] sm:$0xff]  ;;  %v26908_v32 = vpack.c.bf16 %v20318_v34, %v20317_v15  ;;  %v36223_v15 = vld [vmem:[#allocation8_spill] sm:$0xff]  ;;  %v36224_v34 = vld [vmem:[#allocation25_spill] sm:$0xff] }
 0xafa   :  { %26893 = vmatprep.subr.bf16.mxu0 %v26892_v1  ;;  %v17033_v43 = vld [vmem:[#allocation3 + $0x2d8] sm:$0xff] }
 0xafc   :  { %25701 = vmatmul.mubr.f32.gmra.mrb[74].mxu0 %v34184_v42  ;;  %v36157_v42 = vld [vmem:[#allocation63_spill] sm:$0xff] }
 0xafd   :  { %25703 = vmatprep.mubr.f32.mxu0 %v36150_v29  ;;  %26895 = vmatpush3.bf16.msra.mxu0 %v26892_v1  ;;  %v17038_v1 = vld [vmem:[#allocation3 + $0x318] sm:$0xff]  ;;  %v36188_v29 = vld [vmem:[#allocation81_spill] sm:$0xff] }
 0xafe   :  { %26897 = vmatprep.subr.bf16.mxu0 %v26896_v39 }
 0xb00   :  { %25704 = vmatmul.mubr.f32.gmra.mrb[76].mxu0 %v36151_v24 }
 0xb01   :  { %25706 = vmatprep.mubr.f32.mxu0 %v36152_v55  ;;  %26899 = vmatpush3.bf16.msra.mxu0 %v26896_v39  ;;  %v36187_v39 = vld [vmem:[#allocation80_spill] sm:$0xff]  ;;  %v20321_v55 = vld [vmem:[%s35149_s7 + $0x430] sm:$0xff] }
 0xb02   :  { %26901 = vmatprep.subr.bf16.mxu0 %v26900_v54 }
 0xb04   :  { %25707 = vmatmul.mubr.f32.gmra.mrb[78].mxu0 %v36153_v35  ;;  %v20322_v35 = vld [vmem:[%s35149_s7 + $0x438] sm:$0xff] }
 0xb05   :  { %25709 = vmatprep.mubr.f32.mxu0 %v36154_v10  ;;  %26903 = vmatpush3.bf16.msra.mxu0 %v26900_v54  ;;  %v36189_v54 = vld [vmem:[#allocation82_spill] sm:$0xff]  ;;  %v36190_v10 = vld [vmem:[#allocation83_spill] sm:$0xff] }
 0xb06   :  { %26905 = vmatprep.subr.bf16.mxu0 %v26904_v36 }
 0xb08   :  { %25710 = vmatmul.mubr.f32.gmra.mrb[80].mxu0 %v36155_v58  ;;  %v36191_v58 = vld [vmem:[#allocation84_spill] sm:$0xff] }
 0xb09   :  { %25712 = vmatprep.mubr.f32.mxu0 %v36156_v30  ;;  %v26916_v30 = vpack.c.bf16 %v20322_v35, %v20321_v55  ;;  %v36232_v55 = vld [vmem:[#allocation32_spill] sm:$0xff]  ;;  %v36233_v35 = vld [vmem:[#allocation33_spill] sm:$0xff] }
 0xb0c   :  { %25713 = vmatmul.mubr.f32.gmra.mrb[82].mxu0 %v36157_v42  ;;  %v20323_v42 = vld [vmem:[%s35149_s7 + $0x440] sm:$0xff] }
 0xb0d   :  { %25715 = vmatprep.mubr.f32.mxu0 %v36158_v13  ;;  %v20324_v13 = vld [vmem:[%s35149_s7 + $0x448] sm:$0xff] }
 0xb10   :  { %25716 = vmatmul.mubr.f32.gmra.mrb[84].mxu0 %v36159_v22  ;;  %v36192_v22 = vld [vmem:[#allocation85_spill] sm:$0xff] }
 0xb11   :  { %25718 = vmatprep.mubr.f32.mxu0 %v36160_v12  ;;  %v36193_v12 = vld [vmem:[#allocation86_spill] sm:$0xff] }
 0xb14   :  { %25719 = vmatmul.mubr.f32.gmra.mrb[86].mxu0 %v36161_v57  ;;  %v26920_v57 = vpack.c.bf16 %v20324_v13, %v20323_v42  ;;  %v36237_v42 = vld [vmem:[#allocation115_spill] sm:$0xff]  ;;  %v36238_v13 = vld [vmem:[#allocation116_spill] sm:$0xff] }
 0xb15   :  { %25721 = vmatprep.mubr.f32.mxu0 %v36162_v25  ;;  %v20325_v25 = vld [vmem:[%s35149_s7 + $0x450] sm:$0xff] }
 0xb18   :  { %25722 = vmatmul.mubr.f32.gmra.mrb[88].mxu0 %v36163_v48  ;;  %v20326_v48 = vld [vmem:[%s35149_s7 + $0x458] sm:$0xff] }
 0xb19   :  { %25724 = vmatprep.mubr.f32.mxu0 %v36164_v62  ;;  %v36194_v62 = vld [vmem:[#allocation87_spill] sm:$0xff] }
 0xb1c   :  { %25725 = vmatmul.mubr.f32.gmra.mrb[90].mxu0 %v36165_v21  ;;  %v36195_v21 = vld [vmem:[#allocation88_spill] sm:$0xff] }
 0xb1d   :  { %25727 = vmatprep.mubr.f32.mxu0 %v36166_v31  ;;  %v26924_v31 = vpack.c.bf16 %v20326_v48, %v20325_v25  ;;  %v36242_v25 = vld [vmem:[#allocation120_spill] sm:$0xff]  ;;  %v36243_v48 = vld [vmem:[#allocation121_spill] sm:$0xff] }
 0xb20   :  { %25728 = vmatmul.mubr.f32.gmra.mrb[92].mxu0 %v36167_v8  ;;  %v20327_v8 = vld [vmem:[%s35149_s7 + $0x460] sm:$0xff] }
 0xb21   :  { %25730 = vmatprep.mubr.f32.mxu0 %v28569_v28 }
 0xb24   :  { %25731 = vmatmul.mubr.f32.gmra.mrb[94].mxu0 %v28569_v28 }
 0xb25   :  { %25733 = vmatprep.mubr.f32.mxu0 %v36168_v41  ;;  %v36196_v41 = vld [vmem:[#allocation89_spill] sm:$0xff] }
 0xb28   :  { %25734 = vmatmul.mubr.f32.gmra.mrb[96].mxu0 %v36169_v23  ;;  %v36197_v23 = vld [vmem:[#allocation90_spill] sm:$0xff] }
 0xb29   :  { %25736 = vmatprep.mubr.f32.mxu0 %v36170_v11 }
 0xb2c   :  { %25737 = vmatmul.mubr.f32.gmra.mrb[98].mxu0 %v36171_v50  ;;  %v36198_v50 = vld [vmem:[#allocation91_spill] sm:$0xff] }
 0xb2d   :  { %25739 = vmatprep.mubr.f32.mxu0 %v36172_v49  ;;  %v36200_v49 = vld [vmem:[#allocation93_spill] sm:$0xff] }
 0xb30   :  { %25740 = vmatmul.mubr.f32.gmra.mrb[100].mxu0 %v36173_v26  ;;  %v36201_v26 = vld [vmem:[#allocation94_spill] sm:$0xff] }
 0xb31   :  { %25742 = vmatprep.mubr.f32.mxu0 %v36174_v18  ;;  %v36202_v18 = vld [vmem:[#allocation95_spill] sm:$0xff] }
 0xb34   :  { %25743 = vmatmul.mubr.f32.gmra.mrb[102].mxu0 %v36175_v59  ;;  %v36203_v59 = vld [vmem:[#allocation96_spill] sm:$0xff] }
 0xb35   :  { %25745 = vmatprep.mubr.f32.mxu0 %v36176_v16  ;;  %v36205_v16 = vld [vmem:[#allocation98_spill] sm:$0xff] }
 0xb38   :  { %25746 = vmatmul.mubr.f32.gmra.mrb[104].mxu0 %v36177_v53  ;;  %v36206_v53 = vld [vmem:[#allocation99_spill] sm:$0xff] }
 0xb39   :  { %25748 = vmatprep.mubr.f32.mxu0 %v36178_v2  ;;  %v36207_v2 = vld [vmem:[#allocation100_spill] sm:$0xff] }
 0xb3c   :  { %25749 = vmatmul.mubr.f32.gmra.mrb[106].mxu0 %v36179_v33  ;;  %v36208_v33 = vld [vmem:[#allocation101_spill] sm:$0xff] }
 0xb3d   :  { %25751 = vmatprep.mubr.f32.mxu0 %v36180_v37  ;;  %v36209_v37 = vld [vmem:[#allocation102_spill] sm:$0xff] }
 0xb40   :  { %25752 = vmatmul.mubr.f32.gmra.mrb[108].mxu0 %v36181_v7  ;;  %v36210_v7 = vld [vmem:[#allocation103_spill] sm:$0xff] }
 0xb41   :  { %25754 = vmatprep.mubr.f32.mxu0 %v36182_v63  ;;  %v36211_v63 = vld [vmem:[#allocation104_spill] sm:$0xff] }
 0xb44   :  { %25755 = vmatmul.mubr.f32.gmra.mrb[110].mxu0 %v36183_v47  ;;  %v36212_v47 = vld [vmem:[#allocation105_spill] sm:$0xff] }
 0xb45   :  { %25757 = vmatprep.mubr.f32.mxu0 %v36184_v4  ;;  %v36213_v4 = vld [vmem:[#allocation106_spill] sm:$0xff] }
 0xb48   :  { %25758 = vmatmul.mubr.f32.gmra.mrb[112].mxu0 %v36185_v38  ;;  %v17668_v38 = vld [vmem:[#allocation3 + $0x199] sm:$0xff] }
 0xb49   :  { %25760 = vmatprep.mubr.f32.mxu0 %v34304_v56  ;;  %v36186_v56 = vld [vmem:[#allocation79_spill] sm:$0xff] }
 0xb4c   :  { %25761 = vmatmul.mubr.f32.gmra.mrb[114].mxu0 %v17031_v0  ;;  %v36214_v0 = vld [vmem:[#allocation107_spill] sm:$0xff] }
 0xb4d   :  { %25763 = vmatprep.mubr.f32.mxu0 %v17032_v5  ;;  %v17669_v5 = vld [vmem:[#allocation3 + $0x1a1] sm:$0xff] }
 0xb50   :  { %25764 = vmatmul.mubr.f32.gmra.mrb[116].mxu0 %v17033_v43  ;;  %v36215_v43 = vld [vmem:[#allocation108_spill] sm:$0xff] }
 0xb51   :  { %25766 = vmatprep.mubr.f32.mxu0 %v17034_v60  ;;  %v36216_v60 = vld [vmem:[#allocation109_spill] sm:$0xff] }
 0xb54   :  { %25767 = vmatmul.mubr.f32.gmra.mrb[118].mxu0 %v17035_v52  ;;  %v36217_v52 = vld [vmem:[#allocation110_spill] sm:$0xff] }
 0xb55   :  { %25769 = vmatprep.mubr.f32.mxu0 %v17036_v46  ;;  %v36218_v46 = vld [vmem:[#allocation111_spill] sm:$0xff] }
 0xb58   :  { %25770 = vmatmul.mubr.f32.gmra.mrb[120].mxu0 %v17037_v14  ;;  %v36219_v14 = vld [vmem:[#allocation112_spill] sm:$0xff] }
 0xb59   :  { %25772 = vmatprep.mubr.f32.mxu0 %v17038_v1  ;;  %v36220_v1 = vld [vmem:[#allocation113_spill] sm:$0xff] }
 0xb5c   :  { %25773 = vmatmul.mubr.f32.gmra.mrb[122].mxu0 %v17039_v45  ;;  %v36221_v45 = vld [vmem:[#allocation23_spill] sm:$0xff] }
 0xb5d   :  { %25775 = vmatprep.mubr.f32.mxu0 %v34316_v17  ;;  %v20320_v17 = vld [vmem:[%s35149_s7 + $0x428] sm:$0xff] }
 0xb5e   :  { %v26912_v24 = vpack.c.bf16 %v20320_v17, %v20319_v44  ;;  %v36227_v44 = vld [vmem:[#allocation28_spill] sm:$0xff]  ;;  %v36228_v17 = vld [vmem:[#allocation27_spill] sm:$0xff] }
 0xb60   :  { %25776 = vmatmul.mubr.f32.gmra.mrb[124].mxu0 %v36186_v56  ;;  %v36222_v56 = vld [vmem:[#allocation21_spill] sm:$0xff] }
 0xb61   :  { %25778 = vmatprep.mubr.f32.mxu0 %v28569_v28 }
 0xb64   :  { %25779 = vmatmul.mubr.f32.gmra.mrb[126].mxu0 %v28569_v28  ;;  %v20328_v28 = vld [vmem:[%s35149_s7 + $0x468] sm:$0xff] }
 0xb65   :  { %25813 = vmatprep.mubr.f32.mxu0 %v36187_v39  ;;  %v26928_v40 = vpack.c.bf16 %v20328_v28, %v20327_v8  ;;  %v36225_v39 = vld [vmem:[#allocation24_spill] sm:$0xff]  ;;  %v18297_v8 = vld [vmem:[#allocation3 + $0x3a] sm:$0xff]  ;;  %v18298_v28 = vld [vmem:[#allocation3 + $0x4a] sm:$0xff] }
 0xb68   :  { %25814 = vmatmul.mubr.f32.vlgmr.msra.gmra.mrb[64].mxu0 %v36188_v29  ;;  %v36229_v29 = vld [vmem:[#allocation31_spill] sm:$0xff] }
 0xb69   :  { %25816 = vmatprep.mubr.f32.mxu0 %v36189_v54  ;;  %26907 = vmatpush3.bf16.msra.mxu0 %v26904_v36  ;;  %v20330_v36 = vld [vmem:[%s35149_s7 + $0x478] sm:$0xff]  ;;  %v36230_v54 = vld [vmem:[#allocation29_spill] sm:$0xff] }
 0xb6a   :  { %26909 = vmatprep.subr.bf16.mxu0 %v26908_v32  ;;  %v26932_v11 = vpack.c.bf16 %v20330_v36, %v20329_v3  ;;  %v18301_v3 = vld [vmem:[#allocation3 + $0x6a] sm:$0xff]  ;;  %v18302_v36 = vld [vmem:[#allocation3 + $0x7a] sm:$0xff] }
 0xb6c   :  { %25817 = vmatmul.mubr.f32.gmra.mrb[66].mxu0 %v36190_v10  ;;  %v36234_v10 = vld [vmem:[#allocation34_spill] sm:$0xff] }
 0xb6d   :  { %25819 = vmatprep.mubr.f32.mxu0 %v36191_v58  ;;  %26911 = vmatpush3.bf16.msra.mxu0 %v26908_v32  ;;  %v36226_v32 = vld [vmem:[#allocation26_spill] sm:$0xff]  ;;  %v36235_v58 = vld [vmem:[#allocation35_spill] sm:$0xff] }
 0xb6e   :  { %26913 = vmatprep.subr.bf16.mxu0 %v26912_v24 }
 0xb70   :  { %25820 = vmatmul.mubr.f32.gmra.mrb[68].mxu0 %v36192_v22  ;;  %v36239_v22 = vld [vmem:[#allocation117_spill] sm:$0xff] }
 0xb71   :  { %25822 = vmatprep.mubr.f32.mxu0 %v36193_v12  ;;  %26915 = vmatpush3.bf16.msra.mxu0 %v26912_v24  ;;  %v36231_v24 = vld [vmem:[#allocation30_spill] sm:$0xff] }
 0xb72   :  { %26917 = vmatprep.subr.bf16.mxu0 %v26916_v30  ;;  %v36240_v12 = vld [vmem:[#allocation118_spill] sm:$0xff] }
 0xb74   :  { %25823 = vmatmul.mubr.f32.gmra.mrb[70].mxu0 %v36194_v62  ;;  %v17700_v62 = vld [vmem:[#allocation3 + $0x349] sm:$0xff] }
 0xb75   :  { %25825 = vmatprep.mubr.f32.mxu0 %v36195_v21  ;;  %26919 = vmatpush3.bf16.msra.mxu0 %v26916_v30  ;;  %v36236_v30 = vld [vmem:[#allocation114_spill] sm:$0xff] }
 0xb76   :  { %26921 = vmatprep.subr.bf16.mxu0 %v26920_v57  ;;  %v17701_v21 = vld [vmem:[#allocation3 + $0x351] sm:$0xff] }
 0xb78   :  { %25826 = vmatmul.mubr.f32.gmra.mrb[72].mxu0 %v36196_v41  ;;  %v18299_v41 = vld [vmem:[#allocation3 + $0x52] sm:$0xff] }
 0xb79   :  { %25828 = vmatprep.mubr.f32.mxu0 %v34395_v20  ;;  %26923 = vmatpush3.bf16.msra.mxu0 %v26920_v57  ;;  %v36199_v20 = vld [vmem:[#allocation92_spill] sm:$0xff]  ;;  %v36241_v57 = vld [vmem:[#allocation119_spill] sm:$0xff] }
 0xb7a   :  { %26925 = vmatprep.subr.bf16.mxu0 %v26924_v31 }
 0xb7c   :  { %25829 = vmatmul.mubr.f32.gmra.mrb[74].mxu0 %v34398_v27  ;;  %v36204_v27 = vld [vmem:[#allocation97_spill] sm:$0xff] }
 0xb7d   :  { %25831 = vmatprep.mubr.f32.mxu0 %v36197_v23  ;;  %26927 = vmatpush3.bf16.msra.mxu0 %v26924_v31  ;;  %v18296_v31 = vld [vmem:[#allocation3 + $0x32] sm:$0xff]  ;;  %v18303_v23 = vld [vmem:[#allocation3 + $0x82] sm:$0xff] }
 0xb7e   :  { %26929 = vmatprep.subr.bf16.mxu0 %v26928_v40 }
 0xb80   :  { %25832 = vmatmul.mubr.f32.gmra.mrb[76].mxu0 %v36198_v50  ;;  %v18306_v50 = vld [vmem:[#allocation3 + $0xaa] sm:$0xff] }
 0xb81   :  { %25834 = vmatprep.mubr.f32.mxu0 %v36199_v20  ;;  %26931 = vmatpush3.bf16.msra.mxu0 %v26928_v40  ;;  %v18300_v40 = vld [vmem:[#allocation3 + $0x62] sm:$0xff]  ;;  %v18307_v20 = vld [vmem:[#allocation3 + $0xb2] sm:$0xff] }
 0xb82   :  { %26933 = vmatprep.subr.bf16.mxu0 %v26932_v11 }
 0xb84   :  { %25835 = vmatmul.mubr.f32.gmra.mrb[78].mxu0 %v36200_v49  ;;  %v18308_v49 = vld [vmem:[#allocation3 + $0xc2] sm:$0xff] }
 0xb85   :  { %25837 = vmatprep.mubr.f32.mxu0 %v36201_v26  ;;  %26935 = vmatpush3.bf16.msra.mxu0 %v26932_v11  ;;  %v18305_v11 = vld [vmem:[#allocation3 + $0x9a] sm:$0xff]  ;;  %v18309_v26 = vld [vmem:[#allocation3 + $0xca] sm:$0xff] }
 0xb88   :  { %25838 = vmatmul.mubr.f32.gmra.mrb[80].mxu0 %v36202_v18  ;;  %v18310_v18 = vld [vmem:[#allocation3 + $0xda] sm:$0xff] }
 0xb89   :  { %25840 = vmatprep.mubr.f32.mxu0 %v36203_v59  ;;  %v18311_v59 = vld [vmem:[#allocation3 + $0xe2] sm:$0xff] }
 0xb8c   :  { %25841 = vmatmul.mubr.f32.gmra.mrb[82].mxu0 %v36204_v27  ;;  %v18312_v27 = vld [vmem:[#allocation3 + $0xf2] sm:$0xff] }
 0xb8d   :  { %25843 = vmatprep.mubr.f32.mxu0 %v36205_v16  ;;  %v18313_v16 = vld [vmem:[#allocation3 + $0xfa] sm:$0xff] }
 0xb90   :  { %25844 = vmatmul.mubr.f32.gmra.mrb[84].mxu0 %v36206_v53  ;;  %v18314_v53 = vld [vmem:[#allocation3 + $0x10a] sm:$0xff] }
 0xb91   :  { %25846 = vmatprep.mubr.f32.mxu0 %v36207_v2  ;;  %v18315_v2 = vld [vmem:[#allocation3 + $0x112] sm:$0xff] }
 0xb94   :  { %25847 = vmatmul.mubr.f32.gmra.mrb[86].mxu0 %v36208_v33  ;;  %v18316_v33 = vld [vmem:[#allocation3 + $0x122] sm:$0xff] }
 0xb95   :  { %25849 = vmatprep.mubr.f32.mxu0 %v36209_v37  ;;  %v18317_v37 = vld [vmem:[#allocation3 + $0x12a] sm:$0xff] }
 0xb98   :  { %25850 = vmatmul.mubr.f32.gmra.mrb[88].mxu0 %v36210_v7  ;;  %v18318_v7 = vld [vmem:[#allocation3 + $0x13a] sm:$0xff] }
 0xb99   :  { %25852 = vmatprep.mubr.f32.mxu0 %v36211_v63  ;;  %v18319_v63 = vld [vmem:[#allocation3 + $0x142] sm:$0xff] }
 0xb9c   :  { %25853 = vmatmul.mubr.f32.gmra.mrb[90].mxu0 %v36212_v47  ;;  %v18320_v47 = vld [vmem:[#allocation3 + $0x152] sm:$0xff] }
 0xb9d   :  { %25855 = vmatprep.mubr.f32.mxu0 %v36213_v4  ;;  %v18321_v4 = vld [vmem:[#allocation3 + $0x15a] sm:$0xff] }
 0xba0   :  { %25856 = vmatmul.mubr.f32.gmra.mrb[92].mxu0 %v36214_v0  ;;  %v18323_v0 = vld [vmem:[#allocation3 + $0x172] sm:$0xff] }
 0xba1   :  { %25858 = vmatprep.mubr.f32.mxu0 %v17668_v38  ;;  %v18322_v38 = vld [vmem:[#allocation3 + $0x16a] sm:$0xff] }
 0xba4   :  { %25859 = vmatmul.mubr.f32.gmra.mrb[94].mxu0 %v17669_v5  ;;  %v18326_v5 = vld [vmem:[#allocation3 + $0x19a] sm:$0xff] }
 0xba5   :  { %25861 = vmatprep.mubr.f32.mxu0 %v36215_v43  ;;  %v18327_v43 = vld [vmem:[#allocation3 + $0x1a2] sm:$0xff] }
 0xba8   :  { %25862 = vmatmul.mubr.f32.gmra.mrb[96].mxu0 %v36216_v60  ;;  %v18328_v60 = vld [vmem:[#allocation3 + $0x1e2] sm:$0xff] }
 0xba9   :  { %25864 = vmatprep.mubr.f32.mxu0 %v36217_v52  ;;  %v18329_v52 = vld [vmem:[#allocation3 + $0x1ea] sm:$0xff] }
 0xbac   :  { %25865 = vmatmul.mubr.f32.gmra.mrb[98].mxu0 %v36218_v46  ;;  %v18330_v46 = vld [vmem:[#allocation3 + $0x1fa] sm:$0xff] }
 0xbad   :  { %25867 = vmatprep.mubr.f32.mxu0 %v36219_v14  ;;  %v18331_v14 = vld [vmem:[#allocation3 + $0x202] sm:$0xff] }
 0xbb0   :  { %25868 = vmatmul.mubr.f32.gmra.mrb[100].mxu0 %v36220_v1  ;;  %v18332_v1 = vld [vmem:[#allocation3 + $0x212] sm:$0xff] }
 0xbb1   :  { %25870 = vmatprep.mubr.f32.mxu0 %v36221_v45  ;;  %v18333_v45 = vld [vmem:[#allocation3 + $0x21a] sm:$0xff] }
 0xbb4   :  { %25871 = vmatmul.mubr.f32.gmra.mrb[102].mxu0 %v36222_v56  ;;  %v18334_v56 = vld [vmem:[#allocation3 + $0x22a] sm:$0xff] }
 0xbb5   :  { %25873 = vmatprep.mubr.f32.mxu0 %v36223_v15  ;;  %v18337_v15 = vld [vmem:[#allocation3 + $0x24a] sm:$0xff] }
 0xbb8   :  { %25874 = vmatmul.mubr.f32.gmra.mrb[104].mxu0 %v36224_v34  ;;  %v18338_v34 = vld [vmem:[#allocation3 + $0x25a] sm:$0xff] }
 0xbb9   :  { %25876 = vmatprep.mubr.f32.mxu0 %v36225_v39  ;;  %v18339_v39 = vld [vmem:[#allocation3 + $0x262] sm:$0xff] }
 0xbbc   :  { %25877 = vmatmul.mubr.f32.gmra.mrb[106].mxu0 %v36226_v32  ;;  %v18340_v32 = vld [vmem:[#allocation3 + $0x272] sm:$0xff] }
 0xbbd   :  { %25879 = vmatprep.mubr.f32.mxu0 %v36227_v44  ;;  %v18341_v44 = vld [vmem:[#allocation3 + $0x27a] sm:$0xff] }
 0xbc0   :  { %25880 = vmatmul.mubr.f32.gmra.mrb[108].mxu0 %v36228_v17  ;;  %v18342_v17 = vld [vmem:[#allocation3 + $0x28a] sm:$0xff] }
 0xbc1   :  { %25882 = vmatprep.mubr.f32.mxu0 %v36229_v29  ;;  %v18343_v29 = vld [vmem:[#allocation3 + $0x292] sm:$0xff] }
 0xbc4   :  { %25883 = vmatmul.mubr.f32.gmra.mrb[110].mxu0 %v36230_v54  ;;  %v18344_v54 = vld [vmem:[#allocation3 + $0x2a2] sm:$0xff] }
 0xbc5   :  { %25885 = vmatprep.mubr.f32.mxu0 %v36231_v24  ;;  %v18345_v24 = vld [vmem:[#allocation3 + $0x2aa] sm:$0xff] }
 0xbc8   :  { %25886 = vmatmul.mubr.f32.gmra.mrb[112].mxu0 %v36232_v55  ;;  %v18346_v55 = vld [vmem:[#allocation3 + $0x2ba] sm:$0xff] }
 0xbc9   :  { %25888 = vmatprep.mubr.f32.mxu0 %v36233_v35  ;;  %v18347_v35 = vld [vmem:[#allocation3 + $0x2c2] sm:$0xff] }
 0xbcc   :  { %25889 = vmatmul.mubr.f32.gmra.mrb[114].mxu0 %v36234_v10  ;;  %v18348_v10 = vld [vmem:[#allocation3 + $0x2d2] sm:$0xff] }
 0xbcd   :  { %25891 = vmatprep.mubr.f32.mxu0 %v36235_v58  ;;  %v18349_v58 = vld [vmem:[#allocation3 + $0x2da] sm:$0xff] }
 0xbd0   :  { %25892 = vmatmul.mubr.f32.gmra.mrb[116].mxu0 %v36236_v30  ;;  %v18350_v30 = vld [vmem:[#allocation3 + $0x2ea] sm:$0xff] }
 0xbd1   :  { %25894 = vmatprep.mubr.f32.mxu0 %v36237_v42  ;;  %v18351_v42 = vld [vmem:[#allocation3 + $0x2f2] sm:$0xff] }
 0xbd4   :  { %25895 = vmatmul.mubr.f32.gmra.mrb[118].mxu0 %v36238_v13  ;;  %v18352_v13 = vld [vmem:[#allocation3 + $0x302] sm:$0xff] }
 0xbd5   :  { %25897 = vmatprep.mubr.f32.mxu0 %v36239_v22  ;;  %v18353_v22 = vld [vmem:[#allocation3 + $0x30a] sm:$0xff] }
 0xbd8   :  { %25898 = vmatmul.mubr.f32.gmra.mrb[120].mxu0 %v36240_v12  ;;  %v18354_v12 = vld [vmem:[#allocation3 + $0x31a] sm:$0xff] }
 0xbd9   :  { %25900 = vmatprep.mubr.f32.mxu0 %v36241_v57  ;;  %v18355_v57 = vld [vmem:[#allocation3 + $0x322] sm:$0xff] }
 0xbdc   :  { %25901 = vmatmul.mubr.f32.gmra.mrb[122].mxu0 %v36242_v25  ;;  %v18358_v25 = vld [vmem:[#allocation3 + $0x34a] sm:$0xff] }
 0xbdd   :  { %25903 = vmatprep.mubr.f32.mxu0 %v36243_v48  ;;  %v18359_v48 = vld [vmem:[#allocation3 + $0x352] sm:$0xff] }
 0xbe0   :  { %25904 = vmatmul.mubr.f32.gmra.mrb[124].mxu0 %v34551_v51  ;;  %v18304_v51 = vld [vmem:[#allocation3 + $0x92] sm:$0xff] }
 0xbe1   :  { %25906 = vmatprep.mubr.f32.mxu0 %v17700_v62  ;;  %v19294_v62 = vlaneseq }
 0xbe4   :  { %25907 = vmatmul.mubr.f32.gmra.mrb[126].mxu0 %v17701_v21  ;;  %v28596_v21 = vmov 1983009808  }
 0xbe5   :  { %25941 = vmatprep.mubr.f32.mxu0 %v18296_v31  ;;  %v19292_v31 = vunpack.c.l.s4 %v28596_v21 }
 0xbe8   :  { %25942 = vmatmul.mubr.f32.vlgmr.msra.gmra.mrb[64].mxu0 %v18297_v8  ;;  %v19295_v8 = vshrl.u32 %v19294_v62, 7 }
 0xbe9   :  { %25944 = vmatprep.mubr.f32.mxu0 %v18298_v28  ;;  %v19293_v28 = vunpack.c.0.s8 %v19292_v31 }
 0xbec   :  { %25945 = vmatmul.mubr.f32.gmra.mrb[66].mxu0 %v18299_v41  ;;  %v19288_v41 = vld [vmem:[%s35152_s10] sm:$0xff] }
 0xbed   :  { %25947 = vmatprep.mubr.f32.mxu0 %v18300_v40  ;;  %v19296_v40 = vsub.s32 %v19293_v28, %v19295_v8 }
 0xbf0   :  { %25948 = vmatmul.mubr.f32.gmra.mrb[68].mxu0 %v18301_v3  ;;  %v34883_v3 = vrot.slane %v19288_v41, %v19296_v40 }
 0xbf1   :  { %25950 = vmatprep.mubr.f32.mxu0 %v18302_v36 }
 0xbf4   :  { %25951 = vmatmul.mubr.f32.gmra.mrb[70].mxu0 %v18303_v23  ;;  %v34895_v23 = vld [vmem:[%s35151_s9] ss:$0 sm:$0xff] }
 0xbf5   :  { %25953 = vmatprep.mubr.f32.mxu0 %v18304_v51 }
 0xbf8   :  { %25954 = vmatmul.mubr.f32.gmra.mrb[72].mxu0 %v18305_v11 }
 0xbf9   :  { %25956 = vmatprep.mubr.f32.mxu0 %v18306_v50 }
 0xbfc   :  { %25957 = vmatmul.mubr.f32.gmra.mrb[74].mxu0 %v18307_v20 }
 0xbfd   :  { %25959 = vmatprep.mubr.f32.mxu0 %v18308_v49  ;;  %v12905_v49 = vld [vmem:[#allocation2 + $0x21] sm:$0xff] }
 0xc00   :  { %25960 = vmatmul.mubr.f32.gmra.mrb[76].mxu0 %v18309_v26 }
 0xc01   :  { %25962 = vmatprep.mubr.f32.mxu0 %v18310_v18 }
 0xc04   :  { %25963 = vmatmul.mubr.f32.gmra.mrb[78].mxu0 %v18311_v59 }
 0xc05   :  { %25965 = vmatprep.mubr.f32.mxu0 %v18312_v27  ;;  %v12904_v27 = vld [vmem:[#allocation2 + $0x19] sm:$0xff] }
 0xc08   :  { %25966 = vmatmul.mubr.f32.gmra.mrb[80].mxu0 %v18313_v16 }
 0xc09   :  { %25968 = vmatprep.mubr.f32.mxu0 %v18314_v53 }
 0xc0c   :  { %25969 = vmatmul.mubr.f32.gmra.mrb[82].mxu0 %v18315_v2 }
 0xc0d   :  { %25971 = vmatprep.mubr.f32.mxu0 %v18316_v33 }
 0xc10   :  { %25972 = vmatmul.mubr.f32.gmra.mrb[84].mxu0 %v18317_v37 }
 0xc11   :  { %25974 = vmatprep.mubr.f32.mxu0 %v18318_v7 }
 0xc14   :  { %25975 = vmatmul.mubr.f32.gmra.mrb[86].mxu0 %v18319_v63 }
 0xc15   :  { %25977 = vmatprep.mubr.f32.mxu0 %v18320_v47  ;;  %v12907_v47 = vld [vmem:[#allocation2 + $0x39] sm:$0xff] }
 0xc18   :  { %25978 = vmatmul.mubr.f32.gmra.mrb[88].mxu0 %v18321_v4 }
 0xc19   :  { %25980 = vmatprep.mubr.f32.mxu0 %v18322_v38 }
 0xc1c   :  { %25981 = vmatmul.mubr.f32.gmra.mrb[90].mxu0 %v18323_v0 }
 0xc1d   :  { %25983 = vmatprep.mubr.f32.mxu0 %v34627_v9  ;;  %v18335_v9 = vld [vmem:[#allocation3 + $0x232] sm:$0xff] }
 0xc20   :  { %25984 = vmatmul.mubr.f32.gmra.mrb[92].mxu0 %v34630_v19  ;;  %v18336_v19 = vld [vmem:[#allocation3 + $0x242] sm:$0xff] }
 0xc21   :  { %25986 = vmatprep.mubr.f32.mxu0 %v18326_v5  ;;  %v12906_v5 = vld [vmem:[#allocation2 + $0x31] sm:$0xff] }
 0xc24   :  { %25987 = vmatmul.mubr.f32.gmra.mrb[94].mxu0 %v18327_v43 }
 0xc25   :  { %25989 = vmatprep.mubr.f32.mxu0 %v18328_v60 }
 0xc28   :  { %25990 = vmatmul.mubr.f32.gmra.mrb[96].mxu0 %v18329_v52  ;;  %v19290_v52 = vcombine.high %v19288_v41, %v19288_v41  ;;  %v12913_v41 = vld [vmem:[#allocation2 + $0x81] sm:$0xff] }
 0xc29   :  { %25992 = vmatprep.mubr.f32.mxu0 %v18330_v46 }
 0xc2c   :  { %25993 = vmatmul.mubr.f32.gmra.mrb[98].mxu0 %v18331_v14 }
 0xc2d   :  { %25995 = vmatprep.mubr.f32.mxu0 %v18332_v1 }
 0xc30   :  { %25996 = vmatmul.mubr.f32.gmra.mrb[100].mxu0 %v18333_v45 }
 0xc31   :  { %25998 = vmatprep.mubr.f32.mxu0 %v18334_v56 }
 0xc34   :  { %25999 = vmatmul.mubr.f32.gmra.mrb[102].mxu0 %v18335_v9  ;;  %v34910_v9 = vrot.slane %v19290_v52, %v19296_v40 }
 0xc35   :  { %26001 = vmatprep.mubr.f32.mxu0 %v18336_v19 }
 0xc38   :  { %26002 = vmatmul.mubr.f32.gmra.mrb[104].mxu0 %v18337_v15  ;;  %v12909_v15 = vld [vmem:[#allocation2 + $0x51] sm:$0xff] }
 0xc39   :  { %26004 = vmatprep.mubr.f32.mxu0 %v18338_v34 }
 0xc3c   :  { %26005 = vmatmul.mubr.f32.gmra.mrb[106].mxu0 %v18339_v39 }
 0xc3d   :  { %26007 = vmatprep.mubr.f32.mxu0 %v18340_v32 }
 0xc40   :  { %26008 = vmatmul.mubr.f32.gmra.mrb[108].mxu0 %v18341_v44  ;;  %v12908_v44 = vld [vmem:[#allocation2 + $0x49] sm:$0xff] }
 0xc41   :  { %26010 = vmatprep.mubr.f32.mxu0 %v18342_v17 }
 0xc44   :  { %26011 = vmatmul.mubr.f32.gmra.mrb[110].mxu0 %v18343_v29 }
 0xc45   :  { %26013 = vmatprep.mubr.f32.mxu0 %v18344_v54 }
 0xc48   :  { %26014 = vmatmul.mubr.f32.gmra.mrb[112].mxu0 %v18345_v24 }
 0xc49   :  { %26016 = vmatprep.mubr.f32.mxu0 %v18346_v55 }
 0xc4c   :  { %26017 = vmatmul.mubr.f32.gmra.mrb[114].mxu0 %v18347_v35 }
 0xc4d   :  { %26019 = vmatprep.mubr.f32.mxu0 %v18348_v10 }
 0xc50   :  { %26020 = vmatmul.mubr.f32.gmra.mrb[116].mxu0 %v18349_v58 }
 0xc51   :  { %26022 = vmatprep.mubr.f32.mxu0 %v18350_v30  ;;  %v12911_v30 = vld [vmem:[#allocation2 + $0x69] sm:$0xff] }
 0xc54   :  { %26023 = vmatmul.mubr.f32.gmra.mrb[118].mxu0 %v18351_v42 }
 0xc55   :  { %26025 = vmatprep.mubr.f32.mxu0 %v18352_v13 }
 0xc58   :  { %26026 = vmatmul.mubr.f32.gmra.mrb[120].mxu0 %v18353_v22 }
 0xc59   :  { %26028 = vmatprep.mubr.f32.mxu0 %v18354_v12  ;;  %v12910_v12 = vld [vmem:[#allocation2 + $0x61] sm:$0xff] }
 0xc5c   :  { %26029 = vmatmul.mubr.f32.gmra.mrb[122].mxu0 %v18355_v57 }
 0xc5d   :  { %26031 = vmatprep.mubr.f32.mxu0 %v34669_v61  ;;  %v19305_v61 = vcombine.high %v34883_v3, %v34883_v3 }
 0xc5f   :  { %19375 = vmatprep.mubr.f32.mxu1 %v19305_v61 }
 0xc60   :  { %26032 = vmatmul.mubr.f32.gmra.mrb[124].mxu0 %v34672_v6  ;;  %v34890_v6 = vld [vmem:[%s35150_s8] ss:$0 sm:$0xff] }
 0xc61   :  { %26034 = vmatprep.mubr.f32.mxu0 %v18358_v25 }
 0xc64   :  { %26035 = vmatmul.mubr.f32.gmra.mrb[126].mxu0 %v18359_v48 }
 0xcbb   :  { %v25943_v36 = vpop.f32.mrb[64].mxu0 }
 0xcbc   :  { %v19026_v51 = vmul.f32 %v25943_v36, %v34890_v6  ;;  %v18507_v11 = vpop.f32.mrb[65].mxu0 }
 0xcbd   :  { %v19025_v50 = vmul.f32 %v34890_v6, %v18507_v11 }
 0xcbe   :  { %v19097_v20 = vadd.f32 %v34895_v23, %v19026_v51  ;;  %v12912_v51 = vld [vmem:[#allocation2 + $0x79] sm:$0xff] }
 0xcbf   :  { %v19096_v26 = vadd.f32 %v34895_v23, %v19025_v50  ;;  %v25946_v18 = vpop.f32.mrb[66].mxu0 }
 0xcc0   :  { %v19161_v59 = vadd.f32 %v19097_v20, %v12905_v49  ;;  %v19028_v16 = vmul.f32 %v25946_v18, %v34890_v6  ;;  %v18517_v53 = vpop.f32.mrb[67].mxu0 }
 0xcc1   :  { %v19160_v2 = vadd.f32 %v19096_v26, %v12904_v27  ;;  %v19027_v33 = vmul.f32 %v34890_v6, %v18517_v53 }
 0xcc2   :  { %v19225_v37 = vmax.f32 %v19161_v59, 0.0  ;;  %v19099_v7 = vadd.f32 %v34895_v23, %v19028_v16  ;;  %v12915_v16 = vld [vmem:[#allocation2 + $0x99] sm:$0xff] }
 0xcc3   :  { %v19224_v63 = vmax.f32 %v19160_v2, 0.0  ;;  %v19098_v4 = vadd.f32 %v34895_v23, %v19027_v33  ;;  %v25949_v38 = vpop.f32.mrb[68].mxu0 }
 0xcc4   :  { %v19163_v0 = vadd.f32 %v19099_v7, %v12907_v47  ;;  %v19030_v43 = vmul.f32 %v25949_v38, %v34890_v6  ;;  %v18527_v60 = vpop.f32.mrb[69].mxu0 }
 0xcc5   :  { %v34906_v46 = vpack.c.bf16 %v19225_v37, %v19224_v63  ;;  %v19162_v14 = vadd.f32 %v19098_v4, %v12906_v5  ;;  %v19029_v1 = vmul.f32 %v34890_v6, %v18527_v60  ;;  %v12914_v37 = vld [vmem:[#allocation2 + $0x91] sm:$0xff] }
 0xcc6   :  { %v19227_v45 = vmax.f32 %v19163_v0, 0.0  ;;  %v19101_v56 = vadd.f32 %v34895_v23, %v19030_v43  ;;  %v12917_v60 = vld [vmem:[#allocation2 + $0xb1] sm:$0xff] }
 0xcc7   :  { %v19226_v19 = vmax.f32 %v19162_v14, 0.0  ;;  %v19100_v34 = vadd.f32 %v34895_v23, %v19029_v1  ;;  %v25952_v39 = vpop.f32.mrb[70].mxu0 }
 0xcc8   :  { %v19165_v32 = vadd.f32 %v19101_v56, %v12909_v15  ;;  %v19032_v17 = vmul.f32 %v25952_v39, %v34890_v6  ;;  %v18537_v29 = vpop.f32.mrb[71].mxu0 }
 0xcc9   :  { %v34914_v54 = vpack.c.bf16 %v19227_v45, %v19226_v19  ;;  %v19164_v24 = vadd.f32 %v19100_v34, %v12908_v44  ;;  %v19031_v55 = vmul.f32 %v34890_v6, %v18537_v29  ;;  %v12916_v45 = vld [vmem:[#allocation2 + $0xa9] sm:$0xff] }
 0xcca   :  { %v19229_v35 = vmax.f32 %v19165_v32, 0.0  ;;  %v19103_v10 = vadd.f32 %v34895_v23, %v19032_v17  ;;  %v12919_v29 = vld [vmem:[#allocation2 + $0xc9] sm:$0xff] }
 0xccb   :  { %v19228_v58 = vmax.f32 %v19164_v24, 0.0  ;;  %v19102_v42 = vadd.f32 %v34895_v23, %v19031_v55  ;;  %v25955_v13 = vpop.f32.mrb[72].mxu0 }
 0xccc   :  { %v19167_v22 = vadd.f32 %v19103_v10, %v12911_v30  ;;  %v19034_v57 = vmul.f32 %v25955_v13, %v34890_v6  ;;  %v18547_v25 = vpop.f32.mrb[73].mxu0  ;;  %v12918_v10 = vld [vmem:[#allocation2 + $0xc1] sm:$0xff] }
 0xccd   :  { %v34920_v48 = vpack.c.bf16 %v19229_v35, %v19228_v58  ;;  %v19166_v62 = vadd.f32 %v19102_v42, %v12910_v12  ;;  %v19033_v21 = vmul.f32 %v34890_v6, %v18547_v25 }
 0xcce   :  { %v19231_v31 = vmax.f32 %v19167_v22, 0.0  ;;  %v19105_v8 = vadd.f32 %v34895_v23, %v19034_v57 }
 0xccf   :  { %v19230_v28 = vmax.f32 %v19166_v62, 0.0  ;;  %v19104_v40 = vadd.f32 %v34895_v23, %v19033_v21  ;;  %v25958_v61 = vpop.f32.mrb[74].mxu0  ;;  %v12921_v62 = vld [vmem:[#allocation2 + $0xe1] sm:$0xff] }
 0xcd0   :  { %v19169_v36 = vadd.f32 %v19105_v8, %v12913_v41  ;;  %v19036_v11 = vmul.f32 %v25958_v61, %v34890_v6  ;;  %v18557_v50 = vpop.f32.mrb[75].mxu0 }
 0xcd1   :  { %v34926_v20 = vpack.c.bf16 %v19231_v31, %v19230_v28  ;;  %v19168_v49 = vadd.f32 %v19104_v40, %v12912_v51  ;;  %v19035_v26 = vmul.f32 %v34890_v6, %v18557_v50  ;;  %v12920_v28 = vld [vmem:[#allocation2 + $0xd9] sm:$0xff] }
 0xcd2   :  { %v19233_v18 = vmax.f32 %v19169_v36, 0.0  ;;  %v19107_v59 = vadd.f32 %v34895_v23, %v19036_v11 }
 0xcd3   :  { %v19232_v27 = vmax.f32 %v19168_v49, 0.0  ;;  %v19106_v53 = vadd.f32 %v34895_v23, %v19035_v26  ;;  %v25961_v2 = vpop.f32.mrb[76].mxu0  ;;  %v12923_v26 = vld [vmem:[#allocation2 + $0xf9] sm:$0xff] }
 0xcd4   :  { %v19171_v33 = vadd.f32 %v19107_v59, %v12915_v16  ;;  %v19038_v7 = vmul.f32 %v25961_v2, %v34890_v6  ;;  %v18567_v63 = vpop.f32.mrb[77].mxu0  ;;  %v12922_v16 = vld [vmem:[#allocation2 + $0xf1] sm:$0xff] }
 0xcd5   :  { %v34932_v47 = vpack.c.bf16 %v19233_v18, %v19232_v27  ;;  %v19170_v4 = vadd.f32 %v19106_v53, %v12914_v37  ;;  %v19037_v38 = vmul.f32 %v34890_v6, %v18567_v63 }
 0xcd6   :  { %v19235_v0 = vmax.f32 %v19171_v33, 0.0  ;;  %v19109_v5 = vadd.f32 %v34895_v23, %v19038_v7 }
 0xcd7   :  { %v19234_v43 = vmax.f32 %v19170_v4, 0.0  ;;  %v19108_v52 = vadd.f32 %v34895_v23, %v19037_v38  ;;  %v25964_v14 = vpop.f32.mrb[78].mxu0 }
 0xcd8   :  { %v19173_v1 = vadd.f32 %v19109_v5, %v12917_v60  ;;  %v19040_v56 = vmul.f32 %v25964_v14, %v34890_v6  ;;  %v18577_v19 = vpop.f32.mrb[79].mxu0 }
 0xcd9   :  { %v34938_v15 = vpack.c.bf16 %v19235_v0, %v19234_v43  ;;  %v19172_v34 = vadd.f32 %v19108_v52, %v12916_v45  ;;  %v19039_v39 = vmul.f32 %v34890_v6, %v18577_v19  ;;  %v12925_v0 = vld [vmem:[#allocation2 + $0x111] sm:$0xff]  ;;  %v12924_v52 = vld [vmem:[#allocation2 + $0x109] sm:$0xff] }
 0xcda   :  { %v19237_v32 = vmax.f32 %v19173_v1, 0.0  ;;  %v19111_v44 = vadd.f32 %v34895_v23, %v19040_v56 }
 0xcdb   :  { %v19236_v17 = vmax.f32 %v19172_v34, 0.0  ;;  %v19110_v24 = vadd.f32 %v34895_v23, %v19039_v39  ;;  %v25967_v55 = vpop.f32.mrb[80].mxu0 }
 0xcdc   :  { %v19175_v35 = vadd.f32 %v19111_v44, %v12919_v29  ;;  %v19042_v58 = vmul.f32 %v25967_v55, %v34890_v6  ;;  %v18587_v30 = vpop.f32.mrb[81].mxu0  ;;  %v12927_v44 = vld [vmem:[#allocation2 + $0x129] sm:$0xff]  ;;  %v12926_v55 = vld [vmem:[#allocation2 + $0x121] sm:$0xff] }
 0xcdd   :  { %v34944_v42 = vpack.c.bf16 %v19237_v32, %v19236_v17  ;;  %v19174_v13 = vadd.f32 %v19110_v24, %v12918_v10  ;;  %v19041_v22 = vmul.f32 %v34890_v6, %v18587_v30 }
 0xcde   :  { %v19239_v12 = vmax.f32 %v19175_v35, 0.0  ;;  %v19113_v57 = vadd.f32 %v34895_v23, %v19042_v58 }
 0xcdf   :  { %v19238_v25 = vmax.f32 %v19174_v13, 0.0  ;;  %v19112_v21 = vadd.f32 %v34895_v23, %v19041_v22  ;;  %v25970_v31 = vpop.f32.mrb[82].mxu0 }
 0xce0   :  { %v19177_v8 = vadd.f32 %v19113_v57, %v12921_v62  ;;  %v19044_v41 = vmul.f32 %v25970_v31, %v34890_v6  ;;  %v18597_v40 = vpop.f32.mrb[83].mxu0  ;;  %v12929_v57 = vld [vmem:[#allocation2 + $0x141] sm:$0xff]  ;;  %v12928_v31 = vld [vmem:[#allocation2 + $0x139] sm:$0xff] }
 0xce1   :  { %v34950_v61 = vpack.c.bf16 %v19239_v12, %v19238_v25  ;;  %v19176_v36 = vadd.f32 %v19112_v21, %v12920_v28  ;;  %v19043_v51 = vmul.f32 %v34890_v6, %v18597_v40 }
 0xce2   :  { %v19241_v11 = vmax.f32 %v19177_v8, 0.0  ;;  %v19115_v50 = vadd.f32 %v34895_v23, %v19044_v41 }
 0xce3   :  { %v19240_v49 = vmax.f32 %v19176_v36, 0.0  ;;  %v19114_v18 = vadd.f32 %v34895_v23, %v19043_v51  ;;  %v25973_v59 = vpop.f32.mrb[84].mxu0 }
 0xce4   :  { %v19179_v27 = vadd.f32 %v19115_v50, %v12923_v26  ;;  %v19046_v53 = vmul.f32 %v25973_v59, %v34890_v6  ;;  %v18607_v2 = vpop.f32.mrb[85].mxu0  ;;  %v12931_v50 = vld [vmem:[#allocation2 + $0x159] sm:$0xff]  ;;  %v12930_v59 = vld [vmem:[#allocation2 + $0x151] sm:$0xff] }
 0xce5   :  { %v19178_v33 = vadd.f32 %v19114_v18, %v12922_v16  ;;  %v19045_v37 = vmul.f32 %v34890_v6, %v18607_v2  ;;  %v26936_v7 = vpack.c.bf16 %v19241_v11, %v19240_v49 }
 0xce6   :  { %v19243_v63 = vmax.f32 %v19179_v27, 0.0  ;;  %v19117_v4 = vadd.f32 %v34895_v23, %v19046_v53 }
 0xce7   :  { %v19242_v38 = vmax.f32 %v19178_v33, 0.0  ;;  %v19116_v5 = vadd.f32 %v34895_v23, %v19045_v37  ;;  %v25976_v43 = vpop.f32.mrb[86].mxu0  ;;  %26937 = vmatprep.subr.bf16.mxu1 %v26936_v7 }
 0xce8   :  { %v19181_v60 = vadd.f32 %v19117_v4, %v12925_v0  ;;  %v19048_v14 = vmul.f32 %v25976_v43, %v34890_v6  ;;  %v18617_v1 = vpop.f32.mrb[87].mxu0  ;;  %26939 = vmatpush3.bf16.msra.mxu1 %v34906_v46 }
 0xce9   :  { %v19180_v45 = vadd.f32 %v19116_v5, %v12924_v52  ;;  %v19047_v56 = vmul.f32 %v34890_v6, %v18617_v1  ;;  %v26940_v19 = vpack.c.bf16 %v19243_v63, %v19242_v38  ;;  %v12933_v63 = vld [vmem:[#allocation2 + $0x171] sm:$0xff]  ;;  %v12932_v5 = vld [vmem:[#allocation2 + $0x169] sm:$0xff] }
 0xcea   :  { %v19245_v34 = vmax.f32 %v19181_v60, 0.0  ;;  %v19119_v39 = vadd.f32 %v34895_v23, %v19048_v14 }
 0xceb   :  { %v19244_v32 = vmax.f32 %v19180_v45, 0.0  ;;  %v19118_v17 = vadd.f32 %v34895_v23, %v19047_v56  ;;  %v25979_v29 = vpop.f32.mrb[88].mxu0  ;;  %26941 = vmatprep.subr.bf16.mxu1 %v26940_v19  ;;  %v12935_v19 = vld [vmem:[#allocation2 + $0x189] sm:$0xff] }
 0xcec   :  { %v19183_v24 = vadd.f32 %v19119_v39, %v12927_v44  ;;  %v19050_v35 = vmul.f32 %v25979_v29, %v34890_v6  ;;  %v18627_v10 = vpop.f32.mrb[89].mxu0  ;;  %26943 = vmatpush3.bf16.msra.mxu1 %v34914_v54  ;;  %v12934_v44 = vld [vmem:[#allocation2 + $0x181] sm:$0xff] }
 0xced   :  { %v19182_v46 = vadd.f32 %v19118_v17, %v12926_v55  ;;  %v19049_v58 = vmul.f32 %v34890_v6, %v18627_v10  ;;  %v26944_v30 = vpack.c.bf16 %v19245_v34, %v19244_v32 }
 0xcee   :  { %v19247_v13 = vmax.f32 %v19183_v24, 0.0  ;;  %v19121_v22 = vadd.f32 %v34895_v23, %v19050_v35 }
 0xcef   :  { %v19246_v12 = vmax.f32 %v19182_v46, 0.0  ;;  %v19120_v25 = vadd.f32 %v34895_v23, %v19049_v58  ;;  %v25982_v62 = vpop.f32.mrb[90].mxu0  ;;  %26945 = vmatprep.subr.bf16.mxu1 %v26944_v30  ;;  %v12937_v58 = vld [vmem:[#allocation2 + $0x1d1] sm:$0xff] }
 0xcf0   :  { %v19185_v21 = vadd.f32 %v19121_v22, %v12929_v57  ;;  %v19052_v8 = vmul.f32 %v25982_v62, %v34890_v6  ;;  %v18637_v28 = vpop.f32.mrb[91].mxu0  ;;  %26947 = vmatpush3.bf16.msra.mxu1 %v34920_v48 }
 0xcf1   :  { %v19184_v54 = vadd.f32 %v19120_v25, %v12928_v31  ;;  %v19051_v41 = vmul.f32 %v34890_v6, %v18637_v28  ;;  %v26948_v40 = vpack.c.bf16 %v19247_v13, %v19246_v12  ;;  %v12936_v12 = vld [vmem:[#allocation2 + $0x1c9] sm:$0xff] }
 0xcf2   :  { %v19249_v36 = vmax.f32 %v19185_v21, 0.0  ;;  %v19123_v51 = vadd.f32 %v34895_v23, %v19052_v8 }
 0xcf3   :  { %v19248_v11 = vmax.f32 %v19184_v54, 0.0  ;;  %v19122_v49 = vadd.f32 %v34895_v23, %v19051_v41  ;;  %v25985_v26 = vpop.f32.mrb[92].mxu0  ;;  %26949 = vmatprep.subr.bf16.mxu1 %v26948_v40  ;;  %v12939_v54 = vld [vmem:[#allocation2 + $0x1e9] sm:$0xff] }
 0xcf4   :  { %v19187_v18 = vadd.f32 %v19123_v51, %v12931_v50  ;;  %v19054_v27 = vmul.f32 %v25985_v26, %v34890_v6  ;;  %v18647_v16 = vpop.f32.mrb[93].mxu0  ;;  %26951 = vmatpush3.bf16.msra.mxu1 %v34926_v20  ;;  %v12938_v51 = vld [vmem:[#allocation2 + $0x1e1] sm:$0xff] }
 0xcf5   :  { %v19186_v48 = vadd.f32 %v19122_v49, %v12930_v59  ;;  %v19053_v53 = vmul.f32 %v34890_v6, %v18647_v16  ;;  %v26952_v2 = vpack.c.bf16 %v19249_v36, %v19248_v11 }
 0xcf6   :  { %v19251_v33 = vmax.f32 %v19187_v18, 0.0  ;;  %v19125_v37 = vadd.f32 %v34895_v23, %v19054_v27 }
 0xcf7   :  { %v19250_v7 = vmax.f32 %v19186_v48, 0.0  ;;  %v19124_v4 = vadd.f32 %v34895_v23, %v19053_v53  ;;  %v25988_v38 = vpop.f32.mrb[94].mxu0  ;;  %26953 = vmatprep.subr.bf16.mxu1 %v26952_v2  ;;  %v12941_v48 = vld [vmem:[#allocation2 + $0x201] sm:$0xff] }
 0xcf8   :  { %v19189_v0 = vadd.f32 %v19125_v37, %v12933_v63  ;;  %v19056_v43 = vmul.f32 %v25988_v38, %v34890_v6  ;;  %v18657_v60 = vpop.f32.mrb[95].mxu0  ;;  %26955 = vmatpush3.bf16.msra.mxu1 %v34932_v47 }
 0xcf9   :  { %v19188_v20 = vadd.f32 %v19124_v4, %v12932_v5  ;;  %v19055_v52 = vmul.f32 %v34890_v6, %v18657_v60  ;;  %v26956_v14 = vpack.c.bf16 %v19251_v33, %v19250_v7  ;;  %v12943_v60 = vld [vmem:[#allocation2 + $0x219] sm:$0xff] }
 0xcfa   :  { %v19253_v1 = vmax.f32 %v19189_v0, 0.0  ;;  %v19127_v45 = vadd.f32 %v34895_v23, %v19056_v43 }
 0xcfb   :  { %v19252_v56 = vmax.f32 %v19188_v20, 0.0  ;;  %v19126_v34 = vadd.f32 %v34895_v23, %v19055_v52  ;;  %v25991_v39 = vpop.f32.mrb[96].mxu0  ;;  %26957 = vmatprep.subr.bf16.mxu1 %v26956_v14  ;;  %v12942_v14 = vld [vmem:[#allocation2 + $0x211] sm:$0xff] }
 0xcfc   :  { %v19191_v32 = vadd.f32 %v19127_v45, %v12935_v19  ;;  %v19058_v17 = vmul.f32 %v25991_v39, %v34890_v6  ;;  %v18667_v29 = vpop.f32.mrb[97].mxu0  ;;  %26959 = vmatpush3.bf16.msra.mxu1 %v34938_v15 }
 0xcfd   :  { %v19190_v47 = vadd.f32 %v19126_v34, %v12934_v44  ;;  %v19057_v24 = vmul.f32 %v34890_v6, %v18667_v29  ;;  %v26960_v55 = vpack.c.bf16 %v19253_v1, %v19252_v56 }
 0xcfe   :  { %v19255_v35 = vmax.f32 %v19191_v32, 0.0  ;;  %v19129_v10 = vadd.f32 %v34895_v23, %v19058_v17  ;;  %v12945_v17 = vld [vmem:[#allocation2 + $0x231] sm:$0xff] }
 0xcff   :  { %v19254_v46 = vmax.f32 %v19190_v47, 0.0  ;;  %v19128_v30 = vadd.f32 %v34895_v23, %v19057_v24  ;;  %v25994_v13 = vpop.f32.mrb[98].mxu0  ;;  %26961 = vmatprep.subr.bf16.mxu1 %v26960_v55  ;;  %v12944_v55 = vld [vmem:[#allocation2 + $0x229] sm:$0xff] }
 0xd00   :  { %v19193_v22 = vadd.f32 %v19129_v10, %v12937_v58  ;;  %v19060_v57 = vmul.f32 %v25994_v13, %v34890_v6  ;;  %v18677_v25 = vpop.f32.mrb[99].mxu0  ;;  %26963 = vmatpush3.bf16.msra.mxu1 %v34944_v42  ;;  %v19306_v42 = vcombine.high %v34910_v9, %v34910_v9 }
 0xd01   :  { %v19192_v15 = vadd.f32 %v19128_v30, %v12936_v12  ;;  %v19059_v62 = vmul.f32 %v34890_v6, %v18677_v25  ;;  %v26964_v21 = vpack.c.bf16 %v19255_v35, %v19254_v46 }
 0xd02   :  { %v19257_v31 = vmax.f32 %v19193_v22, 0.0  ;;  %v19131_v8 = vadd.f32 %v34895_v23, %v19060_v57  ;;  %v12947_v57 = vld [vmem:[#allocation2 + $0x249] sm:$0xff] }
 0xd03   :  { %v19256_v28 = vmax.f32 %v19192_v15, 0.0  ;;  %v19130_v41 = vadd.f32 %v34895_v23, %v19059_v62  ;;  %v25997_v40 = vpop.f32.mrb[100].mxu0  ;;  %26965 = vmatprep.subr.bf16.mxu1 %v26964_v21  ;;  %v12946_v21 = vld [vmem:[#allocation2 + $0x241] sm:$0xff] }
 0xd04   :  { %v19195_v36 = vadd.f32 %v19131_v8, %v12939_v54  ;;  %v19062_v11 = vmul.f32 %v25997_v40, %v34890_v6  ;;  %v18687_v50 = vpop.f32.mrb[101].mxu0  ;;  %26967 = vmatpush3.bf16.msra.mxu1 %v34950_v61  ;;  %v12940_v61 = vld [vmem:[#allocation2 + $0x1f9] sm:$0xff] }
 0xd05   :  { %v34998_v49 = vpack.c.bf16 %v19257_v31, %v19256_v28  ;;  %v19194_v26 = vadd.f32 %v19130_v41, %v12938_v51  ;;  %v19061_v18 = vmul.f32 %v34890_v6, %v18687_v50 }
 0xd06   :  { %v19259_v59 = vmax.f32 %v19195_v36, 0.0  ;;  %v19133_v27 = vadd.f32 %v34895_v23, %v19062_v11  ;;  %v12949_v11 = vld [vmem:[#allocation2 + $0x261] sm:$0xff] }
 0xd07   :  { %v19258_v16 = vmax.f32 %v19194_v26, 0.0  ;;  %v19132_v53 = vadd.f32 %v34895_v23, %v19061_v18  ;;  %v26000_v2 = vpop.f32.mrb[102].mxu0  ;;  %19376 = vmatmul.mubr.f32.vlgmr.msra.gmra.mrb[128].mxu1 %v34883_v3  ;;  %v12948_v18 = vld [vmem:[#allocation2 + $0x259] sm:$0xff] }
 0xd08   :  { %v19197_v33 = vadd.f32 %v19133_v27, %v12941_v48  ;;  %v19064_v37 = vmul.f32 %v26000_v2, %v34890_v6  ;;  %v18697_v7 = vpop.f32.mrb[103].mxu0  ;;  %19445 = vmatprep.mubr.f32.mxu1 %v19306_v42 }
 0xd09   :  { %v35005_v63 = vpack.c.bf16 %v19259_v59, %v19258_v16  ;;  %v19196_v4 = vadd.f32 %v19132_v53, %v12940_v61  ;;  %v19063_v38 = vmul.f32 %v34890_v6, %v18697_v7 }
 0xd0a   :  { %v19261_v0 = vmax.f32 %v19197_v33, 0.0  ;;  %v19135_v5 = vadd.f32 %v34895_v23, %v19064_v37  ;;  %v12951_v37 = vld [vmem:[#allocation2 + $0x279] sm:$0xff] }
 0xd0b   :  { %v19260_v43 = vmax.f32 %v19196_v4, 0.0  ;;  %v19134_v20 = vadd.f32 %v34895_v23, %v19063_v38  ;;  %v26003_v52 = vpop.f32.mrb[104].mxu0 }
 0xd0c   :  { %v19199_v3 = vadd.f32 %v19135_v5, %v12943_v60  ;;  %v19066_v1 = vmul.f32 %v26003_v52, %v34890_v6  ;;  %v18707_v45 = vpop.f32.mrb[105].mxu0 }
 0xd0d   :  { %v35011_v56 = vpack.c.bf16 %v19261_v0, %v19260_v43  ;;  %v19198_v19 = vadd.f32 %v19134_v20, %v12942_v14  ;;  %v19065_v34 = vmul.f32 %v34890_v6, %v18707_v45  ;;  %v12950_v0 = vld [vmem:[#allocation2 + $0x271] sm:$0xff] }
 0xd0e   :  { %v19263_v39 = vmax.f32 %v19199_v3, 0.0  ;;  %v19137_v32 = vadd.f32 %v34895_v23, %v19066_v1  ;;  %v12953_v45 = vld [vmem:[#allocation2 + $0x291] sm:$0xff] }
 0xd0f   :  { %v19262_v44 = vmax.f32 %v19198_v19, 0.0  ;;  %v19136_v29 = vadd.f32 %v34895_v23, %v19065_v34  ;;  %v26006_v47 = vpop.f32.mrb[106].mxu0 }
 0xd10   :  { %v19201_v24 = vadd.f32 %v19137_v32, %v12945_v17  ;;  %v19068_v35 = vmul.f32 %v26006_v47, %v34890_v6  ;;  %v18717_v10 = vpop.f32.mrb[107].mxu0  ;;  %v12952_v32 = vld [vmem:[#allocation2 + $0x289] sm:$0xff] }
 0xd11   :  { %v35017_v46 = vpack.c.bf16 %v19263_v39, %v19262_v44  ;;  %v19200_v58 = vadd.f32 %v19136_v29, %v12944_v55  ;;  %v19067_v30 = vmul.f32 %v34890_v6, %v18717_v10 }
 0xd12   :  { %v19265_v13 = vmax.f32 %v19201_v24, 0.0  ;;  %v19139_v22 = vadd.f32 %v34895_v23, %v19068_v35 }
 0xd13   :  { %v19264_v12 = vmax.f32 %v19200_v58, 0.0  ;;  %v19138_v25 = vadd.f32 %v34895_v23, %v19067_v30  ;;  %v26009_v15 = vpop.f32.mrb[108].mxu0  ;;  %v12955_v58 = vld [vmem:[#allocation2 + $0x2a9] sm:$0xff] }
 0xd14   :  { %v19203_v62 = vadd.f32 %v19139_v22, %v12947_v57  ;;  %v19070_v31 = vmul.f32 %v26009_v15, %v34890_v6  ;;  %v18727_v8 = vpop.f32.mrb[109].mxu0 }
 0xd15   :  { %v35023_v28 = vpack.c.bf16 %v19265_v13, %v19264_v12  ;;  %v19202_v54 = vadd.f32 %v19138_v25, %v12946_v21  ;;  %v19069_v41 = vmul.f32 %v34890_v6, %v18727_v8  ;;  %v12954_v12 = vld [vmem:[#allocation2 + $0x2a1] sm:$0xff] }
 0xd16   :  { %v19267_v40 = vmax.f32 %v19203_v62, 0.0  ;;  %v19141_v36 = vadd.f32 %v34895_v23, %v19070_v31 }
 0xd17   :  { %v19266_v51 = vmax.f32 %v19202_v54, 0.0  ;;  %v19140_v50 = vadd.f32 %v34895_v23, %v19069_v41  ;;  %v26012_v42 = vpop.f32.mrb[110].mxu0  ;;  %v12957_v41 = vld [vmem:[#allocation2 + $0x2c1] sm:$0xff] }
 0xd18   :  { %v19205_v26 = vadd.f32 %v19141_v36, %v12949_v11  ;;  %v19072_v59 = vmul.f32 %v26012_v42, %v34890_v6  ;;  %v18737_v27 = vpop.f32.mrb[111].mxu0  ;;  %v12956_v11 = vld [vmem:[#allocation2 + $0x2b9] sm:$0xff] }
 0xd19   :  { %v35029_v16 = vpack.c.bf16 %v19267_v40, %v19266_v51  ;;  %v19204_v48 = vadd.f32 %v19140_v50, %v12948_v18  ;;  %v19071_v53 = vmul.f32 %v34890_v6, %v18737_v27 }
 0xd1a   :  { %v19269_v2 = vmax.f32 %v19205_v26, 0.0  ;;  %v19143_v33 = vadd.f32 %v34895_v23, %v19072_v59 }
 0xd1b   :  { %v19268_v61 = vmax.f32 %v19204_v48, 0.0  ;;  %v19142_v7 = vadd.f32 %v34895_v23, %v19071_v53  ;;  %v26015_v4 = vpop.f32.mrb[112].mxu0 }
 0xd1c   :  { %v19207_v38 = vadd.f32 %v19143_v33, %v12951_v37  ;;  %v19074_v5 = vmul.f32 %v26015_v4, %v34890_v6  ;;  %v18747_v43 = vpop.f32.mrb[113].mxu0 }
 0xd1d   :  { %v35035_v60 = vpack.c.bf16 %v19269_v2, %v19268_v61  ;;  %v19206_v20 = vadd.f32 %v19142_v7, %v12950_v0  ;;  %v19073_v52 = vmul.f32 %v34890_v6, %v18747_v43  ;;  %v12959_v2 = vld [vmem:[#allocation2 + $0x2d9] sm:$0xff]  ;;  %v12958_v7 = vld [vmem:[#allocation2 + $0x2d1] sm:$0xff] }
 0xd1e   :  { %v19271_v3 = vmax.f32 %v19207_v38, 0.0  ;;  %v19145_v14 = vadd.f32 %v34895_v23, %v19074_v5 }
 0xd1f   :  { %v19270_v1 = vmax.f32 %v19206_v20, 0.0  ;;  %v19144_v19 = vadd.f32 %v34895_v23, %v19073_v52  ;;  %v26018_v34 = vpop.f32.mrb[114].mxu0 }
 0xd20   :  { %v19209_v39 = vadd.f32 %v19145_v14, %v12953_v45  ;;  %v19076_v44 = vmul.f32 %v26018_v34, %v34890_v6  ;;  %v18757_v17 = vpop.f32.mrb[115].mxu0 }
 0xd21   :  { %v35041_v29 = vpack.c.bf16 %v19271_v3, %v19270_v1  ;;  %v19208_v47 = vadd.f32 %v19144_v19, %v12952_v32  ;;  %v19075_v24 = vmul.f32 %v34890_v6, %v18757_v17  ;;  %v12961_v3 = vld [vmem:[#allocation2 + $0x2f1] sm:$0xff]  ;;  %v12960_v19 = vld [vmem:[#allocation2 + $0x2e9] sm:$0xff] }
 0xd22   :  { %v19273_v55 = vmax.f32 %v19209_v39, 0.0  ;;  %v19147_v35 = vadd.f32 %v34895_v23, %v19076_v44 }
 0xd23   :  { %v19272_v10 = vmax.f32 %v19208_v47, 0.0  ;;  %v19146_v30 = vadd.f32 %v34895_v23, %v19075_v24  ;;  %v26021_v13 = vpop.f32.mrb[116].mxu0 }
 0xd24   :  { %v19211_v22 = vadd.f32 %v19147_v35, %v12955_v58  ;;  %v19078_v57 = vmul.f32 %v26021_v13, %v34890_v6  ;;  %v18767_v25 = vpop.f32.mrb[117].mxu0 }
 0xd25   :  { %v19210_v15 = vadd.f32 %v19146_v30, %v12954_v12  ;;  %v19077_v62 = vmul.f32 %v34890_v6, %v18767_v25  ;;  %v26968_v21 = vpack.c.bf16 %v19273_v55, %v19272_v10  ;;  %v12963_v55 = vld [vmem:[#allocation2 + $0x309] sm:$0xff]  ;;  %v12962_v30 = vld [vmem:[#allocation2 + $0x301] sm:$0xff] }
 0xd26   :  { %v19275_v31 = vmax.f32 %v19211_v22, 0.0  ;;  %v19149_v8 = vadd.f32 %v34895_v23, %v19078_v57 }
 0xd27   :  { %v19274_v54 = vmax.f32 %v19210_v15, 0.0  ;;  %v19148_v40 = vadd.f32 %v34895_v23, %v19077_v62  ;;  %v26024_v36 = vpop.f32.mrb[118].mxu0  ;;  %26969 = vmatprep.subr.bf16.mxu1 %v26968_v21  ;;  %v12965_v21 = vld [vmem:[#allocation2 + $0x321] sm:$0xff] }
 0xd28   :  { %v19213_v51 = vadd.f32 %v19149_v8, %v12957_v41  ;;  %v19080_v50 = vmul.f32 %v26024_v36, %v34890_v6  ;;  %v18777_v42 = vpop.f32.mrb[119].mxu0  ;;  %26971 = vmatpush3.bf16.msra.mxu1 %v34998_v49  ;;  %v12964_v41 = vld [vmem:[#allocation2 + $0x319] sm:$0xff] }
 0xd29   :  { %v19212_v26 = vadd.f32 %v19148_v40, %v12956_v11  ;;  %v19079_v18 = vmul.f32 %v34890_v6, %v18777_v42  ;;  %v26972_v59 = vpack.c.bf16 %v19275_v31, %v19274_v54 }
 0xd2a   :  { %v19277_v27 = vmax.f32 %v19213_v51, 0.0  ;;  %v19151_v48 = vadd.f32 %v34895_v23, %v19080_v50 }
 0xd2b   :  { %v19276_v53 = vmax.f32 %v19212_v26, 0.0  ;;  %v19150_v33 = vadd.f32 %v34895_v23, %v19079_v18  ;;  %v26027_v61 = vpop.f32.mrb[120].mxu0  ;;  %26973 = vmatprep.subr.bf16.mxu1 %v26972_v59  ;;  %v12967_v18 = vld [vmem:[#allocation2 + $0x339] sm:$0xff] }
 0xd2c   :  { %v19215_v37 = vadd.f32 %v19151_v48, %v12959_v2  ;;  %v19082_v4 = vmul.f32 %v26027_v61, %v34890_v6  ;;  %v18787_v38 = vpop.f32.mrb[121].mxu0  ;;  %26975 = vmatpush3.bf16.msra.mxu1 %v35005_v63  ;;  %v12966_v48 = vld [vmem:[#allocation2 + $0x331] sm:$0xff]  ;;  %v19451_v61 = vld [vmem:[%s35153_s11] sm:$0xff] }
 0xd2d   :  { %v19214_v49 = vadd.f32 %v19150_v33, %v12958_v7  ;;  %v19081_v0 = vmul.f32 %v34890_v6, %v18787_v38  ;;  %v26976_v5 = vpack.c.bf16 %v19277_v27, %v19276_v53  ;;  %v19453_v7 = vld [vmem:[%s35153_s11 + $0x10] sm:$0xff]  ;;  %v19456_v38 = vld [vmem:[%s35153_s11 + $0x28] sm:$0xff] }
 0xd2e   :  { %v19279_v43 = vmax.f32 %v19215_v37, 0.0  ;;  %v19153_v20 = vadd.f32 %v34895_v23, %v19082_v4  ;;  %v28597_v37 = vmov 0.0|0.0  }
 0xd2f   :  { %v19278_v52 = vmax.f32 %v19214_v49, 0.0  ;;  %v19152_v14 = vadd.f32 %v34895_v23, %v19081_v0  ;;  %v26030_v1 = vpop.f32.mrb[122].mxu0  ;;  %26977 = vmatprep.subr.bf16.mxu1 %v26976_v5  ;;  %v19457_v0 = vld [vmem:[%s35153_s11 + $0x30] sm:$0xff] }
 0xd30   :  { %v19217_v45 = vadd.f32 %v19153_v20, %v12961_v3  ;;  %v19084_v34 = vmul.f32 %v26030_v1, %v34890_v6  ;;  %v18797_v39 = vpop.f32.mrb[123].mxu0  ;;  %26979 = vmatpush3.bf16.msra.mxu1 %v35011_v56  ;;  %v19460_v20 = vld [vmem:[%s35153_s11 + $0x48] sm:$0xff]  ;;  %v19461_v3 = vld [vmem:[%s35153_s11 + $0x50] sm:$0xff] }
 0xd31   :  { %v19216_v63 = vadd.f32 %v19152_v14, %v12960_v19  ;;  %v19083_v32 = vmul.f32 %v34890_v6, %v18797_v39  ;;  %v26980_v44 = vpack.c.bf16 %v19279_v43, %v19278_v52  ;;  %v19459_v43 = vld [vmem:[%s35153_s11 + $0x40] sm:$0xff]  ;;  %v19462_v14 = vld [vmem:[%s35153_s11 + $0x58] sm:$0xff]  ;;  %v19464_v19 = vld [vmem:[%s35153_s11 + $0x68] sm:$0xff] }
 0xd32   :  { %v19281_v17 = vmax.f32 %v19217_v45, 0.0  ;;  %v19155_v47 = vadd.f32 %v34895_v23, %v19084_v34  ;;  %v27013_v52 = vpack.c.bf16 %v19460_v20, %v19459_v43  ;;  %v27016_v1 = vpack.c.bf16 %v19462_v14, %v19461_v3  ;;  %v19463_v45 = vld [vmem:[%s35153_s11 + $0x60] sm:$0xff]  ;;  %v19465_v39 = vld [vmem:[%s35153_s11 + $0x70] sm:$0xff] }
 0xd33   :  { %v19280_v24 = vmax.f32 %v19216_v63, 0.0  ;;  %v19154_v35 = vadd.f32 %v34895_v23, %v19083_v32  ;;  %v26033_v10 = vpop.f32.mrb[124].mxu0  ;;  %26981 = vmatprep.subr.bf16.mxu1 %v26980_v44  ;;  %v27019_v34 = vpack.c.bf16 %v19464_v19, %v19463_v45  ;;  %v19466_v63 = vld [vmem:[%s35153_s11 + $0x78] sm:$0xff]  ;;  %v28570_v44 = vld [vmem:[#allocation2] sm:$0xff] }
 0xd34   :  { %v19219_v58 = vadd.f32 %v19155_v47, %v12963_v55  ;;  %v19086_v13 = vmul.f32 %v26033_v10, %v34890_v6  ;;  %v18807_v22 = vpop.f32.mrb[125].mxu0  ;;  %26983 = vmatpush3.bf16.msra.mxu1 %v35017_v46  ;;  %v27022_v32 = vpack.c.bf16 %v19466_v63, %v19465_v39 }
 0xd35   :  { %v19218_v56 = vadd.f32 %v19154_v35, %v12962_v30  ;;  %v19085_v12 = vmul.f32 %v34890_v6, %v18807_v22  ;;  %v26984_v57 = vpack.c.bf16 %v19281_v17, %v19280_v24  ;;  %v20333_v30 = vld [vmem:[%s35154_s12] ss:$0 sm:$0xff] }
 0xd36   :  { %v19283_v25 = vmax.f32 %v19219_v58, 0.0  ;;  %v19157_v15 = vadd.f32 %v34895_v23, %v19086_v13 }
 0xd37   :  { %v19282_v62 = vmax.f32 %v19218_v56, 0.0  ;;  %v19156_v31 = vadd.f32 %v34895_v23, %v19085_v12  ;;  %v26036_v8 = vpop.f32.mrb[126].mxu0  ;;  %26985 = vmatprep.subr.bf16.mxu1 %v26984_v57 }
 0xd38   :  { %v19221_v54 = vadd.f32 %v19157_v15, %v12965_v21  ;;  %v19088_v40 = vmul.f32 %v26036_v8, %v34890_v6  ;;  %v18817_v36 = vpop.f32.mrb[127].mxu0  ;;  %26987 = vmatpush3.bf16.msra.mxu1 %v35023_v28 }
 0xd39   :  { %v19220_v46 = vadd.f32 %v19156_v31, %v12964_v41  ;;  %v19087_v51 = vmul.f32 %v34890_v6, %v18817_v36  ;;  %v26988_v11 = vpack.c.bf16 %v19283_v25, %v19282_v62 }
 0xd3a   :  { %v19285_v50 = vmax.f32 %v19221_v54, 0.0  ;;  %v19159_v42 = vadd.f32 %v34895_v23, %v19088_v40 }
 0xd3b   :  { %v19284_v26 = vmax.f32 %v19220_v46, 0.0  ;;  %v19158_v59 = vadd.f32 %v34895_v23, %v19087_v51  ;;  %26989 = vmatprep.subr.bf16.mxu1 %v26988_v11  ;;  %v19452_v23 = vld [vmem:[%s35153_s11 + $0x8] sm:$0xff] }
 0xd3c   :  { %v19223_v27 = vadd.f32 %v19159_v42, %v12967_v18  ;;  %26991 = vmatpush3.bf16.msra.mxu1 %v35029_v16  ;;  %v27001_v16 = vpack.c.bf16 %v19452_v23, %v19451_v61 }
 0xd3d   :  { %v19222_v53 = vadd.f32 %v19158_v59, %v12966_v48  ;;  %v26992_v2 = vpack.c.bf16 %v19285_v50, %v19284_v26 }
 0xd3e   :  { %v19287_v33 = vmax.f32 %v19223_v27, 0.0 }
 0xd3f   :  { %v19286_v28 = vmax.f32 %v19222_v53, 0.0  ;;  %26993 = vmatprep.subr.bf16.mxu1 %v26992_v2 }
 0xd40   :  { %26995 = vmatpush3.bf16.msra.mxu1 %v35035_v60  ;;  %v19454_v60 = vld [vmem:[%s35153_s11 + $0x18] sm:$0xff] }
 0xd41   :  { %v26996_v6 = vpack.c.bf16 %v19287_v33, %v19286_v28  ;;  %v27004_v4 = vpack.c.bf16 %v19454_v60, %v19453_v7 }
 0xd43   :  { %26997 = vmatprep.subr.bf16.mxu1 %v26996_v6 }
 0xd44   :  { %26999 = vmatpush3.bf16.msra.mxu1 %v35041_v29  ;;  %v19455_v29 = vld [vmem:[%s35153_s11 + $0x20] sm:$0xff] }
 0xd45   :  { %27000 = vmatprep.subr.bf16.mxu1 %v28597_v37  ;;  %v27007_v49 = vpack.c.bf16 %v19456_v38, %v19455_v29 }
 0xd47   :  { %19446 = vmatmul.mubr.f32.vlgmr.msra.gmra.mrb[130].mxu1 %v34910_v9  ;;  %v19458_v9 = vld [vmem:[%s35153_s11 + $0x38] sm:$0xff]  ;;  %s28571_s11 = scalar_lea.vmem %s19552_s19, 32 }
 0xd48   :  { %27002 = vmatpush3.bf16.msra.mxu1 %v27001_v16  ;;  %v27010_v5 = vpack.c.bf16 %v19458_v9, %v19457_v0  ;;  %26069 = vmatprep.mubr.msk.f32.mxu1 %vm28598_vm0, %v28570_v44  ;;  %p28572_p0 = scmp.ne.s32.totalorder %s19552_s19, %s28571_s11  ;;  %p28577_p2 = scmp.lt.s32.totalorder %s28571_s11, %s28571_s11 }
 0xd49   :  { %27003 = vmatprep.subr.bf16.mxu1 %v28597_v37 }
 0xd4a   :  { %p28578_p3 = por %p28577_p2, %p28576_p1 }
 0xd4c   :  { %27005 = vmatpush3.bf16.msra.mxu1 %v27004_v4  ;;  %p28579_p4 = pnand %p28578_p3, %p28572_p0 }
 0xd4d   :  { %27006 = vmatprep.subr.bf16.mxu1 %v28597_v37 }
 0xd50   :  { %27008 = vmatpush3.bf16.msra.mxu1 %v27007_v49 }
 0xd51   :  { %27009 = vmatprep.subr.bf16.mxu1 %v28597_v37 }
 0xd54   :  { %27011 = vmatpush3.bf16.msra.mxu1 %v27010_v5 }
 0xd55   :  { %27012 = vmatprep.subr.bf16.mxu1 %v28597_v37 }
 0xd58   :  { %27014 = vmatpush3.bf16.msra.mxu1 %v27013_v52 }
 0xd59   :  { %27015 = vmatprep.subr.bf16.mxu1 %v28597_v37 }
 0xd5c   :  { %27017 = vmatpush3.bf16.msra.mxu1 %v27016_v1 }
 0xd5d   :  { %27018 = vmatprep.subr.bf16.mxu1 %v28597_v37 }
 0xd60   :  { %27020 = vmatpush3.bf16.msra.mxu1 %v27019_v34 }
 0xd61   :  { %27021 = vmatprep.subr.bf16.mxu1 %v28597_v37 }
 0xd64   :  { %27023 = vmatpush3.bf16.msra.mxu1 %v27022_v32 }
 0xdda   :  { %v22526_v17 = vpop.f32.mrb[128].mxu1 }
 0xddb   :  { %v22527_v47 = vpop.f32.mrb[129].mxu1 }
 0xddc   :  { %v22528_v24 = vadd.f32 %v22527_v47, %v22526_v17 }
 0xe1a   :  { %v22561_v55 = vpop.f32.mrb[130].mxu1 }
 0xe1b   :  { %v22562_v35 = vpop.f32.mrb[131].mxu1 }
 0xe1c   :  { %v22563_v10 = vadd.f32 %v22562_v35, %v22561_v55 }
 0xe1e   :  { %v19448_v58 = vadd.f32 %v22563_v10, %v22528_v24 }
 0xe20   :  { %26070 = vmatmul.mubr.f32.vlgmr.msra.gmra.mrb[132].mxu1 %v19448_v58 }
 0xef3   :  { %v19540_v13 = vpop.f32.mrb[132].mxu1 }
 0xef4   :  { %v19541_v22 = vadd.f32 %v20333_v30, %v19540_v13  ;;  %v26071_v56 = vpop.f32.mrb[133].mxu1 }
 0xef6   :  { %19544 = vst [vmem:[#allocation5] sm:$0x3] %v19541_v22 }
 0xef7   :  { %28582 = shalt.err (!%p28579_p4)
}
 0xef8   :  { %s28583_s22 = scalar_lea.hbm %s35155_s13, 32 }
 0xef9   :  { %p28584_p5 = scmp.ne.s32.totalorder %s35155_s13, %s28583_s22  ;;  %p28587_p6 = scmp.lt.u32.totalorder %s28583_s22, %s35155_s13 }
 0xefb   :  { %p28589_p7 = pnand %p28587_p6, %p28584_p5 }
 0xefd   :  { %28592 = shalt.err (!%p28589_p7)
}
 0xefe   :  { %19554 = dma.vmem_to_hbm [thread:$0]  %s19552_s19, 32, %s35155_s13, [#allocation6]  }
 0xeff   :  { %28593 = dma.done.wait [#allocation6], 32  }
 0xf00   :  { %28594 = vsyncadd [#allocation6], 4294967264 }
 0xf01   :  { %19558 = vsyncpa [#allocation6], 1 }

</bundles_post_ra>
